<compile_context>
chip_gen: v7x
topology: tpu7x:2x2x1
jax: 0.10.0
libtpu: 0.0.40
codegen_flags: <defaults>
</compile_context>

<pallas_src>
import functools
import itertools
import math

import numpy as np

import jax
import jax.numpy as jnp
from jax import lax
from jax.experimental import pallas as pl
from jax.experimental.pallas import tpu as pltpu

BN_EPS = 1e-5
LN_EPS = 1e-6


# ---------------------------------------------------------------------------
# In-kernel helpers
# ---------------------------------------------------------------------------
def _gelu(x):
    # TODO(synk): PyTorch nn.GELU defaults to the exact erf formulation; the tanh
    # approximation is used since erf has no guaranteed Mosaic lowering.
    c = math.sqrt(2.0 / math.pi)
    return 0.5 * x * (1.0 + jnp.tanh(c * (x + 0.044715 * x * x * x)))


def _layernorm(x, g, b, eps=LN_EPS):
    mu = jnp.mean(x, axis=-1, keepdims=True)
    xc = x - mu
    var = jnp.mean(xc * xc, axis=-1, keepdims=True)
    return xc * lax.rsqrt(var + eps) * g + b


def _bf16(x):
    return x.astype(jnp.bfloat16)


def _dwconv3x3_tokens(pad_ref, t, w9_ref, N, W):
    """Depthwise 3x3 conv (padding=1) on row-major tokens t:(N, Ch).

    Uses shifted static slices of a zero-padded VMEM scratch pad_ref of shape
    (N + 2*(W+1), Ch); column-wrap taps are masked with an iota-based mask.
    Returns the raw convolution accumulation (no BN / activation).
    """
    P = W + 1
    Ch = t.shape[1]
    # Only the borders need zeroing -- the data region is fully overwritten below.
    pad_ref[0:P, :] = jnp.zeros((P, Ch), jnp.float32)
    pad_ref[P + N:P + N + P, :] = jnp.zeros((P, Ch), jnp.float32)
    pad_ref[P:P + N, :] = t

    col = lax.broadcasted_iota(jnp.int32, (N, 1), 0) % W
    not_left = col > 0
    not_right = col < W - 1
    w9 = w9_ref[...]                                             # (9, Ch)

    acc = jnp.zeros_like(t)
    tap_idx = 0
    for dy in (-1, 0, 1):
        for dx in (-1, 0, 1):
            if dy == 0 and dx == 0:
                tap = t                                          # center: reuse value
            else:
                off = P + dy * W + dx
                tap = pad_ref[off:off + N, :]
            if dx == -1:
                tap = jnp.where(not_left, tap, 0.0)
            elif dx == 1:
                tap = jnp.where(not_right, tap, 0.0)
            acc = acc + tap * w9[tap_idx:tap_idx + 1, :]
            tap_idx += 1
    return acc


def _const_spec(shape):
    n = len(shape)
    return pl.BlockSpec(shape, lambda b, _n=n: (0,) * _n)


# ---------------------------------------------------------------------------
# Kernel 1: fused InvertResidualBlock (per batch element)
# ---------------------------------------------------------------------------
def _invres_kernel(x_ref, w1_ref, s1_ref, b1_ref, wdw_ref, sdw_ref, bdw_ref,
                   w2_ref, s2_ref, b2_ref, o_ref, pad_ref, *, N, W):
    x = x_ref[0]                                                 # (N, C) f32
    # pwconv1 + BN + GELU
    h = jnp.dot(_bf16(x), w1_ref[...], preferred_element_type=jnp.float32)
    h = _gelu(h * s1_ref[...] + b1_ref[...])                     # (N, hid)
    # depthwise 3x3 + BN + GELU
    dw = _dwconv3x3_tokens(pad_ref, h, wdw_ref, N, W)
    h2 = _gelu(dw * sdw_ref[...] + bdw_ref[...])
    # pwconv2 + BN, residual
    y = jnp.dot(_bf16(h2), w2_ref[...], preferred_element_type=jnp.float32)
    y = y * s2_ref[...] + b2_ref[...]
    o_ref[0] = (x + y).astype(o_ref.dtype)


def invres_block(x, p, *, W):
    B, N, C = x.shape
    hid = p["w1"].shape[1]
    kern = functools.partial(_invres_kernel, N=N, W=W)
    return pl.pallas_call(
        kern,
        out_shape=jax.ShapeDtypeStruct((B, N, C), jnp.float32),
        grid=(B,),
        in_specs=[
            pl.BlockSpec((1, N, C), lambda b: (b, 0, 0)),
            _const_spec((C, hid)), _const_spec((1, hid)), _const_spec((1, hid)),
            _const_spec((9, hid)), _const_spec((1, hid)), _const_spec((1, hid)),
            _const_spec((hid, C)), _const_spec((1, C)), _const_spec((1, C)),
        ],
        out_specs=pl.BlockSpec((1, N, C), lambda b: (b, 0, 0)),
        scratch_shapes=[pltpu.VMEM((N + 2 * (W + 1), hid), jnp.float32)],
        compiler_params=pltpu.CompilerParams(dimension_semantics=("parallel",)),
    )(x, p["w1"], p["s1"], p["b1"], p["wdw9"], p["sdw"], p["bdw"],
      p["w2"], p["s2"], p["b2"])


# ---------------------------------------------------------------------------
# Kernel 2: fused ModifiedTransformer block (per batch element)
# ---------------------------------------------------------------------------
def _transformer_kernel(x_ref, ln1g_ref, ln1b_ref, wpw_ref, bpw_ref,
                        wdw_ref, sdw_ref, bdw_ref, wproj_ref, bproj_ref,
                        ab_ref, ln2g_ref, ln2b_ref, wfc1_ref, bfc1_ref,
                        wfc2_ref, bfc2_ref, o_ref, pad_ref,
                        *, N, W, nh, kd, dv, scale):
    x = x_ref[0]                                                 # (N, C) f32
    C = x.shape[-1]

    # --- attention branch: attn(LN1(x)) -----------------------------------
    xn = _layernorm(x, ln1g_ref[...], ln1b_ref[...])
    h = jnp.dot(_bf16(xn), wpw_ref[...],
                preferred_element_type=jnp.float32) + bpw_ref[...]   # (N, dim_h)
    nk = nh * kd
    q = h[:, :nk]                                                # (N, nh*kd)
    k = h[:, nk:2 * nk]                                          # (N, nh*kd)
    v1 = h[:, 2 * nk:]                                           # (N, v_dim)

    # v1 = v1 + GELU(dwconv_bn(v1))
    dw = _dwconv3x3_tokens(pad_ref, v1, wdw_ref, N, W)
    v1 = v1 + _gelu(dw * sdw_ref[...] + bdw_ref[...])

    # per-head attention, output projection folded into the head loop
    wproj = wproj_ref[...]                                       # (v_dim, C) bf16
    attn_acc = jnp.zeros((N, C), jnp.float32)
    for hh in range(nh):
        qh = _bf16(q[:, hh * kd:(hh + 1) * kd])                  # (N, kd)
        kh = _bf16(k[:, hh * kd:(hh + 1) * kd])                  # (N, kd)
        vh = v1[:, hh * dv:(hh + 1) * dv]                        # (N, dv)
        s = lax.dot_general(qh, kh, (((1,), (1,)), ((), ())),
                            preferred_element_type=jnp.float32)  # (N, N)
        s = s * scale + ab_ref[hh]
        s = s - jnp.max(s, axis=-1, keepdims=True)
        p = jnp.exp(s)
        p = p * pl.reciprocal(jnp.sum(p, axis=-1, keepdims=True), approx=True)
        oh = jnp.dot(_bf16(p), _bf16(vh),
                     preferred_element_type=jnp.float32)         # (N, dv)
        attn_acc = attn_acc + jnp.dot(_bf16(oh),
                                      wproj[hh * dv:(hh + 1) * dv, :],
                                      preferred_element_type=jnp.float32)
    x = x + attn_acc + bproj_ref[...]

    # --- MLP branch: mlp(LN2(x)) -------------------------------------------
    xn2 = _layernorm(x, ln2g_ref[...], ln2b_ref[...])
    m = _gelu(jnp.dot(_bf16(xn2), wfc1_ref[...],
                      preferred_element_type=jnp.float32) + bfc1_ref[...])
    y = jnp.dot(_bf16(m), wfc2_ref[...],
                preferred_element_type=jnp.float32) + bfc2_ref[...]
    o_ref[0] = (x + y).astype(o_ref.dtype)


def transformer_block(x, p, cfg):
    B, N, C = x.shape
    nh, kd = cfg["num_heads"], cfg["key_dim"]
    dv = cfg["attn_ratio"] * kd
    res = cfg["resolution"]
    hidden = C * cfg["mlp_ratio"]
    v_dim = nh * dv
    dim_h = 2 * nh * kd + v_dim
    a = p["attn"]
    kern = functools.partial(_transformer_kernel, N=N, W=res, nh=nh, kd=kd,
                             dv=dv, scale=float(kd) ** -0.5)
    return pl.pallas_call(
        kern,
        out_shape=jax.ShapeDtypeStruct((B, N, C), jnp.float32),
        grid=(B,),
        in_specs=[
            pl.BlockSpec((1, N, C), lambda b: (b, 0, 0)),
            _const_spec((1, C)), _const_spec((1, C)),
            _const_spec((C, dim_h)), _const_spec((1, dim_h)),
            _const_spec((9, v_dim)), _const_spec((1, v_dim)), _const_spec((1, v_dim)),
            _const_spec((v_dim, C)), _const_spec((1, C)),
            _const_spec((nh, N, N)),
            _const_spec((1, C)), _const_spec((1, C)),
            _const_spec((C, hidden)), _const_spec((1, hidden)),
            _const_spec((hidden, C)), _const_spec((1, C)),
        ],
        out_specs=pl.BlockSpec((1, N, C), lambda b: (b, 0, 0)),
        scratch_shapes=[pltpu.VMEM((N + 2 * (res + 1), v_dim), jnp.float32)],
        compiler_params=pltpu.CompilerParams(dimension_semantics=("parallel",)),
    )(x, p["ln1_g"], p["ln1_b"], a["w_pw"], a["b_pw"], a["wdw9"], a["s_dw"],
      a["b_dw"], a["w_proj"], a["b_proj"], a["ab"], p["ln2_g"], p["ln2_b"],
      p["w_fc1"], p["b_fc1"], p["w_fc2"], p["b_fc2"])


# ---------------------------------------------------------------------------
# Kernel 3: tail (convTrans-bias+BN fold, proj+h_sigmoid gate, concat-free fuse)
# ---------------------------------------------------------------------------
def _tail_kernel(xup_ref, loc_ref, cs_ref, cb_ref, wp_ref, ps_ref, pb_ref,
                 wfa_ref, wfb_ref, fs_ref, fb_ref, o_ref):
    a = xup_ref[0] * cs_ref[...] + cb_ref[...]                   # (M, C)
    ga = jnp.dot(_bf16(a), wp_ref[...], preferred_element_type=jnp.float32)
    ga = ga * ps_ref[...] + pb_ref[...]
    ga = jnp.clip(ga + 3.0, 0.0, 6.0) * (1.0 / 6.0)              # h_sigmoid
    x_ = loc_ref[0] * ga
    # cat((x, x_), 1) @ W_fuse  ==  x @ W_fuse[:C] + x_ @ W_fuse[C:]
    y = jnp.dot(_bf16(a), wfa_ref[...], preferred_element_type=jnp.float32)
    y = y + jnp.dot(_bf16(x_), wfb_ref[...], preferred_element_type=jnp.float32)
    o_ref[0] = (y * fs_ref[...] + fb_ref[...]).astype(o_ref.dtype)


def tail_fuse(xup, loc, params):
    B, M, C = xup.shape
    return pl.pallas_call(
        _tail_kernel,
        out_shape=jax.ShapeDtypeStruct((B, M, C), jnp.float32),
        grid=(B,),
        in_specs=[
            pl.BlockSpec((1, M, C), lambda b: (b, 0, 0)),
            pl.BlockSpec((1, M, C), lambda b: (b, 0, 0)),
            _const_spec((1, C)), _const_spec((1, C)),
            _const_spec((C, C)), _const_spec((1, C)), _const_spec((1, C)),
            _const_spec((C, C)), _const_spec((C, C)),
            _const_spec((1, C)), _const_spec((1, C)),
        ],
        out_specs=pl.BlockSpec((1, M, C), lambda b: (b, 0, 0)),
        compiler_params=pltpu.CompilerParams(dimension_semantics=("parallel",)),
    )(xup, loc, params["ct_scale"], params["ct_shift"], params["proj_w"],
      params["proj_s"], params["proj_b"], params["wf_a"], params["wf_b"],
      params["fuse_s"], params["fuse_b"])


# ---------------------------------------------------------------------------
# Module composition (only layout glue left in XLA: boundary transposes,
# 2x2 avg-pool and the depthwise ConvTranspose upsample interleave)
# ---------------------------------------------------------------------------
def sbcformer_block(global_x, local_x, params, cfg):
    gx = jnp.transpose(global_x, (0, 2, 3, 1)).astype(jnp.float32)   # NHWC
    lx = jnp.transpose(local_x, (0, 2, 3, 1)).astype(jnp.float32)
    B, H, W, C = gx.shape
    res, pr = cfg["resolution"], cfg["pool_ratio"]

    x = gx.reshape(B, H * W, C)                                   # tokens
    for p in params["invres"]:
        x = invres_block(x, p, W=W)

    if pr > 1:  # AvgPool2d(pr, pr)
        x = x.reshape(B, res, pr, res, pr, C).mean(axis=(2, 4)).reshape(B, res * res, C)

    for p in params["mixer"]:
        x = invres_block(x, p, W=res)

    for p in params["trans"]:
        x = transformer_block(x, p, cfg)

    if pr > 1:
        # depthwise ConvTranspose2d with kernel == stride == pr (non-overlapping);
        # bias + BatchNorm are folded into the tail kernel's per-channel scale/shift.
        x4 = x.reshape(B, res, res, C)
        xup = jnp.einsum("bhwc,cpq->bhpwqc", x4,
                         params["convtrans_w"]).reshape(B, H * W, C)
    else:
        xup = x

    out = tail_fuse(xup, lx.reshape(B, H * W, C), params)
    return jnp.transpose(out.reshape(B, H, W, C), (0, 3, 1, 2))   # back to NCHW


# ---------------------------------------------------------------------------
# Deterministic parameter initialization (synthetic, shapes per the module)
# ---------------------------------------------------------------------------
class KeyGen:
    def __init__(self, key):
        self.key = key

    def __call__(self):
        self.key, sub = jax.random.split(self.key)
        return sub


def fold_bn(c):
    # fresh BatchNorm (weight=1, bias=0, running stats 0/1) in eval mode
    scale = jnp.full((1, c), 1.0 / np.sqrt(1.0 + BN_EPS), jnp.float32)
    shift = jnp.zeros((1, c), jnp.float32)
    return scale, shift


def init_invres(kg, dim, hid):
    s1, b1 = fold_bn(hid)
    sdw, bdw = fold_bn(hid)
    s2, b2 = fold_bn(dim)
    return {
        "w1": ((dim ** -0.5) * jax.random.normal(kg(), (dim, hid), jnp.float32)
               ).astype(jnp.bfloat16),
        "s1": s1, "b1": b1,
        "wdw9": (1.0 / 3.0) * jax.random.normal(kg(), (9, hid), jnp.float32),
        "sdw": sdw, "bdw": bdw,
        "w2": ((hid ** -0.5) * jax.random.normal(kg(), (hid, dim), jnp.float32)
               ).astype(jnp.bfloat16),
        "s2": s2, "b2": b2,
    }


def init_attention(kg, cfg):
    dim, nh, kd = cfg["dim"], cfg["num_heads"], cfg["key_dim"]
    dv = cfg["attn_ratio"] * kd
    qk_dim, v_dim = 2 * nh * kd, nh * dv
    dim_h = qk_dim + v_dim
    res = cfg["resolution"]
    N = res * res

    # relative-position attention bias table + gather indices (eval-mode `self.ab`)
    points = list(itertools.product(range(res), range(res)))
    offsets, idxs = {}, []
    for p1 in points:
        for p2 in points:
            off = (abs(p1[0] - p2[0]), abs(p1[1] - p2[1]))
            if off not in offsets:
                offsets[off] = len(offsets)
            idxs.append(offsets[off])
    idxs = np.asarray(idxs, np.int32).reshape(N, N)
    biases = 0.02 * jax.random.normal(kg(), (nh, len(offsets)), jnp.float32)
    attn_bias = biases[:, idxs]                                   # (nh, N, N)

    sdw, bdw = fold_bn(v_dim)
    return {
        "w_pw": ((dim ** -0.5) * jax.random.normal(kg(), (dim, dim_h), jnp.float32)
                 ).astype(jnp.bfloat16),
        "b_pw": 0.01 * jax.random.normal(kg(), (1, dim_h), jnp.float32),
        "wdw9": (1.0 / 3.0) * jax.random.normal(kg(), (9, v_dim), jnp.float32),
        "s_dw": sdw, "b_dw": bdw,
        "w_proj": ((v_dim ** -0.5) * jax.random.normal(kg(), (v_dim, dim), jnp.float32)
                   ).astype(jnp.bfloat16),
        "b_proj": 0.01 * jax.random.normal(kg(), (1, dim), jnp.float32),
        "ab": attn_bias,
    }


def init_transformer(kg, cfg):
    dim = cfg["dim"]
    hidden = dim * cfg["mlp_ratio"]
    return {
        "ln1_g": jnp.ones((1, dim), jnp.float32), "ln1_b": jnp.zeros((1, dim), jnp.float32),
        "ln2_g": jnp.ones((1, dim), jnp.float32), "ln2_b": jnp.zeros((1, dim), jnp.float32),
        "attn": init_attention(kg, cfg),
        "w_fc1": ((dim ** -0.5) * jax.random.normal(kg(), (dim, hidden), jnp.float32)
                  ).astype(jnp.bfloat16),
        "b_fc1": 0.01 * jax.random.normal(kg(), (1, hidden), jnp.float32),
        "w_fc2": ((hidden ** -0.5) * jax.random.normal(kg(), (hidden, dim), jnp.float32)
                  ).astype(jnp.bfloat16),
        "b_fc2": 0.01 * jax.random.normal(kg(), (1, dim), jnp.float32),
    }


def init_params(key, cfg):
    kg = KeyGen(key)
    dim, pr = cfg["dim"], cfg["pool_ratio"]
    params = {
        "invres": [init_invres(kg, dim, int(dim * cfg["invres_ratio"]))
                   for _ in range(cfg["depth_invres"])],
        "mixer": [init_invres(kg, dim, dim * 2) for _ in range(cfg["depth_mixer"])],
        "trans": [init_transformer(kg, cfg) for _ in range(cfg["depth_mattn"])],
    }
    if pr > 1:
        params["convtrans_w"] = (1.0 / pr) * jax.random.normal(kg(), (dim, pr, pr), jnp.float32)
        ct_b = 0.01 * jax.random.normal(kg(), (1, dim), jnp.float32)
        ns, nb = fold_bn(dim)                    # BatchNorm2d after convTrans (eval)
        params["ct_scale"] = ns
        params["ct_shift"] = ct_b * ns + nb      # fold ConvTranspose bias into BN
    else:
        params["ct_scale"] = jnp.ones((1, dim), jnp.float32)
        params["ct_shift"] = jnp.zeros((1, dim), jnp.float32)
    params["proj_w"] = ((dim ** -0.5) * jax.random.normal(kg(), (dim, dim), jnp.float32)
                        ).astype(jnp.bfloat16)
    params["proj_s"], params["proj_b"] = fold_bn(dim)
    fuse_w = ((2 * dim) ** -0.5) * jax.random.normal(kg(), (2 * dim, dim), jnp.float32)
    params["wf_a"] = fuse_w[:dim, :].astype(jnp.bfloat16)         # rows acting on x
    params["wf_b"] = fuse_w[dim:, :].astype(jnp.bfloat16)         # rows acting on x_
    params["fuse_s"], params["fuse_b"] = fold_bn(dim)
    return params


# ---------------------------------------------------------------------------
if __name__ == "__main__":
    cfg = dict(dim=32, depth_invres=2, depth_mattn=2, depth_mixer=2, key_dim=8,
               num_heads=4, mlp_ratio=2, attn_ratio=2, pool_ratio=2,
               invres_ratio=2, resolution=7)

    key = jax.random.PRNGKey(0)
    k1, k2, k3 = jax.random.split(key, 3)
    B = 2
    HW = cfg["resolution"] * cfg["pool_ratio"]          # 14
    global_x = jax.random.normal(k1, (B, cfg["dim"], HW, HW), jnp.float32)
    local_x = jax.random.normal(k2, (B, cfg["dim"], HW, HW), jnp.float32)
    params = init_params(k3, cfg)

    fwd = jax.jit(functools.partial(sbcformer_block, cfg=cfg))
    out = fwd(global_x, local_x, params)
    jax.block_until_ready(out)

    assert out.shape == (B, cfg["dim"], HW, HW), out.shape
    assert bool(jnp.all(jnp.isfinite(out)))
    print("KERNEL_OK")
</pallas_src>

<mosaic_0001>
module attributes {stable_mosaic.version = 11 : i64} {
  func.func @_invres_kernel(%arg0: i32, %arg1: memref<1x196x32xf32, #tpu.memory_space<vmem>>, %arg2: memref<32x64xbf16, #tpu.memory_space<vmem>>, %arg3: memref<1x64xf32, #tpu.memory_space<vmem>>, %arg4: memref<1x64xf32, #tpu.memory_space<vmem>>, %arg5: memref<9x64xf32, #tpu.memory_space<vmem>>, %arg6: memref<1x64xf32, #tpu.memory_space<vmem>>, %arg7: memref<1x64xf32, #tpu.memory_space<vmem>>, %arg8: memref<64x32xbf16, #tpu.memory_space<vmem>>, %arg9: memref<1x32xf32, #tpu.memory_space<vmem>>, %arg10: memref<1x32xf32, #tpu.memory_space<vmem>>, %arg11: memref<1x196x32xf32, #tpu.memory_space<vmem>>, %arg12: memref<226x64xf32, #tpu.memory_space<vmem>>) attributes {dimension_semantics = [#tpu.dimension_semantics<parallel>], iteration_bounds = array<i64: 2>, scalar_prefetch = 0 : i64, scratch_operands = 1 : i64, tpu.core_type = #tpu.core_type<tc>, window_params = [{transform_indices = @transform_0, window_bounds = array<i64: 1, 196, 32>}, {pipeline_mode = #tpu.pipeline_mode<synchronous>, transform_indices = @transform_1, window_bounds = array<i64: 32, 64>}, {pipeline_mode = #tpu.pipeline_mode<synchronous>, transform_indices = @transform_2, window_bounds = array<i64: 1, 64>}, {pipeline_mode = #tpu.pipeline_mode<synchronous>, transform_indices = @transform_3, window_bounds = array<i64: 1, 64>}, {pipeline_mode = #tpu.pipeline_mode<synchronous>, transform_indices = @transform_4, window_bounds = array<i64: 9, 64>}, {pipeline_mode = #tpu.pipeline_mode<synchronous>, transform_indices = @transform_5, window_bounds = array<i64: 1, 64>}, {pipeline_mode = #tpu.pipeline_mode<synchronous>, transform_indices = @transform_6, window_bounds = array<i64: 1, 64>}, {pipeline_mode = #tpu.pipeline_mode<synchronous>, transform_indices = @transform_7, window_bounds = array<i64: 64, 32>}, {pipeline_mode = #tpu.pipeline_mode<synchronous>, transform_indices = @transform_8, window_bounds = array<i64: 1, 32>}, {pipeline_mode = #tpu.pipeline_mode<synchronous>, transform_indices = @transform_9, window_bounds = array<i64: 1, 32>}, {transform_indices = @transform_10, window_bounds = array<i64: 1, 196, 32>}]} {
    %c0 = arith.constant 0 : index
    %c0_0 = arith.constant 0 : index
    %c0_1 = arith.constant 0 : index
    %0 = vector.load %arg1[%c0, %c0_0, %c0_1] : memref<1x196x32xf32, #tpu.memory_space<vmem>>, vector<1x196x32xf32>
    %1 = vector.shape_cast %0 : vector<1x196x32xf32> to vector<196x32xf32>
    %2 = arith.truncf %1 : vector<196x32xf32> to vector<196x32xbf16>
    %c0_2 = arith.constant 0 : index
    %c0_3 = arith.constant 0 : index
    %3 = vector.load %arg2[%c0_2, %c0_3] : memref<32x64xbf16, #tpu.memory_space<vmem>>, vector<32x64xbf16>
    %cst = arith.constant dense<0.000000e+00> : vector<196x64xf32>
    %4 = tpu.matmul %2, %3, %cst {dimension_numbers = #tpu.dot_dimension_numbers<[1], [0], [0], [1], [0, 0, 1, 1], [], []>} : vector<196x32xbf16>, vector<32x64xbf16>, vector<196x64xf32> -> vector<196x64xf32>
    %c0_4 = arith.constant 0 : index
    %c0_5 = arith.constant 0 : index
    %5 = vector.load %arg3[%c0_4, %c0_5] : memref<1x64xf32, #tpu.memory_space<vmem>>, vector<1x64xf32>
    %6 = vector.broadcast %5 : vector<1x64xf32> to vector<196x64xf32>
    %7 = arith.mulf %4, %6 : vector<196x64xf32>
    %c0_6 = arith.constant 0 : index
    %c0_7 = arith.constant 0 : index
    %8 = vector.load %arg4[%c0_6, %c0_7] : memref<1x64xf32, #tpu.memory_space<vmem>>, vector<1x64xf32>
    %9 = vector.broadcast %8 : vector<1x64xf32> to vector<196x64xf32>
    %10 = arith.addf %7, %9 : vector<196x64xf32>
    %cst_8 = arith.constant 5.000000e-01 : f32
    %11 = vector.broadcast %cst_8 : f32 to vector<196x64xf32>
    %12 = arith.mulf %11, %10 : vector<196x64xf32>
    %cst_9 = arith.constant 4.471500e-02 : f32
    %13 = vector.broadcast %cst_9 : f32 to vector<196x64xf32>
    %14 = arith.mulf %13, %10 : vector<196x64xf32>
    %15 = arith.mulf %14, %10 : vector<196x64xf32>
    %16 = arith.mulf %15, %10 : vector<196x64xf32>
    %17 = arith.addf %10, %16 : vector<196x64xf32>
    %cst_10 = arith.constant 0.797884583 : f32
    %18 = vector.broadcast %cst_10 : f32 to vector<196x64xf32>
    %19 = arith.mulf %18, %17 : vector<196x64xf32>
    %20 = math.tanh %19 : vector<196x64xf32>
    %cst_11 = arith.constant 1.000000e+00 : f32
    %21 = vector.broadcast %cst_11 : f32 to vector<196x64xf32>
    %22 = arith.addf %21, %20 : vector<196x64xf32>
    %23 = arith.mulf %12, %22 : vector<196x64xf32>
    %cst_12 = arith.constant 0.000000e+00 : f32
    %24 = vector.broadcast %cst_12 : f32 to vector<15x64xf32>
    %c0_13 = arith.constant 0 : index
    %c0_14 = arith.constant 0 : index
    %25 = vector.load %arg12[%c0_13, %c0_14] : memref<226x64xf32, #tpu.memory_space<vmem>>, vector<15x64xf32>
    tpu.vector_store %arg12[%c0_13, %c0_14], %24 {strides = array<i32>} : memref<226x64xf32, #tpu.memory_space<vmem>>, vector<15x64xf32>,
    %cst_15 = arith.constant 0.000000e+00 : f32
    %26 = vector.broadcast %cst_15 : f32 to vector<15x64xf32>
    %c211 = arith.constant 211 : index
    %c0_16 = arith.constant 0 : index
    %27 = vector.load %arg12[%c211, %c0_16] : memref<226x64xf32, #tpu.memory_space<vmem>>, vector<15x64xf32>
    tpu.vector_store %arg12[%c211, %c0_16], %26 {strides = array<i32>} : memref<226x64xf32, #tpu.memory_space<vmem>>, vector<15x64xf32>,
    %c15 = arith.constant 15 : index
    %c0_17 = arith.constant 0 : index
    %28 = vector.load %arg12[%c15, %c0_17] : memref<226x64xf32, #tpu.memory_space<vmem>>, vector<196x64xf32>
    tpu.vector_store %arg12[%c15, %c0_17], %23 {strides = array<i32>} : memref<226x64xf32, #tpu.memory_space<vmem>>, vector<196x64xf32>,
    %29 = tpu.iota {dimensions = array<i32: 0>} : vector<196x1xi32>
    %c14_i32 = arith.constant 14 : i32
    %c0_i32 = arith.constant 0 : i32
    %30 = arith.cmpi eq, %c14_i32, %c0_i32 : i32
    %c1_i32 = arith.constant 1 : i32
    %31 = arith.select %30, %c1_i32, %c14_i32 : i32
    %32 = vector.broadcast %31 : i32 to vector<196x1xi32>
    %33 = arith.remsi %29, %32 : vector<196x1xi32>
    %c0_i32_18 = arith.constant 0 : i32
    %34 = vector.broadcast %c0_i32_18 : i32 to vector<196x1xi32>
    %35 = arith.cmpi ne, %33, %34 : vector<196x1xi32>
    %c0_i32_19 = arith.constant 0 : i32
    %36 = vector.broadcast %c0_i32_19 : i32 to vector<196x1xi32>
    %37 = arith.cmpi slt, %33, %36 : vector<196x1xi32>
    %c0_i32_20 = arith.constant 0 : i32
    %38 = arith.cmpi slt, %31, %c0_i32_20 : i32
    %39 = vector.broadcast %38 : i1 to vector<196x1xi1>
    %40 = vector.broadcast %39 : vector<196x1xi1> to vector<196x1xi1>
    %41 = arith.xori %37, %40 : vector<196x1xi1>
    %42 = arith.andi %41, %35 : vector<196x1xi1>
    %43 = vector.broadcast %31 : i32 to vector<196x1xi32>
    %44 = arith.addi %33, %43 : vector<196x1xi32>
    %45 = arith.select %42, %44, %33 : vector<196x1xi1>, vector<196x1xi32>
    %c0_i32_21 = arith.constant 0 : i32
    %46 = vector.broadcast %c0_i32_21 : i32 to vector<196x1xi32>
    %47 = arith.cmpi sgt, %45, %46 : vector<196x1xi32>
    %c13_i32 = arith.constant 13 : i32
    %48 = vector.broadcast %c13_i32 : i32 to vector<196x1xi32>
    %49 = arith.cmpi slt, %45, %48 : vector<196x1xi32>
    %c0_22 = arith.constant 0 : index
    %c0_23 = arith.constant 0 : index
    %50 = vector.load %arg5[%c0_22, %c0_23] : memref<9x64xf32, #tpu.memory_space<vmem>>, vector<9x64xf32>
    %cst_24 = arith.constant 0.000000e+00 : f32
    %51 = vector.broadcast %cst_24 : f32 to vector<196x64xf32>
    %c0_25 = arith.constant 0 : index
    %c0_26 = arith.constant 0 : index
    %52 = vector.load %arg12[%c0_25, %c0_26] : memref<226x64xf32, #tpu.memory_space<vmem>>, vector<196x64xf32>
    %cst_27 = arith.constant 0.000000e+00 : f32
    %53 = vector.shape_cast %47 : vector<196x1xi1> to vector<196x1xi1>
    %54 = vector.broadcast %53 : vector<196x1xi1> to vector<196x64xi1>
    %55 = vector.broadcast %cst_27 : f32 to vector<196x64xf32>
    %56 = arith.select %54, %52, %55 : vector<196x64xi1>, vector<196x64xf32>
    %57 = vector.extract_strided_slice %50 {offsets = [0, 0], sizes = [1, 64], strides = [1, 1]} : vector<9x64xf32> to vector<1x64xf32>
    %58 = vector.broadcast %57 : vector<1x64xf32> to vector<196x64xf32>
    %59 = arith.mulf %56, %58 : vector<196x64xf32>
    %60 = arith.addf %51, %59 : vector<196x64xf32>
    %c1 = arith.constant 1 : index
    %c0_28 = arith.constant 0 : index
    %61 = vector.load %arg12[%c1, %c0_28] : memref<226x64xf32, #tpu.memory_space<vmem>>, vector<196x64xf32>
    %62 = vector.extract_strided_slice %50 {offsets = [1, 0], sizes = [1, 64], strides = [1, 1]} : vector<9x64xf32> to vector<1x64xf32>
    %63 = vector.broadcast %62 : vector<1x64xf32> to vector<196x64xf32>
    %64 = arith.mulf %61, %63 : vector<196x64xf32>
    %65 = arith.addf %60, %64 : vector<196x64xf32>
    %c2 = arith.constant 2 : index
    %c0_29 = arith.constant 0 : index
    %66 = vector.load %arg12[%c2, %c0_29] : memref<226x64xf32, #tpu.memory_space<vmem>>, vector<196x64xf32>
    %cst_30 = arith.constant 0.000000e+00 : f32
    %67 = vector.shape_cast %49 : vector<196x1xi1> to vector<196x1xi1>
    %68 = vector.broadcast %67 : vector<196x1xi1> to vector<196x64xi1>
    %69 = vector.broadcast %cst_30 : f32 to vector<196x64xf32>
    %70 = arith.select %68, %66, %69 : vector<196x64xi1>, vector<196x64xf32>
    %71 = vector.extract_strided_slice %50 {offsets = [2, 0], sizes = [1, 64], strides = [1, 1]} : vector<9x64xf32> to vector<1x64xf32>
    %72 = vector.broadcast %71 : vector<1x64xf32> to vector<196x64xf32>
    %73 = arith.mulf %70, %72 : vector<196x64xf32>
    %74 = arith.addf %65, %73 : vector<196x64xf32>
    %c14 = arith.constant 14 : index
    %c0_31 = arith.constant 0 : index
    %75 = vector.load %arg12[%c14, %c0_31] : memref<226x64xf32, #tpu.memory_space<vmem>>, vector<196x64xf32>
    %cst_32 = arith.constant 0.000000e+00 : f32
    %76 = vector.shape_cast %47 : vector<196x1xi1> to vector<196x1xi1>
    %77 = vector.broadcast %76 : vector<196x1xi1> to vector<196x64xi1>
    %78 = vector.broadcast %cst_32 : f32 to vector<196x64xf32>
    %79 = arith.select %77, %75, %78 : vector<196x64xi1>, vector<196x64xf32>
    %80 = vector.extract_strided_slice %50 {offsets = [3, 0], sizes = [1, 64], strides = [1, 1]} : vector<9x64xf32> to vector<1x64xf32>
    %81 = vector.broadcast %80 : vector<1x64xf32> to vector<196x64xf32>
    %82 = arith.mulf %79, %81 : vector<196x64xf32>
    %83 = arith.addf %74, %82 : vector<196x64xf32>
    %84 = vector.extract_strided_slice %50 {offsets = [4, 0], sizes = [1, 64], strides = [1, 1]} : vector<9x64xf32> to vector<1x64xf32>
    %85 = vector.broadcast %84 : vector<1x64xf32> to vector<196x64xf32>
    %86 = arith.mulf %23, %85 : vector<196x64xf32>
    %87 = arith.addf %83, %86 : vector<196x64xf32>
    %c16 = arith.constant 16 : index
    %c0_33 = arith.constant 0 : index
    %88 = vector.load %arg12[%c16, %c0_33] : memref<226x64xf32, #tpu.memory_space<vmem>>, vector<196x64xf32>
    %cst_34 = arith.constant 0.000000e+00 : f32
    %89 = vector.shape_cast %49 : vector<196x1xi1> to vector<196x1xi1>
    %90 = vector.broadcast %89 : vector<196x1xi1> to vector<196x64xi1>
    %91 = vector.broadcast %cst_34 : f32 to vector<196x64xf32>
    %92 = arith.select %90, %88, %91 : vector<196x64xi1>, vector<196x64xf32>
    %93 = vector.extract_strided_slice %50 {offsets = [5, 0], sizes = [1, 64], strides = [1, 1]} : vector<9x64xf32> to vector<1x64xf32>
    %94 = vector.broadcast %93 : vector<1x64xf32> to vector<196x64xf32>
    %95 = arith.mulf %92, %94 : vector<196x64xf32>
    %96 = arith.addf %87, %95 : vector<196x64xf32>
    %c28 = arith.constant 28 : index
    %c0_35 = arith.constant 0 : index
    %97 = vector.load %arg12[%c28, %c0_35] : memref<226x64xf32, #tpu.memory_space<vmem>>, vector<196x64xf32>
    %cst_36 = arith.constant 0.000000e+00 : f32
    %98 = vector.shape_cast %47 : vector<196x1xi1> to vector<196x1xi1>
    %99 = vector.broadcast %98 : vector<196x1xi1> to vector<196x64xi1>
    %100 = vector.broadcast %cst_36 : f32 to vector<196x64xf32>
    %101 = arith.select %99, %97, %100 : vector<196x64xi1>, vector<196x64xf32>
    %102 = vector.extract_strided_slice %50 {offsets = [6, 0], sizes = [1, 64], strides = [1, 1]} : vector<9x64xf32> to vector<1x64xf32>
    %103 = vector.broadcast %102 : vector<1x64xf32> to vector<196x64xf32>
    %104 = arith.mulf %101, %103 : vector<196x64xf32>
    %105 = arith.addf %96, %104 : vector<196x64xf32>
    %c29 = arith.constant 29 : index
    %c0_37 = arith.constant 0 : index
    %106 = vector.load %arg12[%c29, %c0_37] : memref<226x64xf32, #tpu.memory_space<vmem>>, vector<196x64xf32>
    %107 = vector.extract_strided_slice %50 {offsets = [7, 0], sizes = [1, 64], strides = [1, 1]} : vector<9x64xf32> to vector<1x64xf32>
    %108 = vector.broadcast %107 : vector<1x64xf32> to vector<196x64xf32>
    %109 = arith.mulf %106, %108 : vector<196x64xf32>
    %110 = arith.addf %105, %109 : vector<196x64xf32>
    %c30 = arith.constant 30 : index
    %c0_38 = arith.constant 0 : index
    %111 = vector.load %arg12[%c30, %c0_38] : memref<226x64xf32, #tpu.memory_space<vmem>>, vector<196x64xf32>
    %cst_39 = arith.constant 0.000000e+00 : f32
    %112 = vector.shape_cast %49 : vector<196x1xi1> to vector<196x1xi1>
    %113 = vector.broadcast %112 : vector<196x1xi1> to vector<196x64xi1>
    %114 = vector.broadcast %cst_39 : f32 to vector<196x64xf32>
    %115 = arith.select %113, %111, %114 : vector<196x64xi1>, vector<196x64xf32>
    %116 = vector.extract_strided_slice %50 {offsets = [8, 0], sizes = [1, 64], strides = [1, 1]} : vector<9x64xf32> to vector<1x64xf32>
    %117 = vector.broadcast %116 : vector<1x64xf32> to vector<196x64xf32>
    %118 = arith.mulf %115, %117 : vector<196x64xf32>
    %119 = arith.addf %110, %118 : vector<196x64xf32>
    %c0_40 = arith.constant 0 : index
    %c0_41 = arith.constant 0 : index
    %120 = vector.load %arg6[%c0_40, %c0_41] : memref<1x64xf32, #tpu.memory_space<vmem>>, vector<1x64xf32>
    %121 = vector.broadcast %120 : vector<1x64xf32> to vector<196x64xf32>
    %122 = arith.mulf %119, %121 : vector<196x64xf32>
    %c0_42 = arith.constant 0 : index
    %c0_43 = arith.constant 0 : index
    %123 = vector.load %arg7[%c0_42, %c0_43] : memref<1x64xf32, #tpu.memory_space<vmem>>, vector<1x64xf32>
    %124 = vector.broadcast %123 : vector<1x64xf32> to vector<196x64xf32>
    %125 = arith.addf %122, %124 : vector<196x64xf32>
    %cst_44 = arith.constant 5.000000e-01 : f32
    %126 = vector.broadcast %cst_44 : f32 to vector<196x64xf32>
    %127 = arith.mulf %126, %125 : vector<196x64xf32>
    %cst_45 = arith.constant 4.471500e-02 : f32
    %128 = vector.broadcast %cst_45 : f32 to vector<196x64xf32>
    %129 = arith.mulf %128, %125 : vector<196x64xf32>
    %130 = arith.mulf %129, %125 : vector<196x64xf32>
    %131 = arith.mulf %130, %125 : vector<196x64xf32>
    %132 = arith.addf %125, %131 : vector<196x64xf32>
    %cst_46 = arith.constant 0.797884583 : f32
    %133 = vector.broadcast %cst_46 : f32 to vector<196x64xf32>
    %134 = arith.mulf %133, %132 : vector<196x64xf32>
    %135 = math.tanh %134 : vector<196x64xf32>
    %cst_47 = arith.constant 1.000000e+00 : f32
    %136 = vector.broadcast %cst_47 : f32 to vector<196x64xf32>
    %137 = arith.addf %136, %135 : vector<196x64xf32>
    %138 = arith.mulf %127, %137 : vector<196x64xf32>
    %139 = arith.truncf %138 : vector<196x64xf32> to vector<196x64xbf16>
    %c0_48 = arith.constant 0 : index
    %c0_49 = arith.constant 0 : index
    %140 = vector.load %arg8[%c0_48, %c0_49] : memref<64x32xbf16, #tpu.memory_space<vmem>>, vector<64x32xbf16>
    %cst_50 = arith.constant dense<0.000000e+00> : vector<196x32xf32>
    %141 = tpu.matmul %139, %140, %cst_50 {dimension_numbers = #tpu.dot_dimension_numbers<[1], [0], [0], [1], [0, 0, 1, 1], [], []>} : vector<196x64xbf16>, vector<64x32xbf16>, vector<196x32xf32> -> vector<196x32xf32>
    %c0_51 = arith.constant 0 : index
    %c0_52 = arith.constant 0 : index
    %142 = vector.load %arg9[%c0_51, %c0_52] : memref<1x32xf32, #tpu.memory_space<vmem>>, vector<1x32xf32>
    %143 = vector.broadcast %142 : vector<1x32xf32> to vector<196x32xf32>
    %144 = arith.mulf %141, %143 : vector<196x32xf32>
    %c0_53 = arith.constant 0 : index
    %c0_54 = arith.constant 0 : index
    %145 = vector.load %arg10[%c0_53, %c0_54] : memref<1x32xf32, #tpu.memory_space<vmem>>, vector<1x32xf32>
    %146 = vector.broadcast %145 : vector<1x32xf32> to vector<196x32xf32>
    %147 = arith.addf %144, %146 : vector<196x32xf32>
    %148 = arith.addf %1, %147 : vector<196x32xf32>
    %c0_55 = arith.constant 0 : index
    %c0_56 = arith.constant 0 : index
    %c0_57 = arith.constant 0 : index
    %149 = vector.load %arg11[%c0_55, %c0_56, %c0_57] : memref<1x196x32xf32, #tpu.memory_space<vmem>>, vector<1x196x32xf32>
    %150 = vector.shape_cast %149 : vector<1x196x32xf32> to vector<196x32xf32>
    %151 = vector.shape_cast %148 : vector<196x32xf32> to vector<1x196x32xf32>
    tpu.vector_store %arg11[%c0_55, %c0_56, %c0_57], %151 {strides = array<i32>} : memref<1x196x32xf32, #tpu.memory_space<vmem>>, vector<1x196x32xf32>,
    return
  }
  func.func @transform_0(%arg0: i32) -> (i32, i32, i32) {
    %c0_i32 = arith.constant 0 : i32
    %c0_i32_0 = arith.constant 0 : i32
    %c0_i32_1 = arith.constant 0 : i32
    return %arg0, %c0_i32, %c0_i32_0 : i32, i32, i32
  }
  func.func @transform_1(%arg0: i32) -> (i32, i32) {
    %c0_i32 = arith.constant 0 : i32
    %c0_i32_0 = arith.constant 0 : i32
    %c0_i32_1 = arith.constant 0 : i32
    return %c0_i32, %c0_i32_0 : i32, i32
  }
  func.func @transform_2(%arg0: i32) -> (i32, i32) {
    %c0_i32 = arith.constant 0 : i32
    %c0_i32_0 = arith.constant 0 : i32
    %c0_i32_1 = arith.constant 0 : i32
    return %c0_i32, %c0_i32_0 : i32, i32
  }
  func.func @transform_3(%arg0: i32) -> (i32, i32) {
    %c0_i32 = arith.constant 0 : i32
    %c0_i32_0 = arith.constant 0 : i32
    %c0_i32_1 = arith.constant 0 : i32
    return %c0_i32, %c0_i32_0 : i32, i32
  }
  func.func @transform_4(%arg0: i32) -> (i32, i32) {
    %c0_i32 = arith.constant 0 : i32
    %c0_i32_0 = arith.constant 0 : i32
    %c0_i32_1 = arith.constant 0 : i32
    return %c0_i32, %c0_i32_0 : i32, i32
  }
  func.func @transform_5(%arg0: i32) -> (i32, i32) {
    %c0_i32 = arith.constant 0 : i32
    %c0_i32_0 = arith.constant 0 : i32
    %c0_i32_1 = arith.constant 0 : i32
    return %c0_i32, %c0_i32_0 : i32, i32
  }
  func.func @transform_6(%arg0: i32) -> (i32, i32) {
    %c0_i32 = arith.constant 0 : i32
    %c0_i32_0 = arith.constant 0 : i32
    %c0_i32_1 = arith.constant 0 : i32
    return %c0_i32, %c0_i32_0 : i32, i32
  }
  func.func @transform_7(%arg0: i32) -> (i32, i32) {
    %c0_i32 = arith.constant 0 : i32
    %c0_i32_0 = arith.constant 0 : i32
    %c0_i32_1 = arith.constant 0 : i32
    return %c0_i32, %c0_i32_0 : i32, i32
  }
  func.func @transform_8(%arg0: i32) -> (i32, i32) {
    %c0_i32 = arith.constant 0 : i32
    %c0_i32_0 = arith.constant 0 : i32
    %c0_i32_1 = arith.constant 0 : i32
    return %c0_i32, %c0_i32_0 : i32, i32
  }
  func.func @transform_9(%arg0: i32) -> (i32, i32) {
    %c0_i32 = arith.constant 0 : i32
    %c0_i32_0 = arith.constant 0 : i32
    %c0_i32_1 = arith.constant 0 : i32
    return %c0_i32, %c0_i32_0 : i32, i32
  }
  func.func @transform_10(%arg0: i32) -> (i32, i32, i32) {
    %c0_i32 = arith.constant 0 : i32
    %c0_i32_0 = arith.constant 0 : i32
    %c0_i32_1 = arith.constant 0 : i32
    return %arg0, %c0_i32, %c0_i32_0 : i32, i32, i32
  }
}

module attributes {stable_mosaic.version = 11 : i64} {
  func.func @_invres_kernel(%arg0: i32, %arg1: memref<1x49x32xf32, #tpu.memory_space<vmem>>, %arg2: memref<32x64xbf16, #tpu.memory_space<vmem>>, %arg3: memref<1x64xf32, #tpu.memory_space<vmem>>, %arg4: memref<1x64xf32, #tpu.memory_space<vmem>>, %arg5: memref<9x64xf32, #tpu.memory_space<vmem>>, %arg6: memref<1x64xf32, #tpu.memory_space<vmem>>, %arg7: memref<1x64xf32, #tpu.memory_space<vmem>>, %arg8: memref<64x32xbf16, #tpu.memory_space<vmem>>, %arg9: memref<1x32xf32, #tpu.memory_space<vmem>>, %arg10: memref<1x32xf32, #tpu.memory_space<vmem>>, %arg11: memref<1x49x32xf32, #tpu.memory_space<vmem>>, %arg12: memref<65x64xf32, #tpu.memory_space<vmem>>) attributes {dimension_semantics = [#tpu.dimension_semantics<parallel>], iteration_bounds = array<i64: 2>, scalar_prefetch = 0 : i64, scratch_operands = 1 : i64, tpu.core_type = #tpu.core_type<tc>, window_params = [{transform_indices = @transform_0, window_bounds = array<i64: 1, 49, 32>}, {pipeline_mode = #tpu.pipeline_mode<synchronous>, transform_indices = @transform_1, window_bounds = array<i64: 32, 64>}, {pipeline_mode = #tpu.pipeline_mode<synchronous>, transform_indices = @transform_2, window_bounds = array<i64: 1, 64>}, {pipeline_mode = #tpu.pipeline_mode<synchronous>, transform_indices = @transform_3, window_bounds = array<i64: 1, 64>}, {pipeline_mode = #tpu.pipeline_mode<synchronous>, transform_indices = @transform_4, window_bounds = array<i64: 9, 64>}, {pipeline_mode = #tpu.pipeline_mode<synchronous>, transform_indices = @transform_5, window_bounds = array<i64: 1, 64>}, {pipeline_mode = #tpu.pipeline_mode<synchronous>, transform_indices = @transform_6, window_bounds = array<i64: 1, 64>}, {pipeline_mode = #tpu.pipeline_mode<synchronous>, transform_indices = @transform_7, window_bounds = array<i64: 64, 32>}, {pipeline_mode = #tpu.pipeline_mode<synchronous>, transform_indices = @transform_8, window_bounds = array<i64: 1, 32>}, {pipeline_mode = #tpu.pipeline_mode<synchronous>, transform_indices = @transform_9, window_bounds = array<i64: 1, 32>}, {transform_indices = @transform_10, window_bounds = array<i64: 1, 49, 32>}]} {
    %c0 = arith.constant 0 : index
    %c0_0 = arith.constant 0 : index
    %c0_1 = arith.constant 0 : index
    %0 = vector.load %arg1[%c0, %c0_0, %c0_1] : memref<1x49x32xf32, #tpu.memory_space<vmem>>, vector<1x49x32xf32>
    %1 = vector.shape_cast %0 : vector<1x49x32xf32> to vector<49x32xf32>
    %2 = arith.truncf %1 : vector<49x32xf32> to vector<49x32xbf16>
    %c0_2 = arith.constant 0 : index
    %c0_3 = arith.constant 0 : index
    %3 = vector.load %arg2[%c0_2, %c0_3] : memref<32x64xbf16, #tpu.memory_space<vmem>>, vector<32x64xbf16>
    %cst = arith.constant dense<0.000000e+00> : vector<49x64xf32>
    %4 = tpu.matmul %2, %3, %cst {dimension_numbers = #tpu.dot_dimension_numbers<[1], [0], [0], [1], [0, 0, 1, 1], [], []>} : vector<49x32xbf16>, vector<32x64xbf16>, vector<49x64xf32> -> vector<49x64xf32>
    %c0_4 = arith.constant 0 : index
    %c0_5 = arith.constant 0 : index
    %5 = vector.load %arg3[%c0_4, %c0_5] : memref<1x64xf32, #tpu.memory_space<vmem>>, vector<1x64xf32>
    %6 = vector.broadcast %5 : vector<1x64xf32> to vector<49x64xf32>
    %7 = arith.mulf %4, %6 : vector<49x64xf32>
    %c0_6 = arith.constant 0 : index
    %c0_7 = arith.constant 0 : index
    %8 = vector.load %arg4[%c0_6, %c0_7] : memref<1x64xf32, #tpu.memory_space<vmem>>, vector<1x64xf32>
    %9 = vector.broadcast %8 : vector<1x64xf32> to vector<49x64xf32>
    %10 = arith.addf %7, %9 : vector<49x64xf32>
    %cst_8 = arith.constant 5.000000e-01 : f32
    %11 = vector.broadcast %cst_8 : f32 to vector<49x64xf32>
    %12 = arith.mulf %11, %10 : vector<49x64xf32>
    %cst_9 = arith.constant 4.471500e-02 : f32
    %13 = vector.broadcast %cst_9 : f32 to vector<49x64xf32>
    %14 = arith.mulf %13, %10 : vector<49x64xf32>
    %15 = arith.mulf %14, %10 : vector<49x64xf32>
    %16 = arith.mulf %15, %10 : vector<49x64xf32>
    %17 = arith.addf %10, %16 : vector<49x64xf32>
    %cst_10 = arith.constant 0.797884583 : f32
    %18 = vector.broadcast %cst_10 : f32 to vector<49x64xf32>
    %19 = arith.mulf %18, %17 : vector<49x64xf32>
    %20 = math.tanh %19 : vector<49x64xf32>
    %cst_11 = arith.constant 1.000000e+00 : f32
    %21 = vector.broadcast %cst_11 : f32 to vector<49x64xf32>
    %22 = arith.addf %21, %20 : vector<49x64xf32>
    %23 = arith.mulf %12, %22 : vector<49x64xf32>
    %cst_12 = arith.constant 0.000000e+00 : f32
    %24 = vector.broadcast %cst_12 : f32 to vector<8x64xf32>
    %c0_13 = arith.constant 0 : index
    %c0_14 = arith.constant 0 : index
    %25 = vector.load %arg12[%c0_13, %c0_14] : memref<65x64xf32, #tpu.memory_space<vmem>>, vector<8x64xf32>
    tpu.vector_store %arg12[%c0_13, %c0_14], %24 {strides = array<i32>} : memref<65x64xf32, #tpu.memory_space<vmem>>, vector<8x64xf32>,
    %cst_15 = arith.constant 0.000000e+00 : f32
    %26 = vector.broadcast %cst_15 : f32 to vector<8x64xf32>
    %c57 = arith.constant 57 : index
    %c0_16 = arith.constant 0 : index
    %27 = vector.load %arg12[%c57, %c0_16] : memref<65x64xf32, #tpu.memory_space<vmem>>, vector<8x64xf32>
    tpu.vector_store %arg12[%c57, %c0_16], %26 {strides = array<i32>} : memref<65x64xf32, #tpu.memory_space<vmem>>, vector<8x64xf32>,
    %c8 = arith.constant 8 : index
    %c0_17 = arith.constant 0 : index
    %28 = vector.load %arg12[%c8, %c0_17] : memref<65x64xf32, #tpu.memory_space<vmem>>, vector<49x64xf32>
    tpu.vector_store %arg12[%c8, %c0_17], %23 {strides = array<i32>} : memref<65x64xf32, #tpu.memory_space<vmem>>, vector<49x64xf32>,
    %29 = tpu.iota {dimensions = array<i32: 0>} : vector<49x1xi32>
    %c7_i32 = arith.constant 7 : i32
    %c0_i32 = arith.constant 0 : i32
    %30 = arith.cmpi eq, %c7_i32, %c0_i32 : i32
    %c1_i32 = arith.constant 1 : i32
    %31 = arith.select %30, %c1_i32, %c7_i32 : i32
    %32 = vector.broadcast %31 : i32 to vector<49x1xi32>
    %33 = arith.remsi %29, %32 : vector<49x1xi32>
    %c0_i32_18 = arith.constant 0 : i32
    %34 = vector.broadcast %c0_i32_18 : i32 to vector<49x1xi32>
    %35 = arith.cmpi ne, %33, %34 : vector<49x1xi32>
    %c0_i32_19 = arith.constant 0 : i32
    %36 = vector.broadcast %c0_i32_19 : i32 to vector<49x1xi32>
    %37 = arith.cmpi slt, %33, %36 : vector<49x1xi32>
    %c0_i32_20 = arith.constant 0 : i32
    %38 = arith.cmpi slt, %31, %c0_i32_20 : i32
    %39 = vector.broadcast %38 : i1 to vector<49x1xi1>
    %40 = vector.broadcast %39 : vector<49x1xi1> to vector<49x1xi1>
    %41 = arith.xori %37, %40 : vector<49x1xi1>
    %42 = arith.andi %41, %35 : vector<49x1xi1>
    %43 = vector.broadcast %31 : i32 to vector<49x1xi32>
    %44 = arith.addi %33, %43 : vector<49x1xi32>
    %45 = arith.select %42, %44, %33 : vector<49x1xi1>, vector<49x1xi32>
    %c0_i32_21 = arith.constant 0 : i32
    %46 = vector.broadcast %c0_i32_21 : i32 to vector<49x1xi32>
    %47 = arith.cmpi sgt, %45, %46 : vector<49x1xi32>
    %c6_i32 = arith.constant 6 : i32
    %48 = vector.broadcast %c6_i32 : i32 to vector<49x1xi32>
    %49 = arith.cmpi slt, %45, %48 : vector<49x1xi32>
    %c0_22 = arith.constant 0 : index
    %c0_23 = arith.constant 0 : index
    %50 = vector.load %arg5[%c0_22, %c0_23] : memref<9x64xf32, #tpu.memory_space<vmem>>, vector<9x64xf32>
    %cst_24 = arith.constant 0.000000e+00 : f32
    %51 = vector.broadcast %cst_24 : f32 to vector<49x64xf32>
    %c0_25 = arith.constant 0 : index
    %c0_26 = arith.constant 0 : index
    %52 = vector.load %arg12[%c0_25, %c0_26] : memref<65x64xf32, #tpu.memory_space<vmem>>, vector<49x64xf32>
    %cst_27 = arith.constant 0.000000e+00 : f32
    %53 = vector.shape_cast %47 : vector<49x1xi1> to vector<49x1xi1>
    %54 = vector.broadcast %53 : vector<49x1xi1> to vector<49x64xi1>
    %55 = vector.broadcast %cst_27 : f32 to vector<49x64xf32>
    %56 = arith.select %54, %52, %55 : vector<49x64xi1>, vector<49x64xf32>
    %57 = vector.extract_strided_slice %50 {offsets = [0, 0], sizes = [1, 64], strides = [1, 1]} : vector<9x64xf32> to vector<1x64xf32>
    %58 = vector.broadcast %57 : vector<1x64xf32> to vector<49x64xf32>
    %59 = arith.mulf %56, %58 : vector<49x64xf32>
    %60 = arith.addf %51, %59 : vector<49x64xf32>
    %c1 = arith.constant 1 : index
    %c0_28 = arith.constant 0 : index
    %61 = vector.load %arg12[%c1, %c0_28] : memref<65x64xf32, #tpu.memory_space<vmem>>, vector<49x64xf32>
    %62 = vector.extract_strided_slice %50 {offsets = [1, 0], sizes = [1, 64], strides = [1, 1]} : vector<9x64xf32> to vector<1x64xf32>
    %63 = vector.broadcast %62 : vector<1x64xf32> to vector<49x64xf32>
    %64 = arith.mulf %61, %63 : vector<49x64xf32>
    %65 = arith.addf %60, %64 : vector<49x64xf32>
    %c2 = arith.constant 2 : index
    %c0_29 = arith.constant 0 : index
    %66 = vector.load %arg12[%c2, %c0_29] : memref<65x64xf32, #tpu.memory_space<vmem>>, vector<49x64xf32>
    %cst_30 = arith.constant 0.000000e+00 : f32
    %67 = vector.shape_cast %49 : vector<49x1xi1> to vector<49x1xi1>
    %68 = vector.broadcast %67 : vector<49x1xi1> to vector<49x64xi1>
    %69 = vector.broadcast %cst_30 : f32 to vector<49x64xf32>
    %70 = arith.select %68, %66, %69 : vector<49x64xi1>, vector<49x64xf32>
    %71 = vector.extract_strided_slice %50 {offsets = [2, 0], sizes = [1, 64], strides = [1, 1]} : vector<9x64xf32> to vector<1x64xf32>
    %72 = vector.broadcast %71 : vector<1x64xf32> to vector<49x64xf32>
    %73 = arith.mulf %70, %72 : vector<49x64xf32>
    %74 = arith.addf %65, %73 : vector<49x64xf32>
    %c7 = arith.constant 7 : index
    %c0_31 = arith.constant 0 : index
    %75 = vector.load %arg12[%c7, %c0_31] : memref<65x64xf32, #tpu.memory_space<vmem>>, vector<49x64xf32>
    %cst_32 = arith.constant 0.000000e+00 : f32
    %76 = vector.shape_cast %47 : vector<49x1xi1> to vector<49x1xi1>
    %77 = vector.broadcast %76 : vector<49x1xi1> to vector<49x64xi1>
    %78 = vector.broadcast %cst_32 : f32 to vector<49x64xf32>
    %79 = arith.select %77, %75, %78 : vector<49x64xi1>, vector<49x64xf32>
    %80 = vector.extract_strided_slice %50 {offsets = [3, 0], sizes = [1, 64], strides = [1, 1]} : vector<9x64xf32> to vector<1x64xf32>
    %81 = vector.broadcast %80 : vector<1x64xf32> to vector<49x64xf32>
    %82 = arith.mulf %79, %81 : vector<49x64xf32>
    %83 = arith.addf %74, %82 : vector<49x64xf32>
    %84 = vector.extract_strided_slice %50 {offsets = [4, 0], sizes = [1, 64], strides = [1, 1]} : vector<9x64xf32> to vector<1x64xf32>
    %85 = vector.broadcast %84 : vector<1x64xf32> to vector<49x64xf32>
    %86 = arith.mulf %23, %85 : vector<49x64xf32>
    %87 = arith.addf %83, %86 : vector<49x64xf32>
    %c9 = arith.constant 9 : index
    %c0_33 = arith.constant 0 : index
    %88 = vector.load %arg12[%c9, %c0_33] : memref<65x64xf32, #tpu.memory_space<vmem>>, vector<49x64xf32>
    %cst_34 = arith.constant 0.000000e+00 : f32
    %89 = vector.shape_cast %49 : vector<49x1xi1> to vector<49x1xi1>
    %90 = vector.broadcast %89 : vector<49x1xi1> to vector<49x64xi1>
    %91 = vector.broadcast %cst_34 : f32 to vector<49x64xf32>
    %92 = arith.select %90, %88, %91 : vector<49x64xi1>, vector<49x64xf32>
    %93 = vector.extract_strided_slice %50 {offsets = [5, 0], sizes = [1, 64], strides = [1, 1]} : vector<9x64xf32> to vector<1x64xf32>
    %94 = vector.broadcast %93 : vector<1x64xf32> to vector<49x64xf32>
    %95 = arith.mulf %92, %94 : vector<49x64xf32>
    %96 = arith.addf %87, %95 : vector<49x64xf32>
    %c14 = arith.constant 14 : index
    %c0_35 = arith.constant 0 : index
    %97 = vector.load %arg12[%c14, %c0_35] : memref<65x64xf32, #tpu.memory_space<vmem>>, vector<49x64xf32>
    %cst_36 = arith.constant 0.000000e+00 : f32
    %98 = vector.shape_cast %47 : vector<49x1xi1> to vector<49x1xi1>
    %99 = vector.broadcast %98 : vector<49x1xi1> to vector<49x64xi1>
    %100 = vector.broadcast %cst_36 : f32 to vector<49x64xf32>
    %101 = arith.select %99, %97, %100 : vector<49x64xi1>, vector<49x64xf32>
    %102 = vector.extract_strided_slice %50 {offsets = [6, 0], sizes = [1, 64], strides = [1, 1]} : vector<9x64xf32> to vector<1x64xf32>
    %103 = vector.broadcast %102 : vector<1x64xf32> to vector<49x64xf32>
    %104 = arith.mulf %101, %103 : vector<49x64xf32>
    %105 = arith.addf %96, %104 : vector<49x64xf32>
    %c15 = arith.constant 15 : index
    %c0_37 = arith.constant 0 : index
    %106 = vector.load %arg12[%c15, %c0_37] : memref<65x64xf32, #tpu.memory_space<vmem>>, vector<49x64xf32>
    %107 = vector.extract_strided_slice %50 {offsets = [7, 0], sizes = [1, 64], strides = [1, 1]} : vector<9x64xf32> to vector<1x64xf32>
    %108 = vector.broadcast %107 : vector<1x64xf32> to vector<49x64xf32>
    %109 = arith.mulf %106, %108 : vector<49x64xf32>
    %110 = arith.addf %105, %109 : vector<49x64xf32>
    %c16 = arith.constant 16 : index
    %c0_38 = arith.constant 0 : index
    %111 = vector.load %arg12[%c16, %c0_38] : memref<65x64xf32, #tpu.memory_space<vmem>>, vector<49x64xf32>
    %cst_39 = arith.constant 0.000000e+00 : f32
    %112 = vector.shape_cast %49 : vector<49x1xi1> to vector<49x1xi1>
    %113 = vector.broadcast %112 : vector<49x1xi1> to vector<49x64xi1>
    %114 = vector.broadcast %cst_39 : f32 to vector<49x64xf32>
    %115 = arith.select %113, %111, %114 : vector<49x64xi1>, vector<49x64xf32>
    %116 = vector.extract_strided_slice %50 {offsets = [8, 0], sizes = [1, 64], strides = [1, 1]} : vector<9x64xf32> to vector<1x64xf32>
    %117 = vector.broadcast %116 : vector<1x64xf32> to vector<49x64xf32>
    %118 = arith.mulf %115, %117 : vector<49x64xf32>
    %119 = arith.addf %110, %118 : vector<49x64xf32>
    %c0_40 = arith.constant 0 : index
    %c0_41 = arith.constant 0 : index
    %120 = vector.load %arg6[%c0_40, %c0_41] : memref<1x64xf32, #tpu.memory_space<vmem>>, vector<1x64xf32>
    %121 = vector.broadcast %120 : vector<1x64xf32> to vector<49x64xf32>
    %122 = arith.mulf %119, %121 : vector<49x64xf32>
    %c0_42 = arith.constant 0 : index
    %c0_43 = arith.constant 0 : index
    %123 = vector.load %arg7[%c0_42, %c0_43] : memref<1x64xf32, #tpu.memory_space<vmem>>, vector<1x64xf32>
    %124 = vector.broadcast %123 : vector<1x64xf32> to vector<49x64xf32>
    %125 = arith.addf %122, %124 : vector<49x64xf32>
    %cst_44 = arith.constant 5.000000e-01 : f32
    %126 = vector.broadcast %cst_44 : f32 to vector<49x64xf32>
    %127 = arith.mulf %126, %125 : vector<49x64xf32>
    %cst_45 = arith.constant 4.471500e-02 : f32
    %128 = vector.broadcast %cst_45 : f32 to vector<49x64xf32>
    %129 = arith.mulf %128, %125 : vector<49x64xf32>
    %130 = arith.mulf %129, %125 : vector<49x64xf32>
    %131 = arith.mulf %130, %125 : vector<49x64xf32>
    %132 = arith.addf %125, %131 : vector<49x64xf32>
    %cst_46 = arith.constant 0.797884583 : f32
    %133 = vector.broadcast %cst_46 : f32 to vector<49x64xf32>
    %134 = arith.mulf %133, %132 : vector<49x64xf32>
    %135 = math.tanh %134 : vector<49x64xf32>
    %cst_47 = arith.constant 1.000000e+00 : f32
    %136 = vector.broadcast %cst_47 : f32 to vector<49x64xf32>
    %137 = arith.addf %136, %135 : vector<49x64xf32>
    %138 = arith.mulf %127, %137 : vector<49x64xf32>
    %139 = arith.truncf %138 : vector<49x64xf32> to vector<49x64xbf16>
    %c0_48 = arith.constant 0 : index
    %c0_49 = arith.constant 0 : index
    %140 = vector.load %arg8[%c0_48, %c0_49] : memref<64x32xbf16, #tpu.memory_space<vmem>>, vector<64x32xbf16>
    %cst_50 = arith.constant dense<0.000000e+00> : vector<49x32xf32>
    %141 = tpu.matmul %139, %140, %cst_50 {dimension_numbers = #tpu.dot_dimension_numbers<[1], [0], [0], [1], [0, 0, 1, 1], [], []>} : vector<49x64xbf16>, vector<64x32xbf16>, vector<49x32xf32> -> vector<49x32xf32>
    %c0_51 = arith.constant 0 : index
    %c0_52 = arith.constant 0 : index
    %142 = vector.load %arg9[%c0_51, %c0_52] : memref<1x32xf32, #tpu.memory_space<vmem>>, vector<1x32xf32>
    %143 = vector.broadcast %142 : vector<1x32xf32> to vector<49x32xf32>
    %144 = arith.mulf %141, %143 : vector<49x32xf32>
    %c0_53 = arith.constant 0 : index
    %c0_54 = arith.constant 0 : index
    %145 = vector.load %arg10[%c0_53, %c0_54] : memref<1x32xf32, #tpu.memory_space<vmem>>, vector<1x32xf32>
    %146 = vector.broadcast %145 : vector<1x32xf32> to vector<49x32xf32>
    %147 = arith.addf %144, %146 : vector<49x32xf32>
    %148 = arith.addf %1, %147 : vector<49x32xf32>
    %c0_55 = arith.constant 0 : index
    %c0_56 = arith.constant 0 : index
    %c0_57 = arith.constant 0 : index
    %149 = vector.load %arg11[%c0_55, %c0_56, %c0_57] : memref<1x49x32xf32, #tpu.memory_space<vmem>>, vector<1x49x32xf32>
    %150 = vector.shape_cast %149 : vector<1x49x32xf32> to vector<49x32xf32>
    %151 = vector.shape_cast %148 : vector<49x32xf32> to vector<1x49x32xf32>
    tpu.vector_store %arg11[%c0_55, %c0_56, %c0_57], %151 {strides = array<i32>} : memref<1x49x32xf32, #tpu.memory_space<vmem>>, vector<1x49x32xf32>,
    return
  }
  func.func @transform_0(%arg0: i32) -> (i32, i32, i32) {
    %c0_i32 = arith.constant 0 : i32
    %c0_i32_0 = arith.constant 0 : i32
    %c0_i32_1 = arith.constant 0 : i32
    return %arg0, %c0_i32, %c0_i32_0 : i32, i32, i32
  }
  func.func @transform_1(%arg0: i32) -> (i32, i32) {
    %c0_i32 = arith.constant 0 : i32
    %c0_i32_0 = arith.constant 0 : i32
    %c0_i32_1 = arith.constant 0 : i32
    return %c0_i32, %c0_i32_0 : i32, i32
  }
  func.func @transform_2(%arg0: i32) -> (i32, i32) {
    %c0_i32 = arith.constant 0 : i32
    %c0_i32_0 = arith.constant 0 : i32
    %c0_i32_1 = arith.constant 0 : i32
    return %c0_i32, %c0_i32_0 : i32, i32
  }
  func.func @transform_3(%arg0: i32) -> (i32, i32) {
    %c0_i32 = arith.constant 0 : i32
    %c0_i32_0 = arith.constant 0 : i32
    %c0_i32_1 = arith.constant 0 : i32
    return %c0_i32, %c0_i32_0 : i32, i32
  }
  func.func @transform_4(%arg0: i32) -> (i32, i32) {
    %c0_i32 = arith.constant 0 : i32
    %c0_i32_0 = arith.constant 0 : i32
    %c0_i32_1 = arith.constant 0 : i32
    return %c0_i32, %c0_i32_0 : i32, i32
  }
  func.func @transform_5(%arg0: i32) -> (i32, i32) {
    %c0_i32 = arith.constant 0 : i32
    %c0_i32_0 = arith.constant 0 : i32
    %c0_i32_1 = arith.constant 0 : i32
    return %c0_i32, %c0_i32_0 : i32, i32
  }
  func.func @transform_6(%arg0: i32) -> (i32, i32) {
    %c0_i32 = arith.constant 0 : i32
    %c0_i32_0 = arith.constant 0 : i32
    %c0_i32_1 = arith.constant 0 : i32
    return %c0_i32, %c0_i32_0 : i32, i32
  }
  func.func @transform_7(%arg0: i32) -> (i32, i32) {
    %c0_i32 = arith.constant 0 : i32
    %c0_i32_0 = arith.constant 0 : i32
    %c0_i32_1 = arith.constant 0 : i32
    return %c0_i32, %c0_i32_0 : i32, i32
  }
  func.func @transform_8(%arg0: i32) -> (i32, i32) {
    %c0_i32 = arith.constant 0 : i32
    %c0_i32_0 = arith.constant 0 : i32
    %c0_i32_1 = arith.constant 0 : i32
    return %c0_i32, %c0_i32_0 : i32, i32
  }
  func.func @transform_9(%arg0: i32) -> (i32, i32) {
    %c0_i32 = arith.constant 0 : i32
    %c0_i32_0 = arith.constant 0 : i32
    %c0_i32_1 = arith.constant 0 : i32
    return %c0_i32, %c0_i32_0 : i32, i32
  }
  func.func @transform_10(%arg0: i32) -> (i32, i32, i32) {
    %c0_i32 = arith.constant 0 : i32
    %c0_i32_0 = arith.constant 0 : i32
    %c0_i32_1 = arith.constant 0 : i32
    return %arg0, %c0_i32, %c0_i32_0 : i32, i32, i32
  }
}

module attributes {stable_mosaic.version = 11 : i64} {
  func.func @_transformer_kernel(%arg0: i32, %arg1: memref<1x49x32xf32, #tpu.memory_space<vmem>>, %arg2: memref<1x32xf32, #tpu.memory_space<vmem>>, %arg3: memref<1x32xf32, #tpu.memory_space<vmem>>, %arg4: memref<32x128xbf16, #tpu.memory_space<vmem>>, %arg5: memref<1x128xf32, #tpu.memory_space<vmem>>, %arg6: memref<9x64xf32, #tpu.memory_space<vmem>>, %arg7: memref<1x64xf32, #tpu.memory_space<vmem>>, %arg8: memref<1x64xf32, #tpu.memory_space<vmem>>, %arg9: memref<64x32xbf16, #tpu.memory_space<vmem>>, %arg10: memref<1x32xf32, #tpu.memory_space<vmem>>, %arg11: memref<4x49x49xf32, #tpu.memory_space<vmem>>, %arg12: memref<1x32xf32, #tpu.memory_space<vmem>>, %arg13: memref<1x32xf32, #tpu.memory_space<vmem>>, %arg14: memref<32x64xbf16, #tpu.memory_space<vmem>>, %arg15: memref<1x64xf32, #tpu.memory_space<vmem>>, %arg16: memref<64x32xbf16, #tpu.memory_space<vmem>>, %arg17: memref<1x32xf32, #tpu.memory_space<vmem>>, %arg18: memref<1x49x32xf32, #tpu.memory_space<vmem>>, %arg19: memref<65x64xf32, #tpu.memory_space<vmem>>) attributes {dimension_semantics = [#tpu.dimension_semantics<parallel>], iteration_bounds = array<i64: 2>, scalar_prefetch = 0 : i64, scratch_operands = 1 : i64, tpu.core_type = #tpu.core_type<tc>, window_params = [{transform_indices = @transform_0, window_bounds = array<i64: 1, 49, 32>}, {pipeline_mode = #tpu.pipeline_mode<synchronous>, transform_indices = @transform_1, window_bounds = array<i64: 1, 32>}, {pipeline_mode = #tpu.pipeline_mode<synchronous>, transform_indices = @transform_2, window_bounds = array<i64: 1, 32>}, {pipeline_mode = #tpu.pipeline_mode<synchronous>, transform_indices = @transform_3, window_bounds = array<i64: 32, 128>}, {pipeline_mode = #tpu.pipeline_mode<synchronous>, transform_indices = @transform_4, window_bounds = array<i64: 1, 128>}, {pipeline_mode = #tpu.pipeline_mode<synchronous>, transform_indices = @transform_5, window_bounds = array<i64: 9, 64>}, {pipeline_mode = #tpu.pipeline_mode<synchronous>, transform_indices = @transform_6, window_bounds = array<i64: 1, 64>}, {pipeline_mode = #tpu.pipeline_mode<synchronous>, transform_indices = @transform_7, window_bounds = array<i64: 1, 64>}, {pipeline_mode = #tpu.pipeline_mode<synchronous>, transform_indices = @transform_8, window_bounds = array<i64: 64, 32>}, {pipeline_mode = #tpu.pipeline_mode<synchronous>, transform_indices = @transform_9, window_bounds = array<i64: 1, 32>}, {pipeline_mode = #tpu.pipeline_mode<synchronous>, transform_indices = @transform_10, window_bounds = array<i64: 4, 49, 49>}, {pipeline_mode = #tpu.pipeline_mode<synchronous>, transform_indices = @transform_11, window_bounds = array<i64: 1, 32>}, {pipeline_mode = #tpu.pipeline_mode<synchronous>, transform_indices = @transform_12, window_bounds = array<i64: 1, 32>}, {pipeline_mode = #tpu.pipeline_mode<synchronous>, transform_indices = @transform_13, window_bounds = array<i64: 32, 64>}, {pipeline_mode = #tpu.pipeline_mode<synchronous>, transform_indices = @transform_14, window_bounds = array<i64: 1, 64>}, {pipeline_mode = #tpu.pipeline_mode<synchronous>, transform_indices = @transform_15, window_bounds = array<i64: 64, 32>}, {pipeline_mode = #tpu.pipeline_mode<synchronous>, transform_indices = @transform_16, window_bounds = array<i64: 1, 32>}, {transform_indices = @transform_17, window_bounds = array<i64: 1, 49, 32>}]} {
    %c0 = arith.constant 0 : index
    %c0_0 = arith.constant 0 : index
    %c0_1 = arith.constant 0 : index
    %0 = vector.load %arg1[%c0, %c0_0, %c0_1] : memref<1x49x32xf32, #tpu.memory_space<vmem>>, vector<1x49x32xf32>
    %1 = vector.shape_cast %0 : vector<1x49x32xf32> to vector<49x32xf32>
    %c0_2 = arith.constant 0 : index
    %c0_3 = arith.constant 0 : index
    %2 = vector.load %arg2[%c0_2, %c0_3] : memref<1x32xf32, #tpu.memory_space<vmem>>, vector<1x32xf32>
    %c0_4 = arith.constant 0 : index
    %c0_5 = arith.constant 0 : index
    %3 = vector.load %arg3[%c0_4, %c0_5] : memref<1x32xf32, #tpu.memory_space<vmem>>, vector<1x32xf32>
    %cst = arith.constant dense<0.000000e+00> : vector<49xf32>
    %4 = vector.multi_reduction <add>, %1, %cst [1] : vector<49x32xf32> to vector<49xf32>
    %5 = vector.shape_cast %4 : vector<49xf32> to vector<49x1xf32>
    %cst_6 = arith.constant 3.200000e+01 : f32
    %6 = vector.broadcast %cst_6 : f32 to vector<49x1xf32>
    %7 = arith.divf %5, %6 : vector<49x1xf32>
    %8 = vector.broadcast %7 : vector<49x1xf32> to vector<49x32xf32>
    %9 = arith.subf %1, %8 : vector<49x32xf32>
    %10 = arith.mulf %9, %9 : vector<49x32xf32>
    %cst_7 = arith.constant dense<0.000000e+00> : vector<49xf32>
    %11 = vector.multi_reduction <add>, %10, %cst_7 [1] : vector<49x32xf32> to vector<49xf32>
    %12 = vector.shape_cast %11 : vector<49xf32> to vector<49x1xf32>
    %cst_8 = arith.constant 3.200000e+01 : f32
    %13 = vector.broadcast %cst_8 : f32 to vector<49x1xf32>
    %14 = arith.divf %12, %13 : vector<49x1xf32>
    %cst_9 = arith.constant 9.99999997E-7 : f32
    %15 = vector.broadcast %cst_9 : f32 to vector<49x1xf32>
    %16 = arith.addf %14, %15 : vector<49x1xf32>
    %17 = math.rsqrt %16 : vector<49x1xf32>
    %18 = vector.broadcast %17 : vector<49x1xf32> to vector<49x32xf32>
    %19 = arith.mulf %9, %18 : vector<49x32xf32>
    %20 = vector.broadcast %2 : vector<1x32xf32> to vector<49x32xf32>
    %21 = arith.mulf %19, %20 : vector<49x32xf32>
    %22 = vector.broadcast %3 : vector<1x32xf32> to vector<49x32xf32>
    %23 = arith.addf %21, %22 : vector<49x32xf32>
    %24 = arith.truncf %23 : vector<49x32xf32> to vector<49x32xbf16>
    %c0_10 = arith.constant 0 : index
    %c0_11 = arith.constant 0 : index
    %25 = vector.load %arg4[%c0_10, %c0_11] : memref<32x128xbf16, #tpu.memory_space<vmem>>, vector<32x128xbf16>
    %cst_12 = arith.constant dense<0.000000e+00> : vector<49x128xf32>
    %26 = tpu.matmul %24, %25, %cst_12 {dimension_numbers = #tpu.dot_dimension_numbers<[1], [0], [0], [1], [0, 0, 1, 1], [], []>} : vector<49x32xbf16>, vector<32x128xbf16>, vector<49x128xf32> -> vector<49x128xf32>
    %c0_13 = arith.constant 0 : index
    %c0_14 = arith.constant 0 : index
    %27 = vector.load %arg5[%c0_13, %c0_14] : memref<1x128xf32, #tpu.memory_space<vmem>>, vector<1x128xf32>
    %28 = vector.broadcast %27 : vector<1x128xf32> to vector<49x128xf32>
    %29 = arith.addf %26, %28 : vector<49x128xf32>
    %30 = vector.extract_strided_slice %29 {offsets = [0, 0], sizes = [49, 32], strides = [1, 1]} : vector<49x128xf32> to vector<49x32xf32>
    %31 = vector.extract_strided_slice %29 {offsets = [0, 32], sizes = [49, 32], strides = [1, 1]} : vector<49x128xf32> to vector<49x32xf32>
    %32 = vector.extract_strided_slice %29 {offsets = [0, 64], sizes = [49, 64], strides = [1, 1]} : vector<49x128xf32> to vector<49x64xf32>
    %cst_15 = arith.constant 0.000000e+00 : f32
    %33 = vector.broadcast %cst_15 : f32 to vector<8x64xf32>
    %c0_16 = arith.constant 0 : index
    %c0_17 = arith.constant 0 : index
    %34 = vector.load %arg19[%c0_16, %c0_17] : memref<65x64xf32, #tpu.memory_space<vmem>>, vector<8x64xf32>
    tpu.vector_store %arg19[%c0_16, %c0_17], %33 {strides = array<i32>} : memref<65x64xf32, #tpu.memory_space<vmem>>, vector<8x64xf32>,
    %cst_18 = arith.constant 0.000000e+00 : f32
    %35 = vector.broadcast %cst_18 : f32 to vector<8x64xf32>
    %c57 = arith.constant 57 : index
    %c0_19 = arith.constant 0 : index
    %36 = vector.load %arg19[%c57, %c0_19] : memref<65x64xf32, #tpu.memory_space<vmem>>, vector<8x64xf32>
    tpu.vector_store %arg19[%c57, %c0_19], %35 {strides = array<i32>} : memref<65x64xf32, #tpu.memory_space<vmem>>, vector<8x64xf32>,
    %c8 = arith.constant 8 : index
    %c0_20 = arith.constant 0 : index
    %37 = vector.load %arg19[%c8, %c0_20] : memref<65x64xf32, #tpu.memory_space<vmem>>, vector<49x64xf32>
    tpu.vector_store %arg19[%c8, %c0_20], %32 {strides = array<i32>} : memref<65x64xf32, #tpu.memory_space<vmem>>, vector<49x64xf32>,
    %38 = tpu.iota {dimensions = array<i32: 0>} : vector<49x1xi32>
    %c7_i32 = arith.constant 7 : i32
    %c0_i32 = arith.constant 0 : i32
    %39 = arith.cmpi eq, %c7_i32, %c0_i32 : i32
    %c1_i32 = arith.constant 1 : i32
    %40 = arith.select %39, %c1_i32, %c7_i32 : i32
    %41 = vector.broadcast %40 : i32 to vector<49x1xi32>
    %42 = arith.remsi %38, %41 : vector<49x1xi32>
    %c0_i32_21 = arith.constant 0 : i32
    %43 = vector.broadcast %c0_i32_21 : i32 to vector<49x1xi32>
    %44 = arith.cmpi ne, %42, %43 : vector<49x1xi32>
    %c0_i32_22 = arith.constant 0 : i32
    %45 = vector.broadcast %c0_i32_22 : i32 to vector<49x1xi32>
    %46 = arith.cmpi slt, %42, %45 : vector<49x1xi32>
    %c0_i32_23 = arith.constant 0 : i32
    %47 = arith.cmpi slt, %40, %c0_i32_23 : i32
    %48 = vector.broadcast %47 : i1 to vector<49x1xi1>
    %49 = vector.broadcast %48 : vector<49x1xi1> to vector<49x1xi1>
    %50 = arith.xori %46, %49 : vector<49x1xi1>
    %51 = arith.andi %50, %44 : vector<49x1xi1>
    %52 = vector.broadcast %40 : i32 to vector<49x1xi32>
    %53 = arith.addi %42, %52 : vector<49x1xi32>
    %54 = arith.select %51, %53, %42 : vector<49x1xi1>, vector<49x1xi32>
    %c0_i32_24 = arith.constant 0 : i32
    %55 = vector.broadcast %c0_i32_24 : i32 to vector<49x1xi32>
    %56 = arith.cmpi sgt, %54, %55 : vector<49x1xi32>
    %c6_i32 = arith.constant 6 : i32
    %57 = vector.broadcast %c6_i32 : i32 to vector<49x1xi32>
    %58 = arith.cmpi slt, %54, %57 : vector<49x1xi32>
    %c0_25 = arith.constant 0 : index
    %c0_26 = arith.constant 0 : index
    %59 = vector.load %arg6[%c0_25, %c0_26] : memref<9x64xf32, #tpu.memory_space<vmem>>, vector<9x64xf32>
    %cst_27 = arith.constant 0.000000e+00 : f32
    %60 = vector.broadcast %cst_27 : f32 to vector<49x64xf32>
    %c0_28 = arith.constant 0 : index
    %c0_29 = arith.constant 0 : index
    %61 = vector.load %arg19[%c0_28, %c0_29] : memref<65x64xf32, #tpu.memory_space<vmem>>, vector<49x64xf32>
    %cst_30 = arith.constant 0.000000e+00 : f32
    %62 = vector.shape_cast %56 : vector<49x1xi1> to vector<49x1xi1>
    %63 = vector.broadcast %62 : vector<49x1xi1> to vector<49x64xi1>
    %64 = vector.broadcast %cst_30 : f32 to vector<49x64xf32>
    %65 = arith.select %63, %61, %64 : vector<49x64xi1>, vector<49x64xf32>
    %66 = vector.extract_strided_slice %59 {offsets = [0, 0], sizes = [1, 64], strides = [1, 1]} : vector<9x64xf32> to vector<1x64xf32>
    %67 = vector.broadcast %66 : vector<1x64xf32> to vector<49x64xf32>
    %68 = arith.mulf %65, %67 : vector<49x64xf32>
    %69 = arith.addf %60, %68 : vector<49x64xf32>
    %c1 = arith.constant 1 : index
    %c0_31 = arith.constant 0 : index
    %70 = vector.load %arg19[%c1, %c0_31] : memref<65x64xf32, #tpu.memory_space<vmem>>, vector<49x64xf32>
    %71 = vector.extract_strided_slice %59 {offsets = [1, 0], sizes = [1, 64], strides = [1, 1]} : vector<9x64xf32> to vector<1x64xf32>
    %72 = vector.broadcast %71 : vector<1x64xf32> to vector<49x64xf32>
    %73 = arith.mulf %70, %72 : vector<49x64xf32>
    %74 = arith.addf %69, %73 : vector<49x64xf32>
    %c2 = arith.constant 2 : index
    %c0_32 = arith.constant 0 : index
    %75 = vector.load %arg19[%c2, %c0_32] : memref<65x64xf32, #tpu.memory_space<vmem>>, vector<49x64xf32>
    %cst_33 = arith.constant 0.000000e+00 : f32
    %76 = vector.shape_cast %58 : vector<49x1xi1> to vector<49x1xi1>
    %77 = vector.broadcast %76 : vector<49x1xi1> to vector<49x64xi1>
    %78 = vector.broadcast %cst_33 : f32 to vector<49x64xf32>
    %79 = arith.select %77, %75, %78 : vector<49x64xi1>, vector<49x64xf32>
    %80 = vector.extract_strided_slice %59 {offsets = [2, 0], sizes = [1, 64], strides = [1, 1]} : vector<9x64xf32> to vector<1x64xf32>
    %81 = vector.broadcast %80 : vector<1x64xf32> to vector<49x64xf32>
    %82 = arith.mulf %79, %81 : vector<49x64xf32>
    %83 = arith.addf %74, %82 : vector<49x64xf32>
    %c7 = arith.constant 7 : index
    %c0_34 = arith.constant 0 : index
    %84 = vector.load %arg19[%c7, %c0_34] : memref<65x64xf32, #tpu.memory_space<vmem>>, vector<49x64xf32>
    %cst_35 = arith.constant 0.000000e+00 : f32
    %85 = vector.shape_cast %56 : vector<49x1xi1> to vector<49x1xi1>
    %86 = vector.broadcast %85 : vector<49x1xi1> to vector<49x64xi1>
    %87 = vector.broadcast %cst_35 : f32 to vector<49x64xf32>
    %88 = arith.select %86, %84, %87 : vector<49x64xi1>, vector<49x64xf32>
    %89 = vector.extract_strided_slice %59 {offsets = [3, 0], sizes = [1, 64], strides = [1, 1]} : vector<9x64xf32> to vector<1x64xf32>
    %90 = vector.broadcast %89 : vector<1x64xf32> to vector<49x64xf32>
    %91 = arith.mulf %88, %90 : vector<49x64xf32>
    %92 = arith.addf %83, %91 : vector<49x64xf32>
    %93 = vector.extract_strided_slice %59 {offsets = [4, 0], sizes = [1, 64], strides = [1, 1]} : vector<9x64xf32> to vector<1x64xf32>
    %94 = vector.broadcast %93 : vector<1x64xf32> to vector<49x64xf32>
    %95 = arith.mulf %32, %94 : vector<49x64xf32>
    %96 = arith.addf %92, %95 : vector<49x64xf32>
    %c9 = arith.constant 9 : index
    %c0_36 = arith.constant 0 : index
    %97 = vector.load %arg19[%c9, %c0_36] : memref<65x64xf32, #tpu.memory_space<vmem>>, vector<49x64xf32>
    %cst_37 = arith.constant 0.000000e+00 : f32
    %98 = vector.shape_cast %58 : vector<49x1xi1> to vector<49x1xi1>
    %99 = vector.broadcast %98 : vector<49x1xi1> to vector<49x64xi1>
    %100 = vector.broadcast %cst_37 : f32 to vector<49x64xf32>
    %101 = arith.select %99, %97, %100 : vector<49x64xi1>, vector<49x64xf32>
    %102 = vector.extract_strided_slice %59 {offsets = [5, 0], sizes = [1, 64], strides = [1, 1]} : vector<9x64xf32> to vector<1x64xf32>
    %103 = vector.broadcast %102 : vector<1x64xf32> to vector<49x64xf32>
    %104 = arith.mulf %101, %103 : vector<49x64xf32>
    %105 = arith.addf %96, %104 : vector<49x64xf32>
    %c14 = arith.constant 14 : index
    %c0_38 = arith.constant 0 : index
    %106 = vector.load %arg19[%c14, %c0_38] : memref<65x64xf32, #tpu.memory_space<vmem>>, vector<49x64xf32>
    %cst_39 = arith.constant 0.000000e+00 : f32
    %107 = vector.shape_cast %56 : vector<49x1xi1> to vector<49x1xi1>
    %108 = vector.broadcast %107 : vector<49x1xi1> to vector<49x64xi1>
    %109 = vector.broadcast %cst_39 : f32 to vector<49x64xf32>
    %110 = arith.select %108, %106, %109 : vector<49x64xi1>, vector<49x64xf32>
    %111 = vector.extract_strided_slice %59 {offsets = [6, 0], sizes = [1, 64], strides = [1, 1]} : vector<9x64xf32> to vector<1x64xf32>
    %112 = vector.broadcast %111 : vector<1x64xf32> to vector<49x64xf32>
    %113 = arith.mulf %110, %112 : vector<49x64xf32>
    %114 = arith.addf %105, %113 : vector<49x64xf32>
    %c15 = arith.constant 15 : index
    %c0_40 = arith.constant 0 : index
    %115 = vector.load %arg19[%c15, %c0_40] : memref<65x64xf32, #tpu.memory_space<vmem>>, vector<49x64xf32>
    %116 = vector.extract_strided_slice %59 {offsets = [7, 0], sizes = [1, 64], strides = [1, 1]} : vector<9x64xf32> to vector<1x64xf32>
    %117 = vector.broadcast %116 : vector<1x64xf32> to vector<49x64xf32>
    %118 = arith.mulf %115, %117 : vector<49x64xf32>
    %119 = arith.addf %114, %118 : vector<49x64xf32>
    %c16 = arith.constant 16 : index
    %c0_41 = arith.constant 0 : index
    %120 = vector.load %arg19[%c16, %c0_41] : memref<65x64xf32, #tpu.memory_space<vmem>>, vector<49x64xf32>
    %cst_42 = arith.constant 0.000000e+00 : f32
    %121 = vector.shape_cast %58 : vector<49x1xi1> to vector<49x1xi1>
    %122 = vector.broadcast %121 : vector<49x1xi1> to vector<49x64xi1>
    %123 = vector.broadcast %cst_42 : f32 to vector<49x64xf32>
    %124 = arith.select %122, %120, %123 : vector<49x64xi1>, vector<49x64xf32>
    %125 = vector.extract_strided_slice %59 {offsets = [8, 0], sizes = [1, 64], strides = [1, 1]} : vector<9x64xf32> to vector<1x64xf32>
    %126 = vector.broadcast %125 : vector<1x64xf32> to vector<49x64xf32>
    %127 = arith.mulf %124, %126 : vector<49x64xf32>
    %128 = arith.addf %119, %127 : vector<49x64xf32>
    %c0_43 = arith.constant 0 : index
    %c0_44 = arith.constant 0 : index
    %129 = vector.load %arg7[%c0_43, %c0_44] : memref<1x64xf32, #tpu.memory_space<vmem>>, vector<1x64xf32>
    %130 = vector.broadcast %129 : vector<1x64xf32> to vector<49x64xf32>
    %131 = arith.mulf %128, %130 : vector<49x64xf32>
    %c0_45 = arith.constant 0 : index
    %c0_46 = arith.constant 0 : index
    %132 = vector.load %arg8[%c0_45, %c0_46] : memref<1x64xf32, #tpu.memory_space<vmem>>, vector<1x64xf32>
    %133 = vector.broadcast %132 : vector<1x64xf32> to vector<49x64xf32>
    %134 = arith.addf %131, %133 : vector<49x64xf32>
    %cst_47 = arith.constant 5.000000e-01 : f32
    %135 = vector.broadcast %cst_47 : f32 to vector<49x64xf32>
    %136 = arith.mulf %135, %134 : vector<49x64xf32>
    %cst_48 = arith.constant 4.471500e-02 : f32
    %137 = vector.broadcast %cst_48 : f32 to vector<49x64xf32>
    %138 = arith.mulf %137, %134 : vector<49x64xf32>
    %139 = arith.mulf %138, %134 : vector<49x64xf32>
    %140 = arith.mulf %139, %134 : vector<49x64xf32>
    %141 = arith.addf %134, %140 : vector<49x64xf32>
    %cst_49 = arith.constant 0.797884583 : f32
    %142 = vector.broadcast %cst_49 : f32 to vector<49x64xf32>
    %143 = arith.mulf %142, %141 : vector<49x64xf32>
    %144 = math.tanh %143 : vector<49x64xf32>
    %cst_50 = arith.constant 1.000000e+00 : f32
    %145 = vector.broadcast %cst_50 : f32 to vector<49x64xf32>
    %146 = arith.addf %145, %144 : vector<49x64xf32>
    %147 = arith.mulf %136, %146 : vector<49x64xf32>
    %148 = arith.addf %32, %147 : vector<49x64xf32>
    %c0_51 = arith.constant 0 : index
    %c0_52 = arith.constant 0 : index
    %149 = vector.load %arg9[%c0_51, %c0_52] : memref<64x32xbf16, #tpu.memory_space<vmem>>, vector<64x32xbf16>
    %cst_53 = arith.constant 0.000000e+00 : f32
    %150 = vector.broadcast %cst_53 : f32 to vector<49x32xf32>
    %151 = vector.extract_strided_slice %30 {offsets = [0, 0], sizes = [49, 8], strides = [1, 1]} : vector<49x32xf32> to vector<49x8xf32>
    %152 = arith.truncf %151 : vector<49x8xf32> to vector<49x8xbf16>
    %153 = vector.extract_strided_slice %31 {offsets = [0, 0], sizes = [49, 8], strides = [1, 1]} : vector<49x32xf32> to vector<49x8xf32>
    %154 = arith.truncf %153 : vector<49x8xf32> to vector<49x8xbf16>
    %155 = vector.extract_strided_slice %148 {offsets = [0, 0], sizes = [49, 16], strides = [1, 1]} : vector<49x64xf32> to vector<49x16xf32>
    %cst_54 = arith.constant dense<0.000000e+00> : vector<49x49xf32>
    %156 = tpu.matmul %152, %154, %cst_54 {dimension_numbers = #tpu.dot_dimension_numbers<[1], [1], [0], [0], [0, 0, 1, 0], [], []>} : vector<49x8xbf16>, vector<49x8xbf16>, vector<49x49xf32> -> vector<49x49xf32>
    %cst_55 = arith.constant 0.353553385 : f32
    %157 = vector.broadcast %cst_55 : f32 to vector<49x49xf32>
    %158 = arith.mulf %156, %157 : vector<49x49xf32>
    %c0_56 = arith.constant 0 : index
    %c0_57 = arith.constant 0 : index
    %c0_58 = arith.constant 0 : index
    %159 = vector.load %arg11[%c0_56, %c0_57, %c0_58] : memref<4x49x49xf32, #tpu.memory_space<vmem>>, vector<1x49x49xf32>
    %160 = vector.shape_cast %159 : vector<1x49x49xf32> to vector<49x49xf32>
    %161 = arith.addf %158, %160 : vector<49x49xf32>
    %cst_59 = arith.constant dense<0xFF800000> : vector<49xf32>
    %162 = vector.multi_reduction <maximumf>, %161, %cst_59 [1] : vector<49x49xf32> to vector<49xf32>
    %163 = vector.shape_cast %162 : vector<49xf32> to vector<49x1xf32>
    %164 = vector.broadcast %163 : vector<49x1xf32> to vector<49x49xf32>
    %165 = arith.subf %161, %164 : vector<49x49xf32>
    %166 = math.exp %165 : vector<49x49xf32>
    %cst_60 = arith.constant dense<0.000000e+00> : vector<49xf32>
    %167 = vector.multi_reduction <add>, %166, %cst_60 [1] : vector<49x49xf32> to vector<49xf32>
    %168 = vector.shape_cast %167 : vector<49xf32> to vector<49x1xf32>
    %169 = tpu.reciprocal %168 {approx = true} : vector<49x1xf32> -> vector<49x1xf32>
    %170 = vector.broadcast %169 : vector<49x1xf32> to vector<49x49xf32>
    %171 = arith.mulf %166, %170 : vector<49x49xf32>
    %172 = arith.truncf %171 : vector<49x49xf32> to vector<49x49xbf16>
    %173 = arith.truncf %155 : vector<49x16xf32> to vector<49x16xbf16>
    %cst_61 = arith.constant dense<0.000000e+00> : vector<49x16xf32>
    %174 = tpu.matmul %172, %173, %cst_61 {dimension_numbers = #tpu.dot_dimension_numbers<[1], [0], [0], [1], [0, 0, 1, 1], [], []>} : vector<49x49xbf16>, vector<49x16xbf16>, vector<49x16xf32> -> vector<49x16xf32>
    %175 = arith.truncf %174 : vector<49x16xf32> to vector<49x16xbf16>
    %176 = vector.extract_strided_slice %149 {offsets = [0, 0], sizes = [16, 32], strides = [1, 1]} : vector<64x32xbf16> to vector<16x32xbf16>
    %cst_62 = arith.constant dense<0.000000e+00> : vector<49x32xf32>
    %177 = tpu.matmul %175, %176, %cst_62 {dimension_numbers = #tpu.dot_dimension_numbers<[1], [0], [0], [1], [0, 0, 1, 1], [], []>} : vector<49x16xbf16>, vector<16x32xbf16>, vector<49x32xf32> -> vector<49x32xf32>
    %178 = arith.addf %150, %177 : vector<49x32xf32>
    %179 = vector.extract_strided_slice %30 {offsets = [0, 8], sizes = [49, 8], strides = [1, 1]} : vector<49x32xf32> to vector<49x8xf32>
    %180 = arith.truncf %179 : vector<49x8xf32> to vector<49x8xbf16>
    %181 = vector.extract_strided_slice %31 {offsets = [0, 8], sizes = [49, 8], strides = [1, 1]} : vector<49x32xf32> to vector<49x8xf32>
    %182 = arith.truncf %181 : vector<49x8xf32> to vector<49x8xbf16>
    %183 = vector.extract_strided_slice %148 {offsets = [0, 16], sizes = [49, 16], strides = [1, 1]} : vector<49x64xf32> to vector<49x16xf32>
    %cst_63 = arith.constant dense<0.000000e+00> : vector<49x49xf32>
    %184 = tpu.matmul %180, %182, %cst_63 {dimension_numbers = #tpu.dot_dimension_numbers<[1], [1], [0], [0], [0, 0, 1, 0], [], []>} : vector<49x8xbf16>, vector<49x8xbf16>, vector<49x49xf32> -> vector<49x49xf32>
    %cst_64 = arith.constant 0.353553385 : f32
    %185 = vector.broadcast %cst_64 : f32 to vector<49x49xf32>
    %186 = arith.mulf %184, %185 : vector<49x49xf32>
    %c1_65 = arith.constant 1 : index
    %c0_66 = arith.constant 0 : index
    %c0_67 = arith.constant 0 : index
    %187 = vector.load %arg11[%c1_65, %c0_66, %c0_67] : memref<4x49x49xf32, #tpu.memory_space<vmem>>, vector<1x49x49xf32>
    %188 = vector.shape_cast %187 : vector<1x49x49xf32> to vector<49x49xf32>
    %189 = arith.addf %186, %188 : vector<49x49xf32>
    %cst_68 = arith.constant dense<0xFF800000> : vector<49xf32>
    %190 = vector.multi_reduction <maximumf>, %189, %cst_68 [1] : vector<49x49xf32> to vector<49xf32>
    %191 = vector.shape_cast %190 : vector<49xf32> to vector<49x1xf32>
    %192 = vector.broadcast %191 : vector<49x1xf32> to vector<49x49xf32>
    %193 = arith.subf %189, %192 : vector<49x49xf32>
    %194 = math.exp %193 : vector<49x49xf32>
    %cst_69 = arith.constant dense<0.000000e+00> : vector<49xf32>
    %195 = vector.multi_reduction <add>, %194, %cst_69 [1] : vector<49x49xf32> to vector<49xf32>
    %196 = vector.shape_cast %195 : vector<49xf32> to vector<49x1xf32>
    %197 = tpu.reciprocal %196 {approx = true} : vector<49x1xf32> -> vector<49x1xf32>
    %198 = vector.broadcast %197 : vector<49x1xf32> to vector<49x49xf32>
    %199 = arith.mulf %194, %198 : vector<49x49xf32>
    %200 = arith.truncf %199 : vector<49x49xf32> to vector<49x49xbf16>
    %201 = arith.truncf %183 : vector<49x16xf32> to vector<49x16xbf16>
    %cst_70 = arith.constant dense<0.000000e+00> : vector<49x16xf32>
    %202 = tpu.matmul %200, %201, %cst_70 {dimension_numbers = #tpu.dot_dimension_numbers<[1], [0], [0], [1], [0, 0, 1, 1], [], []>} : vector<49x49xbf16>, vector<49x16xbf16>, vector<49x16xf32> -> vector<49x16xf32>
    %203 = arith.truncf %202 : vector<49x16xf32> to vector<49x16xbf16>
    %204 = vector.extract_strided_slice %149 {offsets = [16, 0], sizes = [16, 32], strides = [1, 1]} : vector<64x32xbf16> to vector<16x32xbf16>
    %cst_71 = arith.constant dense<0.000000e+00> : vector<49x32xf32>
    %205 = tpu.matmul %203, %204, %cst_71 {dimension_numbers = #tpu.dot_dimension_numbers<[1], [0], [0], [1], [0, 0, 1, 1], [], []>} : vector<49x16xbf16>, vector<16x32xbf16>, vector<49x32xf32> -> vector<49x32xf32>
    %206 = arith.addf %178, %205 : vector<49x32xf32>
    %207 = vector.extract_strided_slice %30 {offsets = [0, 16], sizes = [49, 8], strides = [1, 1]} : vector<49x32xf32> to vector<49x8xf32>
    %208 = arith.truncf %207 : vector<49x8xf32> to vector<49x8xbf16>
    %209 = vector.extract_strided_slice %31 {offsets = [0, 16], sizes = [49, 8], strides = [1, 1]} : vector<49x32xf32> to vector<49x8xf32>
    %210 = arith.truncf %209 : vector<49x8xf32> to vector<49x8xbf16>
    %211 = vector.extract_strided_slice %148 {offsets = [0, 32], sizes = [49, 16], strides = [1, 1]} : vector<49x64xf32> to vector<49x16xf32>
    %cst_72 = arith.constant dense<0.000000e+00> : vector<49x49xf32>
    %212 = tpu.matmul %208, %210, %cst_72 {dimension_numbers = #tpu.dot_dimension_numbers<[1], [1], [0], [0], [0, 0, 1, 0], [], []>} : vector<49x8xbf16>, vector<49x8xbf16>, vector<49x49xf32> -> vector<49x49xf32>
    %cst_73 = arith.constant 0.353553385 : f32
    %213 = vector.broadcast %cst_73 : f32 to vector<49x49xf32>
    %214 = arith.mulf %212, %213 : vector<49x49xf32>
    %c2_74 = arith.constant 2 : index
    %c0_75 = arith.constant 0 : index
    %c0_76 = arith.constant 0 : index
    %215 = vector.load %arg11[%c2_74, %c0_75, %c0_76] : memref<4x49x49xf32, #tpu.memory_space<vmem>>, vector<1x49x49xf32>
    %216 = vector.shape_cast %215 : vector<1x49x49xf32> to vector<49x49xf32>
    %217 = arith.addf %214, %216 : vector<49x49xf32>
    %cst_77 = arith.constant dense<0xFF800000> : vector<49xf32>
    %218 = vector.multi_reduction <maximumf>, %217, %cst_77 [1] : vector<49x49xf32> to vector<49xf32>
    %219 = vector.shape_cast %218 : vector<49xf32> to vector<49x1xf32>
    %220 = vector.broadcast %219 : vector<49x1xf32> to vector<49x49xf32>
    %221 = arith.subf %217, %220 : vector<49x49xf32>
    %222 = math.exp %221 : vector<49x49xf32>
    %cst_78 = arith.constant dense<0.000000e+00> : vector<49xf32>
    %223 = vector.multi_reduction <add>, %222, %cst_78 [1] : vector<49x49xf32> to vector<49xf32>
    %224 = vector.shape_cast %223 : vector<49xf32> to vector<49x1xf32>
    %225 = tpu.reciprocal %224 {approx = true} : vector<49x1xf32> -> vector<49x1xf32>
    %226 = vector.broadcast %225 : vector<49x1xf32> to vector<49x49xf32>
    %227 = arith.mulf %222, %226 : vector<49x49xf32>
    %228 = arith.truncf %227 : vector<49x49xf32> to vector<49x49xbf16>
    %229 = arith.truncf %211 : vector<49x16xf32> to vector<49x16xbf16>
    %cst_79 = arith.constant dense<0.000000e+00> : vector<49x16xf32>
    %230 = tpu.matmul %228, %229, %cst_79 {dimension_numbers = #tpu.dot_dimension_numbers<[1], [0], [0], [1], [0, 0, 1, 1], [], []>} : vector<49x49xbf16>, vector<49x16xbf16>, vector<49x16xf32> -> vector<49x16xf32>
    %231 = arith.truncf %230 : vector<49x16xf32> to vector<49x16xbf16>
    %232 = vector.extract_strided_slice %149 {offsets = [32, 0], sizes = [16, 32], strides = [1, 1]} : vector<64x32xbf16> to vector<16x32xbf16>
    %cst_80 = arith.constant dense<0.000000e+00> : vector<49x32xf32>
    %233 = tpu.matmul %231, %232, %cst_80 {dimension_numbers = #tpu.dot_dimension_numbers<[1], [0], [0], [1], [0, 0, 1, 1], [], []>} : vector<49x16xbf16>, vector<16x32xbf16>, vector<49x32xf32> -> vector<49x32xf32>
    %234 = arith.addf %206, %233 : vector<49x32xf32>
    %235 = vector.extract_strided_slice %30 {offsets = [0, 24], sizes = [49, 8], strides = [1, 1]} : vector<49x32xf32> to vector<49x8xf32>
    %236 = arith.truncf %235 : vector<49x8xf32> to vector<49x8xbf16>
    %237 = vector.extract_strided_slice %31 {offsets = [0, 24], sizes = [49, 8], strides = [1, 1]} : vector<49x32xf32> to vector<49x8xf32>
    %238 = arith.truncf %237 : vector<49x8xf32> to vector<49x8xbf16>
    %239 = vector.extract_strided_slice %148 {offsets = [0, 48], sizes = [49, 16], strides = [1, 1]} : vector<49x64xf32> to vector<49x16xf32>
    %cst_81 = arith.constant dense<0.000000e+00> : vector<49x49xf32>
    %240 = tpu.matmul %236, %238, %cst_81 {dimension_numbers = #tpu.dot_dimension_numbers<[1], [1], [0], [0], [0, 0, 1, 0], [], []>} : vector<49x8xbf16>, vector<49x8xbf16>, vector<49x49xf32> -> vector<49x49xf32>
    %cst_82 = arith.constant 0.353553385 : f32
    %241 = vector.broadcast %cst_82 : f32 to vector<49x49xf32>
    %242 = arith.mulf %240, %241 : vector<49x49xf32>
    %c3 = arith.constant 3 : index
    %c0_83 = arith.constant 0 : index
    %c0_84 = arith.constant 0 : index
    %243 = vector.load %arg11[%c3, %c0_83, %c0_84] : memref<4x49x49xf32, #tpu.memory_space<vmem>>, vector<1x49x49xf32>
    %244 = vector.shape_cast %243 : vector<1x49x49xf32> to vector<49x49xf32>
    %245 = arith.addf %242, %244 : vector<49x49xf32>
    %cst_85 = arith.constant dense<0xFF800000> : vector<49xf32>
    %246 = vector.multi_reduction <maximumf>, %245, %cst_85 [1] : vector<49x49xf32> to vector<49xf32>
    %247 = vector.shape_cast %246 : vector<49xf32> to vector<49x1xf32>
    %248 = vector.broadcast %247 : vector<49x1xf32> to vector<49x49xf32>
    %249 = arith.subf %245, %248 : vector<49x49xf32>
    %250 = math.exp %249 : vector<49x49xf32>
    %cst_86 = arith.constant dense<0.000000e+00> : vector<49xf32>
    %251 = vector.multi_reduction <add>, %250, %cst_86 [1] : vector<49x49xf32> to vector<49xf32>
    %252 = vector.shape_cast %251 : vector<49xf32> to vector<49x1xf32>
    %253 = tpu.reciprocal %252 {approx = true} : vector<49x1xf32> -> vector<49x1xf32>
    %254 = vector.broadcast %253 : vector<49x1xf32> to vector<49x49xf32>
    %255 = arith.mulf %250, %254 : vector<49x49xf32>
    %256 = arith.truncf %255 : vector<49x49xf32> to vector<49x49xbf16>
    %257 = arith.truncf %239 : vector<49x16xf32> to vector<49x16xbf16>
    %cst_87 = arith.constant dense<0.000000e+00> : vector<49x16xf32>
    %258 = tpu.matmul %256, %257, %cst_87 {dimension_numbers = #tpu.dot_dimension_numbers<[1], [0], [0], [1], [0, 0, 1, 1], [], []>} : vector<49x49xbf16>, vector<49x16xbf16>, vector<49x16xf32> -> vector<49x16xf32>
    %259 = arith.truncf %258 : vector<49x16xf32> to vector<49x16xbf16>
    %260 = vector.extract_strided_slice %149 {offsets = [48, 0], sizes = [16, 32], strides = [1, 1]} : vector<64x32xbf16> to vector<16x32xbf16>
    %cst_88 = arith.constant dense<0.000000e+00> : vector<49x32xf32>
    %261 = tpu.matmul %259, %260, %cst_88 {dimension_numbers = #tpu.dot_dimension_numbers<[1], [0], [0], [1], [0, 0, 1, 1], [], []>} : vector<49x16xbf16>, vector<16x32xbf16>, vector<49x32xf32> -> vector<49x32xf32>
    %262 = arith.addf %234, %261 : vector<49x32xf32>
    %263 = arith.addf %1, %262 : vector<49x32xf32>
    %c0_89 = arith.constant 0 : index
    %c0_90 = arith.constant 0 : index
    %264 = vector.load %arg10[%c0_89, %c0_90] : memref<1x32xf32, #tpu.memory_space<vmem>>, vector<1x32xf32>
    %265 = vector.broadcast %264 : vector<1x32xf32> to vector<49x32xf32>
    %266 = arith.addf %263, %265 : vector<49x32xf32>
    %c0_91 = arith.constant 0 : index
    %c0_92 = arith.constant 0 : index
    %267 = vector.load %arg12[%c0_91, %c0_92] : memref<1x32xf32, #tpu.memory_space<vmem>>, vector<1x32xf32>
    %c0_93 = arith.constant 0 : index
    %c0_94 = arith.constant 0 : index
    %268 = vector.load %arg13[%c0_93, %c0_94] : memref<1x32xf32, #tpu.memory_space<vmem>>, vector<1x32xf32>
    %cst_95 = arith.constant dense<0.000000e+00> : vector<49xf32>
    %269 = vector.multi_reduction <add>, %266, %cst_95 [1] : vector<49x32xf32> to vector<49xf32>
    %270 = vector.shape_cast %269 : vector<49xf32> to vector<49x1xf32>
    %cst_96 = arith.constant 3.200000e+01 : f32
    %271 = vector.broadcast %cst_96 : f32 to vector<49x1xf32>
    %272 = arith.divf %270, %271 : vector<49x1xf32>
    %273 = vector.broadcast %272 : vector<49x1xf32> to vector<49x32xf32>
    %274 = arith.subf %266, %273 : vector<49x32xf32>
    %275 = arith.mulf %274, %274 : vector<49x32xf32>
    %cst_97 = arith.constant dense<0.000000e+00> : vector<49xf32>
    %276 = vector.multi_reduction <add>, %275, %cst_97 [1] : vector<49x32xf32> to vector<49xf32>
    %277 = vector.shape_cast %276 : vector<49xf32> to vector<49x1xf32>
    %cst_98 = arith.constant 3.200000e+01 : f32
    %278 = vector.broadcast %cst_98 : f32 to vector<49x1xf32>
    %279 = arith.divf %277, %278 : vector<49x1xf32>
    %cst_99 = arith.constant 9.99999997E-7 : f32
    %280 = vector.broadcast %cst_99 : f32 to vector<49x1xf32>
    %281 = arith.addf %279, %280 : vector<49x1xf32>
    %282 = math.rsqrt %281 : vector<49x1xf32>
    %283 = vector.broadcast %282 : vector<49x1xf32> to vector<49x32xf32>
    %284 = arith.mulf %274, %283 : vector<49x32xf32>
    %285 = vector.broadcast %267 : vector<1x32xf32> to vector<49x32xf32>
    %286 = arith.mulf %284, %285 : vector<49x32xf32>
    %287 = vector.broadcast %268 : vector<1x32xf32> to vector<49x32xf32>
    %288 = arith.addf %286, %287 : vector<49x32xf32>
    %289 = arith.truncf %288 : vector<49x32xf32> to vector<49x32xbf16>
    %c0_100 = arith.constant 0 : index
    %c0_101 = arith.constant 0 : index
    %290 = vector.load %arg14[%c0_100, %c0_101] : memref<32x64xbf16, #tpu.memory_space<vmem>>, vector<32x64xbf16>
    %cst_102 = arith.constant dense<0.000000e+00> : vector<49x64xf32>
    %291 = tpu.matmul %289, %290, %cst_102 {dimension_numbers = #tpu.dot_dimension_numbers<[1], [0], [0], [1], [0, 0, 1, 1], [], []>} : vector<49x32xbf16>, vector<32x64xbf16>, vector<49x64xf32> -> vector<49x64xf32>
    %c0_103 = arith.constant 0 : index
    %c0_104 = arith.constant 0 : index
    %292 = vector.load %arg15[%c0_103, %c0_104] : memref<1x64xf32, #tpu.memory_space<vmem>>, vector<1x64xf32>
    %293 = vector.broadcast %292 : vector<1x64xf32> to vector<49x64xf32>
    %294 = arith.addf %291, %293 : vector<49x64xf32>
    %cst_105 = arith.constant 5.000000e-01 : f32
    %295 = vector.broadcast %cst_105 : f32 to vector<49x64xf32>
    %296 = arith.mulf %295, %294 : vector<49x64xf32>
    %cst_106 = arith.constant 4.471500e-02 : f32
    %297 = vector.broadcast %cst_106 : f32 to vector<49x64xf32>
    %298 = arith.mulf %297, %294 : vector<49x64xf32>
    %299 = arith.mulf %298, %294 : vector<49x64xf32>
    %300 = arith.mulf %299, %294 : vector<49x64xf32>
    %301 = arith.addf %294, %300 : vector<49x64xf32>
    %cst_107 = arith.constant 0.797884583 : f32
    %302 = vector.broadcast %cst_107 : f32 to vector<49x64xf32>
    %303 = arith.mulf %302, %301 : vector<49x64xf32>
    %304 = math.tanh %303 : vector<49x64xf32>
    %cst_108 = arith.constant 1.000000e+00 : f32
    %305 = vector.broadcast %cst_108 : f32 to vector<49x64xf32>
    %306 = arith.addf %305, %304 : vector<49x64xf32>
    %307 = arith.mulf %296, %306 : vector<49x64xf32>
    %308 = arith.truncf %307 : vector<49x64xf32> to vector<49x64xbf16>
    %c0_109 = arith.constant 0 : index
    %c0_110 = arith.constant 0 : index
    %309 = vector.load %arg16[%c0_109, %c0_110] : memref<64x32xbf16, #tpu.memory_space<vmem>>, vector<64x32xbf16>
    %cst_111 = arith.constant dense<0.000000e+00> : vector<49x32xf32>
    %310 = tpu.matmul %308, %309, %cst_111 {dimension_numbers = #tpu.dot_dimension_numbers<[1], [0], [0], [1], [0, 0, 1, 1], [], []>} : vector<49x64xbf16>, vector<64x32xbf16>, vector<49x32xf32> -> vector<49x32xf32>
    %c0_112 = arith.constant 0 : index
    %c0_113 = arith.constant 0 : index
    %311 = vector.load %arg17[%c0_112, %c0_113] : memref<1x32xf32, #tpu.memory_space<vmem>>, vector<1x32xf32>
    %312 = vector.broadcast %311 : vector<1x32xf32> to vector<49x32xf32>
    %313 = arith.addf %310, %312 : vector<49x32xf32>
    %314 = arith.addf %266, %313 : vector<49x32xf32>
    %c0_114 = arith.constant 0 : index
    %c0_115 = arith.constant 0 : index
    %c0_116 = arith.constant 0 : index
    %315 = vector.load %arg18[%c0_114, %c0_115, %c0_116] : memref<1x49x32xf32, #tpu.memory_space<vmem>>, vector<1x49x32xf32>
    %316 = vector.shape_cast %315 : vector<1x49x32xf32> to vector<49x32xf32>
    %317 = vector.shape_cast %314 : vector<49x32xf32> to vector<1x49x32xf32>
    tpu.vector_store %arg18[%c0_114, %c0_115, %c0_116], %317 {strides = array<i32>} : memref<1x49x32xf32, #tpu.memory_space<vmem>>, vector<1x49x32xf32>,
    return
  }
  func.func @transform_0(%arg0: i32) -> (i32, i32, i32) {
    %c0_i32 = arith.constant 0 : i32
    %c0_i32_0 = arith.constant 0 : i32
    %c0_i32_1 = arith.constant 0 : i32
    return %arg0, %c0_i32, %c0_i32_0 : i32, i32, i32
  }
  func.func @transform_1(%arg0: i32) -> (i32, i32) {
    %c0_i32 = arith.constant 0 : i32
    %c0_i32_0 = arith.constant 0 : i32
    %c0_i32_1 = arith.constant 0 : i32
    return %c0_i32, %c0_i32_0 : i32, i32
  }
  func.func @transform_2(%arg0: i32) -> (i32, i32) {
    %c0_i32 = arith.constant 0 : i32
    %c0_i32_0 = arith.constant 0 : i32
    %c0_i32_1 = arith.constant 0 : i32
    return %c0_i32, %c0_i32_0 : i32, i32
  }
  func.func @transform_3(%arg0: i32) -> (i32, i32) {
    %c0_i32 = arith.constant 0 : i32
    %c0_i32_0 = arith.constant 0 : i32
    %c0_i32_1 = arith.constant 0 : i32
    return %c0_i32, %c0_i32_0 : i32, i32
  }
  func.func @transform_4(%arg0: i32) -> (i32, i32) {
    %c0_i32 = arith.constant 0 : i32
    %c0_i32_0 = arith.constant 0 : i32
    %c0_i32_1 = arith.constant 0 : i32
    return %c0_i32, %c0_i32_0 : i32, i32
  }
  func.func @transform_5(%arg0: i32) -> (i32, i32) {
    %c0_i32 = arith.constant 0 : i32
    %c0_i32_0 = arith.constant 0 : i32
    %c0_i32_1 = arith.constant 0 : i32
    return %c0_i32, %c0_i32_0 : i32, i32
  }
  func.func @transform_6(%arg0: i32) -> (i32, i32) {
    %c0_i32 = arith.constant 0 : i32
    %c0_i32_0 = arith.constant 0 : i32
    %c0_i32_1 = arith.constant 0 : i32
    return %c0_i32, %c0_i32_0 : i32, i32
  }
  func.func @transform_7(%arg0: i32) -> (i32, i32) {
    %c0_i32 = arith.constant 0 : i32
    %c0_i32_0 = arith.constant 0 : i32
    %c0_i32_1 = arith.constant 0 : i32
    return %c0_i32, %c0_i32_0 : i32, i32
  }
  func.func @transform_8(%arg0: i32) -> (i32, i32) {
    %c0_i32 = arith.constant 0 : i32
    %c0_i32_0 = arith.constant 0 : i32
    %c0_i32_1 = arith.constant 0 : i32
    return %c0_i32, %c0_i32_0 : i32, i32
  }
  func.func @transform_9(%arg0: i32) -> (i32, i32) {
    %c0_i32 = arith.constant 0 : i32
    %c0_i32_0 = arith.constant 0 : i32
    %c0_i32_1 = arith.constant 0 : i32
    return %c0_i32, %c0_i32_0 : i32, i32
  }
  func.func @transform_10(%arg0: i32) -> (i32, i32, i32) {
    %c0_i32 = arith.constant 0 : i32
    %c0_i32_0 = arith.constant 0 : i32
    %c0_i32_1 = arith.constant 0 : i32
    %c0_i32_2 = arith.constant 0 : i32
    return %c0_i32, %c0_i32_0, %c0_i32_1 : i32, i32, i32
  }
  func.func @transform_11(%arg0: i32) -> (i32, i32) {
    %c0_i32 = arith.constant 0 : i32
    %c0_i32_0 = arith.constant 0 : i32
    %c0_i32_1 = arith.constant 0 : i32
    return %c0_i32, %c0_i32_0 : i32, i32
  }
  func.func @transform_12(%arg0: i32) -> (i32, i32) {
    %c0_i32 = arith.constant 0 : i32
    %c0_i32_0 = arith.constant 0 : i32
    %c0_i32_1 = arith.constant 0 : i32
    return %c0_i32, %c0_i32_0 : i32, i32
  }
  func.func @transform_13(%arg0: i32) -> (i32, i32) {
    %c0_i32 = arith.constant 0 : i32
    %c0_i32_0 = arith.constant 0 : i32
    %c0_i32_1 = arith.constant 0 : i32
    return %c0_i32, %c0_i32_0 : i32, i32
  }
  func.func @transform_14(%arg0: i32) -> (i32, i32) {
    %c0_i32 = arith.constant 0 : i32
    %c0_i32_0 = arith.constant 0 : i32
    %c0_i32_1 = arith.constant 0 : i32
    return %c0_i32, %c0_i32_0 : i32, i32
  }
  func.func @transform_15(%arg0: i32) -> (i32, i32) {
    %c0_i32 = arith.constant 0 : i32
    %c0_i32_0 = arith.constant 0 : i32
    %c0_i32_1 = arith.constant 0 : i32
    return %c0_i32, %c0_i32_0 : i32, i32
  }
  func.func @transform_16(%arg0: i32) -> (i32, i32) {
    %c0_i32 = arith.constant 0 : i32
    %c0_i32_0 = arith.constant 0 : i32
    %c0_i32_1 = arith.constant 0 : i32
    return %c0_i32, %c0_i32_0 : i32, i32
  }
  func.func @transform_17(%arg0: i32) -> (i32, i32, i32) {
    %c0_i32 = arith.constant 0 : i32
    %c0_i32_0 = arith.constant 0 : i32
    %c0_i32_1 = arith.constant 0 : i32
    return %arg0, %c0_i32, %c0_i32_0 : i32, i32, i32
  }
}

module attributes {stable_mosaic.version = 11 : i64} {
  func.func @_tail_kernel(%arg0: i32, %arg1: memref<1x196x32xf32, #tpu.memory_space<vmem>>, %arg2: memref<1x196x32xf32, #tpu.memory_space<vmem>>, %arg3: memref<1x32xf32, #tpu.memory_space<vmem>>, %arg4: memref<1x32xf32, #tpu.memory_space<vmem>>, %arg5: memref<32x32xbf16, #tpu.memory_space<vmem>>, %arg6: memref<1x32xf32, #tpu.memory_space<vmem>>, %arg7: memref<1x32xf32, #tpu.memory_space<vmem>>, %arg8: memref<32x32xbf16, #tpu.memory_space<vmem>>, %arg9: memref<32x32xbf16, #tpu.memory_space<vmem>>, %arg10: memref<1x32xf32, #tpu.memory_space<vmem>>, %arg11: memref<1x32xf32, #tpu.memory_space<vmem>>, %arg12: memref<1x196x32xf32, #tpu.memory_space<vmem>>) attributes {dimension_semantics = [#tpu.dimension_semantics<parallel>], iteration_bounds = array<i64: 2>, scalar_prefetch = 0 : i64, scratch_operands = 0 : i64, tpu.core_type = #tpu.core_type<tc>, window_params = [{transform_indices = @transform_0, window_bounds = array<i64: 1, 196, 32>}, {transform_indices = @transform_1, window_bounds = array<i64: 1, 196, 32>}, {pipeline_mode = #tpu.pipeline_mode<synchronous>, transform_indices = @transform_2, window_bounds = array<i64: 1, 32>}, {pipeline_mode = #tpu.pipeline_mode<synchronous>, transform_indices = @transform_3, window_bounds = array<i64: 1, 32>}, {pipeline_mode = #tpu.pipeline_mode<synchronous>, transform_indices = @transform_4, window_bounds = array<i64: 32, 32>}, {pipeline_mode = #tpu.pipeline_mode<synchronous>, transform_indices = @transform_5, window_bounds = array<i64: 1, 32>}, {pipeline_mode = #tpu.pipeline_mode<synchronous>, transform_indices = @transform_6, window_bounds = array<i64: 1, 32>}, {pipeline_mode = #tpu.pipeline_mode<synchronous>, transform_indices = @transform_7, window_bounds = array<i64: 32, 32>}, {pipeline_mode = #tpu.pipeline_mode<synchronous>, transform_indices = @transform_8, window_bounds = array<i64: 32, 32>}, {pipeline_mode = #tpu.pipeline_mode<synchronous>, transform_indices = @transform_9, window_bounds = array<i64: 1, 32>}, {pipeline_mode = #tpu.pipeline_mode<synchronous>, transform_indices = @transform_10, window_bounds = array<i64: 1, 32>}, {transform_indices = @transform_11, window_bounds = array<i64: 1, 196, 32>}]} {
    %c0 = arith.constant 0 : index
    %c0_0 = arith.constant 0 : index
    %c0_1 = arith.constant 0 : index
    %0 = vector.load %arg1[%c0, %c0_0, %c0_1] : memref<1x196x32xf32, #tpu.memory_space<vmem>>, vector<1x196x32xf32>
    %1 = vector.shape_cast %0 : vector<1x196x32xf32> to vector<196x32xf32>
    %c0_2 = arith.constant 0 : index
    %c0_3 = arith.constant 0 : index
    %2 = vector.load %arg3[%c0_2, %c0_3] : memref<1x32xf32, #tpu.memory_space<vmem>>, vector<1x32xf32>
    %3 = vector.broadcast %2 : vector<1x32xf32> to vector<196x32xf32>
    %4 = arith.mulf %1, %3 : vector<196x32xf32>
    %c0_4 = arith.constant 0 : index
    %c0_5 = arith.constant 0 : index
    %5 = vector.load %arg4[%c0_4, %c0_5] : memref<1x32xf32, #tpu.memory_space<vmem>>, vector<1x32xf32>
    %6 = vector.broadcast %5 : vector<1x32xf32> to vector<196x32xf32>
    %7 = arith.addf %4, %6 : vector<196x32xf32>
    %8 = arith.truncf %7 : vector<196x32xf32> to vector<196x32xbf16>
    %c0_6 = arith.constant 0 : index
    %c0_7 = arith.constant 0 : index
    %9 = vector.load %arg5[%c0_6, %c0_7] : memref<32x32xbf16, #tpu.memory_space<vmem>>, vector<32x32xbf16>
    %cst = arith.constant dense<0.000000e+00> : vector<196x32xf32>
    %10 = tpu.matmul %8, %9, %cst {dimension_numbers = #tpu.dot_dimension_numbers<[1], [0], [0], [1], [0, 0, 1, 1], [], []>} : vector<196x32xbf16>, vector<32x32xbf16>, vector<196x32xf32> -> vector<196x32xf32>
    %c0_8 = arith.constant 0 : index
    %c0_9 = arith.constant 0 : index
    %11 = vector.load %arg6[%c0_8, %c0_9] : memref<1x32xf32, #tpu.memory_space<vmem>>, vector<1x32xf32>
    %12 = vector.broadcast %11 : vector<1x32xf32> to vector<196x32xf32>
    %13 = arith.mulf %10, %12 : vector<196x32xf32>
    %c0_10 = arith.constant 0 : index
    %c0_11 = arith.constant 0 : index
    %14 = vector.load %arg7[%c0_10, %c0_11] : memref<1x32xf32, #tpu.memory_space<vmem>>, vector<1x32xf32>
    %15 = vector.broadcast %14 : vector<1x32xf32> to vector<196x32xf32>
    %16 = arith.addf %13, %15 : vector<196x32xf32>
    %cst_12 = arith.constant 3.000000e+00 : f32
    %17 = vector.broadcast %cst_12 : f32 to vector<196x32xf32>
    %18 = arith.addf %16, %17 : vector<196x32xf32>
    %cst_13 = arith.constant 0.000000e+00 : f32
    %cst_14 = arith.constant 6.000000e+00 : f32
    %19 = vector.broadcast %cst_13 : f32 to vector<196x32xf32>
    %20 = arith.maximumf %19, %18 : vector<196x32xf32>
    %21 = vector.broadcast %cst_14 : f32 to vector<196x32xf32>
    %22 = arith.minimumf %21, %20 : vector<196x32xf32>
    %cst_15 = arith.constant 0.166666672 : f32
    %23 = vector.broadcast %cst_15 : f32 to vector<196x32xf32>
    %24 = arith.mulf %22, %23 : vector<196x32xf32>
    %c0_16 = arith.constant 0 : index
    %c0_17 = arith.constant 0 : index
    %c0_18 = arith.constant 0 : index
    %25 = vector.load %arg2[%c0_16, %c0_17, %c0_18] : memref<1x196x32xf32, #tpu.memory_space<vmem>>, vector<1x196x32xf32>
    %26 = vector.shape_cast %25 : vector<1x196x32xf32> to vector<196x32xf32>
    %27 = arith.mulf %26, %24 : vector<196x32xf32>
    %28 = arith.truncf %7 : vector<196x32xf32> to vector<196x32xbf16>
    %c0_19 = arith.constant 0 : index
    %c0_20 = arith.constant 0 : index
    %29 = vector.load %arg8[%c0_19, %c0_20] : memref<32x32xbf16, #tpu.memory_space<vmem>>, vector<32x32xbf16>
    %cst_21 = arith.constant dense<0.000000e+00> : vector<196x32xf32>
    %30 = tpu.matmul %28, %29, %cst_21 {dimension_numbers = #tpu.dot_dimension_numbers<[1], [0], [0], [1], [0, 0, 1, 1], [], []>} : vector<196x32xbf16>, vector<32x32xbf16>, vector<196x32xf32> -> vector<196x32xf32>
    %31 = arith.truncf %27 : vector<196x32xf32> to vector<196x32xbf16>
    %c0_22 = arith.constant 0 : index
    %c0_23 = arith.constant 0 : index
    %32 = vector.load %arg9[%c0_22, %c0_23] : memref<32x32xbf16, #tpu.memory_space<vmem>>, vector<32x32xbf16>
    %cst_24 = arith.constant dense<0.000000e+00> : vector<196x32xf32>
    %33 = tpu.matmul %31, %32, %cst_24 {dimension_numbers = #tpu.dot_dimension_numbers<[1], [0], [0], [1], [0, 0, 1, 1], [], []>} : vector<196x32xbf16>, vector<32x32xbf16>, vector<196x32xf32> -> vector<196x32xf32>
    %34 = arith.addf %30, %33 : vector<196x32xf32>
    %c0_25 = arith.constant 0 : index
    %c0_26 = arith.constant 0 : index
    %35 = vector.load %arg10[%c0_25, %c0_26] : memref<1x32xf32, #tpu.memory_space<vmem>>, vector<1x32xf32>
    %36 = vector.broadcast %35 : vector<1x32xf32> to vector<196x32xf32>
    %37 = arith.mulf %34, %36 : vector<196x32xf32>
    %c0_27 = arith.constant 0 : index
    %c0_28 = arith.constant 0 : index
    %38 = vector.load %arg11[%c0_27, %c0_28] : memref<1x32xf32, #tpu.memory_space<vmem>>, vector<1x32xf32>
    %39 = vector.broadcast %38 : vector<1x32xf32> to vector<196x32xf32>
    %40 = arith.addf %37, %39 : vector<196x32xf32>
    %c0_29 = arith.constant 0 : index
    %c0_30 = arith.constant 0 : index
    %c0_31 = arith.constant 0 : index
    %41 = vector.load %arg12[%c0_29, %c0_30, %c0_31] : memref<1x196x32xf32, #tpu.memory_space<vmem>>, vector<1x196x32xf32>
    %42 = vector.shape_cast %41 : vector<1x196x32xf32> to vector<196x32xf32>
    %43 = vector.shape_cast %40 : vector<196x32xf32> to vector<1x196x32xf32>
    tpu.vector_store %arg12[%c0_29, %c0_30, %c0_31], %43 {strides = array<i32>} : memref<1x196x32xf32, #tpu.memory_space<vmem>>, vector<1x196x32xf32>,
    return
  }
  func.func @transform_0(%arg0: i32) -> (i32, i32, i32) {
    %c0_i32 = arith.constant 0 : i32
    %c0_i32_0 = arith.constant 0 : i32
    %c0_i32_1 = arith.constant 0 : i32
    return %arg0, %c0_i32, %c0_i32_0 : i32, i32, i32
  }
  func.func @transform_1(%arg0: i32) -> (i32, i32, i32) {
    %c0_i32 = arith.constant 0 : i32
    %c0_i32_0 = arith.constant 0 : i32
    %c0_i32_1 = arith.constant 0 : i32
    return %arg0, %c0_i32, %c0_i32_0 : i32, i32, i32
  }
  func.func @transform_2(%arg0: i32) -> (i32, i32) {
    %c0_i32 = arith.constant 0 : i32
    %c0_i32_0 = arith.constant 0 : i32
    %c0_i32_1 = arith.constant 0 : i32
    return %c0_i32, %c0_i32_0 : i32, i32
  }
  func.func @transform_3(%arg0: i32) -> (i32, i32) {
    %c0_i32 = arith.constant 0 : i32
    %c0_i32_0 = arith.constant 0 : i32
    %c0_i32_1 = arith.constant 0 : i32
    return %c0_i32, %c0_i32_0 : i32, i32
  }
  func.func @transform_4(%arg0: i32) -> (i32, i32) {
    %c0_i32 = arith.constant 0 : i32
    %c0_i32_0 = arith.constant 0 : i32
    %c0_i32_1 = arith.constant 0 : i32
    return %c0_i32, %c0_i32_0 : i32, i32
  }
  func.func @transform_5(%arg0: i32) -> (i32, i32) {
    %c0_i32 = arith.constant 0 : i32
    %c0_i32_0 = arith.constant 0 : i32
    %c0_i32_1 = arith.constant 0 : i32
    return %c0_i32, %c0_i32_0 : i32, i32
  }
  func.func @transform_6(%arg0: i32) -> (i32, i32) {
    %c0_i32 = arith.constant 0 : i32
    %c0_i32_0 = arith.constant 0 : i32
    %c0_i32_1 = arith.constant 0 : i32
    return %c0_i32, %c0_i32_0 : i32, i32
  }
  func.func @transform_7(%arg0: i32) -> (i32, i32) {
    %c0_i32 = arith.constant 0 : i32
    %c0_i32_0 = arith.constant 0 : i32
    %c0_i32_1 = arith.constant 0 : i32
    return %c0_i32, %c0_i32_0 : i32, i32
  }
  func.func @transform_8(%arg0: i32) -> (i32, i32) {
    %c0_i32 = arith.constant 0 : i32
    %c0_i32_0 = arith.constant 0 : i32
    %c0_i32_1 = arith.constant 0 : i32
    return %c0_i32, %c0_i32_0 : i32, i32
  }
  func.func @transform_9(%arg0: i32) -> (i32, i32) {
    %c0_i32 = arith.constant 0 : i32
    %c0_i32_0 = arith.constant 0 : i32
    %c0_i32_1 = arith.constant 0 : i32
    return %c0_i32, %c0_i32_0 : i32, i32
  }
  func.func @transform_10(%arg0: i32) -> (i32, i32) {
    %c0_i32 = arith.constant 0 : i32
    %c0_i32_0 = arith.constant 0 : i32
    %c0_i32_1 = arith.constant 0 : i32
    return %c0_i32, %c0_i32_0 : i32, i32
  }
  func.func @transform_11(%arg0: i32) -> (i32, i32, i32) {
    %c0_i32 = arith.constant 0 : i32
    %c0_i32_0 = arith.constant 0 : i32
    %c0_i32_1 = arith.constant 0 : i32
    return %arg0, %c0_i32, %c0_i32_0 : i32, i32, i32
  }
}

</mosaic_0001>

<bundles_post_ra>
// kernel: sbcformer_block.9
= control target key start
LH: loop header
LB: loop body
LE: loop exit
PB: predicated region body
PF: predicated region fallthrough
CT: control target
= control target key end

     0   :  { %s1502_s13 = smov 0   ;;  %s2138_s0 = inlined_call_operand.vmem [shape: f32[2,49,32], index: 0, kind: input, shape index: {}]   ;;  %s2139_s1 = inlined_call_operand.vmem [shape: bf16[32,64], index: 1, kind: input, shape index: {}]   ;;  %s2140_s2 = inlined_call_operand.vmem [shape: f32[1,64], index: 2, kind: input, shape index: {}]   ;;  %s2141_s3 = inlined_call_operand.vmem [shape: f32[1,64], index: 3, kind: input, shape index: {}]   ;;  %s2142_s4 = inlined_call_operand.vmem [shape: f32[9,64], index: 4, kind: input, shape index: {}]   ;;  %s2143_s5 = inlined_call_operand.vmem [shape: f32[1,64], index: 5, kind: input, shape index: {}]   ;;  %s2144_s6 = inlined_call_operand.vmem [shape: f32[1,64], index: 6, kind: input, shape index: {}]   ;;  %s2145_s7 = inlined_call_operand.vmem [shape: bf16[64,32], index: 7, kind: input, shape index: {}]   ;;  %s2146_s8 = inlined_call_operand.vmem [shape: f32[1,32], index: 8, kind: input, shape index: {}]   ;;  %s2147_s9 = inlined_call_operand.vmem [shape: f32[1,32], index: 9, kind: input, shape index: {}]   ;;  %s2148_s10 = inlined_call_operand.vmem [shape: f32[2,49,32], index: 10, kind: output, shape index: {}]  }
   0x1 LB: > { %s1299_s14 = sadd.s32 4294967295, %s1443_s13   ;;  %p1303_p0 = scmp.ge.s32.totalorder %s1443_s13, 1  ;;  %s1443_s13 = sphi %s1502_s13, %s20_s13  }
   0x2   : > { %p312_p1 = scmp.lt.s32.totalorder %s1443_s13, 3 }
   0x4   : > { %p313_p2 = pnand %p1303_p0, %p312_p1 }
   0x5   : > { %v1396_v0 = vld [vmem:[%s2139_s1] sm:$0xff] (!%p313_p2)   ;;  %p350_p3 = scmp.lt.s32.totalorder (!%p313_p2), %s1299_s14, 1  ;;  %v1397_v1 = vld [vmem:[%s2139_s1 + $0x8] sm:$0xff] (!%p313_p2)   ;;  %vm388_vm0 = vcmask (!%p313_p2), 261120   ;;  %vm556_vm1 = vcmask (!%p313_p2), 523264   ;;  %v1445_v13 = vmov (!%p313_p2), 0.0   ;;  %v567_v18 = vlaneseq (!%p313_p2) }
   0x6   : > { %316 = sbr.rel (%p313_p2) target bundleno = 582 (0x246), region = 60  ;;  %1343 = vmatprep.subr.bf16.mxu0 (!%p313_p2), %v1396_v0  ;;  %557 = vst.msk [vmem:[#allocation2] sm:$0xff] (!%p313_p2), %vm556_vm1, %v1445_v13  ;;  %558 = vst.msk [vmem:[#allocation2 + $0x39] sm:$0xff] (!%p313_p2), %vm556_vm1, %v1445_v13  ;;  %v1398_v14 = vld [vmem:[%s2145_s7] sm:$0xff] (!%p313_p2)   ;;  %v1399_v15 = vld [vmem:[%s2145_s7 + $0x8] sm:$0xff] (!%p313_p2)   ;;  %v1446_v28 = vmov (!%p313_p2), 0  }
   0x7   : > { %1344 = vmatpush3.bf16.msra.mxu0 (!%p313_p2), %v1396_v0  ;;  %1355 = vmatprep.subr.bf16.mxu1 (!%p313_p2), %v1398_v14  ;;  %v1400_v16 = vld [vmem:[%s2145_s7 + $0x10] sm:$0xff] (!%p313_p2)   ;;  %v1401_v17 = vld [vmem:[%s2145_s7 + $0x18] sm:$0xff] (!%p313_p2)   ;;  %v1551_v19 = vshrl.u32 (!%p313_p2), %v567_v18, 7  ;;  %v1585_v44 = vld [vmem:[%s2142_s4] sm:$0xff] (!%p313_p2) }
   0x8   : > { %1345 = vmatprep.subr.bf16.mxu0 (!%p313_p2), %v1397_v1  ;;  %1356 = vmatpush3.bf16.msra.mxu1 (!%p313_p2), %v1398_v14  ;;  %v1592_v49 = vld [vmem:[%s2140_s2] ss:$0 sm:$0xff] (!%p313_p2) }
   0x9   : > { %1357 = vmatprep.subr.bf16.mxu1 (!%p313_p2), %v1399_v15  ;;  %v1554_v20 = vmul.u32.u64.low (!%p313_p2), 2454267026, %v1551_v19  ;;  %v1555_v21 = vmul.u32.u64.high 2454267026, %v1551_v19, %v1554_v20  ;;  %v571_v22 = vadd.s32 (!%p313_p2), 24, %v1551_v19  ;;  %v569_v23 = vadd.s32 (!%p313_p2), 8, %v1551_v19  ;;  %v1600_v51 = vld [vmem:[%s2141_s3] ss:$0 sm:$0xff] (!%p313_p2) }
   0xa   : > { %v1572_v36 = vadd.s32 (!%p313_p2), 32, %v1551_v19  ;;  %v875_v42 = vsub.s32 (!%p313_p2), 4, %v1551_v19  ;;  %v1580_v43 = vadd.s32 (!%p313_p2), 40, %v1551_v19  ;;  %v754_v46 = vsub.s32 (!%p313_p2), 0, %v1551_v19 }
   0xb   : > { %1346 = vmatpush3.bf16.msra.mxu0 (!%p313_p2), %v1397_v1  ;;  %vm581_vm2 = vc.u32 (!%p313_p2), %v1554_v20, 2454267026  ;;  %v1559_v24 = vmul.u32.u64.low (!%p313_p2), 2454267026, %v571_v22  ;;  %v1560_v25 = vmul.u32.u64.high 2454267026, %v571_v22, %v1559_v24  ;;  %v1595_v50 = vadd.s32 (!%p313_p2), 16, %v1551_v19 }
   0xc   : > { %1358 = vmatpush3.bf16.msra.mxu1 (!%p313_p2), %v1399_v15  ;;  %v1562_v26 = vmul.u32.u64.low (!%p313_p2), 2454267026, %v569_v23  ;;  %v1563_v27 = vmul.u32.u64.high 2454267026, %v569_v23, %v1562_v26  ;;  %v582_v29 = vsel (!%p313_p2), %vm581_vm2, 1, %v1446_v28  ;;  %v1603_v52 = vrot.slane (!%p313_p2), %v1585_v44, %v875_v42 }
   0xd   : > { %s2154_s14 = smov (!%p350_p3, %s1299_s14), 1  ;;  %1359 = vmatprep.subr.bf16.mxu1 %v1400_v16  ;;  %vm623_vm3 = vc.u32 %v1559_v24, 2454267026  ;;  %v583_v30 = vadd.s32 %v1555_v21, %v582_v29  ;;  %v1575_v40 = vmul.u32.u64.low 2454267026, %v1572_v36  ;;  %v1576_v41 = vmul.u32.u64.high 2454267026, %v1572_v36, %v1575_v40 }
   0xe   : > { %s1371_s19 = smul.u32 56, %s2154_s14  ;;  %vm595_vm4 = vc.u32 %v1562_v26, 2454267026  ;;  %v624_v31 = vsel %vm623_vm3, 1, %v1446_v28  ;;  %v1606_v53 = vmul.u32.u64.low 2454267026, %v1580_v43  ;;  %v1607_v54 = vmul.u32.u64.high 2454267026, %v1580_v43, %v1606_v53 }
   0xf   : > { %v596_v32 = vsel %vm595_vm4, 1, %v1446_v28  ;;  %v584_v33 = vshrl.u32 %v583_v30, 2  ;;  %v625_v34 = vadd.s32 %v1560_v25, %v624_v31  ;;  %vm637_vm5 = vc.u32 %v1575_v40, 2454267026 }
  0x10   : > { %s1524_s22 = scalar_lea.vmem %s2138_s0, %s1371_s19  ;;  %1360 = vmatpush3.bf16.msra.mxu1 %v1400_v16  ;;  %v597_v35 = vadd.s32 %v1563_v27, %v596_v32  ;;  %v638_v56 = vsel %vm637_vm5, 1, %v1446_v28  ;;  %v1611_v57 = vadd.s32 48, %v1551_v19  ;;  %v1615_v60 = vrot.slane %v1585_v44, %v754_v46  ;;  %s2113_s15 = scalar_lea.vmem %s2148_s10, %s1371_s19 }
  0x11   : > { %v361_v2 = vld [vmem:[%s1524_s22] sm:$0xff]  ;;  %v362_v3 = vld [vmem:[%s1524_s22 + $0x8] sm:$0xff]  ;;  %v363_v4 = vld [vmem:[%s1524_s22 + $0x10] sm:$0xff]  ;;  %1361 = vmatprep.subr.bf16.mxu1 %v1401_v17  ;;  %v585_v37 = vmul.u32 7, %v584_v33  ;;  %v626_v38 = vshrl.u32 %v625_v34, 2  ;;  %v779_v13 = vsub.s32 1, %v1551_v19 }
  0x12   : > { %v368_v5 = vpack.c.bf16 %v362_v3, %v361_v2  ;;  %v364_v6 = vld [vmem:[%s1524_s22 + $0x18] sm:$0xff]  ;;  %v365_v7 = vld [vmem:[%s1524_s22 + $0x20] sm:$0xff]  ;;  %v366_v8 = vld [vmem:[%s1524_s22 + $0x28] sm:$0xff]  ;;  %v598_v39 = vshrl.u32 %v597_v35, 2  ;;  %v1623_v2 = vmul.u32.u64.low 2454267026, %v1595_v50  ;;  %v1624_v3 = vmul.u32.u64.high 2454267026, %v1595_v50, %v1623_v2 }
  0x13   : > { %v369_v9 = vpack.c.bf16 %v364_v6, %v363_v4  ;;  %v370_v10 = vpack.c.bf16 %v366_v8, %v365_v7  ;;  %v367_v11 = vld [vmem:[%s1524_s22 + $0x30] sm:$0x1]  ;;  %v586_v45 = vsub.s32 %v1551_v19, %v585_v37  ;;  %v627_v47 = vmul.u32 7, %v626_v38 }
  0x14   : > { %1347 = vmatprep.mubr.msk.bf16.mxu0 %vm388_vm0, %v368_v5  ;;  %v371_v12 = vpack.c.bf16 %v367_v11, %v367_v11  ;;  %1362 = vmatpush3.bf16.msra.mxu1 %v1401_v17  ;;  %v599_v48 = vmul.u32 7, %v598_v39  ;;  %v1631_v7 = vadd.s32 %v1576_v41, %v638_v56  ;;  %vm651_vm9 = vc.u32 %v1606_v53, 2454267026 }
  0x15   : > { %1348 = vmatmul.mubr.msk.bf16.vlgmr.msra.gmra.mrb[0].mxu0 %vm388_vm0, %v369_v9  ;;  %vm673_vm6 = vcmp.ne.s32.totalorder %v586_v45, 0  ;;  %vm680_vm7 = vcmp.lt.s32.totalorder %v586_v45, 0  ;;  %v1617_v61 = vsub.s32 %v571_v22, %v627_v47  ;;  %v694_v0 = vadd.s32 7, %v586_v45 }
  0x16   : > { %1351 = vmatprep.mubr.msk.bf16.mxu0 %vm388_vm0, %v370_v10  ;;  %v1619_v62 = vsub.s32 %v569_v23, %v599_v48  ;;  %vm687_vm8 = vmand %vm680_vm7, %vm673_vm6  ;;  %v1638_v10 = vmul.u32.u64.low 2454267026, %v1611_v57  ;;  %v1639_v11 = vmul.u32.u64.high 2454267026, %v1611_v57, %v1638_v10  ;;  %v652_v20 = vsel %vm651_vm9, 1, %v1446_v28 }
  0x17   : > { %v1647_v15 = vadd.s32 7, %v1617_v61  ;;  %v1650_v17 = vsel %vm687_vm8, %v694_v0, %v586_v45  ;;  %v825_v22 = vsub.s32 2, %v1551_v19  ;;  %vm676_vm10 = vcmp.ne.s32.totalorder %v1617_v61, 0 }
  0x18   : > { %vm683_vm11 = vcmp.lt.s32.totalorder %v1617_v61, 0  ;;  %vm609_vm12 = vc.u32 %v1623_v2, 2454267026  ;;  %v640_v27 = vshrl.u32 %v1631_v7, 2  ;;  %vm665_vm13 = vc.u32 %v1638_v10, 2454267026 }
  0x19   : > { %v653_v33 = vadd.s32 %v1607_v54, %v652_v20  ;;  %v610_v39 = vsel %vm609_vm12, 1, %v1446_v28  ;;  %v666_v46 = vsel %vm665_vm13, 1, %v1446_v28  ;;  %vm674_vm14 = vcmp.ne.s32.totalorder %v1619_v62, 0  ;;  %vm690_vm15 = vmand %vm683_vm11, %vm676_vm10  ;;  %v724_v20 = vld [vmem:[#allocation2] sm:$0xff] }
  0x1a   : > { %v641_v10 = vmul.u32 7, %v640_v27  ;;  %vm708_vm2 = vcmp.gt.s32.totalorder %v1650_v17, 0  ;;  %vm681_vm3 = vcmp.lt.s32.totalorder %v1619_v62, 0  ;;  %vm715_vm8 = vcmp.lt.s32.totalorder %v1650_v17, 6 }
  0x1b   : > { %v654_v7 = vshrl.u32 %v653_v33, 2  ;;  %v745_v33 = vsel %vm708_vm2, %v724_v20, 0.0  ;;  %vm688_vm7 = vmand %vm681_vm3, %vm674_vm14 }
  0x1d   : > { %1352 = vmatmul.mubr.msk.bf16.gmra.mrb[4].mxu0 %vm388_vm0, %v371_v12  ;;  %v655_v27 = vmul.u32 7, %v654_v7 }
  0xe8   : > { %v1349_v55 = vpop.f32.mrb[0].mxu0 }
  0xe9   : > { %v474_v58 = vmul.f32 %v1349_v55, %v1592_v49  ;;  %v435_v59 = vpop.f32.mrb[1].mxu0 }
  0xea   : > { %v472_v63 = vmul.f32 %v1592_v49, %v435_v59  ;;  %v1350_v1 = vpop.f32.mrb[2].mxu0  ;;  %v611_v59 = vadd.s32 %v1624_v3, %v610_v39  ;;  %v1738_v39 = vsub.s32 %v1580_v43, %v655_v27 }
  0xeb   : > { %v1627_v4 = vadd.f32 %v1600_v51, %v474_v58  ;;  %v475_v5 = vmul.f32 %v1350_v1, %v1592_v49  ;;  %v438_v6 = vpop.f32.mrb[3].mxu0  ;;  %v667_v1 = vadd.s32 %v1639_v11, %v666_v46 }
  0xec   : > { %v1634_v8 = vadd.f32 %v1600_v51, %v472_v63  ;;  %v473_v9 = vmul.f32 %v1592_v49, %v438_v6  ;;  %vm678_vm9 = vcmp.ne.s32.totalorder %v1738_v39, 0  ;;  %vm685_vm10 = vcmp.lt.s32.totalorder %v1738_v39, 0 }
  0xed   : > { %v502_v12 = vmul.f32 0.044715, %v1627_v4  ;;  %v1644_v14 = vadd.f32 %v1600_v51, %v475_v5  ;;  %v495_v46 = vmul.f32 0.5, %v1627_v4 }
  0xee   : > { %v500_v16 = vmul.f32 0.044715, %v1634_v8  ;;  %v1653_v18 = vadd.f32 %v1600_v51, %v473_v9  ;;  %v493_v43 = vmul.f32 0.5, %v1634_v8 }
  0xef   : > { %v509_v21 = vmul.f32 %v502_v12, %v1627_v4  ;;  %v503_v23 = vmul.f32 0.044715, %v1644_v14  ;;  %v857_v12 = vsub.s32 3, %v1551_v19 }
  0xf0   : > { %v507_v24 = vmul.f32 %v500_v16, %v1634_v8  ;;  %v501_v25 = vmul.f32 0.044715, %v1653_v18  ;;  %v1353_v26 = vpop.f32.mrb[4].mxu0  ;;  %v612_v16 = vshrl.u32 %v611_v59, 2 }
  0xf1   : > { %v516_v29 = vmul.f32 %v509_v21, %v1627_v4  ;;  %v510_v30 = vmul.f32 %v503_v23, %v1644_v14  ;;  %v478_v31 = vmul.f32 %v1353_v26, %v1592_v49  ;;  %v451_v32 = vpop.f32.mrb[5].mxu0 }
  0xf2   : > { %v514_v34 = vmul.f32 %v507_v24, %v1634_v8  ;;  %v508_v35 = vmul.f32 %v501_v25, %v1653_v18  ;;  %v476_v37 = vmul.f32 %v1592_v49, %v451_v32  ;;  %v1354_v38 = vpop.f32.mrb[6].mxu0  ;;  %v668_v24 = vshrl.u32 %v667_v1, 2 }
  0xf3   : > { %v523_v40 = vadd.f32 %v516_v29, %v1627_v4  ;;  %v517_v41 = vmul.f32 %v510_v30, %v1644_v14  ;;  %v1676_v42 = vadd.f32 %v1600_v51, %v478_v31  ;;  %v454_v45 = vpop.f32.mrb[7].mxu0  ;;  %v1712_v25 = vrot.slane %v1585_v44, %v779_v13 }
  0xf4   : > { %v521_v47 = vadd.f32 %v514_v34, %v1634_v8  ;;  %v515_v48 = vmul.f32 %v508_v35, %v1653_v18  ;;  %v1683_v53 = vadd.f32 %v1600_v51, %v476_v37  ;;  %v477_v54 = vmul.f32 %v1592_v49, %v454_v45 }
  0xf5   : > { %v530_v55 = vmul.f32 0.7978846, %v523_v40  ;;  %v524_v56 = vadd.f32 %v517_v41, %v1644_v14  ;;  %v506_v58 = vmul.f32 0.044715, %v1676_v42  ;;  %v1718_v29 = vsel %vm690_vm15, %v1647_v15, %v1617_v61 }
  0xf6   : > { %v528_v63 = vmul.f32 0.7978846, %v521_v47  ;;  %v522_v0 = vadd.f32 %v515_v48, %v1653_v18  ;;  %v504_v28 = vmul.f32 0.044715, %v1683_v53  ;;  %v1694_v49 = vadd.f32 %v1600_v51, %v477_v54 }
  0xf7   : > { %1402 = vtanh.f32 %v530_v55  ;;  %v531_v2 = vmul.f32 0.7978846, %v524_v56  ;;  %v513_v5 = vmul.f32 %v506_v58, %v1676_v42  ;;  %v1721_v31 = vsub.s32 %v1572_v36, %v641_v10 }
  0xf8   : > { %1404 = vtanh.f32 %v528_v63  ;;  %v529_v6 = vmul.f32 0.7978846, %v522_v0  ;;  %v511_v3 = vmul.f32 %v504_v28, %v1683_v53  ;;  %v505_v11 = vmul.f32 0.044715, %v1694_v49 }
  0xf9   : > { %1406 = vtanh.f32 %v531_v2  ;;  %v520_v9 = vmul.f32 %v513_v5, %v1676_v42  ;;  %v1729_v13 = vrot.slane %v1585_v44, %v825_v22  ;;  %v613_v35 = vmul.u32 7, %v612_v16 }
  0xfa   : > { %1408 = vtanh.f32 %v529_v6  ;;  %v518_v51 = vmul.f32 %v511_v3, %v1683_v53  ;;  %v512_v23 = vmul.f32 %v505_v11, %v1694_v49  ;;  %v1732_v37 = vrot.slane %v1585_v44, %v857_v12 }
  0xfb   : > { %v527_v21 = vadd.f32 %v520_v9, %v1676_v42  ;;  %v669_v36 = vmul.u32 7, %v668_v24  ;;  %v954_v15 = vsub.s32 7, %v1551_v19  ;;  %v695_v38 = vadd.s32 7, %v1619_v62 }
  0xfc   : > { %v525_v26 = vadd.f32 %v518_v51, %v1683_v53  ;;  %v519_v32 = vmul.f32 %v512_v23, %v1694_v49  ;;  %v902_v22 = vsub.s32 5, %v1551_v19  ;;  %vm677_vm4 = vcmp.ne.s32.totalorder %v1721_v31, 0 }
  0xfd   : > { %v534_v30 = vmul.f32 0.7978846, %v527_v21  ;;  %vm684_vm5 = vcmp.lt.s32.totalorder %v1721_v31, 0  ;;  %v698_v48 = vadd.s32 7, %v1721_v31  ;;  %v614_v54 = vsub.s32 %v1595_v50, %v613_v35 }
  0xfe   : > { %v532_v34 = vmul.f32 0.7978846, %v525_v26  ;;  %v526_v61 = vadd.f32 %v519_v32, %v1694_v49  ;;  %vm711_vm6 = vcmp.gt.s32.totalorder %v1718_v29, 0  ;;  %v670_v58 = vsub.s32 %v1611_v57, %v669_v36  ;;  %vm1766_vm11 = vmand %vm684_vm5, %vm677_vm4 }
  0xff   : > { %1410 = vtanh.f32 %v534_v30  ;;  %v496_v50 = vmul.f32 0.5, %v1644_v14  ;;  %v494_v0 = vmul.f32 0.5, %v1653_v18  ;;  %v1760_v57 = vsel %vm688_vm7, %v695_v38, %v1619_v62  ;;  %vm1779_vm4 = vmand %vm685_vm10, %vm678_vm9 }
 0x100   : > { %1412 = vtanh.f32 %v532_v34  ;;  %v533_v41 = vmul.f32 0.7978846, %v526_v61  ;;  %vm675_vm12 = vcmp.ne.s32.totalorder %v614_v54, 0  ;;  %vm682_vm13 = vcmp.lt.s32.totalorder %v614_v54, 0 }
 0x101   : > { %v1403_v40 = vpop.eup %1402  ;;  %v934_v2 = vsub.s32 6, %v1551_v19  ;;  %vm679_vm14 = vcmp.ne.s32.totalorder %v670_v58, 0  ;;  %vm686_vm15 = vcmp.lt.s32.totalorder %v670_v58, 0  ;;  %v756_v62 = vmul.f32 %v1615_v60, %v745_v33  ;;  %vm689_vm7 = vmand %vm682_vm13, %vm675_vm12 }
 0x102   : > { %v1405_v45 = vpop.eup %1404  ;;  %v544_v47 = vadd.f32 1.0, %v1403_v40  ;;  %1414 = vtanh.f32 %v533_v41  ;;  %vm718_vm3 = vcmp.lt.s32.totalorder %v1718_v29, 6  ;;  %v699_v6 = vadd.s32 7, %v1738_v39  ;;  %vm693_vm10 = vmand %vm686_vm15, %vm679_vm14 }
 0x103   : > { %v1407_v55 = vpop.eup %1406  ;;  %v542_v56 = vadd.f32 1.0, %v1405_v45  ;;  %v696_v3 = vadd.s32 7, %v614_v54  ;;  %v1785_v7 = vrot.slane %v1585_v44, %v954_v15  ;;  %vm709_vm5 = vcmp.gt.s32.totalorder %v1760_v57, 0 }
 0x104   : > { %v1409_v4 = vpop.eup %1408  ;;  %v551_v59 = vmul.f32 %v544_v47, %v495_v46  ;;  %v545_v63 = vadd.f32 1.0, %v1407_v55  ;;  %v1792_v9 = vsel %vm1766_vm11, %v698_v48, %v1721_v31  ;;  %v700_v10 = vadd.s32 7, %v670_v58 }
 0x105   : > { %v549_v8 = vmul.f32 %v542_v56, %v493_v43  ;;  %v543_v28 = vadd.f32 1.0, %v1409_v4  ;;  %vm716_vm9 = vcmp.lt.s32.totalorder %v1760_v57, 6  ;;  %v1798_v12 = vrot.slane %v1585_v44, %v902_v22 }
 0x106   : > { %561 = vst.msk [vmem:[#allocation2 + $0x18] sm:$0xff] %vm556_vm1, %v551_v59  ;;  %v552_v1 = vmul.f32 %v545_v63, %v496_v50  ;;  %v499_v51 = vmul.f32 0.5, %v1676_v42  ;;  %v1804_v20 = vrot.slane %v1585_v44, %v934_v2  ;;  %vm565_vm11 = vcmask 516096  }
 0x107   : > { %559 = vst.msk [vmem:[#allocation2 + $0x8] sm:$0xff] %vm556_vm1, %v549_v8  ;;  %v550_v18 = vmul.f32 %v543_v28, %v494_v0  ;;  %v497_v21 = vmul.f32 0.5, %v1683_v53  ;;  %vm712_vm12 = vcmp.gt.s32.totalorder %v1792_v9, 0  ;;  %v1813_v26 = vsel %vm1779_vm4, %v699_v6, %v1738_v39 }
 0x108   : > { %562 = vst.msk [vmem:[#allocation2 + $0x20] sm:$0xff] %vm556_vm1, %v552_v1  ;;  %v1815_v42 = vsel %vm689_vm7, %v696_v3, %v614_v54  ;;  %v1818_v30 = vmul.f32 %v1603_v52, %v551_v59  ;;  %vm719_vm13 = vcmp.lt.s32.totalorder %v1792_v9, 6  ;;  %v1824_v53 = vmul.f32 0.5, %v1694_v49 }
 0x109   : > { %v1411_v19 = vpop.eup %1410  ;;  %560 = vst.msk [vmem:[#allocation2 + $0x10] sm:$0xff] %vm556_vm1, %v550_v18  ;;  %v1826_v32 = vsel %vm693_vm10, %v700_v10, %v670_v58  ;;  %v877_v61 = vmul.f32 %v1603_v52, %v549_v8  ;;  %v1832_v15 = vmul.f32 %v1603_v52, %v552_v1  ;;  %v1835_v38 = vmul.f32 %v1603_v52, %v550_v18 }
 0x10a   : > { %v1413_v11 = vpop.eup %1412  ;;  %v548_v16 = vadd.f32 1.0, %v1411_v19  ;;  %vm713_vm14 = vcmp.gt.s32.totalorder %v1813_v26, 0  ;;  %vm710_vm15 = vcmp.gt.s32.totalorder %v1815_v42, 0  ;;  %vm720_vm4 = vcmp.lt.s32.totalorder %v1813_v26, 6 }
 0x10b   : > { %v546_v23 = vadd.f32 1.0, %v1413_v11  ;;  %vm717_vm7 = vcmp.lt.s32.totalorder %v1815_v42, 6 }
 0x10c   : > { %v1807_v24 = vmul.f32 %v548_v16, %v499_v51  ;;  %v1415_v27 = vpop.eup %1414 }
 0x10d   : > { %v727_v44 = vld [vmem:[#allocation2 + $0x18] sm:$0xff]  ;;  %v1820_v31 = vmul.f32 %v546_v23, %v497_v21  ;;  %v547_v56 = vadd.f32 1.0, %v1415_v27 }
 0x10e   : > { %v770_v33 = vld [vmem:[#allocation2 + $0x1] sm:$0xff]  ;;  %v748_v36 = vsel %vm711_vm6, %v727_v44, 0.0  ;;  %566 = vst.msk [vmem:[#allocation2 + $0x38] sm:$0x1] %vm565_vm11, %v1807_v24  ;;  %v1866_v0 = vsel %vm716_vm9, %v727_v44, 0.0 }
 0x10f   : > { %v795_v34 = vld [vmem:[#allocation2 + $0x2] sm:$0xff]  ;;  %v781_v49 = vmul.f32 %v1712_v25, %v770_v33  ;;  %v759_v22 = vmul.f32 %v1615_v60, %v748_v36  ;;  %v1845_v41 = vld [vmem:[#allocation2 + $0x19] sm:$0xff]  ;;  %563 = vst.msk [vmem:[#allocation2 + $0x28] sm:$0xff] %vm556_vm1, %v1820_v31 }
 0x110   : > { %v841_v35 = vld [vmem:[#allocation2 + $0x7] sm:$0xff]  ;;  %v816_v39 = vsel %vm715_vm8, %v795_v34, 0.0  ;;  %v798_v45 = vld [vmem:[#allocation2 + $0x1a] sm:$0xff]  ;;  %v784_v48 = vmul.f32 %v1712_v25, %v1845_v41  ;;  %v772_v50 = vld [vmem:[#allocation2 + $0x11] sm:$0xff] }
 0x111   : > { %v848_v40 = vsel %vm708_vm2, %v841_v35, 0.0  ;;  %v844_v46 = vld [vmem:[#allocation2 + $0x1f] sm:$0xff]  ;;  %v827_v47 = vmul.f32 %v1729_v13, %v816_v39  ;;  %v819_v54 = vsel %vm718_vm3, %v798_v45, 0.0  ;;  %v725_v55 = vld [vmem:[#allocation2 + $0x8] sm:$0xff]  ;;  %v788_v58 = vadd.f32 %v781_v49, %v756_v62  ;;  %v919_v3 = vld [vmem:[#allocation2 + $0x16] sm:$0xff] }
 0x112   : > { %v1854_v43 = vld [vmem:[#allocation2 + $0x9] sm:$0xff]  ;;  %v830_v4 = vmul.f32 %v1729_v13, %v819_v54  ;;  %v851_v59 = vsel %vm711_vm6, %v844_v46, 0.0  ;;  %v859_v28 = vmul.f32 %v1732_v37, %v848_v40  ;;  %v791_v1 = vadd.f32 %v784_v48, %v759_v22  ;;  %v1878_v19 = vld [vmem:[#allocation2 + $0x20] sm:$0xff] }
 0x113   : > { %v796_v63 = vld [vmem:[#allocation2 + $0xa] sm:$0xff]  ;;  %v746_v14 = vsel %vm709_vm5, %v725_v55, 0.0  ;;  %v782_v18 = vmul.f32 %v1712_v25, %v1854_v43  ;;  %v834_v2 = vadd.f32 %v827_v47, %v788_v58  ;;  %v862_v62 = vmul.f32 %v1732_v37, %v851_v59 }
 0x114   : > { %v1861_v8 = vld [vmem:[#allocation2 + $0xf] sm:$0xff]  ;;  %v757_v5 = vmul.f32 %v1615_v60, %v746_v14  ;;  %v817_v6 = vsel %vm716_vm9, %v796_v63, 0.0  ;;  %v837_v10 = vadd.f32 %v830_v4, %v791_v1  ;;  %v894_v16 = vsel %vm716_vm9, %v772_v50, 0.0 }
 0x115   : > { %v828_v11 = vmul.f32 %v1729_v13, %v817_v6  ;;  %v849_v51 = vsel %vm709_vm5, %v1861_v8, 0.0  ;;  %v866_v21 = vadd.f32 %v859_v28, %v834_v2  ;;  %v1887_v23 = vmul.f32 %v1785_v7, %v844_v46  ;;  %v726_v4 = vld [vmem:[#allocation2 + $0x10] sm:$0xff]  ;;  %v971_v63 = vld [vmem:[#allocation2 + $0x38] sm:$0xff] }
 0x116   : > { %v783_v27 = vmul.f32 %v1712_v25, %v772_v50  ;;  %v789_v44 = vadd.f32 %v782_v18, %v757_v5  ;;  %v869_v33 = vadd.f32 %v862_v62, %v837_v10  ;;  %v860_v34 = vmul.f32 %v1732_v37, %v849_v51  ;;  %v774_v49 = vld [vmem:[#allocation2 + $0x21] sm:$0xff]  ;;  %v797_v2 = vld [vmem:[#allocation2 + $0x12] sm:$0xff] }
 0x117   : > { %v926_v35 = vsel %vm709_vm5, %v919_v3, 0.0  ;;  %v749_v36 = vsel %vm712_vm12, %v1878_v19, 0.0  ;;  %v799_v39 = vld [vmem:[#allocation2 + $0x22] sm:$0xff]  ;;  %v884_v22 = vadd.f32 %v877_v61, %v866_v21  ;;  %v905_v46 = vmul.f32 %v1798_v12, %v894_v16  ;;  %v843_v62 = vld [vmem:[#allocation2 + $0x17] sm:$0xff] }
 0x118   : > { %v845_v40 = vld [vmem:[#allocation2 + $0x27] sm:$0xff]  ;;  %v835_v45 = vadd.f32 %v828_v11, %v789_v44  ;;  %v881_v47 = vmul.f32 %v1603_v52, %v1820_v31  ;;  %v760_v48 = vmul.f32 %v1615_v60, %v749_v36  ;;  %v785_v54 = vmul.f32 %v1712_v25, %v774_v49 }
 0x119   : > { %v820_v57 = vsel %vm719_vm13, %v799_v39, 0.0  ;;  %v852_v55 = vsel %vm712_vm12, %v845_v40, 0.0  ;;  %v1905_v58 = vld [vmem:[#allocation2 + $0x28] sm:$0xff]  ;;  %v937_v59 = vmul.f32 %v1804_v20, %v926_v35  ;;  %v896_v31 = vsel %vm718_vm3, %v774_v49, 0.0 }
 0x11a   : > { %v867_v61 = vadd.f32 %v860_v34, %v835_v45  ;;  %v831_v50 = vmul.f32 %v1729_v13, %v820_v57  ;;  %v887_v28 = vadd.f32 %v1832_v15, %v869_v33  ;;  %v792_v1 = vadd.f32 %v785_v54, %v760_v48  ;;  %v920_v33 = vld [vmem:[#allocation2 + $0x1e] sm:$0xff]  ;;  %v1951_v48 = vld [vmem:[%s2142_s4 + $0x8] ss:$0 sm:$0xff] }
 0x11b   : > { %v863_v14 = vmul.f32 %v1732_v37, %v852_v55  ;;  %v554_v18 = vmul.f32 %v547_v56, %v1824_v53  ;;  %v907_v6 = vmul.f32 %v1798_v12, %v896_v31  ;;  %v750_v3 = vsel %vm713_vm14, %v1905_v58, 0.0  ;;  %v918_v56 = vld [vmem:[#allocation2 + $0xe] sm:$0xff] }
 0x11c   : > { %v885_v5 = vadd.f32 %v1835_v38, %v867_v61  ;;  %v747_v10 = vsel %vm710_vm15, %v726_v4, 0.0  ;;  %v838_v11 = vadd.f32 %v831_v50, %v792_v1  ;;  %v1922_v15 = vmul.f32 %v1785_v7, %v845_v40 }
 0x11d   : > { %564 = vst.msk [vmem:[#allocation2 + $0x30] sm:$0xff] %vm556_vm1, %v554_v18  ;;  %v1927_v53 = vsel %vm720_vm4, %v971_v63, 0.0  ;;  %v758_v38 = vmul.f32 %v1615_v60, %v747_v10  ;;  %v818_v16 = vsel %vm717_vm7, %v797_v2, 0.0  ;;  %v850_v21 = vsel %vm710_vm15, %v843_v62, 0.0 }
 0x11e   : > { %v912_v51 = vadd.f32 %v905_v46, %v885_v5  ;;  %v893_v44 = vsel %vm715_vm8, %v1854_v43, 0.0  ;;  %v870_v34 = vadd.f32 %v863_v14, %v838_v11  ;;  %v761_v35 = vmul.f32 %v1615_v60, %v750_v3  ;;  %v921_v14 = vld [vmem:[#allocation2 + $0x26] sm:$0xff] }
 0x11f   : > { %v790_v36 = vadd.f32 %v783_v27, %v758_v38  ;;  %v829_v49 = vmul.f32 %v1729_v13, %v818_v16  ;;  %v1940_v39 = vmul.f32 %v1603_v52, %v554_v18  ;;  %v895_v40 = vsel %vm717_vm7, %v1845_v41, 0.0 }
 0x120   : > { %v904_v45 = vmul.f32 %v1798_v12, %v893_v44  ;;  %v925_v46 = vsel %vm708_vm2, %v918_v56, 0.0  ;;  %v944_v43 = vadd.f32 %v937_v59, %v912_v51  ;;  %v861_v54 = vmul.f32 %v1732_v37, %v850_v21 }
 0x121   : > { %v836_v27 = vadd.f32 %v829_v49, %v790_v36  ;;  %v927_v57 = vsel %vm710_vm15, %v920_v33, 0.0  ;;  %v888_v55 = vadd.f32 %v881_v47, %v870_v34  ;;  %v906_v41 = vmul.f32 %v1798_v12, %v895_v40 }
 0x122   : > { %v911_v61 = vadd.f32 %v904_v45, %v884_v22  ;;  %v936_v50 = vmul.f32 %v1804_v20, %v925_v46  ;;  %v938_v59 = vmul.f32 %v1804_v20, %v927_v57  ;;  %v956_v63 = vmul.f32 %v1785_v7, %v1861_v8  ;;  %v1991_v46 = vld [vmem:[%s2143_s5] ss:$0 sm:$0xff] }
 0x123   : > { %v868_v31 = vadd.f32 %v861_v54, %v836_v27  ;;  %v973_v1 = vsel %vm715_vm8, %v726_v4, 0.0  ;;  %v957_v47 = vmul.f32 %v1785_v7, %v843_v62  ;;  %v985_v10 = vmul.f32 %v1951_v48, %v1866_v0 }
 0x124   : > { %v775_v18 = vld [vmem:[#allocation2 + $0x29] sm:$0xff]  ;;  %v943_v3 = vadd.f32 %v936_v50, %v911_v61  ;;  %v984_v22 = vmul.f32 %v1951_v48, %v973_v1  ;;  %v891_v4 = vld [vmem:[#allocation2 + $0x31] sm:$0xff]  ;;  %v914_v16 = vadd.f32 %v907_v6, %v887_v28  ;;  %v928_v0 = vsel %vm711_vm6, %v921_v14, 0.0 }
 0x125   : > { %v800_v2 = vld [vmem:[#allocation2 + $0x2a] sm:$0xff]  ;;  %v786_v11 = vmul.f32 %v1712_v25, %v775_v18  ;;  %v897_v38 = vsel %vm719_vm13, %v775_v18, 0.0  ;;  %v923_v56 = vld [vmem:[#allocation2 + $0x36] sm:$0xff]  ;;  %v898_v51 = vsel %vm720_vm4, %v891_v4, 0.0  ;;  %vm714_vm2 = vcmp.gt.s32.totalorder %v1826_v32, 0 }
 0x126   : > { %v846_v5 = vld [vmem:[#allocation2 + $0x2f] sm:$0xff]  ;;  %v821_v8 = vsel %vm720_vm4, %v800_v2, 0.0  ;;  %v908_v33 = vmul.f32 %v1798_v12, %v897_v38  ;;  %v930_v34 = vsel %vm713_vm14, %v923_v56, 0.0  ;;  %v909_v36 = vmul.f32 %v1798_v12, %v898_v51 }
 0x127   : > { %v853_v17 = vsel %vm713_vm14, %v846_v5, 0.0  ;;  %v832_v62 = vmul.f32 %v1729_v13, %v821_v8  ;;  %v793_v21 = vadd.f32 %v786_v11, %v761_v35  ;;  %v960_v49 = vmul.f32 %v1785_v7, %v846_v5  ;;  %v922_v27 = vld [vmem:[#allocation2 + $0x2e] sm:$0xff] }
 0x128   : > { %v864_v44 = vmul.f32 %v1732_v37, %v853_v17  ;;  %v886_v40 = vadd.f32 %v1818_v30, %v868_v31  ;;  %v963_v28 = vadd.f32 %v956_v63, %v943_v3  ;;  %v941_v45 = vmul.f32 %v1804_v20, %v930_v34  ;;  %v2003_v31 = vld [vmem:[%s2144_s6] ss:$0 sm:$0xff]  ;;  %v970_v14 = vld [vmem:[#allocation2 + $0x30] sm:$0xff] }
 0x129   : > { %v839_v6 = vadd.f32 %v832_v62, %v793_v21  ;;  %v964_v35 = vadd.f32 %v957_v47, %v944_v43  ;;  %v939_v26 = vmul.f32 %v1804_v20, %v928_v0  ;;  %v975_v61 = vsel %vm717_vm7, %v1878_v19, 0.0  ;;  %v730_v17 = vld [vmem:[#allocation2 + $0x30] sm:$0x1] }
 0x12a   : > { %v991_v54 = vadd.f32 %v984_v22, %v963_v28  ;;  %v913_v57 = vadd.f32 %v906_v41, %v886_v40  ;;  %v976_v30 = vsel %vm718_vm3, %v1905_v58, 0.0  ;;  %v915_v42 = vadd.f32 %v908_v33, %v888_v55  ;;  %v950_v58 = vld [vmem:[#allocation2 + $0x37] sm:$0xff] }
 0x12b   : > { %v871_v50 = vadd.f32 %v864_v44, %v839_v6  ;;  %v992_v43 = vadd.f32 %v985_v10, %v964_v35  ;;  %v946_v63 = vadd.f32 %v939_v26, %v914_v16  ;;  %v987_v1 = vmul.f32 %v1951_v48, %v976_v30  ;;  %v776_v16 = vld [vmem:[#allocation2 + $0x31] sm:$0x1] }
 0x12c   : > { %v1005_v41 = vmul.f32 %v1991_v46, %v991_v54  ;;  %v945_v18 = vadd.f32 %v938_v59, %v913_v57  ;;  %v929_v19 = vsel %vm712_vm12, %v922_v27, 0.0  ;;  %v986_v59 = vmul.f32 %v1951_v48, %v975_v61  ;;  %v801_v54 = vld [vmem:[#allocation2 + $0x32] sm:$0x1] }
 0x12d   : > { %v889_v29 = vadd.f32 %v1940_v39, %v871_v50  ;;  %v1006_v2 = vmul.f32 %v1991_v46, %v992_v43  ;;  %v966_v5 = vadd.f32 %v1922_v15, %v946_v63  ;;  %v940_v3 = vmul.f32 %v1804_v20, %v929_v19 }
 0x12e   : > { %v2014_v47 = vadd.f32 %v2003_v31, %v1005_v41  ;;  %v965_v22 = vadd.f32 %v1887_v23, %v945_v18  ;;  %v977_v55 = vsel %vm719_vm13, %v970_v14, 0.0  ;;  %v961_v15 = vmul.f32 %v1785_v7, %v950_v58  ;;  %v892_v18 = vld [vmem:[#allocation2 + $0x39] sm:$0x1]  ;;  %v847_v58 = vld [vmem:[#allocation2 + $0x37] sm:$0x1] }
 0x12f   : > { %v916_v10 = vadd.f32 %v909_v36, %v889_v29  ;;  %v2021_v39 = vadd.f32 %v2003_v31, %v1006_v2  ;;  %v994_v11 = vadd.f32 %v987_v1, %v966_v5  ;;  %v947_v8 = vadd.f32 %v940_v3, %v915_v42 }
 0x130   : > { %v1033_v4 = vmul.f32 0.044715, %v2014_v47  ;;  %v993_v38 = vadd.f32 %v986_v59, %v965_v22  ;;  %v989_v23 = vmul.f32 %v1951_v48, %v1927_v53  ;;  %v988_v51 = vmul.f32 %v1951_v48, %v977_v55 }
 0x131   : > { %v948_v56 = vadd.f32 %v941_v45, %v916_v10  ;;  %v1034_v62 = vmul.f32 0.044715, %v2021_v39  ;;  %v1008_v9 = vmul.f32 %v1991_v46, %v994_v11  ;;  %v967_v44 = vadd.f32 %v960_v49, %v947_v8  ;;  %v924_v10 = vld [vmem:[#allocation2 + $0x3e] sm:$0x1] }
 0x132   : > { %v1040_v0 = vmul.f32 %v1033_v4, %v2014_v47  ;;  %v1007_v21 = vmul.f32 %v1991_v46, %v993_v38  ;;  %v751_v33 = vsel %vm714_vm2, %v730_v17, 0.0  ;;  %v787_v35 = vmul.f32 %v1712_v25, %v776_v16 }
 0x133   : > { %v968_v34 = vadd.f32 %v961_v15, %v948_v56  ;;  %v1041_v36 = vmul.f32 %v1034_v62, %v2021_v39  ;;  %v2036_v53 = vadd.f32 %v2003_v31, %v1008_v9  ;;  %v762_v40 = vmul.f32 %v1615_v60, %v751_v33 }
 0x134   : > { %v1047_v28 = vmul.f32 %v1040_v0, %v2014_v47  ;;  %v2041_v6 = vadd.f32 %v2003_v31, %v1007_v21  ;;  %v995_v45 = vadd.f32 %v988_v51, %v967_v44  ;;  %vm721_vm6 = vcmp.lt.s32.totalorder %v1826_v32, 6  ;;  %v972_v21 = vld [vmem:[#allocation2 + $0x40] sm:$0x1] }
 0x135   : > { %v1048_v49 = vmul.f32 %v1041_v36, %v2021_v39  ;;  %v1036_v26 = vmul.f32 0.044715, %v2036_v53  ;;  %v996_v27 = vadd.f32 %v989_v23, %v968_v34  ;;  %v794_v43 = vadd.f32 %v787_v35, %v762_v40 }
 0x136   : > { %v1054_v57 = vadd.f32 %v1047_v28, %v2014_v47  ;;  %v1035_v60 = vmul.f32 0.044715, %v2041_v6  ;;  %v1009_v61 = vmul.f32 %v1991_v46, %v995_v45  ;;  %v822_v41 = vsel %vm721_vm6, %v801_v54, 0.0 }
 0x137   : > { %v1055_v30 = vadd.f32 %v1048_v49, %v2021_v39  ;;  %v1043_v50 = vmul.f32 %v1036_v26, %v2036_v53  ;;  %v1010_v25 = vmul.f32 %v1991_v46, %v996_v27  ;;  %v833_v3 = vmul.f32 %v1729_v13, %v822_v41 }
 0x138   : > { %v1061_v63 = vmul.f32 0.7978846, %v1054_v57  ;;  %v1042_v1 = vmul.f32 %v1035_v60, %v2041_v6  ;;  %v2055_v14 = vadd.f32 %v2003_v31, %v1009_v61  ;;  %v899_v55 = vsel %vm721_vm6, %v892_v18, 0.0 }
 0x139   : > { %v1062_v42 = vmul.f32 0.7978846, %v1055_v30  ;;  %v1050_v19 = vmul.f32 %v1043_v50, %v2036_v53  ;;  %v2061_v29 = vadd.f32 %v2003_v31, %v1010_v25  ;;  %v840_v17 = vadd.f32 %v833_v3, %v794_v43 }
 0x13a   : > { %1416 = vtanh.f32 %v1061_v63  ;;  %v1049_v2 = vmul.f32 %v1042_v1, %v2041_v6  ;;  %v1037_v5 = vmul.f32 0.044715, %v2055_v14  ;;  %v854_v15 = vsel %vm714_vm2, %v847_v58, 0.0 }
 0x13b   : > { %1418 = vtanh.f32 %v1062_v42  ;;  %v1057_v22 = vadd.f32 %v1050_v19, %v2036_v53  ;;  %v1038_v59 = vmul.f32 0.044715, %v2061_v29  ;;  %v865_v38 = vmul.f32 %v1732_v37, %v854_v15  ;;  %v951_v37 = vld [vmem:[#allocation2 + $0x3f] sm:$0x1] }
 0x13c   : > { %v1056_v11 = vadd.f32 %v1049_v2, %v2041_v6  ;;  %v1044_v8 = vmul.f32 %v1037_v5, %v2055_v14  ;;  %v910_v62 = vmul.f32 %v1798_v12, %v899_v55  ;;  %v931_v9 = vsel %vm714_vm2, %v924_v10, 0.0 }
 0x13d   : > { %v1064_v4 = vmul.f32 0.7978846, %v1057_v22  ;;  %v1045_v13 = vmul.f32 %v1038_v59, %v2061_v29  ;;  %v883_v51 = vmul.f32 %v1603_v52, %v1807_v24  ;;  %v872_v0 = vadd.f32 %v865_v38, %v840_v17  ;;  %v1326_v38 = vld [vmem:[%s2147_s9] ss:$0 sm:$0xff] }
 0x13e   : > { %v1063_v23 = vmul.f32 0.7978846, %v1056_v11  ;;  %v1051_v56 = vmul.f32 %v1044_v8, %v2055_v14  ;;  %v942_v12 = vmul.f32 %v1804_v20, %v931_v9  ;;  %v979_v40 = vsel %vm721_vm6, %v972_v21, 0.0 }
 0x13f   : > { %1420 = vtanh.f32 %v1064_v4  ;;  %v1052_v16 = vmul.f32 %v1045_v13, %v2061_v29  ;;  %v890_v34 = vadd.f32 %v883_v51, %v872_v0  ;;  %v962_v24 = vmul.f32 %v1785_v7, %v951_v37  ;;  %v1325_v4 = vld [vmem:[%s2146_s8] ss:$0 sm:$0xff]  ;;  %v1430_v37 = vld [vmem:[%s1524_s22 + $0x10] sm:$0xff] }
 0x140   : > { %1422 = vtanh.f32 %v1063_v23  ;;  %v1058_v44 = vadd.f32 %v1051_v56, %v2055_v14  ;;  %v990_v27 = vmul.f32 %v1951_v48, %v979_v40  ;;  %v1026_v54 = vmul.f32 0.5, %v2014_v47 }
 0x141   : > { %v1059_v33 = vadd.f32 %v1052_v16, %v2061_v29  ;;  %v917_v52 = vadd.f32 %v910_v62, %v890_v34  ;;  %v1027_v20 = vmul.f32 0.5, %v2021_v39  ;;  %v1028_v63 = vmul.f32 0.5, %v2041_v6 }
 0x142   : > { %v1065_v36 = vmul.f32 0.7978846, %v1058_v44  ;;  %v1029_v1 = vmul.f32 0.5, %v2036_v53  ;;  %v1030_v3 = vmul.f32 0.5, %v2055_v14  ;;  %v1031_v6 = vmul.f32 0.5, %v2061_v29 }
 0x143   : > { %v1066_v28 = vmul.f32 0.7978846, %v1059_v33  ;;  %v949_v26 = vadd.f32 %v942_v12, %v917_v52  ;;  %v1431_v12 = vld [vmem:[%s1524_s22] sm:$0xff] }
 0x144   : > { %v1417_v45 = vpop.eup %1416  ;;  %1424 = vtanh.f32 %v1065_v36 }
 0x145   : > { %v1419_v35 = vpop.eup %1418  ;;  %v1075_v49 = vadd.f32 1.0, %v1417_v45  ;;  %1426 = vtanh.f32 %v1066_v28  ;;  %v969_v60 = vadd.f32 %v962_v24, %v949_v26  ;;  %v1432_v28 = vld [vmem:[%s1524_s22 + $0x18] sm:$0xff]  ;;  %v1433_v24 = vld [vmem:[%s1524_s22 + $0x8] sm:$0xff] }
 0x146   : > { %v1076_v57 = vadd.f32 1.0, %v1419_v35 }
 0x147   : > { %v1082_v32 = vmul.f32 %v1075_v49, %v1026_v54  ;;  %v997_v50 = vadd.f32 %v990_v27, %v969_v60 }
 0x148   : > { %v1083_v61 = vmul.f32 %v1076_v57, %v1027_v20 }
 0x149   : > { %v1421_v30 = vpop.eup %1420  ;;  %v1011_v48 = vmul.f32 %v1991_v46, %v997_v50  ;;  %v1435_v50 = vld [vmem:[%s1524_s22 + $0x20] sm:$0xff] }
 0x14a   : > { %v1423_v25 = vpop.eup %1422  ;;  %v1089_v7 = vpack.c.bf16 %v1083_v61, %v1082_v32  ;;  %v1078_v43 = vadd.f32 1.0, %v1421_v30  ;;  %v1434_v61 = vld [vmem:[%s1524_s22 + $0x30] sm:$0x1] }
 0x14b   : > { %v1077_v41 = vadd.f32 1.0, %v1423_v25  ;;  %v1025_v18 = vadd.f32 %v2003_v31, %v1011_v48 }
 0x14c   : > { %1363 = vmatprep.mubr.msk.bf16.mxu1 %vm556_vm1, %v1089_v7  ;;  %v1085_v39 = vmul.f32 %v1078_v43, %v1029_v1  ;;  %v1436_v43 = vld [vmem:[%s1524_s22 + $0x28] sm:$0xff] }
 0x14d   : > { %v1084_v47 = vmul.f32 %v1077_v41, %v1028_v63  ;;  %v1039_v5 = vmul.f32 0.044715, %v1025_v18  ;;  %v1032_v17 = vmul.f32 0.5, %v1025_v18 }
 0x14e   : > { %v1425_v42 = vpop.eup %1424 }
 0x14f   : > { %v1427_v19 = vpop.eup %1426  ;;  %v1090_v58 = vpack.c.bf16 %v1085_v39, %v1084_v47  ;;  %v1079_v2 = vadd.f32 1.0, %v1425_v42  ;;  %v1046_v53 = vmul.f32 %v1039_v5, %v1025_v18 }
 0x150   : > { %v1080_v22 = vadd.f32 1.0, %v1427_v19 }
 0x151   : > { %1364 = vmatmul.mubr.msk.bf16.vlgmr.msra.gmra.mrb[0].mxu1 %vm556_vm1, %v1090_v58  ;;  %v1086_v46 = vmul.f32 %v1079_v2, %v1030_v3  ;;  %v1053_v55 = vmul.f32 %v1046_v53, %v1025_v18 }
 0x152   : > { %v1087_v59 = vmul.f32 %v1080_v22, %v1031_v6 }
 0x153   : > { %v1060_v11 = vadd.f32 %v1053_v55, %v1025_v18 }
 0x154   : > { %v1091_v10 = vpack.c.bf16 %v1087_v59, %v1086_v46 }
 0x155   : > { %v1067_v31 = vmul.f32 0.7978846, %v1060_v11 }
 0x156   : > { %1367 = vmatprep.mubr.msk.bf16.mxu1 %vm556_vm1, %v1091_v10 }
 0x157   : > { %1428 = vtanh.f32 %v1067_v31 }
 0x161   : > { %v1429_v8 = vpop.eup %1428 }
 0x162   : > { %v1081_v15 = vadd.f32 1.0, %v1429_v8 }
 0x164   : > { %v1088_v14 = vmul.f32 %v1081_v15, %v1032_v17 }
 0x166   : > { %v1092_v29 = vpack.c.bf16 %v1088_v14, %v1088_v14 }
 0x168   : > { %1368 = vmatmul.mubr.msk.bf16.gmra.mrb[4].mxu1 %vm556_vm1, %v1092_v29  ;;  %vm1242_vm1 = vcmask 253952  }
 0x224   : > { %v1365_v13 = vpop.f32.mrb[0].mxu1 }
 0x225   : > { %v1210_v23 = vmul.f32 %v1365_v13, %v1325_v4  ;;  %v1171_v56 = vpop.f32.mrb[1].mxu1 }
 0x226   : > { %v1208_v62 = vmul.f32 %v1325_v4, %v1171_v56  ;;  %v1366_v9 = vpop.f32.mrb[2].mxu1 }
 0x227   : > { %v1224_v51 = vadd.f32 %v1326_v38, %v1210_v23  ;;  %v1211_v16 = vmul.f32 %v1366_v9, %v1325_v4  ;;  %v1174_v0 = vpop.f32.mrb[3].mxu1 }
 0x228   : > { %v1222_v21 = vadd.f32 %v1326_v38, %v1208_v62  ;;  %v1209_v44 = vmul.f32 %v1325_v4, %v1174_v0 }
 0x229   : > { %v1231_v33 = vadd.f32 %v1430_v37, %v1224_v51  ;;  %v1225_v34 = vadd.f32 %v1326_v38, %v1211_v16 }
 0x22a   : > { %v1229_v36 = vadd.f32 %v1431_v12, %v1222_v21  ;;  %v1223_v40 = vadd.f32 %v1326_v38, %v1209_v44 }
 0x22b   : > { %1238 = vst.msk [vmem:[%s2113_s15 + $0x10] sm:$0xff] %vm388_vm0, %v1231_v33  ;;  %v1232_v52 = vadd.f32 %v1432_v28, %v1225_v34 }
 0x22c   : > { %1236 = vst.msk [vmem:[%s2113_s15] sm:$0xff] %vm388_vm0, %v1229_v36  ;;  %v1230_v45 = vadd.f32 %v1433_v24, %v1223_v40 }
 0x22d   : > { %1239 = vst.msk [vmem:[%s2113_s15 + $0x18] sm:$0xff] %vm388_vm0, %v1232_v52 }
 0x22e   : > { %1237 = vst.msk [vmem:[%s2113_s15 + $0x8] sm:$0xff] %vm388_vm0, %v1230_v45 }
 0x23b   : > { %v1369_v35 = vpop.f32.mrb[4].mxu1 }
 0x23c   : > { %v1214_v49 = vmul.f32 %v1369_v35, %v1325_v4  ;;  %v1187_v26 = vpop.f32.mrb[5].mxu1 }
 0x23d   : > { %v1212_v27 = vmul.f32 %v1325_v4, %v1187_v26  ;;  %v1370_v54 = vpop.f32.mrb[6].mxu1 }
 0x23e   : > { %v1228_v20 = vadd.f32 %v1326_v38, %v1214_v49  ;;  %v1190_v57 = vpop.f32.mrb[7].mxu1 }
 0x23f   : > { %v1226_v60 = vadd.f32 %v1326_v38, %v1212_v27  ;;  %v1213_v32 = vmul.f32 %v1325_v4, %v1190_v57 }
 0x240   : > { %v1235_v30 = vadd.f32 %v1434_v61, %v1228_v20 }
 0x241   : > { %v1233_v25 = vadd.f32 %v1435_v50, %v1226_v60  ;;  %v1227_v7 = vadd.f32 %v1326_v38, %v1213_v32 }
 0x242   : > { %1243 = vst.msk [vmem:[%s2113_s15 + $0x30] sm:$0x1] %vm1242_vm1, %v1235_v30 }
 0x243   : > { %1240 = vst.msk [vmem:[%s2113_s15 + $0x20] sm:$0xff] %vm388_vm0, %v1233_v25  ;;  %v1234_v63 = vadd.f32 %v1436_v43, %v1227_v7 }
 0x245   : > { %1241 = vst.msk [vmem:[%s2113_s15 + $0x28] sm:$0xff] %vm388_vm0, %v1234_v63 }
 0x246 PF: > { %s20_s13 = sadd.s32 1, %s1443_s13  }
 0x247   : > { %p17_p4 = scmp.ge.s32.totalorder %s20_s13, 4  }
 0x249   :  { %19 = sbr.rel (!%p17_p4) target bundleno = 1 (0x1), region = 90 }

// kernel: sbcformer_block.7
= control target key start
LH: loop header
LB: loop body
LE: loop exit
PB: predicated region body
PF: predicated region fallthrough
CT: control target
= control target key end

     0   :  { %s3498_s13 = smov 0   ;;  %s5791_s0 = inlined_call_operand.vmem [shape: f32[2,196,32], index: 0, kind: input, shape index: {}]   ;;  %s5792_s1 = inlined_call_operand.vmem [shape: bf16[32,64], index: 1, kind: input, shape index: {}]   ;;  %s5793_s2 = inlined_call_operand.vmem [shape: f32[1,64], index: 2, kind: input, shape index: {}]   ;;  %s5794_s3 = inlined_call_operand.vmem [shape: f32[1,64], index: 3, kind: input, shape index: {}]   ;;  %s5795_s4 = inlined_call_operand.vmem [shape: f32[9,64], index: 4, kind: input, shape index: {}]   ;;  %s5796_s5 = inlined_call_operand.vmem [shape: f32[1,64], index: 5, kind: input, shape index: {}]   ;;  %s5797_s6 = inlined_call_operand.vmem [shape: f32[1,64], index: 6, kind: input, shape index: {}]   ;;  %s5798_s7 = inlined_call_operand.vmem [shape: bf16[64,32], index: 7, kind: input, shape index: {}]   ;;  %s5799_s8 = inlined_call_operand.vmem [shape: f32[1,32], index: 8, kind: input, shape index: {}]   ;;  %s5800_s9 = inlined_call_operand.vmem [shape: f32[1,32], index: 9, kind: input, shape index: {}]   ;;  %s5801_s10 = inlined_call_operand.vmem [shape: f32[2,196,32], index: 10, kind: output, shape index: {}]  }
   0x1 LB: > { %s3036_s14 = sadd.s32 4294967295, %s3438_s13   ;;  %p3040_p0 = scmp.ge.s32.totalorder %s3438_s13, 1  ;;  %s3438_s13 = sphi %s3498_s13, %s20_s13  }
   0x2   : > { %p312_p1 = scmp.lt.s32.totalorder %s3438_s13, 3 }
   0x4   : > { %p313_p2 = pnand %p3040_p0, %p312_p1 }
   0x6   : > { %316 = sbr.rel (%p313_p2) target bundleno = 816 (0x330), region = 60 }
   0xd   : > { %v3294_v0 = vld [vmem:[%s5792_s1] sm:$0xff]   ;;  %v5808_v1 = vmov 0.0   ;;  %v3295_v2 = vld [vmem:[%s5792_s1 + $0x8] sm:$0xff]   ;;  %vm5803_vm0 = vmmov 0   ;;  %p350_p3 = scmp.lt.s32.totalorder %s3036_s14, 1  ;;  %vm5802_vm1 = vcmask 261120   ;;  %v912_v41 = vlaneseq }
   0xe   : > { %3116 = vmatprep.subr.bf16.mxu0 %v5808_v1  ;;  %3172 = vmatprep.subr.bf16.mxu1 %v5808_v1  ;;  %vm5807_vm2 = vcmask 523264   ;;  %vm882_vm3 = vcmask 522240   ;;  %v5810_v45 = vmov 0  }
   0xf   : > { %3117 = vmatpush3.bf16.msra.mxu0 %v3294_v0  ;;  %3120 = vmatprep.mubr.msk.bf16.mxu0 %vm5803_vm0, %v5808_v1  ;;  %s6116_s14 = smov (!%p350_p3, %s3036_s14), 1  ;;  %881 = vst.msk [vmem:[#allocation2] sm:$0xff] %vm5807_vm2, %v5808_v1  ;;  %884 = vst.msk [vmem:[#allocation2 + $0xd3] sm:$0xff] %vm5807_vm2, %v5808_v1  ;;  %v3597_v42 = vshrl.u32 %v912_v41, 7 }
  0x10   : > { %3118 = vmatprep.subr.bf16.mxu0 %v5808_v1  ;;  %3180 = vmatprep.mubr.msk.bf16.mxu1 %vm5803_vm0, %v5808_v1  ;;  %s3232_s19 = smul.u32 200, %s6116_s14  ;;  %883 = vst.msk [vmem:[#allocation2 + $0x8] sm:$0x7f] %vm882_vm3, %v5808_v1  ;;  %885 = vst.msk [vmem:[#allocation2 + $0xdb] sm:$0x7f] %vm882_vm3, %v5808_v1 }
  0x11   : > { %5852 = vst [vmem:[#allocation3_spill] sm:$0xff] %v3597_v42  ;;  %v3600_v43 = vmul.u32.u64.low 2454267026, %v3597_v42  ;;  %v3601_v44 = vmul.u32.u64.high 2454267026, %v3597_v42, %v3600_v43  ;;  %v914_v48 = vadd.s32 8, %v3597_v42  ;;  %v3610_v52 = vadd.s32 16, %v3597_v42 }
  0x12   : > { %s3527_s22 = scalar_lea.vmem %s5791_s0, %s3232_s19  ;;  %v3620_v59 = vadd.s32 24, %v3597_v42  ;;  %v3624_v62 = vadd.s32 32, %v3597_v42  ;;  %s5665_s11 = scalar_lea.vmem %s5801_s10, %s3232_s19 }
  0x13   : > { %3119 = vmatpush3.bf16.msra.mxu0 %v3295_v2  ;;  %v361_v3 = vld [vmem:[%s3527_s22] sm:$0xff]  ;;  %v362_v4 = vld [vmem:[%s3527_s22 + $0x8] sm:$0xff]  ;;  %v363_v6 = vld [vmem:[%s3527_s22 + $0x10] sm:$0xff]  ;;  %vm944_vm4 = vc.u32 %v3600_v43, 2454267026  ;;  %v3696_v43 = vadd.s32 72, %v3597_v42 }
  0x14   : > { %v386_v5 = vpack.c.bf16 %v362_v4, %v361_v3  ;;  %v364_v7 = vld [vmem:[%s3527_s22 + $0x18] sm:$0xff]  ;;  %v365_v9 = vld [vmem:[%s3527_s22 + $0x20] sm:$0xff]  ;;  %v366_v10 = vld [vmem:[%s3527_s22 + $0x28] sm:$0xff]  ;;  %v945_v46 = vsel %vm944_vm4, 1, %v5810_v45  ;;  %v3606_v50 = vmul.u32.u64.low 2454267026, %v914_v48  ;;  %v3607_v51 = vmul.u32.u64.high 2454267026, %v914_v48, %v3606_v50 }
  0x15   : > { %v387_v8 = vpack.c.bf16 %v364_v7, %v363_v6  ;;  %v388_v11 = vpack.c.bf16 %v366_v10, %v365_v9  ;;  %v367_v12 = vld [vmem:[%s3527_s22 + $0x30] sm:$0xff]  ;;  %v368_v13 = vld [vmem:[%s3527_s22 + $0x38] sm:$0xff]  ;;  %v369_v15 = vld [vmem:[%s3527_s22 + $0x40] sm:$0xff]  ;;  %v946_v47 = vadd.s32 %v3601_v44, %v945_v46  ;;  %v1567_v9 = vsub.s32 0, %v3597_v42 }
  0x16   : > { %3121 = vmatmul.mubr.msk.bf16.vlgmr.msra.gmra.mrb[0].mxu0 %vm5802_vm1, %v386_v5  ;;  %v389_v14 = vpack.c.bf16 %v368_v13, %v367_v12  ;;  %v370_v16 = vld [vmem:[%s3527_s22 + $0x48] sm:$0xff]  ;;  %v371_v18 = vld [vmem:[%s3527_s22 + $0x50] sm:$0xff]  ;;  %v372_v19 = vld [vmem:[%s3527_s22 + $0x58] sm:$0xff]  ;;  %vm958_vm5 = vc.u32 %v3606_v50, 2454267026  ;;  %v1958_v5 = vsub.s32 4, %v3597_v42 }
  0x17   : > { %3124 = vmatprep.mubr.msk.bf16.mxu0 %vm5803_vm0, %v5808_v1  ;;  %v390_v17 = vpack.c.bf16 %v370_v16, %v369_v15  ;;  %v391_v20 = vpack.c.bf16 %v372_v19, %v371_v18  ;;  %v373_v21 = vld [vmem:[%s3527_s22 + $0x60] sm:$0xff]  ;;  %v374_v22 = vld [vmem:[%s3527_s22 + $0x68] sm:$0xff]  ;;  %v375_v24 = vld [vmem:[%s3527_s22 + $0x70] sm:$0xff]  ;;  %v947_v49 = vshrl.u32 %v946_v47, 3  ;;  %v959_v57 = vsel %vm958_vm5, 1, %v5810_v45 }
  0x18   : > { %v392_v23 = vpack.c.bf16 %v374_v22, %v373_v21  ;;  %v376_v25 = vld [vmem:[%s3527_s22 + $0x78] sm:$0xff]  ;;  %v377_v27 = vld [vmem:[%s3527_s22 + $0x80] sm:$0xff]  ;;  %v378_v28 = vld [vmem:[%s3527_s22 + $0x88] sm:$0xff]  ;;  %v3613_v54 = vmul.u32.u64.low 2454267026, %v3610_v52  ;;  %v3614_v55 = vmul.u32.u64.high 2454267026, %v3610_v52, %v3613_v54  ;;  %v960_v58 = vadd.s32 %v3607_v51, %v959_v57 }
  0x19   : > { %v393_v26 = vpack.c.bf16 %v376_v25, %v375_v24  ;;  %v394_v29 = vpack.c.bf16 %v378_v28, %v377_v27  ;;  %v379_v30 = vld [vmem:[%s3527_s22 + $0x90] sm:$0xff]  ;;  %v380_v31 = vld [vmem:[%s3527_s22 + $0x98] sm:$0xff]  ;;  %v381_v33 = vld [vmem:[%s3527_s22 + $0xa0] sm:$0xff]  ;;  %v948_v53 = vmul.u32 14, %v947_v49  ;;  %v1646_v10 = vsub.s32 1, %v3597_v42 }
  0x1a   : > { %v395_v32 = vpack.c.bf16 %v380_v31, %v379_v30  ;;  %v382_v34 = vld [vmem:[%s3527_s22 + $0xa8] sm:$0xff]  ;;  %v383_v36 = vld [vmem:[%s3527_s22 + $0xb0] sm:$0xff]  ;;  %v384_v37 = vld [vmem:[%s3527_s22 + $0xb8] sm:$0xff]  ;;  %vm972_vm6 = vc.u32 %v3613_v54, 2454267026  ;;  %v961_v63 = vshrl.u32 %v960_v58, 3 }
  0x1b   : > { %v396_v35 = vpack.c.bf16 %v382_v34, %v381_v33  ;;  %v397_v38 = vpack.c.bf16 %v384_v37, %v383_v36  ;;  %v385_v39 = vld [vmem:[%s3527_s22 + $0xc0] sm:$0xf]  ;;  %v949_v56 = vsub.s32 %v3597_v42, %v948_v53  ;;  %v973_v61 = vsel %vm972_vm6, 1, %v5810_v45 }
  0x1c   : > { %v398_v40 = vpack.c.bf16 %v385_v39, %v385_v39  ;;  %v974_v0 = vadd.s32 %v3614_v55, %v973_v61  ;;  %v3628_v2 = vmul.u32.u64.low 2454267026, %v3620_v59  ;;  %v3629_v3 = vmul.u32.u64.high 2454267026, %v3620_v59, %v3628_v2  ;;  %v1465_v13 = vld [vmem:[#allocation2] sm:$0xff] }
  0x1d   : > { %vm1288_vm7 = vcmp.ne.s32.totalorder %v949_v56, 0  ;;  %vm1313_vm8 = vcmp.lt.s32.totalorder %v949_v56, 0  ;;  %v1363_v60 = vadd.s32 14, %v949_v56  ;;  %v962_v12 = vmul.u32 14, %v961_v63 }
  0x1e   : > { %3125 = vmatmul.mubr.msk.bf16.gmra.mrb[4].mxu0 %vm5802_vm1, %v387_v8  ;;  %vm1338_vm9 = vmand %vm1313_vm8, %vm1288_vm7  ;;  %v3635_v6 = vmul.u32.u64.low 2454267026, %v3624_v62  ;;  %v3636_v7 = vmul.u32.u64.high 2454267026, %v3624_v62, %v3635_v6  ;;  %v3641_v8 = vld [vmem:[%s5795_s4] sm:$0xff]  ;;  %vm986_vm11 = vc.u32 %v3628_v2, 2454267026  ;;  %v3648_v15 = vadd.s32 40, %v3597_v42 }
  0x1f   : > { %3128 = vmatprep.mubr.msk.bf16.mxu0 %vm5803_vm0, %v5808_v1  ;;  %v3631_v4 = vsel %vm1338_vm9, %v1363_v60, %v949_v56  ;;  %v3651_v16 = vrot.slane %v3641_v8, %v1958_v5  ;;  %v3658_v18 = vrot.slane %v3641_v8, %v1567_v9  ;;  %v3661_v19 = vrot.slane %v3641_v8, %v1646_v10 }
  0x20   : > { %5853 = vst [vmem:[#allocation4_spill] sm:$0xff] %v3631_v4  ;;  %vm5806_vm10 = vcmp.gt.s32.totalorder %v3631_v4, 0  ;;  %vm1000_vm12 = vc.u32 %v3635_v6, 2454267026  ;;  %vm5805_vm13 = vcmp.lt.s32.totalorder %v3631_v4, 13  ;;  %v3664_v21 = vadd.s32 56, %v3597_v42 }
  0x21   : > { %v1540_v22 = vsel %vm5806_vm10, %v1465_v13, 0.0  ;;  %v963_v24 = vsub.s32 %v914_v48, %v962_v12  ;;  %v987_v25 = vsel %vm986_vm11, 1, %v5810_v45  ;;  %v1001_v28 = vsel %vm1000_vm12, 1, %v5810_v45 }
  0x22   : > { %v3684_v34 = vadd.s32 64, %v3597_v42  ;;  %v988_v36 = vadd.s32 %v3629_v3, %v987_v25  ;;  %v1002_v41 = vadd.s32 %v3636_v7, %v1001_v28  ;;  %v3702_v46 = vadd.s32 80, %v3597_v42 }
  0x23   : > { %vm1289_vm14 = vcmp.ne.s32.totalorder %v963_v24, 0  ;;  %v3709_v49 = vadd.s32 88, %v3597_v42  ;;  %vm1314_vm4 = vcmp.lt.s32.totalorder %v963_v24, 0  ;;  %v3712_v51 = vadd.s32 96, %v3597_v42 }
  0x24   : > { %v3705_v47 = vmul.u32.u64.low 2454267026, %v3684_v34  ;;  %v3706_v48 = vmul.u32.u64.high 2454267026, %v3684_v34, %v3705_v47  ;;  %v989_v50 = vshrl.u32 %v988_v36, 3  ;;  %v1364_v53 = vadd.s32 14, %v963_v24  ;;  %vm1339_vm7 = vmand %vm1314_vm4, %vm1289_vm14 }
  0x25   : > { %v1003_v54 = vshrl.u32 %v1002_v41, 3  ;;  %v3715_v55 = vmul.u32.u64.low 2454267026, %v3696_v43  ;;  %v3716_v56 = vmul.u32.u64.high 2454267026, %v3696_v43, %v3715_v55 }
  0x26   : > { %3129 = vmatmul.mubr.msk.bf16.gmra.mrb[8].mxu0 %vm5802_vm1, %v388_v11  ;;  %v1800_v11 = vsub.s32 2, %v3597_v42  ;;  %v3721_v60 = vmul.u32.u64.low 2454267026, %v3702_v46  ;;  %v3722_v61 = vmul.u32.u64.high 2454267026, %v3702_v46, %v3721_v60  ;;  %vm1056_vm6 = vc.u32 %v3705_v47, 2454267026 }
  0x27   : > { %3132 = vmatprep.mubr.msk.bf16.mxu0 %vm5803_vm0, %v5808_v1  ;;  %v990_v5 = vmul.u32 14, %v989_v50  ;;  %v3733_v6 = vmul.u32.u64.low 2454267026, %v3712_v51  ;;  %v3734_v7 = vmul.u32.u64.high 2454267026, %v3712_v51, %v3733_v6  ;;  %vm1070_vm8 = vc.u32 %v3715_v55, 2454267026 }
  0x28   : > { %v1004_v10 = vmul.u32 14, %v1003_v54  ;;  %vm1084_vm9 = vc.u32 %v3721_v60, 2454267026 }
  0x29   : > { %v991_v25 = vsub.s32 %v3620_v59, %v990_v5  ;;  %vm1112_vm14 = vc.u32 %v3733_v6, 2454267026 }
  0x2b   : > { %vm1316_vm4 = vcmp.lt.s32.totalorder %v991_v25, 0 }
  0x2e   : > { %3133 = vmatmul.mubr.msk.bf16.gmra.mrb[12].mxu0 %vm5802_vm1, %v389_v14  ;;  %v975_v14 = vshrl.u32 %v974_v0, 3  ;;  %v3726_v0 = vmul.u32.u64.low 2454267026, %v3709_v49  ;;  %v3727_v2 = vmul.u32.u64.high 2454267026, %v3709_v49, %v3726_v0 }
  0x2f   : > { %3136 = vmatprep.mubr.msk.bf16.mxu0 %vm5803_vm0, %v5808_v1 }
  0x30   : > { %v976_v27 = vmul.u32 14, %v975_v14  ;;  %v1057_v14 = vsel %vm1056_vm6, 1, %v5810_v45  ;;  %vm1098_vm11 = vc.u32 %v3726_v0, 2454267026 }
  0x31   : > { %v1058_v28 = vadd.s32 %v3706_v48, %v1057_v14  ;;  %v3767_v48 = vadd.s32 112, %v3597_v42  ;;  %v3803_v14 = vadd.s32 120, %v3597_v42 }
  0x32   : > { %v977_v3 = vsub.s32 %v3610_v52, %v976_v27  ;;  %v3743_v52 = vsel %vm1339_vm7, %v1364_v53, %v963_v24 }
  0x33   : > { %5854 = vst [vmem:[#allocation5_spill] sm:$0xff] %v3743_v52 }
  0x34   : > { %vm1290_vm12 = vcmp.ne.s32.totalorder %v977_v3, 0 }
  0x36   : > { %3137 = vmatmul.mubr.msk.bf16.gmra.mrb[16].mxu0 %vm5802_vm1, %v390_v17  ;;  %v3654_v17 = vadd.s32 48, %v3597_v42 }
  0x37   : > { %3140 = vmatprep.mubr.msk.bf16.mxu0 %vm5803_vm0, %v5808_v1 }
  0x3e   : > { %3141 = vmatmul.mubr.msk.bf16.gmra.mrb[20].mxu0 %vm5802_vm1, %v391_v20  ;;  %v1698_v20 = vld [vmem:[#allocation2 + $0x2] sm:$0xff] }
  0x3f   : > { %3144 = vmatprep.mubr.msk.bf16.mxu0 %vm5803_vm0, %v5808_v1  ;;  %v1773_v31 = vsel %vm5805_vm13, %v1698_v20, 0.0 }
  0x46   : > { %3145 = vmatmul.mubr.msk.bf16.gmra.mrb[24].mxu0 %vm5802_vm1, %v392_v23  ;;  %v3669_v23 = vrot.slane %v3641_v8, %v1800_v11 }
  0x47   : > { %3148 = vmatprep.mubr.msk.bf16.mxu0 %vm5803_vm0, %v5808_v1 }
  0x48   : > { %v3699_v44 = vmul.f32 %v3669_v23, %v1773_v31 }
  0x4e   : > { %3149 = vmatmul.mubr.msk.bf16.gmra.mrb[28].mxu0 %vm5802_vm1, %v393_v26  ;;  %v1619_v26 = vld [vmem:[#allocation2 + $0x1] sm:$0xff] }
  0x4f   : > { %3152 = vmatprep.mubr.msk.bf16.mxu0 %vm5803_vm0, %v5808_v1  ;;  %v1648_v39 = vmul.f32 %v3661_v19, %v1619_v26  ;;  %v1071_v26 = vsel %vm1070_vm8, 1, %v5810_v45 }
  0x56   : > { %3153 = vmatmul.mubr.msk.bf16.gmra.mrb[32].mxu0 %vm5802_vm1, %v394_v29  ;;  %v3674_v29 = vmul.u32.u64.low 2454267026, %v3648_v15  ;;  %v3675_v30 = vmul.u32.u64.high 2454267026, %v3648_v15, %v3674_v29 }
  0x57   : > { %3156 = vmatprep.mubr.msk.bf16.mxu0 %vm5803_vm0, %v5808_v1 }
  0x58   : > { %vm1014_vm15 = vc.u32 %v3674_v29, 2454267026  ;;  %v1085_v29 = vsel %vm1084_vm9, 1, %v5810_v45 }
  0x59   : > { %v1015_v57 = vsel %vm1014_vm15, 1, %v5810_v45  ;;  %vm1315_vm15 = vcmp.lt.s32.totalorder %v977_v3, 0 }
  0x5a   : > { %v1016_v11 = vadd.s32 %v3675_v30, %v1015_v57  ;;  %v1005_v30 = vsub.s32 %v3624_v62, %v1004_v10  ;;  %v1366_v57 = vadd.s32 14, %v991_v25 }
  0x5c   : > { %v1017_v27 = vshrl.u32 %v1016_v11, 3  ;;  %vm1292_vm6 = vcmp.ne.s32.totalorder %v1005_v30, 0  ;;  %vm1317_vm7 = vcmp.lt.s32.totalorder %v1005_v30, 0 }
  0x5e   : > { %3157 = vmatmul.mubr.msk.bf16.gmra.mrb[36].mxu0 %vm5802_vm1, %v395_v32  ;;  %v3680_v32 = vmul.u32.u64.low 2454267026, %v3654_v17  ;;  %v3681_v33 = vmul.u32.u64.high 2454267026, %v3654_v17, %v3680_v32  ;;  %v1018_v62 = vmul.u32 14, %v1017_v27 }
  0x5f   : > { %3160 = vmatprep.mubr.msk.bf16.mxu0 %vm5803_vm0, %v5808_v1 }
  0x60   : > { %vm1028_vm3 = vc.u32 %v3680_v32, 2454267026  ;;  %v1099_v32 = vsel %vm1098_vm11, 1, %v5810_v45  ;;  %vm1342_vm11 = vmand %vm1317_vm7, %vm1292_vm6 }
  0x61   : > { %v1029_v58 = vsel %vm1028_vm3, 1, %v5810_v45  ;;  %vm1291_vm3 = vcmp.ne.s32.totalorder %v991_v25, 0  ;;  %v1100_v41 = vadd.s32 %v3727_v2, %v1099_v32 }
  0x62   : > { %v1030_v12 = vadd.s32 %v3681_v33, %v1029_v58  ;;  %v1072_v33 = vadd.s32 %v3716_v56, %v1071_v26  ;;  %vm3773_vm9 = vmand %vm1316_vm4, %vm1291_vm3  ;;  %v1367_v58 = vadd.s32 14, %v1005_v30 }
  0x63   : > { %v1101_v2 = vshrl.u32 %v1100_v41, 3  ;;  %v3798_v11 = vsel %vm3773_vm9, %v1366_v57, %v991_v25  ;;  %v3812_v25 = vadd.s32 128, %v3597_v42 }
  0x64   : > { %v1031_v24 = vshrl.u32 %v1030_v12, 3  ;;  %v1073_v54 = vshrl.u32 %v1072_v33, 3  ;;  %5858 = vst [vmem:[#allocation7_spill] sm:$0xff] %v3798_v11  ;;  %v3800_v12 = vsel %vm1342_vm11, %v1367_v58, %v1005_v30 }
  0x65   : > { %5859 = vst [vmem:[#allocation8_spill] sm:$0xff] %v3800_v12  ;;  %v3847_v32 = vmul.u32.u64.low 2454267026, %v3812_v25  ;;  %v3848_v33 = vmul.u32.u64.high 2454267026, %v3812_v25, %v3847_v32 }
  0x66   : > { %3161 = vmatmul.mubr.msk.bf16.gmra.mrb[40].mxu0 %vm5802_vm1, %v396_v35  ;;  %v1569_v35 = vmul.f32 %v3658_v18, %v1540_v22  ;;  %v3746_v22 = vadd.s32 104, %v3597_v42  ;;  %v1032_v50 = vmul.u32 14, %v1031_v24 }
  0x67   : > { %3164 = vmatprep.mubr.msk.bf16.mxu0 %vm5803_vm0, %v5808_v1  ;;  %vm1168_vm10 = vc.u32 %v3847_v32, 2454267026 }
  0x68   : > { %v1673_v9 = vadd.f32 %v1648_v39, %v1569_v35  ;;  %v1113_v35 = vsel %vm1112_vm14, 1, %v5810_v45  ;;  %v3757_v59 = vmul.u32.u64.low 2454267026, %v3746_v22  ;;  %v3758_v36 = vmul.u32.u64.high 2454267026, %v3746_v22, %v3757_v59 }
  0x69   : > { %v1086_v39 = vadd.s32 %v3722_v61, %v1085_v29  ;;  %v1114_v47 = vadd.s32 %v3734_v7, %v1113_v35  ;;  %v3784_v6 = vmul.u32.u64.low 2454267026, %v3767_v48  ;;  %v3785_v7 = vmul.u32.u64.high 2454267026, %v3767_v48, %v3784_v6  ;;  %v3853_v35 = vld [vmem:[%s5793_s2] ss:$0 sm:$0xff] }
  0x6a   : > { %vm1126_vm8 = vc.u32 %v3757_v59, 2454267026  ;;  %v3770_v55 = vadd.f32 %v3699_v44, %v1673_v9  ;;  %v3791_v10 = vsub.s32 %v3654_v17, %v1032_v50  ;;  %v1102_v17 = vmul.u32 14, %v1101_v2 }
  0x6b   : > { %v1087_v60 = vshrl.u32 %v1086_v39, 3  ;;  %v1115_v5 = vshrl.u32 %v1114_v47, 3  ;;  %v1127_v44 = vsel %vm1126_vm8, 1, %v5810_v45  ;;  %v3297_v47 = vld [vmem:[%s5798_s7 + $0x8] sm:$0xff]  }
  0x6c   : > { %vm1294_vm3 = vcmp.ne.s32.totalorder %v3791_v10, 0  ;;  %vm1319_vm4 = vcmp.lt.s32.totalorder %v3791_v10, 0  ;;  %v3830_v30 = vsub.s32 %v3709_v49, %v1102_v17 }
  0x6d   : > { %v1116_v26 = vmul.u32 14, %v1115_v5  ;;  %vm3860_vm11 = vmand %vm1319_vm4, %vm1294_vm3 }
  0x6e   : > { %3165 = vmatmul.mubr.msk.bf16.gmra.mrb[44].mxu0 %vm5802_vm1, %v397_v38  ;;  %v3689_v37 = vmul.u32.u64.low 2454267026, %v3664_v21  ;;  %v3690_v38 = vmul.u32.u64.high 2454267026, %v3664_v21, %v3689_v37 }
  0x6f   : > { %3168 = vmatprep.mubr.msk.bf16.mxu0 %vm5803_vm0, %v5808_v1  ;;  %v1117_v49 = vsub.s32 %v3712_v51, %v1116_v26  ;;  %v1369_v51 = vadd.s32 14, %v3791_v10 }
  0x70   : > { %vm1042_vm5 = vc.u32 %v3689_v37, 2454267026  ;;  %v1365_v37 = vadd.s32 14, %v977_v3 }
  0x71   : > { %v1043_v63 = vsel %vm1042_vm5, 1, %v5810_v45  ;;  %vm1340_vm5 = vmand %vm1315_vm15, %vm1290_vm12  ;;  %vm1140_vm15 = vc.u32 %v3784_v6, 2454267026  ;;  %vm1325_vm13 = vcmp.lt.s32.totalorder %v1117_v49, 0 }
  0x72   : > { %v1044_v13 = vadd.s32 %v3690_v38, %v1043_v63  ;;  %v2040_v38 = vsub.s32 5, %v3597_v42  ;;  %v3777_v61 = vsel %vm1340_vm5, %v1365_v37, %v977_v3  ;;  %v3780_v63 = vsub.s32 %v3648_v15, %v1018_v62  ;;  %v3870_v37 = vld [vmem:[%s5794_s3] ss:$0 sm:$0xff] }
  0x73   : > { %5857 = vst [vmem:[#allocation6_spill] sm:$0xff] %v3777_v61  ;;  %v1074_v15 = vmul.u32 14, %v1073_v54 }
  0x74   : > { %v1045_v31 = vshrl.u32 %v1044_v13, 3  ;;  %v3788_v9 = vrot.slane %v3641_v8, %v2040_v38  ;;  %v1088_v13 = vmul.u32 14, %v1087_v60  ;;  %vm1293_vm12 = vcmp.ne.s32.totalorder %v3780_v63, 0 }
  0x75   : > { %vm1318_vm14 = vcmp.lt.s32.totalorder %v3780_v63, 0  ;;  %v3818_v27 = vsub.s32 %v3696_v43, %v1074_v15  ;;  %v3296_v43 = vld [vmem:[%s5798_s7] sm:$0xff]   ;;  %v1368_v59 = vadd.s32 14, %v3780_v63  ;;  %v1375_v15 = vadd.s32 14, %v1117_v49 }
  0x76   : > { %3169 = vmatmul.mubr.msk.bf16.gmra.mrb[48].mxu0 %vm5802_vm1, %v398_v40  ;;  %v1904_v40 = vsub.s32 3, %v3597_v42  ;;  %v1046_v53 = vmul.u32 14, %v1045_v31  ;;  %v1141_v31 = vsel %vm1140_vm15, 1, %v5810_v45  ;;  %vm3840_vm8 = vmand %vm1318_vm14, %vm1293_vm12  ;;  %3173 = vmatpush3.bf16.msra.mxu1 %v3296_v43 }
  0x77   : > { %vm1297_vm12 = vcmp.ne.s32.totalorder %v3818_v27, 0  ;;  %vm1322_vm14 = vcmp.lt.s32.totalorder %v3818_v27, 0  ;;  %v1142_v39 = vadd.s32 %v3785_v7, %v1141_v31  ;;  %3174 = vmatprep.subr.bf16.mxu1 %v5808_v1  ;;  %v1372_v58 = vadd.s32 14, %v3818_v27 }
  0x78   : > { %v3741_v20 = vrot.slane %v3641_v8, %v1904_v40  ;;  %v1059_v40 = vshrl.u32 %v1058_v28, 3  ;;  %v3794_v3 = vsub.s32 %v3664_v21, %v1046_v53  ;;  %v1128_v21 = vadd.s32 %v3758_v36, %v1127_v44 }
  0x79   : > { %v3825_v28 = vmul.u32.u64.low 2454267026, %v3803_v14  ;;  %v3826_v29 = vmul.u32.u64.high 2454267026, %v3803_v14, %v3825_v28  ;;  %v3923_v44 = vsel %vm3840_vm8, %v1368_v59, %v3780_v63  ;;  %v1374_v7 = vadd.s32 14, %v3830_v30 }
  0x7a   : > { %v1060_v0 = vmul.u32 14, %v1059_v40  ;;  %vm1295_vm5 = vcmp.ne.s32.totalorder %v3794_v3, 0  ;;  %vm1320_vm6 = vcmp.lt.s32.totalorder %v3794_v3, 0  ;;  %v1129_v24 = vshrl.u32 %v1128_v21, 3  ;;  %3175 = vmatpush3.bf16.msra.mxu1 %v3297_v47  ;;  %5872 = vst [vmem:[#allocation9_spill] sm:$0xff] %v3923_v44 }
  0x7b   : > { %vm3876_vm15 = vmand %vm1320_vm6, %vm1295_vm5  ;;  %vm1154_vm1 = vc.u32 %v3825_v28, 2454267026  ;;  %v1370_v62 = vadd.s32 14, %v3794_v3  ;;  %vm1299_vm5 = vcmp.ne.s32.totalorder %v3830_v30, 0  ;;  %vm1324_vm6 = vcmp.lt.s32.totalorder %v3830_v30, 0  ;;  %3176 = vmatprep.subr.bf16.mxu1 %v5808_v1 }
  0x7c   : > { %v3807_v8 = vsub.s32 %v3684_v34, %v1060_v0  ;;  %v3822_v34 = vsub.s32 %v3702_v46, %v1088_v13  ;;  %v1130_v41 = vmul.u32 14, %v1129_v24  ;;  %v1155_v2 = vsel %vm1154_vm1, 1, %v5810_v45 }
  0x7d   : > { %v1143_v13 = vshrl.u32 %v1142_v39, 3  ;;  %v1169_v28 = vsel %vm1168_vm10, 1, %v5810_v45  ;;  %v3947_v24 = vsel %vm3860_vm11, %v1369_v51, %v3791_v10  ;;  %v3952_v31 = vsel %vm3876_vm15, %v1370_v62, %v3794_v3 }
  0x7e   : > { %vm1296_vm7 = vcmp.ne.s32.totalorder %v3807_v8, 0  ;;  %vm1321_vm9 = vcmp.lt.s32.totalorder %v3807_v8, 0  ;;  %vm1298_vm3 = vcmp.ne.s32.totalorder %v3822_v34, 0  ;;  %vm1323_vm4 = vcmp.lt.s32.totalorder %v3822_v34, 0  ;;  %5875 = vst [vmem:[#allocation10_spill] sm:$0xff] %v3947_v24  ;;  %5876 = vst [vmem:[#allocation11_spill] sm:$0xff] %v3952_v31 }
  0x7f   : > { %vm3889_vm0 = vmand %vm1321_vm9, %vm1296_vm7  ;;  %v1371_v53 = vadd.s32 14, %v3807_v8  ;;  %vm1300_vm9 = vcmp.ne.s32.totalorder %v1117_v49, 0  ;;  %v1373_v0 = vadd.s32 14, %v3822_v34  ;;  %v1131_v26 = vsub.s32 %v3746_v22, %v1130_v41 }
  0x80   : > { %vm3903_vm7 = vmand %vm1322_vm14, %vm1297_vm12  ;;  %v1156_v22 = vadd.s32 %v3826_v29, %v1155_v2  ;;  %v1170_v59 = vadd.s32 %v3848_v33, %v1169_v28  ;;  %v3983_v36 = vadd.s32 136, %v3597_v42  ;;  %v1144_v38 = vmul.u32 14, %v1143_v13 }
  0x81   : > { %vm3913_vm2 = vmand %vm1323_vm4, %vm1298_vm3  ;;  %v3957_v43 = vsel %vm3889_vm0, %v1371_v53, %v3807_v8  ;;  %v3967_v10 = vsel %vm3903_vm7, %v1372_v58, %v3818_v27  ;;  %vm1301_vm0 = vcmp.ne.s32.totalorder %v1131_v26, 0  ;;  %v1376_v6 = vadd.s32 14, %v1131_v26 }
  0x82   : > { %vm3929_vm12 = vmand %vm1324_vm6, %vm1299_vm5  ;;  %5877 = vst [vmem:[#allocation12_spill] sm:$0xff] %v3957_v43  ;;  %v3972_v3 = vsel %vm3913_vm2, %v1373_v0, %v3822_v34  ;;  %v1157_v39 = vshrl.u32 %v1156_v22, 3  ;;  %v3988_v62 = vmul.u32.u64.low 2454267026, %v3983_v36  ;;  %v3989_v40 = vmul.u32.u64.high 2454267026, %v3983_v36, %v3988_v62 }
  0x83   : > { %vm1350_vm1 = vmand %vm1325_vm13, %vm1300_vm9  ;;  %5878 = vst [vmem:[#allocation13_spill] sm:$0xff] %v3967_v10  ;;  %v3977_v8 = vsel %vm3929_vm12, %v1374_v7, %v3830_v30  ;;  %v3992_v30 = vadd.s32 144, %v3597_v42  ;;  %vm1326_vm2 = vcmp.lt.s32.totalorder %v1131_v26, 0  ;;  %v1171_v54 = vshrl.u32 %v1170_v59, 3 }
  0x84   : > { %5879 = vst [vmem:[#allocation14_spill] sm:$0xff] %v3972_v3  ;;  %v3979_v29 = vsel %vm1350_vm1, %v1375_v15, %v1117_v49  ;;  %vm1182_vm10 = vc.u32 %v3988_v62, 2454267026  ;;  %v1158_v7 = vmul.u32 14, %v1157_v39  ;;  %vm1351_vm8 = vmand %vm1326_vm2, %vm1301_vm0  ;;  %v4017_v28 = vsub.s32 %v3767_v48, %v1144_v38 }
  0x85   : > { %v1183_v15 = vsel %vm1182_vm10, 1, %v5810_v45  ;;  %vm1414_vm6 = vcmp.gt.s32.totalorder %v3743_v52, 0  ;;  %vm1439_vm12 = vcmp.lt.s32.totalorder %v3743_v52, 13  ;;  %vm1415_vm1 = vcmp.gt.s32.totalorder %v3777_v61, 0 }
  0x86   : > { %v1184_v59 = vadd.s32 %v3989_v40, %v1183_v15  ;;  %v4030_v48 = vsub.s32 %v3803_v14, %v1158_v7  ;;  %vm1302_vm11 = vcmp.ne.s32.totalorder %v4017_v28, 0  ;;  %vm1327_vm14 = vcmp.lt.s32.totalorder %v4017_v28, 0 }
  0x87   : > { %vm4091_vm7 = vmand %vm1327_vm14, %vm1302_vm11  ;;  %vm5883_vm10 = vcmask 523264  }
  0x88   : > { %v1185_v38 = vshrl.u32 %v1184_v59, 3  ;;  %vm1303_vm15 = vcmp.ne.s32.totalorder %v4030_v48, 0  ;;  %vm1328_vm3 = vcmp.lt.s32.totalorder %v4030_v48, 0  ;;  %vm5886_vm14 = vmmov %vm5883_vm10 }
  0x89   : > { %vm1353_vm0 = vmand %vm1328_vm3, %vm1303_vm15 }
  0xe9   : > { %v489_v50 = vpop.f32.mrb[0].mxu0 }
  0xea   : > { %v598_v56 = vmul.f32 %v3853_v35, %v489_v50  ;;  %v3122_v57 = vpop.f32.mrb[1].mxu0  ;;  %v3298_v50 = vld [vmem:[%s5798_s7 + $0x10] sm:$0xff]  }
  0xeb   : > { %v492_v5 = vpop.f32.mrb[2].mxu0  ;;  %3177 = vmatpush3.bf16.msra.mxu1 %v3298_v50  ;;  %v3299_v50 = vld [vmem:[%s5798_s7 + $0x18] sm:$0xff]  }
  0xec   : > { %v3936_v17 = vadd.f32 %v3870_v37, %v598_v56  ;;  %v599_v63 = vmul.f32 %v3853_v35, %v492_v5  ;;  %v3123_v21 = vpop.f32.mrb[3].mxu0  ;;  %v4001_v56 = vmul.u32.u64.low 2454267026, %v3992_v30  ;;  %v4002_v57 = vmul.u32.u64.high 2454267026, %v3992_v30, %v4001_v56  ;;  %3178 = vmatprep.subr.bf16.mxu1 %v5808_v1 }
  0xee   : > { %v680_v46 = vmul.f32 0.044715, %v3936_v17  ;;  %v3962_v32 = vadd.f32 %v3870_v37, %v599_v63  ;;  %vm1196_vm13 = vc.u32 %v4001_v56, 2454267026 }
  0xef   : > { %3179 = vmatpush3.bf16.msra.mxu1 %v3299_v50 }
  0xf0   : > { %v705_v27 = vmul.f32 %v680_v46, %v3936_v17  ;;  %v681_v51 = vmul.f32 0.044715, %v3962_v32  ;;  %v1172_v46 = vmul.u32 14, %v1171_v54 }
  0xf1   : > { %v497_v34 = vpop.f32.mrb[4].mxu0 }
  0xf2   : > { %v730_v49 = vmul.f32 %v705_v27, %v3936_v17  ;;  %v706_v33 = vmul.f32 %v681_v51, %v3962_v32  ;;  %v600_v41 = vmul.f32 %v3853_v35, %v497_v34  ;;  %v3126_v47 = vpop.f32.mrb[5].mxu0  ;;  %v1197_v27 = vsel %vm1196_vm13, 1, %v5810_v45 }
  0xf3   : > { %v500_v53 = vpop.f32.mrb[6].mxu0  ;;  %v1198_v39 = vadd.s32 %v4002_v57, %v1197_v27  ;;  %v4041_v14 = vsub.s32 %v3812_v25, %v1172_v46  ;;  %v4054_v25 = vadd.s32 152, %v3597_v42 }
  0xf4   : > { %v755_v58 = vadd.f32 %v730_v49, %v3936_v17  ;;  %v731_v60 = vmul.f32 %v706_v33, %v3962_v32  ;;  %v4007_v0 = vadd.f32 %v3870_v37, %v600_v41  ;;  %v601_v2 = vmul.f32 %v3853_v35, %v500_v53  ;;  %v3127_v5 = vpop.f32.mrb[7].mxu0 }
  0xf5   : > { %v4027_v33 = vsel %vm1351_vm8, %v1376_v6, %v1131_v26  ;;  %v1199_v54 = vshrl.u32 %v1198_v39, 3  ;;  %v1186_v6 = vmul.u32 14, %v1185_v38  ;;  %vm1304_vm4 = vcmp.ne.s32.totalorder %v4041_v14, 0 }
  0xf6   : > { %v780_v13 = vmul.f32 0.7978846, %v755_v58  ;;  %v756_v63 = vadd.f32 %v731_v60, %v3962_v32  ;;  %v682_v21 = vmul.f32 0.044715, %v4007_v0  ;;  %v4020_v22 = vadd.f32 %v3870_v37, %v601_v2  ;;  %5880 = vst [vmem:[#allocation15_spill] sm:$0xff] %v4027_v33 }
  0xf7   : > { %v4049_v2 = vadd.s32 14, %v4017_v28  ;;  %v1200_v46 = vmul.u32 14, %v1199_v54  ;;  %vm1329_vm5 = vcmp.lt.s32.totalorder %v4041_v14, 0  ;;  %v4068_v39 = vsub.s32 %v3983_v36, %v1186_v6 }
  0xf8   : > { %3300 = vtanh.f32 %v780_v13  ;;  %v781_v51 = vmul.f32 0.7978846, %v756_v63  ;;  %v707_v34 = vmul.f32 %v682_v21, %v4007_v0  ;;  %v683_v62 = vmul.f32 0.044715, %v4020_v22  ;;  %vm4109_vm13 = vmand %vm1329_vm5, %vm1304_vm4 }
  0xf9   : > { %v505_v49 = vpop.f32.mrb[8].mxu0  ;;  %v1378_v21 = vadd.s32 14, %v4030_v48  ;;  %vm1305_vm9 = vcmp.ne.s32.totalorder %v4068_v39, 0  ;;  %vm1330_vm2 = vcmp.lt.s32.totalorder %v4068_v39, 0  ;;  %vm1440_vm5 = vcmp.lt.s32.totalorder %v3777_v61, 13 }
  0xfa   : > { %3302 = vtanh.f32 %v781_v51  ;;  %v732_v40 = vmul.f32 %v707_v34, %v4007_v0  ;;  %v602_v41 = vmul.f32 %v3853_v35, %v505_v49  ;;  %v3130_v47 = vpop.f32.mrb[9].mxu0  ;;  %v708_v53 = vmul.f32 %v683_v62, %v4020_v22  ;;  %vm4131_vm15 = vmand %vm1330_vm2, %vm1305_vm9 }
  0xfb   : > { %v508_v26 = vpop.f32.mrb[10].mxu0  ;;  %v4071_v62 = vmul.u32.u64.low 2454267026, %v4054_v25  ;;  %v4072_v49 = vmul.u32.u64.high 2454267026, %v4054_v25, %v4071_v62  ;;  %vm1441_vm9 = vcmp.lt.s32.totalorder %v3798_v11, 13  ;;  %vm5897_vm2 = vmmov %vm5883_vm10 }
  0xfc   : > { %v757_v56 = vadd.f32 %v732_v40, %v4007_v0  ;;  %v4045_v57 = vadd.f32 %v3870_v37, %v602_v41  ;;  %v603_v58 = vmul.f32 %v3853_v35, %v508_v26  ;;  %v3131_v60 = vpop.f32.mrb[11].mxu0  ;;  %v733_v5 = vmul.f32 %v708_v53, %v4020_v22 }
  0xfd   : > { %v1379_v53 = vadd.s32 14, %v4041_v14  ;;  %v655_v26 = vmul.f32 0.5, %v3936_v17  ;;  %v656_v17 = vmul.f32 0.5, %v3962_v32  ;;  %vm1210_vm3 = vc.u32 %v4071_v62, 2454267026 }
  0xfe   : > { %v782_v7 = vmul.f32 0.7978846, %v757_v56  ;;  %v684_v15 = vmul.f32 0.044715, %v4045_v57  ;;  %v4058_v13 = vadd.f32 %v3870_v37, %v603_v58  ;;  %v758_v63 = vadd.f32 %v733_v5, %v4020_v22 }
  0xff   : > { %v1201_v56 = vsub.s32 %v3992_v30, %v1200_v46 }
 0x100   : > { %3304 = vtanh.f32 %v782_v7  ;;  %v709_v59 = vmul.f32 %v684_v15, %v4045_v57  ;;  %v685_v27 = vmul.f32 0.044715, %v4058_v13  ;;  %v783_v51 = vmul.f32 0.7978846, %v758_v63 }
 0x101   : > { %v513_v34 = vpop.f32.mrb[12].mxu0  ;;  %vm1306_vm8 = vcmp.ne.s32.totalorder %v1201_v56, 0  ;;  %vm1331_vm11 = vcmp.lt.s32.totalorder %v1201_v56, 0 }
 0x102   : > { %v3301_v38 = vpop.eup %3300  ;;  %v734_v40 = vmul.f32 %v709_v59, %v4045_v57  ;;  %v710_v41 = vmul.f32 %v685_v27, %v4058_v13  ;;  %v604_v47 = vmul.f32 %v3853_v35, %v513_v34  ;;  %v3134_v50 = vpop.f32.mrb[13].mxu0  ;;  %3306 = vtanh.f32 %v783_v51  ;;  %vm4144_vm4 = vmand %vm1331_vm11, %vm1306_vm8 }
 0x103   : > { %v830_v54 = vadd.f32 1.0, %v3301_v38  ;;  %v516_v36 = vpop.f32.mrb[14].mxu0  ;;  %v1380_v38 = vadd.s32 14, %v4068_v39  ;;  %vm5834_vm8 = vcmp.gt.s32.totalorder %v3923_v44, 0  ;;  %vm1442_vm11 = vcmp.lt.s32.totalorder %v3800_v12, 13 }
 0x104   : > { %v3303_v58 = vpop.eup %3302  ;;  %v759_v60 = vadd.f32 %v734_v40, %v4045_v57  ;;  %v735_v5 = vmul.f32 %v710_v41, %v4058_v13  ;;  %v636_v6 = vadd.f32 %v3870_v37, %v604_v47  ;;  %v605_v7 = vmul.f32 %v3853_v35, %v516_v36  ;;  %v3135_v15 = vpop.f32.mrb[15].mxu0 }
 0x105   : > { %v855_v63 = vmul.f32 %v830_v54, %v655_v26  ;;  %v831_v59 = vadd.f32 1.0, %v3303_v58  ;;  %v4122_v26 = vsel %vm4091_vm7, %v4049_v2, %v4017_v28  ;;  %v4125_v54 = vsel %vm1353_vm0, %v1378_v21, %v4030_v48 }
 0x106   : > { %v784_v46 = vmul.f32 0.7978846, %v759_v60  ;;  %v760_v27 = vadd.f32 %v735_v5, %v4058_v13  ;;  %v686_v51 = vmul.f32 0.044715, %v636_v6  ;;  %v4115_v47 = vadd.f32 %v3870_v37, %v605_v7  ;;  %5887 = vst [vmem:[#allocation16_spill] sm:$0xff] %v4122_v26  ;;  %5888 = vst [vmem:[#allocation17_spill] sm:$0xff] %v4125_v54 }
 0x107   : > { %886 = vst.msk [vmem:[#allocation2 + $0xf] sm:$0xff] %vm5883_vm10, %v855_v63  ;;  %v856_v32 = vmul.f32 %v831_v59, %v656_v17  ;;  %v1381_v58 = vadd.s32 14, %v1201_v56  ;;  %v657_v5 = vmul.f32 0.5, %v4007_v0  ;;  %v4140_v48 = vsel %vm4109_vm13, %v1379_v53, %v4041_v14  ;;  %vm5900_vm13 = vmmov %vm5897_vm2 }
 0x108   : > { %3308 = vtanh.f32 %v784_v46  ;;  %v785_v40 = vmul.f32 0.7978846, %v760_v27  ;;  %v711_v41 = vmul.f32 %v686_v51, %v636_v6  ;;  %5891 = vst [vmem:[#allocation18_spill] sm:$0xff] %v4140_v48  ;;  %v658_v15 = vmul.f32 0.5, %v4020_v22 }
 0x109   : > { %887 = vst.msk [vmem:[#allocation2 + $0x17] sm:$0xff] %vm5886_vm14, %v856_v32  ;;  %v521_v50 = vpop.f32.mrb[16].mxu0  ;;  %v659_v0 = vmul.f32 0.5, %v4045_v57  ;;  %v4152_v17 = vmul.f32 0.5, %v4058_v13  ;;  %vm1416_vm7 = vcmp.gt.s32.totalorder %v3798_v11, 0  ;;  %v4155_v14 = vmul.f32 0.5, %v636_v6 }
 0x10a   : > { %v3305_v60 = vpop.eup %3304  ;;  %3310 = vtanh.f32 %v785_v40  ;;  %v736_v28 = vmul.f32 %v711_v41, %v636_v6  ;;  %v3138_v2 = vpop.f32.mrb[17].mxu0  ;;  %v687_v53 = vmul.f32 0.044715, %v4115_v47  ;;  %v4161_v46 = vsel %vm4131_vm15, %v1380_v38, %v4068_v39  ;;  %vm5903_vm15 = vmmov %vm5897_vm2 }
 0x10b   : > { %v832_v7 = vadd.f32 1.0, %v3305_v60  ;;  %v524_v59 = vpop.f32.mrb[18].mxu0  ;;  %5894 = vst [vmem:[#allocation19_spill] sm:$0xff] %v4161_v46  ;;  %v1211_v22 = vsel %vm1210_vm3, 1, %v5810_v45  ;;  %v4167_v13 = vmul.f32 %v3651_v16, %v855_v63  ;;  %v4173_v34 = vsel %vm4144_vm4, %v1381_v58, %v1201_v56 }
 0x10c   : > { %v3139_v30 = vpop.f32.mrb[19].mxu0  ;;  %v3307_v57 = vpop.eup %3306  ;;  %v761_v51 = vadd.f32 %v736_v28, %v636_v6  ;;  %5895 = vst [vmem:[#allocation20_spill] sm:$0xff] %v4173_v34  ;;  %v4176_v39 = vmul.f32 %v3651_v16, %v856_v32  ;;  %v4180_v62 = vmul.f32 0.5, %v4115_v47  ;;  %v606_v63 = vmul.f32 %v3853_v35, %v521_v50 }
 0x10d   : > { %v4169_v27 = vmul.f32 %v832_v7, %v657_v5  ;;  %v833_v38 = vadd.f32 1.0, %v3307_v57  ;;  %vm5896_vm0 = vcmp.gt.s32.totalorder %v3631_v4, 0  ;;  %v4191_v32 = vadd.s32 %v4072_v49, %v1211_v22 }
 0x10e   : > { %v1852_v40 = vld [vmem:[#allocation2 + $0xe] sm:$0xff]  ;;  %vm1417_vm10 = vcmp.gt.s32.totalorder %v3800_v12, 0  ;;  %v712_v21 = vmul.f32 %v687_v53, %v4115_v47  ;;  %v4197_v7 = vadd.s32 160, %v3597_v42  ;;  %v786_v49 = vmul.f32 0.7978846, %v761_v51 }
 0x10f   : > { %v1466_v41 = vld [vmem:[#allocation2 + $0x8] sm:$0xff]  ;;  %v1877_v6 = vsel %vm5896_vm0, %v1852_v40, 0.0  ;;  %888 = vst.msk [vmem:[#allocation2 + $0x1f] sm:$0xff] %vm5897_vm2, %v4169_v27  ;;  %v858_v50 = vmul.f32 %v833_v38, %v658_v15  ;;  %v4206_v40 = vadd.s32 168, %v3597_v42  ;;  %v4211_v38 = vadd.f32 %v3870_v37, %v606_v63 }
 0x110   : > { %v1620_v36 = vld [vmem:[#allocation2 + $0x9] sm:$0xff]  ;;  %v1541_v56 = vsel %vm1414_vm6, %v1466_v41, 0.0  ;;  %v1621_v2 = vld [vmem:[#allocation2 + $0x11] sm:$0xff]  ;;  %5898 = vst [vmem:[#allocation21_spill] sm:$0xff] %v4197_v7  ;;  %v1906_v41 = vmul.f32 %v3741_v20, %v1877_v6  ;;  %v737_v63 = vmul.f32 %v712_v21, %v4115_v47  ;;  %3312 = vtanh.f32 %v786_v49 }
 0x111   : > { %v1649_v58 = vmul.f32 %v3661_v19, %v1620_v36  ;;  %v1699_v60 = vld [vmem:[#allocation2 + $0xa] sm:$0xff]  ;;  %v1570_v5 = vmul.f32 %v3658_v18, %v1541_v56  ;;  %v4203_v22 = vpop.f32.mrb[20].mxu0  ;;  %5899 = vst [vmem:[#allocation22_spill] sm:$0xff] %v4206_v40  ;;  %v1853_v53 = vld [vmem:[#allocation2 + $0x16] sm:$0xff]  ;;  %889 = vst.msk [vmem:[#allocation2 + $0x27] sm:$0xff] %vm5900_vm13, %v858_v50  ;;  %v607_v56 = vmul.f32 %v3853_v35, %v524_v59  ;;  %vm1443_vm14 = vcmp.lt.s32.totalorder %v3923_v44, 13 }
 0x112   : > { %v1467_v28 = vld [vmem:[#allocation2 + $0x10] sm:$0xff]  ;;  %v1774_v30 = vsel %vm1439_vm12, %v1699_v60, 0.0  ;;  %v3309_v15 = vpop.eup %3308  ;;  %v3142_v60 = vpop.f32.mrb[21].mxu0  ;;  %v1650_v1 = vmul.f32 %v3661_v19, %v1621_v2  ;;  %v1878_v2 = vsel %vm1414_vm6, %v1853_v53, 0.0  ;;  %vm5904_vm3 = vcmp.lt.s32.totalorder %v3631_v4, 13 }
 0x113   : > { %v1542_v57 = vsel %vm1415_vm1, %v1467_v28, 0.0  ;;  %v1674_v36 = vadd.f32 %v1649_v58, %v1570_v5  ;;  %v1700_v45 = vld [vmem:[#allocation2 + $0x12] sm:$0xff]  ;;  %v834_v42 = vadd.f32 1.0, %v3309_v15  ;;  %v4216_v34 = vpop.f32.mrb[22].mxu0  ;;  %v1803_v5 = vmul.f32 %v3669_v23, %v1774_v30  ;;  %vm5906_vm0 = vmmov %vm5904_vm3 }
 0x114   : > { %v1571_v51 = vmul.f32 %v3658_v18, %v1542_v57  ;;  %v3311_v58 = vpop.eup %3310  ;;  %v3143_v40 = vpop.f32.mrb[23].mxu0  ;;  %v4223_v59 = vmul.u32.u64.low 2454267026, %v4197_v7  ;;  %v4224_v60 = vmul.u32.u64.high 2454267026, %v4197_v7, %v4223_v59  ;;  %v1931_v30 = vadd.f32 %v1906_v41, %v3770_v55 }
 0x115   : > { %v4229_v57 = vmul.f32 %v834_v42, %v659_v0  ;;  %v835_v15 = vadd.f32 1.0, %v3311_v58  ;;  %v1828_v6 = vadd.f32 %v1803_v5, %v1674_v36  ;;  %v1775_v21 = vsel %vm1440_vm5, %v1700_v45, 0.0 }
 0x116   : > { %5901 = vst [vmem:[#allocation23_spill] sm:$0xff] %v4224_v60  ;;  %5902 = vst [vmem:[#allocation24_spill] sm:$0xff] %v4223_v59  ;;  %v1854_v40 = vld [vmem:[#allocation2 + $0x1e] sm:$0xff]  ;;  %v4237_v60 = vadd.f32 %v3870_v37, %v607_v56  ;;  %v1675_v42 = vadd.f32 %v1650_v1, %v1571_v51  ;;  %v1907_v45 = vmul.f32 %v3741_v20, %v1878_v2  ;;  %v2013_v1 = vsel %vm5904_vm3, %v1467_v28, 0.0 }
 0x117   : > { %v1468_v46 = vld [vmem:[#allocation2 + $0x18] sm:$0xff]  ;;  %v1879_v0 = vsel %vm1415_vm1, %v1854_v40, 0.0  ;;  %890 = vst.msk [vmem:[#allocation2 + $0x2f] sm:$0xff] %vm5903_vm15, %v4229_v57  ;;  %v1962_v36 = vmul.f32 %v3651_v16, %v4169_v27  ;;  %v1804_v56 = vmul.f32 %v3669_v23, %v1775_v21  ;;  %v4257_v59 = vmul.f32 %v835_v15, %v4152_v17  ;;  %v4272_v17 = vld [vmem:[%s5795_s4 + $0x8] ss:$0 sm:$0xff]  ;;  %vm5915_vm15 = vmmov %vm5897_vm2 }
 0x118   : > { %v1622_v7 = vld [vmem:[#allocation2 + $0x19] sm:$0xff]  ;;  %v1543_v49 = vsel %vm1416_vm7, %v1468_v46, 0.0  ;;  %v1908_v51 = vmul.f32 %v3741_v20, %v1879_v0  ;;  %v1855_v58 = vld [vmem:[#allocation2 + $0x26] sm:$0xff]  ;;  %vm5827_vm4 = vcmp.gt.s32.totalorder %v3947_v24, 0  ;;  %v1932_v2 = vadd.f32 %v1907_v45, %v1828_v6 }
 0x119   : > { %v1651_v55 = vmul.f32 %v3661_v19, %v1622_v7  ;;  %v1701_v41 = vld [vmem:[#allocation2 + $0x1a] sm:$0xff]  ;;  %v1572_v53 = vmul.f32 %v3658_v18, %v1543_v49  ;;  %v4260_v27 = vpop.f32.mrb[24].mxu0  ;;  %v4263_v49 = vmul.f32 %v3651_v16, %v858_v50  ;;  %v762_v0 = vadd.f32 %v737_v63, %v4115_v47  ;;  %891 = vst.msk [vmem:[#allocation2 + $0x37] sm:$0xff] %vm5897_vm2, %v4257_v59 }
 0x11a   : > { %v1776_v7 = vsel %vm1441_vm9, %v1701_v41, 0.0  ;;  %v1469_v5 = vld [vmem:[#allocation2 + $0x20] sm:$0xff]  ;;  %v3146_v48 = vpop.f32.mrb[25].mxu0  ;;  %v4267_v41 = vadd.f32 %v4167_v13, %v1931_v30  ;;  %v1829_v15 = vadd.f32 %v1804_v56, %v1675_v42  ;;  %v2278_v6 = vsel %vm5906_vm0, %v1854_v40, 0.0 }
 0x11b   : > { %v1676_v28 = vadd.f32 %v1651_v55, %v1572_v53  ;;  %v1623_v21 = vld [vmem:[#allocation2 + $0x21] sm:$0xff]  ;;  %v1544_v50 = vsel %vm1417_vm10, %v1469_v5, 0.0  ;;  %v4280_v47 = vpop.f32.mrb[26].mxu0  ;;  %v4283_v48 = vmul.f32 %v3788_v9, %v2013_v1  ;;  %v1805_v13 = vmul.f32 %v3669_v23, %v1776_v7 }
 0x11c   : > { %5905 = vst [vmem:[#allocation25_spill] sm:$0xff] %v4267_v41  ;;  %v1880_v63 = vsel %vm1416_vm7, %v1855_v58, 0.0  ;;  %v2014_v30 = vsel %vm1439_vm12, %v1468_v46, 0.0  ;;  %v3147_v40 = vpop.f32.mrb[27].mxu0  ;;  %v1933_v42 = vadd.f32 %v1908_v51, %v1829_v15  ;;  %v1573_v55 = vmul.f32 %v3658_v18, %v1544_v50  ;;  %v1702_v53 = vld [vmem:[#allocation2 + $0x22] sm:$0xff]  ;;  %v3313_v15 = vpop.eup %3312 }
 0x11d   : > { %5907 = vst [vmem:[#allocation26_spill] sm:$0xff] %v4283_v48  ;;  %v1652_v45 = vmul.f32 %v3661_v19, %v1623_v21  ;;  %v4293_v56 = vmul.f32 0.5, %v4211_v38  ;;  %v4296_v1 = vadd.f32 %v4176_v39, %v1932_v2  ;;  %v4299_v7 = vmul.f32 %v4272_v17, %v2278_v6 }
 0x11e   : > { %v1830_v4 = vadd.f32 %v1805_v13, %v1676_v28  ;;  %v1856_v48 = vld [vmem:[#allocation2 + $0x2e] sm:$0xff]  ;;  %vm1444_vm13 = vcmp.lt.s32.totalorder %v3947_v24, 13  ;;  %v787_v51 = vmul.f32 0.7978846, %v762_v0  ;;  %v1909_v21 = vmul.f32 %v3741_v20, %v1880_v63 }
 0x11f   : > { %5908 = vst [vmem:[#allocation27_spill] sm:$0xff] %v4296_v1  ;;  %5909 = vst [vmem:[#allocation28_spill] sm:$0xff] %v4299_v7  ;;  %v1470_v41 = vld [vmem:[#allocation2 + $0x28] sm:$0xff]  ;;  %v4304_v50 = vmul.f32 %v3788_v9, %v2014_v30  ;;  %v1964_v39 = vmul.f32 %v3651_v16, %v4229_v57  ;;  %v2279_v28 = vsel %vm1439_vm12, %v1855_v58, 0.0  ;;  %v1777_v13 = vsel %vm1442_vm11, %v1702_v53, 0.0 }
 0x120   : > { %v1624_v46 = vld [vmem:[#allocation2 + $0x29] sm:$0xff]  ;;  %v1545_v2 = vsel %vm5834_vm8, %v1470_v41, 0.0  ;;  %v1881_v0 = vsel %vm1417_vm10, %v1856_v48, 0.0  ;;  %v4317_v30 = vadd.f32 %v1962_v36, %v1933_v42  ;;  %v1677_v40 = vadd.f32 %v1652_v45, %v1573_v55  ;;  %v1857_v53 = vld [vmem:[#allocation2 + $0x36] sm:$0xff] }
 0x121   : > { %5910 = vst [vmem:[#allocation29_spill] sm:$0xff] %v4304_v50  ;;  %v1703_v6 = vld [vmem:[#allocation2 + $0x2a] sm:$0xff]  ;;  %v1574_v63 = vmul.f32 %v3658_v18, %v1545_v2  ;;  %v1653_v57 = vmul.f32 %v3661_v19, %v1624_v46  ;;  %v4322_v50 = vpop.f32.mrb[28].mxu0  ;;  %v1934_v52 = vadd.f32 %v1909_v21, %v1830_v4  ;;  %v2015_v58 = vsel %vm1440_vm5, %v1469_v5, 0.0 }
 0x122   : > { %5911 = vst [vmem:[#allocation30_spill] sm:$0xff] %v4317_v30  ;;  %v1778_v7 = vsel %vm1443_vm14, %v1703_v6, 0.0  ;;  %v836_v1 = vadd.f32 1.0, %v3313_v15  ;;  %v1471_v54 = vld [vmem:[#allocation2 + $0x30] sm:$0xff]  ;;  %3314 = vtanh.f32 %v787_v51  ;;  %v3150_v26 = vpop.f32.mrb[29].mxu0  ;;  %v4327_v36 = vmul.f32 %v4272_v17, %v2279_v28 }
 0x123   : > { %v1806_v42 = vmul.f32 %v3669_v23, %v1777_v13  ;;  %v1910_v55 = vmul.f32 %v3741_v20, %v1881_v0  ;;  %v1678_v45 = vadd.f32 %v1653_v57, %v1574_v63  ;;  %v4331_v46 = vpop.f32.mrb[30].mxu0  ;;  %v1807_v4 = vmul.f32 %v3669_v23, %v1778_v7  ;;  %v1625_v28 = vld [vmem:[#allocation2 + $0x31] sm:$0xff] }
 0x124   : > { %5912 = vst [vmem:[#allocation31_spill] sm:$0xff] %v4327_v36  ;;  %v1882_v5 = vsel %vm5834_vm8, %v1857_v53, 0.0  ;;  %v861_v15 = vmul.f32 %v836_v1, %v4155_v14  ;;  %v1546_v26 = vsel %vm5827_vm4, %v1471_v54, 0.0  ;;  %vm5826_vm12 = vcmp.gt.s32.totalorder %v3952_v31, 0  ;;  %v3151_v51 = vpop.f32.mrb[31].mxu0  ;;  %v1704_v0 = vld [vmem:[#allocation2 + $0x32] sm:$0xff] }
 0x125   : > { %v1831_v21 = vadd.f32 %v1806_v42, %v1677_v40  ;;  %v4341_v2 = vmul.f32 %v3788_v9, %v2015_v58  ;;  %v2280_v6 = vsel %vm1440_vm5, %v1856_v48, 0.0  ;;  %v1965_v7 = vmul.f32 %v3651_v16, %v4257_v59 }
 0x126   : > { %v4348_v13 = vadd.f32 %v4263_v49, %v1934_v52  ;;  %v1832_v14 = vadd.f32 %v1807_v4, %v1678_v45  ;;  %v2016_v1 = vsel %vm1441_vm9, %v1470_v41, 0.0  ;;  %892 = vst.msk [vmem:[#allocation2 + $0x3f] sm:$0xff] %vm5915_vm15, %v861_v15  ;;  %v688_v63 = vmul.f32 0.044715, %v4211_v38 }
 0x127   : > { %5913 = vst [vmem:[#allocation32_spill] sm:$0xff] %v4341_v2  ;;  %v1935_v40 = vadd.f32 %v1910_v55, %v1831_v21  ;;  %v1911_v57 = vmul.f32 %v3741_v20, %v1882_v5  ;;  %v2281_v48 = vsel %vm1441_vm9, %v1857_v53, 0.0  ;;  %v1575_v59 = vmul.f32 %v3658_v18, %v1546_v26  ;;  %vm5922_vm9 = vmmov %vm5897_vm2 }
 0x128   : > { %5914 = vst [vmem:[#allocation33_spill] sm:$0xff] %v4348_v13  ;;  %v1654_v52 = vmul.f32 %v3661_v19, %v1625_v28  ;;  %v713_v49 = vmul.f32 %v688_v63, %v4211_v38  ;;  %v689_v58 = vmul.f32 0.044715, %v4237_v60  ;;  %v608_v41 = vmul.f32 %v3853_v35, %v4203_v22 }
 0x129   : > { %v4364_v42 = vmul.f32 %v4272_v17, %v2280_v6  ;;  %v4367_v55 = vmul.f32 %v3788_v9, %v2016_v1  ;;  %v1779_v53 = vsel %vm1444_vm13, %v1704_v0, 0.0  ;;  %v2017_v45 = vsel %vm1442_vm11, %v1471_v54, 0.0  ;;  %v4374_v4 = vpop.f32.mrb[32].mxu0 }
 0x12a   : > { %vm1445_vm5 = vcmp.lt.s32.totalorder %v3952_v31, 13  ;;  %v1936_v5 = vadd.f32 %v1911_v57, %v1832_v14  ;;  %v738_v26 = vmul.f32 %v713_v49, %v4211_v38  ;;  %v714_v22 = vmul.f32 %v689_v58, %v4237_v60  ;;  %v3154_v21 = vpop.f32.mrb[33].mxu0 }
 0x12b   : > { %5916 = vst [vmem:[#allocation34_spill] sm:$0xff] %v4364_v42  ;;  %5917 = vst [vmem:[#allocation35_spill] sm:$0xff] %v4367_v55  ;;  %v640_v51 = vadd.f32 %v3870_v37, %v608_v41  ;;  %v4379_v6 = vadd.f32 %v1964_v39, %v1935_v40  ;;  %v4382_v28 = vmul.f32 %v4272_v17, %v2281_v48  ;;  %v4388_v0 = vpop.f32.mrb[34].mxu0  ;;  %vm5833_vm3 = vcmp.gt.s32.totalorder %v3957_v43, 0 }
 0x12c   : > { %v609_v54 = vmul.f32 %v3853_v35, %v4216_v34  ;;  %v610_v1 = vmul.f32 %v3853_v35, %v4260_v27  ;;  %v3315_v14 = vpop.eup %3314  ;;  %v1679_v63 = vadd.f32 %v1654_v52, %v1575_v59  ;;  %v763_v57 = vadd.f32 %v738_v26, %v4211_v38  ;;  %v3155_v40 = vpop.f32.mrb[35].mxu0 }
 0x12d   : > { %5918 = vst [vmem:[#allocation36_spill] sm:$0xff] %v4379_v6  ;;  %5919 = vst [vmem:[#allocation37_spill] sm:$0xff] %v4382_v28  ;;  %v739_v49 = vmul.f32 %v714_v22, %v4237_v60  ;;  %v611_v39 = vmul.f32 %v3853_v35, %v4280_v47  ;;  %v1808_v48 = vmul.f32 %v3669_v23, %v1779_v53  ;;  %v1858_v58 = vld [vmem:[#allocation2 + $0x3e] sm:$0xff]  ;;  %v837_v41 = vadd.f32 1.0, %v3315_v14 }
 0x12e   : > { %v4396_v34 = vmul.f32 %v3651_v16, %v861_v15  ;;  %v4399_v27 = vmul.f32 %v3788_v9, %v2017_v45  ;;  %v1472_v21 = vld [vmem:[#allocation2 + $0x38] sm:$0xff]  ;;  %v4401_v59 = vadd.f32 %v1965_v7, %v1936_v5  ;;  %v1883_v38 = vsel %vm5827_vm4, %v1858_v58, 0.0 }
 0x12f   : > { %v1626_v52 = vld [vmem:[#allocation2 + $0x39] sm:$0xff]  ;;  %v4406_v47 = vmul.f32 0.5, %v4237_v60  ;;  %v690_v26 = vmul.f32 0.044715, %v640_v51  ;;  %v862_v53 = vmul.f32 %v837_v41, %v4180_v62  ;;  %v1547_v15 = vsel %vm5826_vm12, %v1472_v21, 0.0 }
 0x130   : > { %5920 = vst [vmem:[#allocation38_spill] sm:$0xff] %v4399_v27  ;;  %5921 = vst [vmem:[#allocation39_spill] sm:$0xff] %v4401_v59  ;;  %v641_v45 = vadd.f32 %v3870_v37, %v609_v54  ;;  %v4413_v22 = vadd.f32 %v3870_v37, %v610_v1  ;;  %v1833_v7 = vadd.f32 %v1808_v48, %v1679_v63  ;;  %v788_v5 = vmul.f32 0.7978846, %v763_v57  ;;  %v1705_v41 = vld [vmem:[#allocation2 + $0x3a] sm:$0xff] }
 0x131   : > { %v764_v14 = vadd.f32 %v739_v49, %v4237_v60  ;;  %v4417_v40 = vadd.f32 %v3870_v37, %v611_v39  ;;  %v1912_v59 = vmul.f32 %v3741_v20, %v1883_v38  ;;  %893 = vst.msk [vmem:[#allocation2 + $0x47] sm:$0xff] %vm5922_vm9, %v862_v53  ;;  %v1655_v62 = vmul.f32 %v3661_v19, %v1626_v52  ;;  %v4427_v63 = vpop.f32.mrb[36].mxu0 }
 0x132   : > { %v4423_v54 = vmul.f32 0.5, %v640_v51  ;;  %v612_v1 = vmul.f32 %v3853_v35, %v4322_v50  ;;  %v1576_v60 = vmul.f32 %v3658_v18, %v1547_v15  ;;  %3316 = vtanh.f32 %v788_v5  ;;  %v3158_v39 = vpop.f32.mrb[37].mxu0 }
 0x133   : > { %v789_v57 = vmul.f32 0.7978846, %v764_v14  ;;  %v715_v49 = vmul.f32 %v690_v26, %v640_v51  ;;  %v2282_v48 = vsel %vm1442_vm11, %v1858_v58, 0.0  ;;  %v691_v38 = vmul.f32 0.044715, %v641_v45  ;;  %v4435_v27 = vpop.f32.mrb[38].mxu0 }
 0x134   : > { %v692_v52 = vmul.f32 0.044715, %v4413_v22  ;;  %v613_v28 = vmul.f32 %v3853_v35, %v4331_v46  ;;  %v1780_v50 = vsel %vm1445_vm5, %v1705_v41, 0.0  ;;  %v693_v5 = vmul.f32 0.044715, %v4417_v40  ;;  %v3159_v26 = vpop.f32.mrb[39].mxu0 }
 0x135   : > { %3318 = vtanh.f32 %v789_v57  ;;  %v740_v15 = vmul.f32 %v715_v49, %v640_v51  ;;  %v2018_v14 = vsel %vm1443_vm14, %v1472_v21, 0.0  ;;  %vm1446_vm11 = vcmp.lt.s32.totalorder %v3957_v43, 13 }
 0x136   : > { %v716_v58 = vmul.f32 %v691_v38, %v641_v45  ;;  %v717_v39 = vmul.f32 %v692_v52, %v4413_v22  ;;  %v4445_v46 = vadd.f32 %v3870_v37, %v612_v1  ;;  %v1937_v12 = vadd.f32 %v1912_v59, %v1833_v7 }
 0x137   : > { %v1680_v6 = vadd.f32 %v1655_v62, %v1576_v60  ;;  %v765_v42 = vadd.f32 %v740_v15, %v640_v51  ;;  %v718_v41 = vmul.f32 %v693_v5, %v4417_v40  ;;  %v4449_v57 = vmul.f32 %v4272_v17, %v2282_v48 }
 0x138   : > { %v4451_v49 = vmul.f32 0.5, %v641_v45  ;;  %v741_v26 = vmul.f32 %v716_v58, %v641_v45  ;;  %v4454_v21 = vmul.f32 0.5, %v4413_v22  ;;  %v1809_v38 = vmul.f32 %v3669_v23, %v1780_v50  ;;  %v1859_v51 = vld [vmem:[#allocation2 + $0x46] sm:$0xff] }
 0x139   : > { %5923 = vst [vmem:[#allocation40_spill] sm:$0xff] %v4449_v57  ;;  %v790_v52 = vmul.f32 0.7978846, %v765_v42  ;;  %v742_v1 = vmul.f32 %v717_v39, %v4413_v22  ;;  %v614_v59 = vmul.f32 %v3853_v35, %v4374_v4  ;;  %v4461_v7 = vmul.f32 %v3651_v16, %v862_v53  ;;  %v1473_v60 = vld [vmem:[#allocation2 + $0x40] sm:$0xff]  ;;  %v4468_v5 = vpop.f32.mrb[40].mxu0 }
 0x13a   : > { %v4464_v62 = vmul.f32 %v3788_v9, %v2018_v14  ;;  %v743_v48 = vmul.f32 %v718_v41, %v4417_v40  ;;  %v694_v15 = vmul.f32 0.044715, %v4445_v46  ;;  %v4471_v42 = vadd.f32 %v4396_v34, %v1937_v12  ;;  %v3162_v58 = vpop.f32.mrb[41].mxu0  ;;  %v1627_v39 = vld [vmem:[#allocation2 + $0x41] sm:$0xff] }
 0x13b   : > { %v1834_v50 = vadd.f32 %v1809_v38, %v1680_v6  ;;  %v4474_v4 = vmul.f32 0.5, %v4417_v40  ;;  %v645_v53 = vadd.f32 %v3870_v37, %v613_v28  ;;  %3320 = vtanh.f32 %v790_v52  ;;  %v1706_v52 = vld [vmem:[#allocation2 + $0x42] sm:$0xff] }
 0x13c   : > { %5924 = vst [vmem:[#allocation41_spill] sm:$0xff] %v4464_v62  ;;  %5925 = vst [vmem:[#allocation42_spill] sm:$0xff] %v4471_v42  ;;  %v766_v14 = vadd.f32 %v741_v26, %v641_v45  ;;  %v4478_v57 = vmul.f32 0.5, %v4445_v46  ;;  %v615_v41 = vmul.f32 %v3853_v35, %v4388_v0  ;;  %v4482_v62 = vpop.f32.mrb[42].mxu0  ;;  %v3317_v12 = vpop.eup %3316  ;;  %v1884_v6 = vsel %vm5826_vm12, %v1859_v51, 0.0 }
 0x13d   : > { %v1548_v34 = vsel %vm5833_vm3, %v1473_v60, 0.0  ;;  %v767_v28 = vadd.f32 %v742_v1, %v4413_v22  ;;  %v4490_v38 = vadd.f32 %v3870_v37, %v614_v59  ;;  %v3163_v45 = vpop.f32.mrb[43].mxu0  ;;  %v838_v26 = vadd.f32 1.0, %v3317_v12 }
 0x13e   : > { %v791_v58 = vmul.f32 0.7978846, %v766_v14  ;;  %v768_v35 = vadd.f32 %v743_v48, %v4417_v40  ;;  %v719_v0 = vmul.f32 %v694_v15, %v4445_v46  ;;  %v2283_v11 = vsel %vm1443_vm14, %v1859_v51, 0.0  ;;  %vm5926_vm14 = vmmov %vm5897_vm2 }
 0x13f   : > { %v3319_v42 = vpop.eup %3318  ;;  %v1656_v61 = vmul.f32 %v3661_v19, %v1627_v39  ;;  %vm5831_vm0 = vcmp.gt.s32.totalorder %v3967_v10, 0  ;;  %v792_v22 = vmul.f32 0.7978846, %v767_v28  ;;  %v695_v1 = vmul.f32 0.044715, %v645_v53 }
 0x140   : > { %v1913_v59 = vmul.f32 %v3741_v20, %v1884_v6  ;;  %v863_v12 = vmul.f32 %v838_v26, %v4293_v56  ;;  %v1577_v14 = vmul.f32 %v3658_v18, %v1548_v34  ;;  %v839_v45 = vadd.f32 1.0, %v3319_v42 }
 0x141   : > { %v1781_v40 = vsel %vm1446_vm11, %v1706_v52, 0.0  ;;  %v2019_v48 = vsel %vm1444_vm13, %v1473_v60, 0.0  ;;  %v744_v51 = vmul.f32 %v719_v0, %v4445_v46  ;;  %v720_v15 = vmul.f32 %v695_v1, %v645_v53  ;;  %v4510_v42 = vpop.f32.mrb[44].mxu0 }
 0x142   : > { %894 = vst.msk [vmem:[#allocation2 + $0x4f] sm:$0xff] %vm5926_vm14, %v863_v12  ;;  %v864_v39 = vmul.f32 %v839_v45, %v4406_v47  ;;  %vm1447_vm2 = vcmp.lt.s32.totalorder %v3967_v10, 13  ;;  %3322 = vtanh.f32 %v791_v58  ;;  %v793_v56 = vmul.f32 0.7978846, %v768_v35  ;;  %v3166_v26 = vpop.f32.mrb[45].mxu0 }
 0x143   : > { %v696_v6 = vmul.f32 0.044715, %v4490_v38  ;;  %vm5832_vm15 = vcmp.gt.s32.totalorder %v3972_v3, 0  ;;  %3324 = vtanh.f32 %v792_v22  ;;  %v769_v60 = vadd.f32 %v744_v51, %v4445_v46  ;;  %v4523_v35 = vld [vmem:[%s5793_s2] ss:$0 sm:$0xff] }
 0x144   : > { %v745_v34 = vmul.f32 %v720_v15, %v645_v53  ;;  %v4515_v28 = vadd.f32 %v3870_v37, %v615_v41  ;;  %v1938_v52 = vadd.f32 %v1913_v59, %v1834_v50  ;;  %v1681_v47 = vadd.f32 %v1656_v61, %v1577_v14  ;;  %895 = vst.msk [vmem:[#allocation2 + $0x57] sm:$0xff] %vm5922_vm9, %v864_v39  ;;  %v4531_v50 = vpop.f32.mrb[46].mxu0 }
 0x145   : > { %v4518_v58 = vmul.f32 0.5, %v645_v53  ;;  %v616_v0 = vmul.f32 %v4523_v35, %v4427_v63  ;;  %vm1448_vm14 = vcmp.lt.s32.totalorder %v3972_v3, 13  ;;  %v794_v46 = vmul.f32 0.7978846, %v769_v60  ;;  %5927 = vst [vmem:[#allocation43_spill] sm:$0xff] %v4531_v50  ;;  %v3321_v22 = vpop.eup %3320  ;;  %v3167_v63 = vpop.f32.mrb[47].mxu0 }
 0x146   : > { %v770_v37 = vadd.f32 %v745_v34, %v645_v53  ;;  %v721_v41 = vmul.f32 %v696_v6, %v4490_v38  ;;  %v617_v61 = vmul.f32 %v4523_v35, %v4435_v27  ;;  %v4534_v1 = vmul.f32 %v4272_v17, %v2283_v11  ;;  %v4547_v11 = vld [vmem:[%s5794_s3] ss:$0 sm:$0xff] }
 0x147   : > { %v1810_v59 = vmul.f32 %v3669_v23, %v1781_v40  ;;  %v4538_v14 = vmul.f32 %v3788_v9, %v2019_v48  ;;  %3326 = vtanh.f32 %v793_v56  ;;  %v840_v45 = vadd.f32 1.0, %v3321_v22 }
 0x148   : > { %5928 = vst [vmem:[#allocation44_spill] sm:$0xff] %v4534_v1  ;;  %3328 = vtanh.f32 %v794_v46  ;;  %v795_v53 = vmul.f32 0.7978846, %v770_v37  ;;  %v697_v51 = vmul.f32 0.044715, %v4515_v28  ;;  %v4542_v27 = vadd.f32 %v4461_v7, %v1938_v52 }
 0x149   : > { %5929 = vst [vmem:[#allocation45_spill] sm:$0xff] %v4538_v14  ;;  %v1835_v15 = vadd.f32 %v1810_v59, %v1681_v47  ;;  %v4550_v40 = vadd.f32 %v4547_v11, %v616_v0  ;;  %v5931_v48 = vshrl.u32 %v4191_v32, 3  ;;  %v1860_v6 = vld [vmem:[#allocation2 + $0x4e] sm:$0xff]  ;;  %v4555_v26 = vmul.f32 %v840_v45, %v4423_v54  ;;  %v4571_v37 = vpop.f32.mrb[48].mxu0 }
 0x14a   : > { %5930 = vst [vmem:[#allocation46_spill] sm:$0xff] %v4542_v27  ;;  %v1474_v60 = vld [vmem:[#allocation2 + $0x48] sm:$0xff]  ;;  %vm5844_vm9 = vcmp.gt.s32.totalorder %v3977_v8, 0  ;;  %v4559_v7 = vmul.f32 0.5, %v4490_v38  ;;  %v746_v52 = vmul.f32 %v721_v41, %v4490_v38  ;;  %v4563_v47 = vadd.f32 %v4547_v11, %v617_v61  ;;  %5932 = vst [vmem:[#allocation47_spill] sm:$0xff] %v4571_v37  ;;  %v3170_v45 = vpop.f32.mrb[49].mxu0 }
 0x14b   : > { %v1214_v56 = vmul.u32 14, %v5931_v48  ;;  %v1628_v34 = vld [vmem:[#allocation2 + $0x49] sm:$0xff]  ;;  %v4566_v0 = vmul.f32 %v3651_v16, %v863_v12  ;;  %v1549_v32 = vsel %vm5831_vm0, %v1474_v60, 0.0  ;;  %3330 = vtanh.f32 %v795_v53  ;;  %v1629_v59 = vld [vmem:[#allocation2 + $0x51] sm:$0xff]  ;;  %v588_v1 = vpop.f32.mrb[50].mxu0 }
 0x14c   : > { %v1657_v46 = vmul.f32 %v3661_v19, %v1628_v34  ;;  %v1707_v54 = vld [vmem:[#allocation2 + $0x4a] sm:$0xff]  ;;  %v1885_v22 = vsel %vm5833_vm3, %v1860_v6, 0.0  ;;  %v1578_v41 = vmul.f32 %v3658_v18, %v1549_v32  ;;  %v4577_v61 = vmul.f32 %v3651_v16, %v864_v39  ;;  %v3323_v53 = vpop.eup %3322  ;;  %v3171_v44 = vpop.f32.mrb[51].mxu0 }
 0x14d   : > { %vm5933_vm12 = vcmask 523264   ;;  %v4581_v12 = vld [vmem:[#allocation2 + $0x50] sm:$0xff]  ;;  %vm1449_vm4 = vcmp.lt.s32.totalorder %v3977_v8, 13  ;;  %v722_v63 = vmul.f32 %v697_v51, %v4515_v28  ;;  %v2284_v48 = vsel %vm1444_vm13, %v1860_v6, 0.0  ;;  %v3325_v27 = vpop.eup %3324 }
 0x14e   : > { %896 = vst.msk [vmem:[#allocation2 + $0x5f] sm:$0xff] %vm5933_vm12, %v4555_v26  ;;  %v4588_v34 = vmul.f32 0.5, %v4515_v28  ;;  %v4591_v39 = vmul.f32 0.5, %v4550_v40  ;;  %v4594_v32 = vsub.s32 %v4054_v25, %v1214_v56  ;;  %v1782_v14 = vsel %vm1447_vm2, %v1707_v54, 0.0  ;;  %v1708_v51 = vld [vmem:[#allocation2 + $0x52] sm:$0xff] }
 0x14f   : > { %v771_v45 = vadd.f32 %v746_v52, %v4490_v38  ;;  %v4600_v24 = vmul.f32 0.044715, %v4550_v40  ;;  %v4603_v6 = vmul.f32 0.5, %v4563_v47  ;;  %v1914_v55 = vmul.f32 %v3741_v20, %v1885_v22  ;;  %v1861_v25 = vld [vmem:[#allocation2 + $0x56] sm:$0xff] }
 0x150   : > { %5934 = vst [vmem:[#allocation48_spill] sm:$0xff] %v4591_v39  ;;  %v1682_v13 = vadd.f32 %v1657_v46, %v1578_v41  ;;  %v1550_v1 = vsel %vm5832_vm15, %v4581_v12, 0.0  ;;  %v1658_v56 = vmul.f32 %v3661_v19, %v1629_v59  ;;  %v4611_v54 = vmul.f32 %v4272_v17, %v2284_v48 }
 0x151   : > { %5935 = vst [vmem:[#allocation49_spill] sm:$0xff] %v4603_v6  ;;  %v1579_v38 = vmul.f32 %v3658_v18, %v1550_v1  ;;  %v747_v52 = vmul.f32 %v722_v63, %v4515_v28  ;;  %v4616_v2 = vmul.f32 0.044715, %v4563_v47  ;;  %v3327_v44 = vpop.eup %3326  ;;  %v1811_v46 = vmul.f32 %v3669_v23, %v1782_v14 }
 0x152   : > { %5936 = vst [vmem:[#allocation50_spill] sm:$0xff] %v4611_v54  ;;  %v1783_v22 = vsel %vm1448_vm14, %v1708_v51, 0.0  ;;  %v841_v41 = vadd.f32 1.0, %v3323_v53  ;;  %v842_v30 = vadd.f32 1.0, %v3325_v27  ;;  %v3329_v36 = vpop.eup %3328  ;;  %v1886_v59 = vsel %vm5831_vm0, %v1861_v25, 0.0 }
 0x153   : > { %v2020_v48 = vsel %vm1445_vm5, %v1474_v60, 0.0  ;;  %v2285_v63 = vsel %vm1445_vm5, %v1861_v25, 0.0  ;;  %v1683_v1 = vadd.f32 %v1658_v56, %v1579_v38  ;;  %vm5843_vm13 = vcmp.gt.s32.totalorder %v3979_v29, 0  ;;  %vm5937_vm5 = vmmov %vm5933_vm12 }
 0x154   : > { %v1939_v54 = vadd.f32 %v1914_v55, %v1835_v15  ;;  %v1836_v14 = vadd.f32 %v1811_v46, %v1682_v13  ;;  %v866_v51 = vmul.f32 %v841_v41, %v4451_v49  ;;  %v867_v50 = vmul.f32 %v842_v30, %v4454_v21 }
 0x155   : > { %v1862_v37 = vld [vmem:[#allocation2 + $0x5e] sm:$0xff]  ;;  %v1812_v6 = vmul.f32 %v3669_v23, %v1783_v22  ;;  %v843_v31 = vadd.f32 1.0, %v3327_v44  ;;  %v844_v25 = vadd.f32 1.0, %v3329_v36  ;;  %v3331_v56 = vpop.eup %3330  ;;  %v1915_v38 = vmul.f32 %v3741_v20, %v1886_v59 }
 0x156   : > { %v1476_v53 = vld [vmem:[#allocation2 + $0x58] sm:$0xff]  ;;  %v1887_v60 = vsel %vm5832_vm15, %v1862_v37, 0.0  ;;  %897 = vst.msk [vmem:[#allocation2 + $0x67] sm:$0xff] %vm5933_vm12, %v866_v51  ;;  %vm1450_vm0 = vcmp.lt.s32.totalorder %v3979_v29, 13  ;;  %v4642_v49 = vmul.f32 %v3788_v9, %v2020_v48  ;;  %v4645_v36 = vmul.f32 %v4272_v17, %v2285_v63  ;;  %v5938_v63 = vld [vmem:[#allocation16_spill] sm:$0xff] }
 0x157   : > { %v1630_v27 = vld [vmem:[#allocation2 + $0x59] sm:$0xff]  ;;  %v1916_v13 = vmul.f32 %v3741_v20, %v1887_v60  ;;  %v1551_v55 = vsel %vm5844_vm9, %v1476_v53, 0.0  ;;  %898 = vst.msk [vmem:[#allocation2 + $0x6f] sm:$0xff] %vm5937_vm5, %v867_v50  ;;  %v1837_v21 = vadd.f32 %v1812_v6, %v1683_v1  ;;  %vm5839_vm12 = vcmp.gt.s32.totalorder %v4027_v33, 0 }
 0x158   : > { %v1709_v39 = vld [vmem:[#allocation2 + $0x5a] sm:$0xff]  ;;  %v1659_v30 = vmul.f32 %v3661_v19, %v1630_v27  ;;  %v1580_v15 = vmul.f32 %v3658_v18, %v1551_v55  ;;  %v1940_v44 = vadd.f32 %v1915_v38, %v1836_v14  ;;  %v2021_v46 = vsel %vm1446_vm11, %v4581_v12, 0.0 }
 0x159   : > { %v2286_v22 = vsel %vm1446_vm11, %v1862_v37, 0.0  ;;  %v1784_v41 = vsel %vm1449_vm4, %v1709_v39, 0.0  ;;  %vm1451_vm5 = vcmp.lt.s32.totalorder %v4027_v33, 13  ;;  %v1941_v59 = vadd.f32 %v1916_v13, %v1837_v21  ;;  %v5944_v55 = vld [vmem:[#allocation17_spill] sm:$0xff] }
 0x15a   : > { %v868_v6 = vmul.f32 %v843_v31, %v4474_v4  ;;  %v869_v48 = vmul.f32 %v844_v25, %v4478_v57  ;;  %vm5838_vm15 = vcmp.gt.s32.totalorder %v5938_v63, 0  ;;  %v845_v1 = vadd.f32 1.0, %v3331_v56 }
 0x15b   : > { %v4661_v14 = vadd.f32 %v4566_v0, %v1939_v54  ;;  %v1684_v12 = vadd.f32 %v1659_v30, %v1580_v15  ;;  %v2022_v37 = vsel %vm1447_vm2, %v1476_v53, 0.0  ;;  %v796_v27 = vmul.f32 0.7978846, %v771_v45 }
 0x15c   : > { %v1970_v39 = vmul.f32 %v3651_v16, %v4555_v26  ;;  %vm5939_vm11 = vcmask 523264   ;;  %vm1452_vm8 = vcmp.lt.s32.totalorder %v5938_v63, 13  ;;  %v870_v31 = vmul.f32 %v845_v1, %v4518_v58 }
 0x15d   : > { %899 = vst.msk [vmem:[#allocation2 + $0x77] sm:$0xff] %vm5939_vm11, %v868_v6  ;;  %vm5940_vm3 = vmmov %vm5939_vm11  ;;  %v772_v57 = vadd.f32 %v747_v52, %v4515_v28  ;;  %v723_v4 = vmul.f32 %v4600_v24, %v4550_v40  ;;  %v4675_v0 = vadd.f32 %v4577_v61, %v1940_v44  ;;  %v4678_v45 = vmul.f32 %v3788_v9, %v2021_v46  ;;  %v1863_v60 = vld [vmem:[#allocation2 + $0x66] sm:$0xff] }
 0x15e   : > { %900 = vst.msk [vmem:[#allocation2 + $0x7f] sm:$0xff] %vm5940_vm3, %v869_v48  ;;  %v4681_v26 = vmul.f32 %v4272_v17, %v2286_v22  ;;  %v1813_v54 = vmul.f32 %v3669_v23, %v1784_v41  ;;  %v4684_v53 = vadd.f32 %v1970_v39, %v1941_v59  ;;  %v1971_v58 = vmul.f32 %v3651_v16, %v866_v51  ;;  %v1477_v24 = vld [vmem:[#allocation2 + $0x60] sm:$0xff]  ;;  %v1864_v51 = vld [vmem:[#allocation2 + $0x6e] sm:$0xff] }
 0x15f   : > { %v4688_v28 = vmul.f32 %v3788_v9, %v2022_v37  ;;  %v1631_v52 = vld [vmem:[#allocation2 + $0x61] sm:$0xff]  ;;  %v4691_v61 = vmul.f32 %v3651_v16, %v867_v50  ;;  %901 = vst.msk [vmem:[#allocation2 + $0x87] sm:$0xff] %vm5940_vm3, %v870_v31  ;;  %v1888_v56 = vsel %vm5844_vm9, %v1863_v60, 0.0  ;;  %v1552_v38 = vsel %vm5843_vm13, %v1477_v24, 0.0  ;;  %v1632_v21 = vld [vmem:[#allocation2 + $0x69] sm:$0xff] }
 0x160   : > { %5941 = vst [vmem:[#allocation51_spill] sm:$0xff] %v4681_v26  ;;  %5942 = vst [vmem:[#allocation52_spill] sm:$0xff] %v4684_v53  ;;  %v1838_v25 = vadd.f32 %v1813_v54, %v1684_v12  ;;  %v1710_v13 = vld [vmem:[#allocation2 + $0x62] sm:$0xff]  ;;  %vm5840_vm11 = vcmp.gt.s32.totalorder %v5944_v55, 0  ;;  %3332 = vtanh.f32 %v796_v27  ;;  %v4700_v15 = vmul.f32 %v3651_v16, %v868_v6  ;;  %v1711_v59 = vld [vmem:[#allocation2 + $0x6a] sm:$0xff] }
 0x161   : > { %5943 = vst [vmem:[#allocation53_spill] sm:$0xff] %v4688_v28  ;;  %v1478_v30 = vld [vmem:[#allocation2 + $0x68] sm:$0xff]  ;;  %v4703_v50 = vmul.f32 %v3651_v16, %v869_v48  ;;  %v4705_v44 = vmul.f32 0.7978846, %v772_v57  ;;  %v4708_v46 = vmul.f32 %v723_v4, %v4550_v40  ;;  %v1581_v22 = vmul.f32 %v3658_v18, %v1552_v38 }
 0x162   : > { %v1660_v41 = vmul.f32 %v3661_v19, %v1631_v52  ;;  %vm1453_vm3 = vcmp.lt.s32.totalorder %v5944_v55, 13  ;;  %v4714_v1 = vmul.f32 %v3651_v16, %v870_v31  ;;  %v4718_v6 = vmul.f32 %v4616_v2, %v4563_v47 }
 0x163   : > { %v1917_v48 = vmul.f32 %v3741_v20, %v1888_v56  ;;  %v2287_v12 = vsel %vm1447_vm2, %v1863_v60, 0.0  ;;  %v1785_v37 = vsel %vm1450_vm0, %v1710_v13, 0.0  ;;  %v4726_v27 = vadd.s32 14, %v4594_v32 }
 0x164   : > { %v1889_v39 = vsel %vm5843_vm13, %v1864_v51, 0.0  ;;  %v2023_v31 = vsel %vm1448_vm14, %v1477_v24, 0.0  ;;  %v1553_v2 = vsel %vm5839_vm12, %v1478_v30, 0.0  ;;  %v1661_v57 = vmul.f32 %v3661_v19, %v1632_v21  ;;  %v1479_v4 = vld [vmem:[#allocation2 + $0x70] sm:$0xff] }
 0x165   : > { %v1942_v54 = vadd.f32 %v1917_v48, %v1838_v25  ;;  %v1582_v60 = vmul.f32 %v3658_v18, %v1553_v2  ;;  %v1786_v52 = vsel %vm1451_vm5, %v1711_v59, 0.0  ;;  %v1633_v56 = vld [vmem:[#allocation2 + $0x71] sm:$0xff]  ;;  %v4740_v13 = vmul.f32 %v4523_v35, %v4468_v5  ;;  %v1866_v48 = vld [vmem:[#allocation2 + $0x7e] sm:$0xff] }
 0x166   : > { %v1712_v38 = vld [vmem:[#allocation2 + $0x72] sm:$0xff]  ;;  %v4743_v24 = vmul.f32 %v4272_v17, %v2287_v12  ;;  %v1685_v26 = vadd.f32 %v1660_v41, %v1581_v22  ;;  %v2288_v21 = vsel %vm1448_vm14, %v1864_v51, 0.0  ;;  %v1554_v25 = vsel %vm5838_vm15, %v1479_v4, 0.0  ;;  %v5946_v2 = vld [vmem:[#allocation18_spill] sm:$0xff] }
 0x167   : > { %v1865_v53 = vld [vmem:[#allocation2 + $0x76] sm:$0xff]  ;;  %vm5842_vm2 = vcmp.gt.s32.totalorder %v5946_v2, 0  ;;  %v1814_v59 = vmul.f32 %v3669_v23, %v1785_v37  ;;  %v1918_v10 = vmul.f32 %v3741_v20, %v1889_v39  ;;  %v4753_v5 = vmul.f32 %v3788_v9, %v2023_v31 }
 0x168   : > { %5945 = vst [vmem:[#allocation54_spill] sm:$0xff] %v4743_v24  ;;  %v1686_v12 = vadd.f32 %v1661_v57, %v1582_v60  ;;  %v1815_v22 = vmul.f32 %v3669_v23, %v1786_v52  ;;  %v1583_v41 = vmul.f32 %v3658_v18, %v1554_v25  ;;  %v1662_v51 = vmul.f32 %v3661_v19, %v1633_v56  ;;  %v1480_v24 = vld [vmem:[#allocation2 + $0x78] sm:$0xff] }
 0x169   : > { %5947 = vst [vmem:[#allocation18_spill] sm:$0xff] %v4753_v5  ;;  %v1787_v3 = vsel %vm1452_vm8, %v1712_v38, 0.0  ;;  %v4760_v43 = vadd.f32 %v1971_v58, %v1942_v54  ;;  %v4763_v37 = vmul.f32 %v4272_v17, %v2288_v21  ;;  %v1890_v39 = vsel %vm5839_vm12, %v1865_v53, 0.0  ;;  %v1634_v57 = vld [vmem:[#allocation2 + $0x79] sm:$0xff] }
 0x16a   : > { %v1891_v31 = vsel %vm5838_vm15, %v1866_v48, 0.0  ;;  %vm1454_vm14 = vcmp.lt.s32.totalorder %v5946_v2, 13  ;;  %v3333_v60 = vpop.eup %3332  ;;  %v1839_v52 = vadd.f32 %v1814_v59, %v1685_v26  ;;  %v1840_v56 = vadd.f32 %v1815_v22, %v1686_v12  ;;  %v1713_v54 = vld [vmem:[#allocation2 + $0x7a] sm:$0xff] }
 0x16b   : > { %5948 = vst [vmem:[#allocation55_spill] sm:$0xff] %v4760_v43  ;;  %5949 = vst [vmem:[#allocation56_spill] sm:$0xff] %v4763_v37  ;;  %v2024_v38 = vsel %vm1449_vm4, %v1478_v30, 0.0  ;;  %v1687_v58 = vadd.f32 %v1662_v51, %v1583_v41  ;;  %v2289_v21 = vsel %vm1449_vm4, %v1865_v53, 0.0  ;;  %v1816_v25 = vmul.f32 %v3669_v23, %v1787_v3  ;;  %v1867_v30 = vld [vmem:[#allocation2 + $0x86] sm:$0xff] }
 0x16c   : > { %v1920_v37 = vmul.f32 %v3741_v20, %v1891_v31  ;;  %v1555_v43 = vsel %vm5840_vm11, %v1480_v24, 0.0  ;;  %v1943_v5 = vadd.f32 %v1918_v10, %v1839_v52  ;;  %v1919_v28 = vmul.f32 %v3741_v20, %v1890_v39  ;;  %v1481_v39 = vld [vmem:[#allocation2 + $0x80] sm:$0xff] }
 0x16d   : > { %v1584_v26 = vmul.f32 %v3658_v18, %v1555_v43  ;;  %v1663_v59 = vmul.f32 %v3661_v19, %v1634_v57  ;;  %vm1307_vm15 = vcmp.ne.s32.totalorder %v4594_v32, 0  ;;  %vm1332_vm12 = vcmp.lt.s32.totalorder %v4594_v32, 0 }
 0x16e   : > { %v1841_v53 = vadd.f32 %v1816_v25, %v1687_v58  ;;  %v2025_v3 = vsel %vm1450_vm0, %v1479_v4, 0.0  ;;  %v2290_v12 = vsel %vm1450_vm0, %v1866_v48, 0.0  ;;  %v1788_v10 = vsel %vm1453_vm3, %v1713_v54, 0.0  ;;  %v1635_v58 = vld [vmem:[#allocation2 + $0x81] sm:$0xff] }
 0x16f   : > { %v1944_v22 = vadd.f32 %v1919_v28, %v1840_v56  ;;  %v4790_v43 = vmul.f32 %v3788_v9, %v2024_v38  ;;  %v4793_v41 = vmul.f32 %v4272_v17, %v2289_v21  ;;  %v1688_v51 = vadd.f32 %v1663_v59, %v1584_v26 }
 0x170   : > { %v1945_v31 = vadd.f32 %v1920_v37, %v1841_v53  ;;  %v1892_v57 = vsel %vm5840_vm11, %v1867_v30, 0.0  ;;  %v2026_v4 = vsel %vm1451_vm5, %v1480_v24, 0.0  ;;  %v846_v48 = vadd.f32 1.0, %v3333_v60  ;;  %v5952_v37 = vld [vmem:[#allocation19_spill] sm:$0xff]  ;;  %vm1357_vm11 = vmand %vm1332_vm12, %vm1307_vm15 }
 0x171   : > { %5950 = vst [vmem:[#allocation57_spill] sm:$0xff] %v4793_v41  ;;  %v4800_v52 = vadd.f32 %v4691_v61, %v1943_v5  ;;  %v4803_v28 = vmul.f32 %v3788_v9, %v2025_v3  ;;  %v4806_v56 = vmul.f32 %v4272_v17, %v2290_v12  ;;  %v1817_v38 = vmul.f32 %v3669_v23, %v1788_v10  ;;  %v1714_v5 = vld [vmem:[#allocation2 + $0x82] sm:$0xff] }
 0x172   : > { %vm5845_vm4 = vcmp.gt.s32.totalorder %v5952_v37, 0  ;;  %v2291_v54 = vsel %vm1451_vm5, %v1867_v30, 0.0  ;;  %v871_v24 = vmul.f32 %v846_v48, %v4559_v7  ;;  %v1556_v61 = vsel %vm5842_vm2, %v1481_v39, 0.0 }
 0x173   : > { %5951 = vst [vmem:[#allocation58_spill] sm:$0xff] %v4806_v56  ;;  %3334 = vtanh.f32 %v4705_v44  ;;  %v4817_v60 = vadd.f32 %v4700_v15, %v1944_v22  ;;  %v1842_v21 = vadd.f32 %v1817_v38, %v1688_v51  ;;  %v1921_v25 = vmul.f32 %v3741_v20, %v1892_v57  ;;  %v5958_v51 = vld [vmem:[#allocation22_spill] sm:$0xff]  ;;  %v5959_v38 = vld [vmem:[#allocation23_spill] sm:$0xff] }
 0x174   : > { %v4821_v26 = vmul.f32 %v3788_v9, %v2026_v4  ;;  %v4824_v59 = vadd.f32 %v4703_v50, %v1945_v31  ;;  %vm5954_vm0 = vcmask 523264   ;;  %v1664_v7 = vmul.f32 %v3661_v19, %v1635_v58 }
 0x175   : > { %902 = vst.msk [vmem:[#allocation2 + $0x8f] sm:$0xff] %vm5954_vm0, %v871_v24  ;;  %v773_v30 = vadd.f32 %v4708_v46, %v4550_v40  ;;  %v749_v15 = vmul.f32 %v4718_v6, %v4563_v47  ;;  %v4833_v44 = vmul.f32 %v4272_v17, %v2291_v54  ;;  %v1585_v53 = vmul.f32 %v3658_v18, %v1556_v61  ;;  %v5956_v46 = vld [vmem:[#allocation24_spill] sm:$0xff] }
 0x176   : > { %5953 = vst [vmem:[#allocation59_spill] sm:$0xff] %v4824_v59  ;;  %v1789_v3 = vsel %vm1454_vm14, %v1714_v5, 0.0  ;;  %v2027_v50 = vsel %vm1452_vm8, %v1481_v39, 0.0  ;;  %vm1455_vm5 = vcmp.lt.s32.totalorder %v5952_v37, 13  ;;  %v650_v40 = vadd.f32 %v4547_v11, %v4740_v13 }
 0x177   : > { %5955 = vst [vmem:[#allocation60_spill] sm:$0xff] %v4833_v44  ;;  %v798_v12 = vmul.f32 0.7978846, %v773_v30  ;;  %v774_v10 = vadd.f32 %v749_v15, %v4563_v47  ;;  %vm1224_vm0 = vc.u32 %v5956_v46, 2454267026  ;;  %v1946_v17 = vadd.f32 %v1921_v25, %v1842_v21  ;;  %v5975_v44 = vld [vmem:[#allocation29_spill] sm:$0xff] }
 0x178   : > { %v5957_v6 = vmov 0   ;;  %v4847_v31 = vmul.u32.u64.low 2454267026, %v5958_v51  ;;  %v4848_v57 = vmul.u32.u64.high 2454267026, %v5958_v51, %v4847_v31  ;;  %v700_v47 = vmul.f32 0.044715, %v650_v40 }
 0x179   : > { %v1225_v22 = vsel %vm1224_vm0, 1, %v5957_v6  ;;  %3336 = vtanh.f32 %v798_v12  ;;  %v799_v4 = vmul.f32 0.7978846, %v774_v10  ;;  %v619_v13 = vmul.f32 %v4523_v35, %v4482_v62 }
 0x17a   : > { %v1689_v39 = vadd.f32 %v1664_v7, %v1585_v53  ;;  %v1818_v48 = vmul.f32 %v3669_v23, %v1789_v3  ;;  %v1226_v58 = vadd.s32 %v5959_v38, %v1225_v22  ;;  %vm1238_vm0 = vc.u32 %v4847_v31, 2454267026  ;;  %v5962_v31 = vld [vmem:[#allocation20_spill] sm:$0xff] }
 0x17b   : > { %v4859_v54 = vmul.f32 %v3788_v9, %v2027_v50  ;;  %3338 = vtanh.f32 %v799_v4  ;;  %v725_v61 = vmul.f32 %v700_v47, %v650_v40  ;;  %v1239_v5 = vsel %vm1238_vm0, 1, %v5957_v6  ;;  %v5963_v47 = vld [vmem:[#allocation3_spill] sm:$0xff] }
 0x17c   : > { %v1868_v21 = vld [vmem:[#allocation2 + $0x8e] sm:$0xff]  ;;  %v1976_v25 = vmul.f32 %v3651_v16, %v871_v24  ;;  %v4865_v62 = vsel %vm1357_vm11, %v4726_v27, %v4594_v32  ;;  %v1227_v7 = vshrl.u32 %v1226_v58, 3  ;;  %v620_v15 = vmul.f32 %v4523_v35, %v4510_v42 }
 0x17d   : > { %5960 = vst [vmem:[#allocation24_spill] sm:$0xff] %v4859_v54  ;;  %v1482_v30 = vld [vmem:[#allocation2 + $0x88] sm:$0xff]  ;;  %v3335_v53 = vpop.eup %3334  ;;  %v4870_v3 = vadd.f32 %v4714_v1, %v1946_v17  ;;  %v1893_v50 = vsel %vm5842_vm2, %v1868_v21, 0.0  ;;  %v651_v10 = vadd.f32 %v4547_v11, %v619_v13  ;;  %v1843_v46 = vadd.f32 %v1818_v48, %v1689_v39 }
 0x17e   : > { %v1557_v12 = vsel %vm5845_vm4, %v1482_v30, 0.0  ;;  %v1636_v24 = vld [vmem:[#allocation2 + $0x89] sm:$0xff]  ;;  %v1922_v32 = vmul.f32 %v3741_v20, %v1893_v50  ;;  %v847_v27 = vadd.f32 1.0, %v3335_v53  ;;  %v1240_v22 = vadd.s32 %v4848_v57, %v1239_v5 }
 0x17f   : > { %5961 = vst [vmem:[#allocation22_spill] sm:$0xff] %v4870_v3  ;;  %v1715_v42 = vld [vmem:[#allocation2 + $0x8a] sm:$0xff]  ;;  %vm1431_vm15 = vcmp.gt.s32.totalorder %v5962_v31, 0  ;;  %v4880_v1 = vmul.f32 0.5, %v650_v40  ;;  %v750_v17 = vmul.f32 %v725_v61, %v650_v40  ;;  %v1228_v4 = vmul.u32 14, %v1227_v7  ;;  %v5964_v61 = vld [vmem:[#allocation21_spill] sm:$0xff] }
 0x180   : > { %v4883_v38 = vadd.s32 176, %v5963_v47  ;;  %v872_v58 = vmul.f32 %v847_v27, %v4588_v34  ;;  %v1586_v13 = vmul.f32 %v3658_v18, %v1557_v12  ;;  %v1665_v39 = vmul.f32 %v3661_v19, %v1636_v24 }
 0x181   : > { %v4889_v48 = vadd.f32 %v4547_v11, %v620_v15  ;;  %v2292_v57 = vsel %vm1452_vm8, %v1868_v21, 0.0  ;;  %vm1456_vm12 = vcmp.lt.s32.totalorder %v5962_v31, 13  ;;  %v775_v5 = vadd.f32 %v750_v17, %v650_v40 }
 0x182   : > { %v1229_v7 = vsub.s32 %v5964_v61, %v1228_v4  ;;  %v701_v53 = vmul.f32 0.044715, %v651_v10  ;;  %v1947_v50 = vadd.f32 %v1922_v32, %v1843_v46  ;;  %vm5965_vm11 = vcmask 523264   ;;  %v4903_v32 = vld [vmem:[%s5795_s4 + $0x8] ss:$0 sm:$0xff] }
 0x183   : > { %903 = vst.msk [vmem:[#allocation2 + $0x97] sm:$0xff] %vm5965_vm11, %v872_v58  ;;  %v1790_v34 = vsel %vm1455_vm5, %v1715_v42, 0.0  ;;  %v2028_v12 = vsel %vm1453_vm3, %v1482_v30, 0.0  ;;  %v1241_v15 = vshrl.u32 %v1240_v22, 3  ;;  %v3337_v24 = vpop.eup %3336  ;;  %v800_v27 = vmul.f32 0.7978846, %v775_v5 }
 0x184   : > { %vm1308_vm0 = vcmp.ne.s32.totalorder %v1229_v7, 0  ;;  %vm1333_vm8 = vcmp.lt.s32.totalorder %v1229_v7, 0  ;;  %v1383_v21 = vadd.s32 14, %v1229_v7  ;;  %v1690_v63 = vadd.f32 %v1665_v39, %v1586_v13  ;;  %v5969_v5 = vld [vmem:[#allocation48_spill] sm:$0xff] }
 0x185   : > { %v848_v40 = vadd.f32 1.0, %v3337_v24  ;;  %vm1358_vm2 = vmand %vm1333_vm8, %vm1308_vm0  ;;  %v726_v17 = vmul.f32 %v701_v53, %v651_v10  ;;  %v1242_v4 = vmul.u32 14, %v1241_v15  ;;  %v3339_v46 = vpop.eup %3338  ;;  %v4906_v42 = vmul.f32 %v4903_v32, %v2292_v57 }
 0x186   : > { %v1819_v30 = vmul.f32 %v3669_v23, %v1790_v34  ;;  %v4910_v22 = vmul.f32 %v3788_v9, %v2028_v12  ;;  %vm1432_vm11 = vcmp.gt.s32.totalorder %v4865_v62, 0  ;;  %v4913_v13 = vmul.f32 0.5, %v651_v10 }
 0x187   : > { %5966 = vst [vmem:[#allocation23_spill] sm:$0xff] %v4906_v42  ;;  %v4915_v39 = vadd.f32 %v1976_v25, %v1947_v50  ;;  %v873_v61 = vmul.f32 %v848_v40, %v5969_v5  ;;  %v849_v53 = vadd.f32 1.0, %v3339_v46  ;;  %vm1457_vm0 = vcmp.lt.s32.totalorder %v4865_v62, 13  ;;  %v5971_v25 = vld [vmem:[#allocation49_spill] sm:$0xff] }
 0x188   : > { %5967 = vst [vmem:[#allocation3_spill] sm:$0xff] %v4910_v22  ;;  %3340 = vtanh.f32 %v800_v27  ;;  %v4919_v15 = vsel %vm1358_vm2, %v1383_v21, %v1229_v7  ;;  %v751_v57 = vmul.f32 %v726_v17, %v651_v10  ;;  %v1243_v34 = vsub.s32 %v5958_v51, %v1242_v4  ;;  %v5972_v21 = vld [vmem:[#allocation25_spill] sm:$0xff]  ;;  %v5973_v51 = vld [vmem:[#allocation26_spill] sm:$0xff] }
 0x189   : > { %5968 = vst [vmem:[#allocation21_spill] sm:$0xff] %v4915_v39  ;;  %v702_v12 = vmul.f32 0.044715, %v4889_v48  ;;  %v1844_v24 = vadd.f32 %v1819_v30, %v1690_v63  ;;  %v1977_v42 = vmul.f32 %v3651_v16, %v872_v58  ;;  %vm5970_vm8 = vcmask 523264  }
 0x18a   : > { %904 = vst.msk [vmem:[#allocation2 + $0x9f] sm:$0xff] %vm5970_vm8, %v873_v61  ;;  %v874_v50 = vmul.f32 %v849_v53, %v5971_v25  ;;  %v4927_v40 = vmul.f32 0.5, %v4889_v48  ;;  %v1869_v46 = vld [vmem:[#allocation2 + $0x96] sm:$0xff]  ;;  %v776_v7 = vadd.f32 %v751_v57, %v651_v10  ;;  %vm1309_vm2 = vcmp.ne.s32.totalorder %v1243_v34, 0 }
 0x18b   : > { %v1483_v5 = vld [vmem:[#allocation2 + $0x90] sm:$0xff]  ;;  %vm1334_vm13 = vcmp.lt.s32.totalorder %v1243_v34, 0  ;;  %v4931_v17 = vadd.f32 %v5973_v51, %v5972_v21  ;;  %v1894_v63 = vsel %vm5845_vm4, %v1869_v46, 0.0  ;;  %vm1433_vm9 = vcmp.gt.s32.totalorder %v4919_v15, 0 }
 0x18c   : > { %v1637_v27 = vld [vmem:[#allocation2 + $0x91] sm:$0xff]  ;;  %v1558_v58 = vsel %vm1431_vm15, %v1483_v5, 0.0  ;;  %905 = vst.msk [vmem:[#allocation2 + $0xa7] sm:$0xff] %vm5970_vm8, %v874_v50  ;;  %v2293_v10 = vsel %vm1453_vm3, %v1869_v46, 0.0  ;;  %v1384_v57 = vadd.s32 14, %v1243_v34  ;;  %v727_v25 = vmul.f32 %v702_v12, %v4889_v48  ;;  %vm1359_vm4 = vmand %vm1334_vm13, %vm1309_vm2  ;;  %v5974_v12 = vld [vmem:[#allocation27_spill] sm:$0xff] }
 0x18d   : > { %v1666_v4 = vmul.f32 %v3661_v19, %v1637_v27  ;;  %v1716_v30 = vld [vmem:[#allocation2 + $0x92] sm:$0xff]  ;;  %v1587_v53 = vmul.f32 %v3658_v18, %v1558_v58  ;;  %v1923_v21 = vmul.f32 %v3741_v20, %v1894_v63  ;;  %v2029_v27 = vsel %vm1454_vm14, %v1483_v5, 0.0 }
 0x18e   : > { %v1791_v51 = vsel %vm1456_vm12, %v1716_v30, 0.0  ;;  %vm1458_vm8 = vcmp.lt.s32.totalorder %v4919_v15, 13  ;;  %v801_v39 = vmul.f32 0.7978846, %v776_v7  ;;  %v4958_v63 = vadd.f32 %v5975_v44, %v5974_v12 }
 0x18f   : > { %v1691_v46 = vadd.f32 %v1666_v4, %v1587_v53  ;;  %v4953_v58 = vmul.u32.u64.low 2454267026, %v4883_v38  ;;  %v4954_v55 = vmul.u32.u64.high 2454267026, %v4883_v38, %v4953_v58  ;;  %v1948_v56 = vadd.f32 %v1923_v21, %v1844_v24 }
 0x190   : > { %v4961_v30 = vmul.f32 %v4903_v32, %v2293_v10  ;;  %v1978_v5 = vmul.f32 %v3651_v16, %v873_v61  ;;  %3342 = vtanh.f32 %v801_v39  ;;  %v1820_v7 = vmul.f32 %v3669_v23, %v1791_v51 }
 0x191   : > { %v1870_v22 = vld [vmem:[#allocation2 + $0x9e] sm:$0xff]  ;;  %v4966_v4 = vmul.f32 %v3788_v9, %v2029_v27  ;;  %v4969_v54 = vmul.f32 %v3651_v16, %v874_v50  ;;  %v4971_v44 = vsel %vm1359_vm4, %v1384_v57, %v1243_v34  ;;  %v752_v51 = vmul.f32 %v727_v25, %v4889_v48 }
 0x192   : > { %5976 = vst [vmem:[#allocation48_spill] sm:$0xff] %v4961_v30  ;;  %v1484_v53 = vld [vmem:[#allocation2 + $0x98] sm:$0xff]  ;;  %v3341_v24 = vpop.eup %3340  ;;  %v1895_v10 = vsel %vm1431_vm15, %v1870_v22, 0.0  ;;  %v1845_v27 = vadd.f32 %v1820_v7, %v1691_v46  ;;  %v4983_v59 = vadd.f32 %v1977_v42, %v1948_v56  ;;  %v2294_v41 = vsel %vm1454_vm14, %v1870_v22, 0.0 }
 0x193   : > { %5977 = vst [vmem:[#allocation49_spill] sm:$0xff] %v4966_v4  ;;  %v1638_v3 = vld [vmem:[#allocation2 + $0x99] sm:$0xff]  ;;  %v1559_v39 = vsel %vm1432_vm11, %v1484_v53, 0.0  ;;  %v1924_v12 = vmul.f32 %v3741_v20, %v1895_v10  ;;  %v1871_v57 = vld [vmem:[#allocation2 + $0xa6] sm:$0xff]  ;;  %vm1252_vm13 = vc.u32 %v4953_v58, 2454267026 }
 0x194   : > { %v1667_v61 = vmul.f32 %v3661_v19, %v1638_v3  ;;  %v1717_v21 = vld [vmem:[#allocation2 + $0x9a] sm:$0xff]  ;;  %v1588_v50 = vmul.f32 %v3658_v18, %v1559_v39  ;;  %v1896_v7 = vsel %vm1432_vm11, %v1871_v57, 0.0  ;;  %v2030_v10 = vsel %vm1455_vm5, %v1484_v53, 0.0  ;;  %v1718_v22 = vld [vmem:[#allocation2 + $0xa2] sm:$0xff] }
 0x195   : > { %v1792_v34 = vsel %vm1457_vm0, %v1717_v21, 0.0  ;;  %v1485_v30 = vld [vmem:[#allocation2 + $0xa0] sm:$0xff]  ;;  %v1949_v25 = vadd.f32 %v1924_v12, %v1845_v27  ;;  %v2295_v39 = vsel %vm1455_vm5, %v1871_v57, 0.0  ;;  %v850_v56 = vadd.f32 1.0, %v3341_v24  ;;  %v5978_v21 = vld [vmem:[#allocation4_spill] sm:$0xff] }
 0x196   : > { %v2092_v4 = vld [vmem:[#allocation2 + $0x1c] sm:$0xff]  ;;  %v1821_v3 = vmul.f32 %v3669_v23, %v1792_v34  ;;  %v1692_v46 = vadd.f32 %v1667_v61, %v1588_v50  ;;  %v1560_v42 = vsel %vm1433_vm9, %v1485_v30, 0.0  ;;  %vm5979_vm3 = vcmp.gt.s32.totalorder %v5978_v21, 0 }
 0x197   : > { %v1639_v33 = vld [vmem:[#allocation2 + $0xa1] sm:$0xff]  ;;  %v2117_v34 = vsel %vm5979_vm3, %v2092_v4, 0.0  ;;  %v4999_v27 = vmul.f32 %v4903_v32, %v2294_v41  ;;  %v1589_v12 = vmul.f32 %v3658_v18, %v1560_v42  ;;  %vm1434_vm14 = vcmp.gt.s32.totalorder %v4971_v44, 0 }
 0x198   : > { %v1846_v61 = vadd.f32 %v1821_v3, %v1692_v46  ;;  %v1668_v50 = vmul.f32 %v3661_v19, %v1639_v33  ;;  %v1925_v53 = vmul.f32 %v3741_v20, %v1896_v7  ;;  %v5006_v24 = vmul.f32 %v3788_v9, %v2030_v10  ;;  %v2093_v41 = vld [vmem:[#allocation2 + $0x24] sm:$0xff] }
 0x199   : > { %5980 = vst [vmem:[#allocation25_spill] sm:$0xff] %v4999_v27  ;;  %v875_v57 = vmul.f32 %v850_v56, %v4880_v1  ;;  %vm1459_vm4 = vcmp.lt.s32.totalorder %v4971_v44, 13  ;;  %v777_v4 = vadd.f32 %v752_v51, %v4889_v48  ;;  %v5011_v21 = vadd.f32 %v1978_v5, %v1949_v25 }
 0x19a   : > { %v5014_v3 = vmul.f32 %v4903_v32, %v2295_v39  ;;  %v1793_v33 = vsel %vm1458_vm8, %v1718_v22, 0.0  ;;  %v1253_v46 = vsel %vm1252_vm13, 1, %v5957_v6  ;;  %v3343_v7 = vpop.eup %3342  ;;  %v1950_v10 = vadd.f32 %v1925_v53, %v1846_v61  ;;  %v5985_v61 = vld [vmem:[#allocation43_spill] sm:$0xff] }
 0x19b   : > { %5981 = vst [vmem:[#allocation26_spill] sm:$0xff] %v5011_v21  ;;  %vm5983_vm5 = vcmask 523264   ;;  %v2031_v1 = vsel %vm1456_vm12, %v1485_v30, 0.0  ;;  %v802_v48 = vmul.f32 0.7978846, %v777_v4  ;;  %v1254_v5 = vadd.s32 %v4954_v55, %v1253_v46  ;;  %v3403_v55 = vld [vmem:[%s5795_s4] sm:$0xff] }
 0x19c   : > { %5982 = vst [vmem:[#allocation27_spill] sm:$0xff] %v5014_v3  ;;  %906 = vst.msk [vmem:[#allocation2 + $0xaf] sm:$0xff] %vm5983_vm5, %v875_v57  ;;  %v1693_v51 = vadd.f32 %v1668_v50, %v1589_v12  ;;  %v851_v25 = vadd.f32 1.0, %v3343_v7  ;;  %v2118_v56 = vsel %vm1414_vm6, %v2093_v41, 0.0  ;;  %v2144_v42 = vsub.s32 6, %v5963_v47  ;;  %v5986_v50 = vld [vmem:[#allocation47_spill] sm:$0xff] }
 0x19d   : > { %3344 = vtanh.f32 %v802_v48  ;;  %v1255_v58 = vshrl.u32 %v1254_v5, 3  ;;  %v2223_v22 = vsub.s32 7, %v5963_v47  ;;  %v621_v53 = vmul.f32 %v4523_v35, %v5985_v61  ;;  %v2196_v7 = vld [vmem:[#allocation2 + $0x1d] sm:$0xff]  ;;  %vm5989_vm6 = vmmov %vm5983_vm5 }
 0x19e   : > { %v1822_v3 = vmul.f32 %v3669_v23, %v1793_v33  ;;  %v876_v30 = vmul.f32 %v851_v25, %v4913_v13  ;;  %v5035_v12 = vrot.slane %v3403_v55, %v2144_v42  ;;  %v622_v4 = vmul.f32 %v4523_v35, %v5986_v50 }
 0x19f   : > { %v5040_v41 = vmul.f32 %v3788_v9, %v2031_v1  ;;  %v1256_v46 = vmul.u32 14, %v1255_v58  ;;  %v5042_v48 = vrot.slane %v3403_v55, %v2223_v22  ;;  %v5045_v33 = vadd.f32 %v4547_v11, %v621_v53  ;;  %v2197_v58 = vld [vmem:[#allocation2 + $0x25] sm:$0xff] }
 0x1a0   : > { %v5048_v13 = vadd.f32 %v4969_v54, %v1950_v10  ;;  %v1980_v5 = vmul.f32 %v3651_v16, %v875_v57  ;;  %907 = vst.msk [vmem:[#allocation2 + $0xb7] sm:$0xff] %vm5989_vm6, %v876_v30  ;;  %v2146_v25 = vmul.f32 %v5035_v12, %v2117_v34  ;;  %v2147_v35 = vmul.f32 %v5035_v12, %v2118_v56 }
 0x1a1   : > { %5987 = vst [vmem:[#allocation29_spill] sm:$0xff] %v5040_v41  ;;  %v1847_v1 = vadd.f32 %v1822_v3, %v1693_v51  ;;  %v5055_v39 = vmul.f32 %v3651_v16, %v876_v30  ;;  %v1257_v42 = vsub.s32 %v4883_v38, %v1256_v46  ;;  %v5059_v22 = vadd.s32 184, %v5963_v47 }
 0x1a2   : > { %5988 = vst [vmem:[#allocation4_spill] sm:$0xff] %v5048_v13  ;;  %v2171_v57 = vadd.f32 %v2146_v25, %v4931_v17  ;;  %v2172_v53 = vadd.f32 %v2147_v35, %v4958_v63  ;;  %v2225_v34 = vmul.f32 %v5042_v48, %v2196_v7  ;;  %v5065_v3 = vadd.f32 %v4547_v11, %v622_v4 }
 0x1a3   : > { %v1872_v54 = vld [vmem:[#allocation2 + $0xae] sm:$0xff]  ;;  %v703_v55 = vmul.f32 0.044715, %v5045_v33  ;;  %vm1310_vm2 = vcmp.ne.s32.totalorder %v1257_v42, 0  ;;  %vm1335_vm13 = vcmp.lt.s32.totalorder %v1257_v42, 0  ;;  %v2226_v46 = vmul.f32 %v5042_v48, %v2197_v58 }
 0x1a4   : > { %v1486_v10 = vld [vmem:[#allocation2 + $0xa8] sm:$0xff]  ;;  %v1897_v51 = vsel %vm1433_vm9, %v1872_v54, 0.0  ;;  %v2296_v63 = vsel %vm1456_vm12, %v1872_v54, 0.0  ;;  %vm5082_vm3 = vmand %vm1335_vm13, %vm1310_vm2  ;;  %v1385_v35 = vadd.s32 14, %v1257_v42  ;;  %v5087_v54 = vmul.f32 0.5, %v5045_v33 }
 0x1a5   : > { %v1640_v61 = vld [vmem:[#allocation2 + $0xa9] sm:$0xff]  ;;  %v1561_v38 = vsel %vm1434_vm14, %v1486_v10, 0.0  ;;  %v1926_v17 = vmul.f32 %v3741_v20, %v1897_v51  ;;  %v2032_v4 = vsel %vm1457_vm0, %v1486_v10, 0.0  ;;  %v5093_v10 = vmul.f32 %v4903_v32, %v2296_v63 }
 0x1a6   : > { %v1669_v56 = vmul.f32 %v3661_v19, %v1640_v61  ;;  %v1719_v30 = vld [vmem:[#allocation2 + $0xaa] sm:$0xff]  ;;  %v1590_v50 = vmul.f32 %v3658_v18, %v1561_v38  ;;  %v5090_v61 = vmul.f32 0.5, %v5065_v3  ;;  %v2250_v41 = vadd.f32 %v2225_v34, %v2171_v57 }
 0x1a7   : > { %v1794_v11 = vsel %vm1459_vm4, %v1719_v30, 0.0  ;;  %v3345_v51 = vpop.eup %3344  ;;  %v1951_v38 = vadd.f32 %v1926_v17, %v1847_v1  ;;  %5992 = vst [vmem:[#allocation5_spill] sm:$0xff] %v5093_v10  ;;  %v1873_v58 = vld [vmem:[#allocation2 + $0xb6] sm:$0xff]  ;;  %v2251_v21 = vadd.f32 %v2226_v46, %v2172_v53  ;;  %v728_v37 = vmul.f32 %v703_v55, %v5045_v33 }
 0x1a8   : > { %v1694_v7 = vadd.f32 %v1669_v56, %v1590_v50  ;;  %v1823_v30 = vmul.f32 %v3669_v23, %v1794_v11  ;;  %v5097_v56 = vmul.f32 %v3788_v9, %v2032_v4  ;;  %v1898_v50 = vsel %vm1434_vm14, %v1873_v58, 0.0  ;;  %v1487_v27 = vld [vmem:[#allocation2 + $0xb0] sm:$0xff] }
 0x1a9   : > { %v1641_v31 = vld [vmem:[#allocation2 + $0xb1] sm:$0xff]  ;;  %v2297_v17 = vsel %vm1457_vm0, %v1873_v58, 0.0  ;;  %v852_v63 = vadd.f32 1.0, %v3345_v51  ;;  %v5106_v11 = vsel %vm5082_vm3, %v1385_v35, %v1257_v42  ;;  %v1927_v4 = vmul.f32 %v3741_v20, %v1898_v50  ;;  %v5121_v42 = vld [vmem:[%s5796_s5] ss:$0 sm:$0xff]  ;;  %vm5997_vm0 = vmmov %vm5989_vm6 }
 0x1aa   : > { %v1720_v13 = vld [vmem:[#allocation2 + $0xb2] sm:$0xff]  ;;  %v1848_v1 = vadd.f32 %v1823_v30, %v1694_v7  ;;  %5993 = vst [vmem:[#allocation43_spill] sm:$0xff] %v5106_v11  ;;  %vm1435_vm12 = vcmp.gt.s32.totalorder %v5106_v11, 0  ;;  %vm1460_vm5 = vcmp.lt.s32.totalorder %v5106_v11, 13  ;;  %v704_v57 = vmul.f32 0.044715, %v5065_v3 }
 0x1ab   : > { %v877_v53 = vmul.f32 %v852_v63, %v4927_v40  ;;  %v1562_v34 = vsel %vm1435_vm12, %v1487_v27, 0.0  ;;  %v1670_v55 = vmul.f32 %v3661_v19, %v1641_v31  ;;  %v1795_v46 = vsel %vm1460_vm5, %v1720_v13, 0.0  ;;  %v5996_v35 = vld [vmem:[#allocation28_spill] sm:$0xff]  ;;  %v5998_v13 = vld [vmem:[#allocation31_spill] sm:$0xff] }
 0x1ac   : > { %v5123_v7 = vadd.f32 %v1980_v5, %v1951_v38  ;;  %v5126_v25 = vmul.f32 %v4903_v32, %v2297_v17  ;;  %v1591_v40 = vmul.f32 %v3658_v18, %v1562_v34  ;;  %v2332_v51 = vadd.f32 %v5996_v35, %v2250_v41  ;;  %v5137_v5 = vld [vmem:[%s5797_s6] ss:$0 sm:$0xff] }
 0x1ad   : > { %v1952_v30 = vadd.f32 %v1927_v4, %v1848_v1  ;;  %908 = vst.msk [vmem:[#allocation2 + $0xbf] sm:$0xff] %vm5997_vm0, %v877_v53  ;;  %v2033_v31 = vsel %vm1458_vm8, %v1487_v27, 0.0  ;;  %v2333_v58 = vadd.f32 %v5998_v13, %v2251_v21  ;;  %v753_v38 = vmul.f32 %v728_v37, %v5045_v33 }
 0x1ae   : > { %5994 = vst [vmem:[#allocation47_spill] sm:$0xff] %v5123_v7  ;;  %5995 = vst [vmem:[#allocation61_spill] sm:$0xff] %v5126_v25  ;;  %v1824_v50 = vmul.f32 %v3669_v23, %v1795_v46  ;;  %v2364_v17 = vmul.f32 %v5121_v42, %v2332_v51  ;;  %v5143_v41 = vmul.u32.u64.low 2454267026, %v5059_v22  ;;  %v5144_v1 = vmul.u32.u64.high 2454267026, %v5059_v22, %v5143_v41 }
 0x1af   : > { %v1695_v63 = vadd.f32 %v1670_v55, %v1591_v40  ;;  %v2365_v27 = vmul.f32 %v5121_v42, %v2333_v58  ;;  %v778_v21 = vadd.f32 %v753_v38, %v5045_v33  ;;  %v729_v4 = vmul.f32 %v704_v57, %v5065_v3  ;;  %v2220_v58 = vld [vmem:[#allocation2 + $0xdd] sm:$0xf] }
 0x1b0   : > { %v5150_v34 = vmul.f32 %v3788_v9, %v2033_v31  ;;  %v2396_v37 = vadd.f32 %v5137_v5, %v2364_v17  ;;  %vm1266_vm6 = vc.u32 %v5143_v41, 2454267026  ;;  %v5154_v46 = vadd.s32 192, %v5963_v47 }
 0x1b1   : > { %v2397_v35 = vadd.f32 %v5137_v5, %v2365_v27  ;;  %v803_v51 = vmul.f32 0.7978846, %v778_v21  ;;  %v1267_v55 = vsel %vm1266_vm6, 1, %v5957_v6  ;;  %v754_v40 = vmul.f32 %v729_v4, %v5065_v3 }
 0x1b2   : > { %5999 = vst [vmem:[#allocation28_spill] sm:$0xff] %v5150_v34  ;;  %v5160_v33 = vadd.f32 %v5055_v39, %v1952_v30  ;;  %v5163_v57 = vmul.f32 %v3651_v16, %v877_v53  ;;  %v2446_v31 = vmul.f32 0.044715, %v2396_v37  ;;  %v1268_v13 = vadd.s32 %v5144_v1, %v1267_v55  ;;  %v6001_v55 = vld [vmem:[#allocation30_spill] sm:$0xff] }
 0x1b3   : > { %v1849_v38 = vadd.f32 %v1824_v50, %v1695_v63  ;;  %v2447_v47 = vmul.f32 0.044715, %v2397_v35  ;;  %3346 = vtanh.f32 %v803_v51  ;;  %v779_v17 = vadd.f32 %v754_v40, %v5065_v3  ;;  %v6002_v40 = vld [vmem:[#allocation32_spill] sm:$0xff] }
 0x1b4   : > { %6000 = vst [vmem:[#allocation31_spill] sm:$0xff] %v5160_v33  ;;  %v1874_v41 = vld [vmem:[#allocation2 + $0xbe] sm:$0xff]  ;;  %v2471_v27 = vmul.f32 %v2446_v31, %v2396_v37  ;;  %v1269_v21 = vshrl.u32 %v1268_v13, 3  ;;  %v5168_v4 = vmul.u32.u64.low 2454267026, %v5154_v46  ;;  %v5169_v25 = vmul.u32.u64.high 2454267026, %v5154_v46, %v5168_v4 }
 0x1b5   : > { %v1899_v39 = vsel %vm1435_vm12, %v1874_v41, 0.0  ;;  %v5173_v53 = vmul.f32 0.5, %v2396_v37  ;;  %v2472_v30 = vmul.f32 %v2447_v47, %v2397_v35  ;;  %v1642_v1 = vld [vmem:[#allocation2 + $0xb9] sm:$0xff]  ;;  %v5176_v50 = vmul.f32 %v5042_v48, %v2220_v58 }
 0x1b6   : > { %v2298_v3 = vsel %vm1458_vm8, %v1874_v41, 0.0  ;;  %v2496_v63 = vmul.f32 %v2471_v27, %v2396_v37  ;;  %v1270_v51 = vmul.u32 14, %v1269_v21  ;;  %v2069_v31 = vadd.f32 %v6002_v40, %v6001_v55  ;;  %v1488_v11 = vld [vmem:[#allocation2 + $0xb8] sm:$0xff]  ;;  %v2094_v55 = vld [vmem:[#allocation2 + $0x2c] sm:$0xff] }
 0x1b7   : > { %v1928_v13 = vmul.f32 %v3741_v20, %v1899_v39  ;;  %v2497_v10 = vmul.f32 %v2472_v30, %v2397_v35  ;;  %v804_v33 = vmul.f32 0.7978846, %v779_v17  ;;  %vm1280_vm2 = vc.u32 %v5168_v4, 2454267026  ;;  %v2095_v39 = vld [vmem:[#allocation2 + $0x34] sm:$0xff] }
 0x1b8   : > { %v5183_v34 = vmul.f32 0.5, %v2397_v35  ;;  %v2521_v47 = vadd.f32 %v2496_v63, %v2396_v37  ;;  %v1271_v58 = vsub.s32 %v5059_v22, %v1270_v51  ;;  %v1671_v7 = vmul.f32 %v3661_v19, %v1642_v1 }
 0x1b9   : > { %v5188_v41 = vmul.f32 %v4903_v32, %v2298_v3  ;;  %v2522_v27 = vadd.f32 %v2497_v10, %v2397_v35  ;;  %3348 = vtanh.f32 %v804_v33  ;;  %v1281_v21 = vsel %vm1280_vm2, 1, %v5957_v6  ;;  %v1721_v3 = vld [vmem:[#allocation2 + $0xba] sm:$0xff]  ;;  %v6005_v33 = vld [vmem:[#allocation35_spill] sm:$0xff] }
 0x1ba   : > { %v2546_v30 = vmul.f32 0.7978846, %v2521_v47  ;;  %vm1311_vm8 = vcmp.ne.s32.totalorder %v1271_v58, 0  ;;  %vm1336_vm13 = vcmp.lt.s32.totalorder %v1271_v58, 0  ;;  %v2034_v17 = vsel %vm1459_vm4, %v1488_v11, 0.0  ;;  %v2115_v10 = vld [vmem:[#allocation2 + $0xd4] sm:$0xff] }
 0x1bb   : > { %6003 = vst [vmem:[#allocation30_spill] sm:$0xff] %v5188_v41  ;;  %v1953_v37 = vadd.f32 %v1928_v13, %v1849_v38  ;;  %v2547_v4 = vmul.f32 0.7978846, %v2522_v27  ;;  %vm1361_vm3 = vmand %vm1336_vm13, %vm1311_vm8  ;;  %v1386_v22 = vadd.s32 14, %v1271_v58  ;;  %v1282_v1 = vadd.s32 %v5169_v25, %v1281_v21  ;;  %v6004_v35 = vld [vmem:[#allocation33_spill] sm:$0xff] }
 0x1bc   : > { %3350 = vtanh.f32 %v2546_v30  ;;  %v2070_v6 = vadd.f32 %v6005_v33, %v6004_v35  ;;  %v2119_v51 = vsel %vm1415_vm1, %v2094_v55, 0.0  ;;  %v2120_v47 = vsel %vm1416_vm7, %v2095_v39, 0.0  ;;  %v1643_v27 = vld [vmem:[#allocation2 + $0xc1] sm:$0xf]  ;;  %v2198_v55 = vld [vmem:[#allocation2 + $0x2d] sm:$0xff] }
 0x1bd   : > { %v3347_v41 = vpop.eup %3346  ;;  %3352 = vtanh.f32 %v2547_v4  ;;  %v5200_v38 = vsel %vm1361_vm3, %v1386_v22, %v1271_v58  ;;  %vm910_vm0 = vcmask 519168   ;;  %v1283_v13 = vshrl.u32 %v1282_v1, 3  ;;  %v2199_v1 = vld [vmem:[#allocation2 + $0x35] sm:$0xff] }
 0x1be   : > { %v2148_v25 = vmul.f32 %v5035_v12, %v2119_v51  ;;  %v853_v21 = vadd.f32 1.0, %v3347_v41  ;;  %vm1436_vm6 = vcmp.gt.s32.totalorder %v5200_v38, 0  ;;  %vm1461_vm2 = vcmp.lt.s32.totalorder %v5200_v38, 13 }
 0x1bf   : > { %v2149_v30 = vmul.f32 %v5035_v12, %v2120_v47  ;;  %v1563_v39 = vsel %vm1436_vm6, %v1488_v11, 0.0  ;;  %v1796_v58 = vsel %vm1461_vm2, %v1721_v3, 0.0  ;;  %v2140_v4 = vsel %vm1436_vm6, %v2115_v10, 0.0 }
 0x1c0   : > { %v1284_v22 = vmul.u32 14, %v1283_v13  ;;  %v878_v41 = vmul.f32 %v853_v21, %v5087_v54  ;;  %v1592_v35 = vmul.f32 %v3658_v18, %v1563_v39  ;;  %v5215_v33 = vmul.f32 %v3788_v9, %v2034_v17  ;;  %v2096_v13 = vld [vmem:[#allocation2 + $0x3c] sm:$0xff]  ;;  %v2097_v21 = vld [vmem:[#allocation2 + $0x44] sm:$0xff] }
 0x1c1   : > { %v1672_v63 = vmul.f32 %v3661_v19, %v1643_v27  ;;  %v2173_v11 = vadd.f32 %v2148_v25, %v2069_v31  ;;  %v2174_v40 = vadd.f32 %v2149_v30, %v2070_v6  ;;  %v2227_v3 = vmul.f32 %v5042_v48, %v2198_v55  ;;  %v1722_v55 = vld [vmem:[#allocation2 + $0xc2] sm:$0xf] }
 0x1c2   : > { %v1285_v51 = vsub.s32 %v5154_v46, %v1284_v22  ;;  %v5221_v47 = vadd.f32 %v5163_v57, %v1953_v37  ;;  %vm6008_vm1 = vcmask 523264   ;;  %v1825_v54 = vmul.f32 %v3669_v23, %v1796_v58  ;;  %v1489_v37 = vld [vmem:[#allocation2 + $0xc0] sm:$0xf] }
 0x1c3   : > { %909 = vst.msk [vmem:[#allocation2 + $0xc7] sm:$0xff] %vm6008_vm1, %v878_v41  ;;  %v5226_v10 = vmul.f32 %v5035_v12, %v2140_v4  ;;  %v2228_v17 = vmul.f32 %v5042_v48, %v2199_v1  ;;  %v3349_v19 = vpop.eup %3348  ;;  %v2252_v31 = vadd.f32 %v2227_v3, %v2173_v11  ;;  %v1696_v6 = vadd.f32 %v1671_v7, %v1592_v35  ;;  %v6010_v39 = vld [vmem:[#allocation34_spill] sm:$0xff]  ;;  %v6011_v4 = vld [vmem:[#allocation36_spill] sm:$0xff]  ;;  %v2116_v35 = vld [vmem:[#allocation2 + $0xdc] sm:$0xf] }
 0x1c4   : > { %vm1312_vm7 = vcmp.ne.s32.totalorder %v1285_v51, 0  ;;  %vm1337_vm8 = vcmp.lt.s32.totalorder %v1285_v51, 0  ;;  %v1387_v46 = vadd.s32 14, %v1285_v51  ;;  %v5230_v27 = vmul.f32 %v3651_v16, %v878_v41  ;;  %v6012_v22 = vld [vmem:[#allocation38_spill] sm:$0xff] }
 0x1c5   : > { %6009 = vst [vmem:[#allocation32_spill] sm:$0xff] %v5226_v10  ;;  %v854_v57 = vadd.f32 1.0, %v3349_v19  ;;  %vm1362_vm13 = vmand %vm1337_vm8, %vm1312_vm7  ;;  %v2253_v25 = vadd.f32 %v2228_v17, %v2174_v40  ;;  %v2334_v58 = vadd.f32 %v6010_v39, %v2252_v31  ;;  %v2071_v1 = vadd.f32 %v6012_v22, %v6011_v4  ;;  %v6014_v40 = vld [vmem:[#allocation37_spill] sm:$0xff] }
 0x1c6   : > { %v5232_v30 = vsel %vm1362_vm13, %v1387_v46, %v1285_v51  ;;  %v2121_v11 = vsel %vm1417_vm10, %v2096_v13, 0.0  ;;  %v3351_v7 = vpop.eup %3350  ;;  %v6015_v46 = vld [vmem:[#allocation39_spill] sm:$0xff]  ;;  %v6016_v31 = vld [vmem:[#allocation41_spill] sm:$0xff] }
 0x1c7   : > { %v879_v41 = vmul.f32 %v854_v57, %v5090_v61  ;;  %vm1437_vm3 = vcmp.gt.s32.totalorder %v5232_v30, 0  ;;  %vm1462_vm1 = vcmp.lt.s32.totalorder %v5232_v30, 13  ;;  %v2335_v51 = vadd.f32 %v6014_v40, %v2253_v25  ;;  %v3353_v3 = vpop.eup %3352  ;;  %v6017_v10 = vld [vmem:[#allocation9_spill] sm:$0xff] }
 0x1c8   : > { %v2596_v17 = vadd.f32 1.0, %v3351_v7  ;;  %v1564_v19 = vsel %vm1437_vm3, %v1489_v37, 0.0  ;;  %v2072_v39 = vadd.f32 %v6016_v31, %v6015_v46  ;;  %vm6018_vm10 = vcmp.gt.s32.totalorder %v6017_v10, 0  ;;  %v2201_v10 = vld [vmem:[#allocation2 + $0x45] sm:$0xff] }
 0x1c9   : > { %v2122_v13 = vsel %vm6018_vm10, %v2097_v21, 0.0  ;;  %v2597_v4 = vadd.f32 1.0, %v3353_v3  ;;  %911 = vst.msk [vmem:[#allocation2 + $0xcf] sm:$0xf] %vm910_vm0, %v879_v41  ;;  %v1593_v61 = vmul.f32 %v3658_v18, %v1564_v19  ;;  %v1797_v57 = vsel %vm1462_vm1, %v1722_v55, 0.0 }
 0x1ca   : > { %v2150_v25 = vmul.f32 %v5035_v12, %v2121_v11  ;;  %v2621_v22 = vmul.f32 %v2596_v17, %v5173_v53  ;;  %v1875_v7 = vld [vmem:[#allocation2 + $0xc6] sm:$0xff]  ;;  %v2141_v37 = vsel %vm1437_vm3, %v2116_v35, 0.0  ;;  %v2366_v40 = vmul.f32 %v5121_v42, %v2334_v58  ;;  %v2200_v58 = vld [vmem:[#allocation2 + $0x3d] sm:$0xff] }
 0x1cb   : > { %v2367_v21 = vmul.f32 %v5121_v42, %v2335_v51  ;;  %v2622_v3 = vmul.f32 %v2597_v4, %v5183_v34  ;;  %v1900_v18 = vsel %vm1436_vm6, %v1875_v7, 0.0  ;;  %v2299_v55 = vsel %vm1459_vm4, %v1875_v7, 0.0 }
 0x1cc   : > { %v1697_v19 = vadd.f32 %v1672_v63, %v1593_v61  ;;  %v1850_v11 = vadd.f32 %v1825_v54, %v1696_v6  ;;  %v1826_v53 = vmul.f32 %v3669_v23, %v1797_v57  ;;  %v2398_v17 = vadd.f32 %v5137_v5, %v2366_v40  ;;  %v6023_v40 = vld [vmem:[#allocation45_spill] sm:$0xff] }
 0x1cd   : > { %v5267_v35 = vadd.f32 %v5137_v5, %v2367_v21  ;;  %v2646_v46 = vpack.c.bf16 %v2622_v3, %v2621_v22  ;;  %v1984_v51 = vmul.f32 %v3651_v16, %v879_v41  ;;  %v2151_v34 = vmul.f32 %v5035_v12, %v2122_v13  ;;  %v2098_v41 = vld [vmem:[#allocation2 + $0x4c] sm:$0xff]  ;;  %v2099_v3 = vld [vmem:[#allocation2 + $0x54] sm:$0xff] }
 0x1ce   : > { %v2175_v31 = vadd.f32 %v2150_v25, %v2071_v1  ;;  %v1929_v4 = vmul.f32 %v3741_v20, %v1900_v18  ;;  %v5273_v63 = vmul.f32 %v4903_v32, %v2299_v55  ;;  %v5276_v23 = vmul.f32 %v5035_v12, %v2141_v37  ;;  %v6022_v37 = vld [vmem:[#allocation42_spill] sm:$0xff] }
 0x1cf   : > { %v2448_v54 = vmul.f32 0.044715, %v2398_v17  ;;  %vm6019_vm4 = vcmask 523264   ;;  %v1851_v6 = vadd.f32 %v1826_v53, %v1697_v19  ;;  %v2449_v61 = vmul.f32 0.044715, %v5267_v35  ;;  %v6024_v19 = vld [vmem:[#allocation46_spill] sm:$0xff] }
 0x1d0   : > { %3181 = vmatmul.mubr.msk.bf16.vlgmr.msra.gmra.mrb[0].mxu1 %vm6019_vm4, %v2646_v46  ;;  %v2176_v57 = vadd.f32 %v2151_v34, %v2072_v39  ;;  %v2229_v16 = vmul.f32 %v5042_v48, %v2200_v58  ;;  %v1954_v1 = vadd.f32 %v1929_v4, %v1850_v11  ;;  %v6020_v13 = vmov 0.0   ;;  %v1876_v25 = vld [vmem:[#allocation2 + $0xce] sm:$0xf] }
 0x1d1   : > { %vm6021_vm0 = vmmov 0   ;;  %v2012_v32 = vld [vmem:[#allocation2 + $0xd0] sm:$0xf]  ;;  %v2473_v22 = vmul.f32 %v2448_v54, %v2398_v17  ;;  %v2230_v7 = vmul.f32 %v5042_v48, %v2201_v10  ;;  %v2073_v21 = vadd.f32 %v6023_v40, %v6022_v37  ;;  %v6026_v40 = vld [vmem:[#allocation10_spill] sm:$0xff] }
 0x1d2   : > { %3184 = vmatprep.mubr.msk.bf16.mxu1 %vm6021_vm0, %v6020_v13  ;;  %v1901_v18 = vsel %vm1437_vm3, %v1876_v25, 0.0  ;;  %v2474_v39 = vmul.f32 %v2449_v61, %v5267_v35  ;;  %v2254_v55 = vadd.f32 %v2229_v16, %v2175_v31  ;;  %v2074_v11 = vadd.f32 %v4642_v49, %v6024_v19  ;;  %v2202_v10 = vld [vmem:[#allocation2 + $0x4d] sm:$0xff] }
 0x1d3   : > { %v1930_v53 = vmul.f32 %v3741_v20, %v1901_v18  ;;  %v2037_v58 = vsel %vm1462_vm1, %v2012_v32, 0.0  ;;  %v2498_v46 = vmul.f32 %v2473_v22, %v2398_v17  ;;  %v2255_v34 = vadd.f32 %v2230_v7, %v2176_v57  ;;  %v6025_v54 = vld [vmem:[#allocation40_spill] sm:$0xff]  ;;  %v6028_v61 = vld [vmem:[#allocation11_spill] sm:$0xff] }
 0x1d4   : > { %v2499_v4 = vmul.f32 %v2474_v39, %v5267_v35  ;;  %v2336_v37 = vadd.f32 %v6025_v54, %v2254_v55  ;;  %vm6027_vm6 = vcmp.gt.s32.totalorder %v6026_v40, 0  ;;  %vm6029_vm7 = vcmp.gt.s32.totalorder %v6028_v61, 0  ;;  %v6030_v19 = vld [vmem:[#allocation44_spill] sm:$0xff]  ;;  %v2100_v61 = vld [vmem:[#allocation2 + $0x5c] sm:$0xff] }
 0x1d5   : > { %v2123_v25 = vsel %vm6027_vm6, %v2098_v41, 0.0  ;;  %v2124_v31 = vsel %vm6029_vm7, %v2099_v3, 0.0  ;;  %v1955_v16 = vadd.f32 %v1930_v53, %v1851_v6  ;;  %v2523_v49 = vadd.f32 %v2498_v46, %v2398_v17  ;;  %v2203_v32 = vld [vmem:[#allocation2 + $0x55] sm:$0xff] }
 0x1d6   : > { %v2337_v20 = vadd.f32 %v6030_v19, %v2255_v34  ;;  %v2152_v18 = vmul.f32 %v5035_v12, %v2123_v25  ;;  %v2524_v57 = vadd.f32 %v2499_v4, %v5267_v35  ;;  %v2368_v22 = vmul.f32 %v5121_v42, %v2336_v37 }
 0x1d7   : > { %v2153_v7 = vmul.f32 %v5035_v12, %v2124_v31  ;;  %v2231_v39 = vmul.f32 %v5042_v48, %v2202_v10  ;;  %v2009_v55 = vadd.f32 %v1984_v51, %v1955_v16  ;;  %v2548_v41 = vmul.f32 0.7978846, %v2523_v49  ;;  %v6031_v16 = vld [vmem:[#allocation50_spill] sm:$0xff] }
 0x1d8   : > { %v2369_v54 = vmul.f32 %v5121_v42, %v2337_v20  ;;  %v2177_v3 = vadd.f32 %v2152_v18, %v2073_v21  ;;  %v2549_v6 = vmul.f32 0.7978846, %v2524_v57  ;;  %v2400_v53 = vadd.f32 %v5137_v5, %v2368_v22  ;;  %v2101_v49 = vld [vmem:[#allocation2 + $0x64] sm:$0xff] }
 0x1d9   : > { %v2178_v46 = vadd.f32 %v2153_v7, %v2074_v11  ;;  %v2232_v34 = vmul.f32 %v5042_v48, %v2203_v32  ;;  %v2423_v40 = vmul.f32 0.5, %v2398_v17  ;;  %3354 = vtanh.f32 %v2548_v41  ;;  %v2204_v7 = vld [vmem:[#allocation2 + $0x5d] sm:$0xff] }
 0x1da   : > { %v5310_v4 = vadd.f32 %v5137_v5, %v2369_v54  ;;  %v2256_v37 = vadd.f32 %v2231_v39, %v2177_v3  ;;  %v2066_v25 = vmul.f32 %v3788_v9, %v2037_v58  ;;  %3356 = vtanh.f32 %v2549_v6  ;;  %v6035_v41 = vld [vmem:[#allocation13_spill] sm:$0xff] }
 0x1db   : > { %v2450_v51 = vmul.f32 0.044715, %v2400_v53  ;;  %v2257_v10 = vadd.f32 %v2232_v34, %v2178_v46  ;;  %v5314_v21 = vadd.f32 %v5230_v27, %v1954_v1  ;;  %v2424_v31 = vmul.f32 0.5, %v5267_v35  ;;  %v6032_v27 = vld [vmem:[#allocation53_spill] sm:$0xff]  ;;  %v6033_v35 = vld [vmem:[#allocation12_spill] sm:$0xff] }
 0x1dc   : > { %v2451_v11 = vmul.f32 0.044715, %v5310_v4  ;;  %v2338_v17 = vadd.f32 %v6031_v16, %v2256_v37  ;;  %v2091_v19 = vadd.f32 %v2066_v25, %v2009_v55  ;;  %v2075_v58 = vadd.f32 %v4678_v45, %v4661_v14  ;;  %v2205_v14 = vld [vmem:[#allocation2 + $0x65] sm:$0xff] }
 0x1dd   : > { %v2475_v20 = vmul.f32 %v2450_v51, %v2400_v53  ;;  %v2339_v18 = vadd.f32 %v4645_v36, %v2257_v10  ;;  %v2076_v1 = vadd.f32 %v6032_v27, %v4675_v0  ;;  %vm6034_vm8 = vcmp.gt.s32.totalorder %v6033_v35, 0  ;;  %v6038_v27 = vld [vmem:[#allocation18_spill] sm:$0xff] }
 0x1de   : > { %v2476_v32 = vmul.f32 %v2451_v11, %v5310_v4  ;;  %v2370_v57 = vmul.f32 %v5121_v42, %v2338_v17  ;;  %v2125_v22 = vsel %vm6034_vm8, %v2100_v61, 0.0  ;;  %vm6036_vm13 = vcmp.gt.s32.totalorder %v6035_v41, 0  ;;  %vm6050_vm8 = vmmov %vm6019_vm4 }
 0x1df   : > { %v2500_v39 = vmul.f32 %v2475_v20, %v2400_v53  ;;  %v2371_v55 = vmul.f32 %v5121_v42, %v2339_v18  ;;  %v2126_v36 = vsel %vm6036_vm13, %v2101_v49, 0.0  ;;  %v2154_v54 = vmul.f32 %v5035_v12, %v2125_v22 }
 0x1e0   : > { %v5332_v45 = vmul.f32 0.5, %v2400_v53  ;;  %v2501_v3 = vmul.f32 %v2476_v32, %v5310_v4  ;;  %v5336_v6 = vadd.f32 %v5137_v5, %v2370_v57  ;;  %v2155_v0 = vmul.f32 %v5035_v12, %v2126_v36  ;;  %v6037_v57 = vld [vmem:[#allocation52_spill] sm:$0xff]  ;;  %v6040_v36 = vld [vmem:[#allocation54_spill] sm:$0xff] }
 0x1e1   : > { %v2525_v46 = vadd.f32 %v2500_v39, %v2400_v53  ;;  %v5340_v34 = vadd.f32 %v5137_v5, %v2371_v55  ;;  %v2179_v37 = vadd.f32 %v2154_v54, %v2075_v58  ;;  %v2233_v25 = vmul.f32 %v5042_v48, %v2204_v7  ;;  %v6039_v39 = vld [vmem:[#allocation51_spill] sm:$0xff] }
 0x1e2   : > { %v2526_v51 = vadd.f32 %v2501_v3, %v5310_v4  ;;  %v2452_v10 = vmul.f32 0.044715, %v5336_v6  ;;  %v2180_v61 = vadd.f32 %v2155_v0, %v2076_v1  ;;  %v2234_v11 = vmul.f32 %v5042_v48, %v2205_v14  ;;  %v2103_v14 = vld [vmem:[#allocation2 + $0x74] sm:$0xff] }
 0x1e3   : > { %v2195_v16 = vadd.f32 %v5276_v23, %v2091_v19  ;;  %v2550_v17 = vmul.f32 0.7978846, %v2525_v46  ;;  %v2453_v49 = vmul.f32 0.044715, %v5340_v34  ;;  %v2258_v20 = vadd.f32 %v2233_v25, %v2179_v37  ;;  %v3355_v53 = vpop.eup %3354  ;;  %v2102_v23 = vld [vmem:[#allocation2 + $0x6c] sm:$0xff] }
 0x1e4   : > { %v2551_v18 = vmul.f32 0.7978846, %v2526_v51  ;;  %v2477_v32 = vmul.f32 %v2452_v10, %v5336_v6  ;;  %v2259_v58 = vadd.f32 %v2234_v11, %v2180_v61  ;;  %v2077_v35 = vadd.f32 %v6038_v27, %v6037_v57  ;;  %v3357_v22 = vpop.eup %3356  ;;  %v6041_v37 = vld [vmem:[#allocation55_spill] sm:$0xff]  ;;  %v6042_v11 = vld [vmem:[#allocation14_spill] sm:$0xff]  ;;  %v2207_v57 = vld [vmem:[#allocation2 + $0x75] sm:$0xff] }
 0x1e5   : > { %v2598_v7 = vadd.f32 1.0, %v3355_v53  ;;  %3358 = vtanh.f32 %v2550_v17  ;;  %v2478_v1 = vmul.f32 %v2453_v49, %v5340_v34  ;;  %v2340_v55 = vadd.f32 %v6039_v39, %v2258_v20  ;;  %v2104_v39 = vld [vmem:[#allocation2 + $0x7c] sm:$0xff] }
 0x1e6   : > { %v2599_v19 = vadd.f32 1.0, %v3357_v22  ;;  %3360 = vtanh.f32 %v2551_v18  ;;  %v2502_v41 = vmul.f32 %v2477_v32, %v5336_v6  ;;  %v2341_v54 = vadd.f32 %v6040_v36, %v2259_v58  ;;  %v2206_v58 = vld [vmem:[#allocation2 + $0x6d] sm:$0xff] }
 0x1e7   : > { %v2623_v3 = vmul.f32 %v2598_v7, %v2423_v40  ;;  %v2503_v0 = vmul.f32 %v2478_v1, %v5340_v34  ;;  %v2372_v46 = vmul.f32 %v5121_v42, %v2340_v55  ;;  %v2078_v25 = vadd.f32 %v4790_v43, %v6041_v37  ;;  %v6046_v37 = vld [vmem:[#allocation15_spill] sm:$0xff] }
 0x1e8   : > { %v2624_v51 = vmul.f32 %v2599_v19, %v2424_v31  ;;  %v2527_v10 = vadd.f32 %v2502_v41, %v5336_v6  ;;  %v2373_v61 = vmul.f32 %v5121_v42, %v2341_v54  ;;  %vm6043_vm3 = vcmp.gt.s32.totalorder %v6042_v11, 0  ;;  %v2105_v19 = vld [vmem:[#allocation2 + $0x84] sm:$0xff] }
 0x1e9   : > { %v2127_v17 = vsel %vm6043_vm3, %v2102_v23, 0.0  ;;  %v2528_v49 = vadd.f32 %v2503_v0, %v5340_v34  ;;  %v5365_v20 = vadd.f32 %v5137_v5, %v2372_v46  ;;  %vm6044_vm10 = vcmp.gt.s32.totalorder %v3977_v8, 0 }
 0x1ea   : > { %v2128_v40 = vsel %vm6044_vm10, %v2103_v14, 0.0  ;;  %v2156_v53 = vmul.f32 %v5035_v12, %v2127_v17  ;;  %v2647_v18 = vpack.c.bf16 %v2624_v51, %v2623_v3  ;;  %v2552_v43 = vmul.f32 0.7978846, %v2527_v10  ;;  %v6049_v17 = vld [vmem:[#allocation57_spill] sm:$0xff]  ;;  %vm6061_vm10 = vmmov %vm6019_vm4 }
 0x1eb   : > { %v5371_v31 = vadd.f32 %v5137_v5, %v2373_v61  ;;  %v2157_v32 = vmul.f32 %v5035_v12, %v2128_v40  ;;  %v2426_v27 = vmul.f32 0.5, %v5310_v4  ;;  %v2553_v22 = vmul.f32 0.7978846, %v2528_v49  ;;  %v2208_v40 = vld [vmem:[#allocation2 + $0x7d] sm:$0xff] }
 0x1ec   : > { %v2454_v7 = vmul.f32 0.044715, %v5365_v20  ;;  %v2181_v1 = vadd.f32 %v2156_v53, %v2077_v35  ;;  %v5377_v8 = vadd.f32 %v5176_v50, %v2195_v16  ;;  %3185 = vmatmul.mubr.msk.bf16.gmra.mrb[4].mxu1 %vm6019_vm4, %v2647_v18  ;;  %3362 = vtanh.f32 %v2552_v43  ;;  %v2209_v53 = vld [vmem:[#allocation2 + $0x85] sm:$0xff] }
 0x1ed   : > { %v2455_v55 = vmul.f32 0.044715, %v5371_v31  ;;  %v2182_v23 = vadd.f32 %v2157_v32, %v2078_v25  ;;  %3188 = vmatprep.mubr.msk.bf16.mxu1 %vm6021_vm0, %v6020_v13  ;;  %3364 = vtanh.f32 %v2553_v22  ;;  %v2235_v41 = vmul.f32 %v5042_v48, %v2206_v58 }
 0x1ee   : > { %v2479_v4 = vmul.f32 %v2454_v7, %v5365_v20  ;;  %v2236_v35 = vmul.f32 %v5042_v48, %v2207_v57  ;;  %v2079_v16 = vadd.f32 %v4803_v28, %v4800_v52  ;;  %v2080_v36 = vadd.f32 %v4821_v26, %v4817_v60  ;;  %v6048_v26 = vld [vmem:[#allocation56_spill] sm:$0xff] }
 0x1ef   : > { %v2480_v50 = vmul.f32 %v2455_v55, %v5371_v31  ;;  %vm6045_vm6 = vcmp.gt.s32.totalorder %v3979_v29, 0  ;;  %v3359_v14 = vpop.eup %3358  ;;  %v2260_v0 = vadd.f32 %v2235_v41, %v2181_v1  ;;  %vm6047_vm7 = vcmp.gt.s32.totalorder %v6046_v37, 0 }
 0x1f0   : > { %v2129_v54 = vsel %vm6045_vm6, %v2104_v39, 0.0  ;;  %v2504_v3 = vmul.f32 %v2479_v4, %v5365_v20  ;;  %v2261_v46 = vadd.f32 %v2236_v35, %v2182_v23  ;;  %v2130_v25 = vsel %vm6047_vm7, %v2105_v19, 0.0  ;;  %v3361_v51 = vpop.eup %3360  ;;  %vm6069_vm7 = vmmov %vm6050_vm8 }
 0x1f1   : > { %v2600_v10 = vadd.f32 1.0, %v3359_v14  ;;  %v2505_v61 = vmul.f32 %v2480_v50, %v5371_v31  ;;  %v2158_v52 = vmul.f32 %v5035_v12, %v2129_v54  ;;  %v2159_v28 = vmul.f32 %v5035_v12, %v2130_v25  ;;  %v6053_v25 = vld [vmem:[#allocation22_spill] sm:$0xff] }
 0x1f2   : > { %v2601_v60 = vadd.f32 1.0, %v3361_v51  ;;  %v2529_v29 = vadd.f32 %v2504_v3, %v5365_v20  ;;  %v2342_v11 = vadd.f32 %v6048_v26, %v2260_v0  ;;  %v2343_v49 = vadd.f32 %v6049_v17, %v2261_v46  ;;  %v6051_v0 = vld [vmem:[#allocation59_spill] sm:$0xff]  ;;  %v6052_v46 = vld [vmem:[#allocation24_spill] sm:$0xff] }
 0x1f3   : > { %v2625_v18 = vmul.f32 %v2600_v10, %v5332_v45  ;;  %v2530_v43 = vadd.f32 %v2505_v61, %v5371_v31  ;;  %v2183_v32 = vadd.f32 %v2158_v52, %v2079_v16  ;;  %v2184_v58 = vadd.f32 %v2159_v28, %v2080_v36  ;;  %v2107_v36 = vld [vmem:[#allocation2 + $0x94] sm:$0xff]  ;;  %v6054_v51 = vld [vmem:[#allocation3_spill] sm:$0xff]  ;;  %v6055_v52 = vld [vmem:[#allocation58_spill] sm:$0xff] }
 0x1f4   : > { %v2626_v57 = vmul.f32 %v2601_v60, %v2426_v27  ;;  %v2554_v22 = vmul.f32 0.7978846, %v2529_v29  ;;  %v2374_v7 = vmul.f32 %v5121_v42, %v2342_v11  ;;  %v2375_v1 = vmul.f32 %v5121_v42, %v2343_v49  ;;  %v6056_v60 = vld [vmem:[#allocation60_spill] sm:$0xff] }
 0x1f5   : > { %v2427_v39 = vmul.f32 0.5, %v5336_v6  ;;  %v2555_v55 = vmul.f32 0.7978846, %v2530_v43  ;;  %v2237_v23 = vmul.f32 %v5042_v48, %v2208_v40  ;;  %v2238_v19 = vmul.f32 %v5042_v48, %v2209_v53  ;;  %v2106_v6 = vld [vmem:[#allocation2 + $0x8c] sm:$0xff]  ;;  %v6059_v53 = vld [vmem:[#allocation17_spill] sm:$0xff] }
 0x1f6   : > { %v2648_v4 = vpack.c.bf16 %v2626_v57, %v2625_v18  ;;  %3366 = vtanh.f32 %v2554_v22  ;;  %v5410_v45 = vadd.f32 %v5137_v5, %v2374_v7  ;;  %v5413_v41 = vadd.f32 %v5137_v5, %v2375_v1  ;;  %v3363_v27 = vpop.eup %3362  ;;  %v2210_v26 = vld [vmem:[#allocation2 + $0x8d] sm:$0xff]  ;;  %v2211_v22 = vld [vmem:[#allocation2 + $0x95] sm:$0xff] }
 0x1f7   : > { %v2428_v35 = vmul.f32 0.5, %v5340_v34  ;;  %3368 = vtanh.f32 %v2555_v55  ;;  %v2262_v50 = vadd.f32 %v2237_v23, %v2183_v32  ;;  %v2263_v16 = vadd.f32 %v2238_v19, %v2184_v58  ;;  %v3365_v54 = vpop.eup %3364  ;;  %v6057_v49 = vld [vmem:[#allocation16_spill] sm:$0xff] }
 0x1f8   : > { %3189 = vmatmul.mubr.msk.bf16.gmra.mrb[8].mxu1 %vm6050_vm8, %v2648_v4  ;;  %v2602_v14 = vadd.f32 1.0, %v3363_v27  ;;  %v2456_v3 = vmul.f32 0.044715, %v5410_v45  ;;  %v2081_v37 = vadd.f32 %v6052_v46, %v6051_v0  ;;  %v2082_v10 = vadd.f32 %v6054_v51, %v6053_v25 }
 0x1f9   : > { %3192 = vmatprep.mubr.msk.bf16.mxu1 %vm6021_vm0, %v6020_v13  ;;  %v2603_v34 = vadd.f32 1.0, %v3365_v54  ;;  %v2457_v61 = vmul.f32 0.044715, %v5413_v41  ;;  %v2344_v28 = vadd.f32 %v6055_v52, %v2262_v50  ;;  %v2345_v29 = vadd.f32 %v6056_v60, %v2263_v16  ;;  %v6063_v52 = vld [vmem:[#allocation49_spill] sm:$0xff] }
 0x1fa   : > { %v2627_v11 = vmul.f32 %v2602_v14, %v2427_v39  ;;  %v2481_v17 = vmul.f32 %v2456_v3, %v5410_v45  ;;  %vm6058_vm13 = vcmp.gt.s32.totalorder %v6057_v49, 0  ;;  %vm6060_vm3 = vcmp.gt.s32.totalorder %v6059_v53, 0  ;;  %v2109_v49 = vld [vmem:[#allocation2 + $0xa4] sm:$0xff] }
 0x1fb   : > { %v2131_v40 = vsel %vm6058_vm13, %v2106_v6, 0.0  ;;  %v2132_v18 = vsel %vm6060_vm3, %v2107_v36, 0.0  ;;  %v2628_v43 = vmul.f32 %v2603_v34, %v2428_v35  ;;  %v2482_v32 = vmul.f32 %v2457_v61, %v5413_v41  ;;  %v6062_v61 = vld [vmem:[#allocation21_spill] sm:$0xff] }
 0x1fc   : > { %v2376_v58 = vmul.f32 %v5121_v42, %v2344_v28  ;;  %v2377_v57 = vmul.f32 %v5121_v42, %v2345_v29  ;;  %v2506_v7 = vmul.f32 %v2481_v17, %v5410_v45  ;;  %v2160_v1 = vmul.f32 %v5035_v12, %v2131_v40  ;;  %v2108_v17 = vld [vmem:[#allocation2 + $0x9c] sm:$0xff] }
 0x1fd   : > { %v2161_v39 = vmul.f32 %v5035_v12, %v2132_v18  ;;  %v2239_v55 = vmul.f32 %v5042_v48, %v2210_v26  ;;  %v2649_v23 = vpack.c.bf16 %v2628_v43, %v2627_v11  ;;  %v2507_v19 = vmul.f32 %v2482_v32, %v5413_v41  ;;  %v6064_v26 = vld [vmem:[#allocation23_spill] sm:$0xff]  ;;  %v6065_v18 = vld [vmem:[#allocation48_spill] sm:$0xff] }
 0x1fe   : > { %v5441_v4 = vadd.f32 %v5137_v5, %v2376_v58  ;;  %v5444_v27 = vadd.f32 %v5137_v5, %v2377_v57  ;;  %v2531_v35 = vadd.f32 %v2506_v7, %v5410_v45  ;;  %v2185_v50 = vadd.f32 %v2160_v1, %v2081_v37 }
 0x1ff   : > { %v2186_v16 = vadd.f32 %v2161_v39, %v2082_v10  ;;  %v2240_v6 = vmul.f32 %v5042_v48, %v2211_v22  ;;  %v2429_v36 = vmul.f32 0.5, %v5365_v20  ;;  %v2430_v54 = vmul.f32 0.5, %v5371_v31 }
 0x200   : > { %v2532_v14 = vadd.f32 %v2507_v19, %v5413_v41  ;;  %v2458_v3 = vmul.f32 0.044715, %v5441_v4  ;;  %v3367_v0 = vpop.eup %3366  ;;  %3193 = vmatmul.mubr.msk.bf16.gmra.mrb[12].mxu1 %vm6061_vm10, %v2649_v23  ;;  %v2556_v46 = vmul.f32 0.7978846, %v2531_v35  ;;  %v2459_v25 = vmul.f32 0.044715, %v5444_v27 }
 0x201   : > { %v2264_v51 = vadd.f32 %v2239_v55, %v2185_v50  ;;  %v2265_v34 = vadd.f32 %v2240_v6, %v2186_v16  ;;  %v3369_v37 = vpop.eup %3368  ;;  %3196 = vmatprep.mubr.msk.bf16.mxu1 %vm6021_vm0, %v6020_v13  ;;  %v2604_v10 = vadd.f32 1.0, %v3367_v0  ;;  %v2083_v28 = vadd.f32 %v6063_v52, %v6062_v61  ;;  %v6067_v55 = vld [vmem:[#allocation19_spill] sm:$0xff]  ;;  %v2212_v19 = vld [vmem:[#allocation2 + $0x9d] sm:$0xff] }
 0x202   : > { %v2557_v20 = vmul.f32 0.7978846, %v2532_v14  ;;  %v2483_v31 = vmul.f32 %v2458_v3, %v5441_v4  ;;  %v2605_v60 = vadd.f32 1.0, %v3369_v37  ;;  %3370 = vtanh.f32 %v2556_v46  ;;  %v2111_v37 = vld [vmem:[#allocation2 + $0xb4] sm:$0xff]  ;;  %v6070_v52 = vld [vmem:[#allocation26_spill] sm:$0xff] }
 0x203   : > { %v2484_v29 = vmul.f32 %v2459_v25, %v5444_v27  ;;  %v2346_v11 = vadd.f32 %v6064_v26, %v2264_v51  ;;  %v2629_v40 = vmul.f32 %v2604_v10, %v2429_v36  ;;  %v2347_v43 = vadd.f32 %v6065_v18, %v2265_v34  ;;  %v2110_v25 = vld [vmem:[#allocation2 + $0xac] sm:$0xff] }
 0x204   : > { %3372 = vtanh.f32 %v2557_v20  ;;  %v2508_v53 = vmul.f32 %v2483_v31, %v5441_v4  ;;  %v2630_v32 = vmul.f32 %v2605_v60, %v2430_v54  ;;  %v2084_v22 = vadd.f32 %v5006_v24, %v4983_v59  ;;  %v2213_v54 = vld [vmem:[#allocation2 + $0xa5] sm:$0xff] }
 0x205   : > { %v2509_v58 = vmul.f32 %v2484_v29, %v5444_v27  ;;  %v2378_v57 = vmul.f32 %v5121_v42, %v2346_v11  ;;  %v2379_v1 = vmul.f32 %v5121_v42, %v2347_v43  ;;  %vm6066_vm4 = vcmp.gt.s32.totalorder %v5946_v2, 0  ;;  %v6072_v29 = vld [vmem:[#allocation4_spill] sm:$0xff] }
 0x206   : > { %v2533_v7 = vadd.f32 %v2508_v53, %v5441_v4  ;;  %v2133_v39 = vsel %vm6066_vm4, %v2108_v17, 0.0  ;;  %vm6068_vm6 = vcmp.gt.s32.totalorder %v6067_v55, 0  ;;  %v2650_v35 = vpack.c.bf16 %v2630_v32, %v2629_v40  ;;  %v6074_v53 = vld [vmem:[#allocation25_spill] sm:$0xff] }
 0x207   : > { %v2134_v23 = vsel %vm6068_vm6, %v2109_v49, 0.0  ;;  %v2534_v50 = vadd.f32 %v2509_v58, %v5444_v27  ;;  %v5475_v16 = vadd.f32 %v5137_v5, %v2378_v57  ;;  %v2162_v6 = vmul.f32 %v5035_v12, %v2133_v39  ;;  %v6075_v39 = vld [vmem:[#allocation27_spill] sm:$0xff] }
 0x208   : > { %v2431_v59 = vmul.f32 0.5, %v5410_v45  ;;  %v2558_v24 = vmul.f32 0.7978846, %v2533_v7  ;;  %v5480_v36 = vadd.f32 %v5137_v5, %v2379_v1  ;;  %v2163_v2 = vmul.f32 %v5035_v12, %v2134_v23  ;;  %3197 = vmatmul.mubr.msk.bf16.gmra.mrb[16].mxu1 %vm6069_vm7, %v2650_v35  ;;  %v2215_v35 = vld [vmem:[#allocation2 + $0xb5] sm:$0xff] }
 0x209   : > { %v2559_v14 = vmul.f32 0.7978846, %v2534_v50  ;;  %v2460_v3 = vmul.f32 0.044715, %v5475_v16  ;;  %v2187_v0 = vadd.f32 %v2162_v6, %v2083_v28  ;;  %v2241_v46 = vmul.f32 %v5042_v48, %v2212_v19  ;;  %3200 = vmatprep.mubr.msk.bf16.mxu1 %vm6021_vm0, %v6020_v13  ;;  %v6071_v28 = vld [vmem:[#allocation29_spill] sm:$0xff]  ;;  %v2214_v19 = vld [vmem:[#allocation2 + $0xad] sm:$0xff] }
 0x20a   : > { %v2432_v45 = vmul.f32 0.5, %v5413_v41  ;;  %3374 = vtanh.f32 %v2558_v24  ;;  %v2461_v51 = vmul.f32 0.044715, %v5480_v36  ;;  %v2188_v34 = vadd.f32 %v2163_v2, %v2084_v22  ;;  %v6079_v41 = vld [vmem:[#allocation31_spill] sm:$0xff] }
 0x20b   : > { %3376 = vtanh.f32 %v2559_v14  ;;  %v2485_v10 = vmul.f32 %v2460_v3, %v5475_v16  ;;  %v2242_v20 = vmul.f32 %v5042_v48, %v2213_v54  ;;  %v2266_v31 = vadd.f32 %v2241_v46, %v2187_v0 }
 0x20c   : > { %v2486_v61 = vmul.f32 %v2461_v51, %v5480_v36  ;;  %v2085_v60 = vadd.f32 %v6071_v28, %v6070_v52  ;;  %v2086_v26 = vadd.f32 %v5097_v56, %v6072_v29  ;;  %v2135_v11 = vsel %vm1431_vm15, %v2110_v25, 0.0  ;;  %v3371_v17 = vpop.eup %3370  ;;  %vm6076_vm15 = vmmov %vm6069_vm7  ;;  %v6077_v29 = vld [vmem:[#allocation47_spill] sm:$0xff] }
 0x20d   : > { %v2510_v49 = vmul.f32 %v2485_v10, %v5475_v16  ;;  %v2267_v40 = vadd.f32 %v2242_v20, %v2188_v34  ;;  %v2348_v18 = vadd.f32 %v6074_v53, %v2266_v31  ;;  %v2136_v43 = vsel %vm1432_vm11, %v2111_v37, 0.0  ;;  %vm6085_vm11 = vmmov %vm6069_vm7 }
 0x20e   : > { %v3373_v32 = vpop.eup %3372  ;;  %v2606_v58 = vadd.f32 1.0, %v3371_v17  ;;  %v2511_v57 = vmul.f32 %v2486_v61, %v5480_v36  ;;  %v2164_v22 = vmul.f32 %v5035_v12, %v2135_v11  ;;  %v2165_v56 = vmul.f32 %v5035_v12, %v2136_v43  ;;  %v2112_v61 = vld [vmem:[#allocation2 + $0xbc] sm:$0xff] }
 0x20f   : > { %v2607_v7 = vadd.f32 1.0, %v3373_v32  ;;  %v2535_v1 = vadd.f32 %v2510_v49, %v5475_v16  ;;  %v2349_v55 = vadd.f32 %v6075_v39, %v2267_v40  ;;  %v2380_v23 = vmul.f32 %v5121_v42, %v2348_v18  ;;  %v6080_v40 = vld [vmem:[#allocation5_spill] sm:$0xff] }
 0x210   : > { %v2631_v50 = vmul.f32 %v2606_v58, %v2431_v59  ;;  %v2536_v62 = vadd.f32 %v2511_v57, %v5480_v36  ;;  %v2189_v6 = vadd.f32 %v2164_v22, %v2085_v60  ;;  %v2190_v24 = vadd.f32 %v2165_v56, %v2086_v26  ;;  %v6081_v18 = vld [vmem:[#allocation61_spill] sm:$0xff] }
 0x211   : > { %v2632_v2 = vmul.f32 %v2607_v7, %v2432_v45  ;;  %v2560_v54 = vmul.f32 0.7978846, %v2535_v1  ;;  %v2381_v14 = vmul.f32 %v5121_v42, %v2349_v55  ;;  %v5512_v3 = vadd.f32 %v5137_v5, %v2380_v23  ;;  %v2216_v32 = vld [vmem:[#allocation2 + $0xbd] sm:$0xff]  ;;  %v2217_v55 = vld [vmem:[#allocation2 + $0xc5] sm:$0xff] }
 0x212   : > { %v2433_v0 = vmul.f32 0.5, %v5441_v4  ;;  %v2561_v46 = vmul.f32 0.7978846, %v2536_v62  ;;  %v2243_v25 = vmul.f32 %v5042_v48, %v2214_v19  ;;  %v2244_v51 = vmul.f32 %v5042_v48, %v2215_v35  ;;  %v2113_v4 = vld [vmem:[#allocation2 + $0xc4] sm:$0xff] }
 0x213   : > { %v2651_v34 = vpack.c.bf16 %v2632_v2, %v2631_v50  ;;  %v2434_v59 = vmul.f32 0.5, %v5444_v27  ;;  %3378 = vtanh.f32 %v2560_v54  ;;  %v5519_v37 = vadd.f32 %v5137_v5, %v2381_v14  ;;  %v6078_v27 = vld [vmem:[#allocation28_spill] sm:$0xff]  ;;  %v2010_v14 = vld [vmem:[#allocation2 + $0xc0] sm:$0xff] }
 0x214   : > { %v3375_v45 = vpop.eup %3374  ;;  %3380 = vtanh.f32 %v2561_v46  ;;  %v2462_v10 = vmul.f32 0.044715, %v5512_v3  ;;  %v2268_v20 = vadd.f32 %v2243_v25, %v2189_v6  ;;  %v2269_v31 = vadd.f32 %v2244_v51, %v2190_v24 }
 0x215   : > { %v3377_v52 = vpop.eup %3376  ;;  %3201 = vmatmul.mubr.msk.bf16.gmra.mrb[20].mxu1 %vm6076_vm15, %v2651_v34  ;;  %v2608_v28 = vadd.f32 1.0, %v3375_v45  ;;  %v2463_v60 = vmul.f32 0.044715, %v5519_v37  ;;  %v2087_v26 = vadd.f32 %v6078_v27, %v6077_v29  ;;  %v2088_v11 = vadd.f32 %v5215_v33, %v6079_v41  ;;  %v2114_v27 = vld [vmem:[#allocation2 + $0xcc] sm:$0xff] }
 0x216   : > { %3204 = vmatprep.mubr.msk.bf16.mxu1 %vm6021_vm0, %v6020_v13  ;;  %v2609_v17 = vadd.f32 1.0, %v3377_v52  ;;  %v2487_v49 = vmul.f32 %v2462_v10, %v5512_v3  ;;  %v2350_v53 = vadd.f32 %v6080_v40, %v2268_v20  ;;  %v2351_v43 = vadd.f32 %v6081_v18, %v2269_v31  ;;  %v2011_v20 = vld [vmem:[#allocation2 + $0xc8] sm:$0xff] }
 0x217   : > { %v2633_v58 = vmul.f32 %v2608_v28, %v2433_v0  ;;  %v2488_v57 = vmul.f32 %v2463_v60, %v5519_v37  ;;  %v2137_v22 = vsel %vm1433_vm9, %v2112_v61, 0.0  ;;  %v2138_v33 = vsel %vm1434_vm14, %v2113_v4, 0.0  ;;  %vm6082_vm9 = vmmov %vm6069_vm7  ;;  %v6084_v60 = vld [vmem:[#allocation30_spill] sm:$0xff] }
 0x218   : > { %v2634_v56 = vmul.f32 %v2609_v17, %v2434_v59  ;;  %v2512_v7 = vmul.f32 %v2487_v49, %v5512_v3  ;;  %v2382_v1 = vmul.f32 %v5121_v42, %v2350_v53  ;;  %v2383_v39 = vmul.f32 %v5121_v42, %v2351_v43  ;;  %v5574_v53 = vld [vmem:[%s5796_s5] ss:$0 sm:$0xff]  ;;  %vm6087_vm14 = vmmov %vm6069_vm7 }
 0x219   : > { %v2513_v23 = vmul.f32 %v2488_v57, %v5519_v37  ;;  %v2166_v19 = vmul.f32 %v5035_v12, %v2137_v22  ;;  %v2167_v35 = vmul.f32 %v5035_v12, %v2138_v33  ;;  %v2245_v15 = vmul.f32 %v5042_v48, %v2216_v32 }
 0x21a   : > { %v2652_v50 = vpack.c.bf16 %v2634_v56, %v2633_v58  ;;  %v2537_v44 = vadd.f32 %v2512_v7, %v5512_v3  ;;  %v5547_v62 = vadd.f32 %v5137_v5, %v2382_v1  ;;  %v5550_v6 = vadd.f32 %v5137_v5, %v2383_v39  ;;  %v5587_v56 = vld [vmem:[%s5797_s6] ss:$0 sm:$0xff]  ;;  %v2218_v39 = vld [vmem:[#allocation2 + $0xcd] sm:$0xff] }
 0x21b   : > { %v2538_v42 = vadd.f32 %v2513_v23, %v5519_v37  ;;  %v2191_v24 = vadd.f32 %v2166_v19, %v2087_v26  ;;  %v2192_v2 = vadd.f32 %v2167_v35, %v2088_v11  ;;  %v2246_v54 = vmul.f32 %v5042_v48, %v2217_v55  ;;  %v2219_v35 = vld [vmem:[#allocation2 + $0xd5] sm:$0xff] }
 0x21c   : > { %v2435_v0 = vmul.f32 0.5, %v5475_v16  ;;  %v2436_v46 = vmul.f32 0.5, %v5480_v36  ;;  %v2562_v25 = vmul.f32 0.7978846, %v2537_v44  ;;  %v2464_v51 = vmul.f32 0.044715, %v5547_v62 }
 0x21d   : > { %v3379_v34 = vpop.eup %3378  ;;  %3205 = vmatmul.mubr.msk.bf16.gmra.mrb[24].mxu1 %vm6082_vm9, %v2652_v50  ;;  %v2563_v59 = vmul.f32 0.7978846, %v2538_v42  ;;  %v2465_v5 = vmul.f32 0.044715, %v5550_v6  ;;  %v2270_v45 = vadd.f32 %v2245_v15, %v2191_v24  ;;  %v2271_v10 = vadd.f32 %v2246_v54, %v2192_v2  ;;  %v2275_v15 = vld [vmem:[#allocation2 + $0xce] sm:$0xff]  ;;  %v2276_v50 = vld [vmem:[#allocation2 + $0xd6] sm:$0xff] }
 0x21e   : > { %v3381_v31 = vpop.eup %3380  ;;  %3208 = vmatprep.mubr.msk.bf16.mxu1 %vm6021_vm0, %v6020_v13  ;;  %v2610_v61 = vadd.f32 1.0, %v3379_v34  ;;  %3382 = vtanh.f32 %v2562_v25  ;;  %v2489_v16 = vmul.f32 %v2464_v51, %v5547_v62  ;;  %v2035_v4 = vsel %vm1460_vm5, %v2010_v14, 0.0  ;;  %v6086_v14 = vld [vmem:[#allocation32_spill] sm:$0xff] }
 0x21f   : > { %v2611_v52 = vadd.f32 1.0, %v3381_v31  ;;  %3384 = vtanh.f32 %v2563_v59  ;;  %v2490_v28 = vmul.f32 %v2465_v5, %v5550_v6  ;;  %v2352_v29 = vadd.f32 %v6084_v60, %v2270_v45 }
 0x220   : > { %v2635_v26 = vmul.f32 %v2610_v61, %v2435_v0  ;;  %v2514_v41 = vmul.f32 %v2489_v16, %v5547_v62  ;;  %v2353_v11 = vadd.f32 %v5273_v63, %v2271_v10  ;;  %v2036_v17 = vsel %vm1461_vm2, %v2011_v20, 0.0 }
 0x221   : > { %v2636_v49 = vmul.f32 %v2611_v52, %v2436_v46  ;;  %v2515_v40 = vmul.f32 %v2490_v28, %v5550_v6  ;;  %v2384_v18 = vmul.f32 %v5574_v53, %v2352_v29  ;;  %v2064_v43 = vmul.f32 %v3788_v9, %v2035_v4 }
 0x222   : > { %v2539_v32 = vadd.f32 %v2514_v41, %v5547_v62  ;;  %v2385_v58 = vmul.f32 %v5574_v53, %v2353_v11  ;;  %v2065_v63 = vmul.f32 %v3788_v9, %v2036_v17  ;;  %v2139_v57 = vsel %vm1435_vm12, %v2114_v27, 0.0  ;;  %vm6088_vm12 = vmmov %vm6069_vm7 }
 0x223   : > { %v2653_v22 = vpack.c.bf16 %v2636_v49, %v2635_v26  ;;  %v2540_v33 = vadd.f32 %v2515_v40, %v5550_v6  ;;  %v5590_v7 = vadd.f32 %v5587_v56, %v2384_v18  ;;  %v2089_v1 = vadd.f32 %v2064_v43, %v5221_v47 }
 0x224   : > { %v2564_v55 = vmul.f32 0.7978846, %v2539_v32  ;;  %v5594_v9 = vadd.f32 %v5587_v56, %v2385_v58  ;;  %v2090_v23 = vadd.f32 %v2065_v63, %v5314_v21  ;;  %v2168_v19 = vmul.f32 %v5035_v12, %v2139_v57 }
 0x225   : > { %3209 = vmatmul.mubr.msk.bf16.gmra.mrb[28].mxu1 %vm6085_vm11, %v2653_v22  ;;  %v2437_v44 = vmul.f32 0.5, %v5512_v3  ;;  %v2438_v42 = vmul.f32 0.5, %v5519_v37  ;;  %v2565_v24 = vmul.f32 0.7978846, %v2540_v33  ;;  %v2466_v47 = vmul.f32 0.044715, %v5590_v7 }
 0x226   : > { %3212 = vmatprep.mubr.msk.bf16.mxu1 %vm6021_vm0, %v6020_v13  ;;  %3386 = vtanh.f32 %v2564_v55  ;;  %v2467_v21 = vmul.f32 0.044715, %v5594_v9  ;;  %v2193_v2 = vadd.f32 %v2168_v19, %v2089_v1  ;;  %v2247_v12 = vmul.f32 %v5042_v48, %v2218_v39  ;;  %v2277_v37 = vld [vmem:[#allocation2 + $0xde] sm:$0xf] }
 0x227   : > { %3388 = vtanh.f32 %v2565_v24  ;;  %v2491_v54 = vmul.f32 %v2466_v47, %v5590_v7  ;;  %v2194_v0 = vadd.f32 %v6086_v14, %v2090_v23  ;;  %v2248_v3 = vmul.f32 %v5042_v48, %v2219_v35  ;;  %v3406_v48 = vld [vmem:[%s5795_s4 + $0x8] ss:$0 sm:$0xff] }
 0x228   : > { %v3383_v46 = vpop.eup %3382  ;;  %v2492_v25 = vmul.f32 %v2467_v21, %v5594_v9  ;;  %v2272_v51 = vadd.f32 %v2247_v12, %v2193_v2  ;;  %v2300_v34 = vsel %vm1460_vm5, %v2275_v15, 0.0  ;;  %v2301_v59 = vsel %vm1461_vm2, %v2276_v50, 0.0  ;;  %vm6089_vm5 = vmmov %vm6069_vm7 }
 0x229   : > { %v3385_v5 = vpop.eup %3384  ;;  %v2612_v45 = vadd.f32 1.0, %v3383_v46  ;;  %v2516_v10 = vmul.f32 %v2491_v54, %v5590_v7  ;;  %v2273_v20 = vadd.f32 %v2248_v3, %v2194_v0  ;;  %v2329_v31 = vmul.f32 %v3406_v48, %v2300_v34  ;;  %vm6090_vm2 = vmmov %vm6089_vm5 }
 0x22a   : > { %v2613_v61 = vadd.f32 1.0, %v3385_v5  ;;  %v2517_v16 = vmul.f32 %v2492_v25, %v5594_v9  ;;  %v2330_v4 = vmul.f32 %v3406_v48, %v2301_v59  ;;  %v2302_v36 = vsel %vm1462_vm1, %v2277_v37, 0.0  ;;  %vm6091_vm1 = vmmov %vm6090_vm2 }
 0x22b   : > { %v2541_v38 = vadd.f32 %v2516_v10, %v5590_v7  ;;  %v2354_v52 = vadd.f32 %v2329_v31, %v2272_v51  ;;  %v2331_v28 = vmul.f32 %v3406_v48, %v2302_v36  ;;  %v2637_v60 = vmul.f32 %v2612_v45, %v2437_v44 }
 0x22c   : > { %v2638_v29 = vmul.f32 %v2613_v61, %v2438_v42  ;;  %v2542_v27 = vadd.f32 %v2517_v16, %v5594_v9  ;;  %v2355_v26 = vadd.f32 %v2330_v4, %v2273_v20  ;;  %v2439_v33 = vmul.f32 0.5, %v5547_v62 }
 0x22d   : > { %v2566_v41 = vmul.f32 0.7978846, %v2541_v38  ;;  %v2386_v11 = vmul.f32 %v5574_v53, %v2354_v52  ;;  %v2356_v17 = vadd.f32 %v2331_v28, %v5377_v8  ;;  %v2440_v1 = vmul.f32 0.5, %v5550_v6  ;;  %v5650_v52 = vld [vmem:[%s5799_s8] ss:$0 sm:$0xff] }
 0x22e   : > { %v2654_v49 = vpack.c.bf16 %v2638_v29, %v2637_v60  ;;  %v2567_v40 = vmul.f32 0.7978846, %v2542_v27  ;;  %v2387_v18 = vmul.f32 %v5574_v53, %v2355_v26  ;;  %v2441_v54 = vmul.f32 0.5, %v5590_v7  ;;  %v5655_v60 = vld [vmem:[%s5800_s9] ss:$0 sm:$0xff] }
 0x22f   : > { %3390 = vtanh.f32 %v2566_v41  ;;  %v2418_v30 = vadd.f32 %v5587_v56, %v2386_v11  ;;  %v2388_v43 = vmul.f32 %v5574_v53, %v2356_v17  ;;  %v2442_v3 = vmul.f32 0.5, %v5594_v9  ;;  %v3407_v17 = vld [vmem:[%s3527_s22] sm:$0xff] }
 0x230   : > { %v3387_v32 = vpop.eup %3386  ;;  %3213 = vmatmul.mubr.msk.bf16.gmra.mrb[32].mxu1 %vm6087_vm14, %v2654_v49  ;;  %3392 = vtanh.f32 %v2567_v40  ;;  %v2419_v58 = vadd.f32 %v5587_v56, %v2387_v18  ;;  %v3408_v18 = vld [vmem:[%s3527_s22 + $0x8] sm:$0xff] }
 0x231   : > { %v3389_v63 = vpop.eup %3388  ;;  %3216 = vmatprep.mubr.msk.bf16.mxu1 %vm6021_vm0, %v6020_v13  ;;  %v2614_v8 = vadd.f32 1.0, %v3387_v32  ;;  %v2468_v57 = vmul.f32 0.044715, %v2418_v30  ;;  %v2420_v22 = vadd.f32 %v5587_v56, %v2388_v43  ;;  %v2443_v45 = vmul.f32 0.5, %v2418_v30 }
 0x232   : > { %v2615_v39 = vadd.f32 1.0, %v3389_v63  ;;  %v2469_v53 = vmul.f32 0.044715, %v2419_v58  ;;  %v2444_v10 = vmul.f32 0.5, %v2419_v58 }
 0x233   : > { %v2493_v55 = vmul.f32 %v2468_v57, %v2418_v30  ;;  %v2470_v23 = vmul.f32 0.044715, %v2420_v22  ;;  %v2639_v19 = vmul.f32 %v2614_v8, %v2439_v33  ;;  %v2445_v4 = vmul.f32 0.5, %v2420_v22  ;;  %v3409_v33 = vld [vmem:[%s3527_s22 + $0x10] sm:$0xff] }
 0x234   : > { %v2640_v35 = vmul.f32 %v2615_v39, %v2440_v1  ;;  %v2494_v15 = vmul.f32 %v2469_v53, %v2419_v58  ;;  %v3410_v53 = vld [vmem:[%s3527_s22 + $0x18] sm:$0xff] }
 0x235   : > { %v2518_v50 = vmul.f32 %v2493_v55, %v2418_v30  ;;  %v2495_v44 = vmul.f32 %v2470_v23, %v2420_v22 }
 0x236   : > { %v2655_v42 = vpack.c.bf16 %v2640_v35, %v2639_v19  ;;  %v2519_v24 = vmul.f32 %v2494_v15, %v2419_v58 }
 0x237   : > { %v2543_v47 = vadd.f32 %v2518_v50, %v2418_v30  ;;  %v2520_v21 = vmul.f32 %v2495_v44, %v2420_v22 }
 0x238   : > { %3217 = vmatmul.mubr.msk.bf16.gmra.mrb[36].mxu1 %vm6088_vm12, %v2655_v42  ;;  %v2544_v56 = vadd.f32 %v2519_v24, %v2419_v58  ;;  %v3411_v24 = vld [vmem:[%s3527_s22 + $0x20] sm:$0xff] }
 0x239   : > { %v3391_v2 = vpop.eup %3390  ;;  %3220 = vmatprep.mubr.msk.bf16.mxu1 %vm6021_vm0, %v6020_v13  ;;  %v2568_v62 = vmul.f32 0.7978846, %v2543_v47  ;;  %v2545_v6 = vadd.f32 %v2520_v21, %v2420_v22 }
 0x23a   : > { %v3393_v12 = vpop.eup %3392  ;;  %v2616_v14 = vadd.f32 1.0, %v3391_v2  ;;  %v2569_v0 = vmul.f32 0.7978846, %v2544_v56  ;;  %v3412_v56 = vld [vmem:[%s3527_s22 + $0x28] sm:$0xff] }
 0x23b   : > { %v2617_v37 = vadd.f32 1.0, %v3393_v12  ;;  %3394 = vtanh.f32 %v2568_v62  ;;  %v2570_v46 = vmul.f32 0.7978846, %v2545_v6 }
 0x23c   : > { %3396 = vtanh.f32 %v2569_v0  ;;  %v2641_v25 = vmul.f32 %v2616_v14, %v2441_v54 }
 0x23d   : > { %v2642_v51 = vmul.f32 %v2617_v37, %v2442_v3  ;;  %3398 = vtanh.f32 %v2570_v46  ;;  %v3413_v37 = vld [vmem:[%s3527_s22 + $0x30] sm:$0xff] }
 0x23f   : > { %v2656_v34 = vpack.c.bf16 %v2642_v51, %v2641_v25  ;;  %v3414_v51 = vld [vmem:[%s3527_s22 + $0x38] sm:$0xff] }
 0x241   : > { %3221 = vmatmul.mubr.msk.bf16.gmra.mrb[40].mxu1 %vm6089_vm5, %v2656_v34 }
 0x242   : > { %3224 = vmatprep.mubr.msk.bf16.mxu1 %vm6021_vm0, %v6020_v13 }
 0x245   : > { %v3395_v59 = vpop.eup %3394 }
 0x246   : > { %v3397_v5 = vpop.eup %3396  ;;  %v2618_v7 = vadd.f32 1.0, %v3395_v59 }
 0x247   : > { %v2619_v20 = vadd.f32 1.0, %v3397_v5  ;;  %v3399_v9 = vpop.eup %3398 }
 0x248   : > { %v2643_v48 = vmul.f32 %v2618_v7, %v2443_v45  ;;  %v2620_v16 = vadd.f32 1.0, %v3399_v9 }
 0x249   : > { %v2644_v31 = vmul.f32 %v2619_v20, %v2444_v10 }
 0x24a   : > { %v2645_v36 = vmul.f32 %v2620_v16, %v2445_v4  ;;  %v3416_v16 = vld [vmem:[%s3527_s22 + $0x48] sm:$0xff] }
 0x24b   : > { %v2657_v61 = vpack.c.bf16 %v2644_v31, %v2643_v48  ;;  %v3415_v48 = vld [vmem:[%s3527_s22 + $0x40] sm:$0xff] }
 0x24c   : > { %v2658_v38 = vpack.c.bf16 %v2645_v36, %v2645_v36 }
 0x24d   : > { %3225 = vmatmul.mubr.msk.bf16.gmra.mrb[44].mxu1 %vm6090_vm2, %v2657_v61 }
 0x24e   : > { %3228 = vmatprep.mubr.msk.bf16.mxu1 %vm6021_vm0, %v6020_v13  ;;  %vm6092_vm0 = vcmask 261120  }
 0x24f   : > { %vm6093_vm8 = vmmov %vm6092_vm0 }
 0x250   : > { %vm6094_vm13 = vmmov %vm6092_vm0 }
 0x251   : > { %vm6095_vm3 = vmmov %vm6092_vm0 }
 0x252   : > { %vm6096_vm10 = vmmov %vm6092_vm0 }
 0x253   : > { %vm6097_vm4 = vmmov %vm6092_vm0 }
 0x254   : > { %vm6098_vm6 = vmmov %vm6092_vm0 }
 0x255   : > { %3229 = vmatmul.mubr.msk.bf16.gmra.mrb[48].mxu1 %vm6091_vm1, %v2658_v38  ;;  %vm6099_vm7 = vmmov %vm6092_vm0 }
 0x256   : > { %vm6100_vm15 = vmmov %vm6092_vm0 }
 0x257   : > { %vm6101_vm9 = vmmov %vm6092_vm0 }
 0x258   : > { %vm6102_vm11 = vmmov %vm6092_vm0 }
 0x259   : > { %vm6103_vm14 = vmmov %vm6092_vm0 }
 0x25a   : > { %vm6104_vm12 = vmmov %vm6092_vm0 }
 0x25b   : > { %vm6105_vm5 = vmmov %vm6092_vm0 }
 0x25c   : > { %vm6106_vm2 = vmmov %vm6092_vm0 }
 0x25d   : > { %vm6107_vm1 = vmmov %vm6092_vm0 }
 0x2a3   : > { %v2764_v28 = vpop.f32.mrb[0].mxu1 }
 0x2a4   : > { %v2873_v29 = vmul.f32 %v5650_v52, %v2764_v28  ;;  %v3182_v27 = vpop.f32.mrb[1].mxu1 }
 0x2a5   : > { %v2767_v13 = vpop.f32.mrb[2].mxu1 }
 0x2a6   : > { %v2905_v26 = vadd.f32 %v5655_v60, %v2873_v29  ;;  %v2874_v41 = vmul.f32 %v5650_v52, %v2767_v13  ;;  %v3183_v11 = vpop.f32.mrb[3].mxu1 }
 0x2a8   : > { %v2930_v49 = vadd.f32 %v3407_v17, %v2905_v26  ;;  %v2906_v40 = vadd.f32 %v5655_v60, %v2874_v41  ;;  %v3417_v41 = vld [vmem:[%s3527_s22 + $0x50] sm:$0xff] }
 0x2aa   : > { %2955 = vst.msk [vmem:[%s5665_s11] sm:$0xff] %vm6092_vm0, %v2930_v49  ;;  %v2931_v30 = vadd.f32 %v3408_v18, %v2906_v40  ;;  %v3418_v49 = vld [vmem:[%s3527_s22 + $0x58] sm:$0xff] }
 0x2ac   : > { %2956 = vst.msk [vmem:[%s5665_s11 + $0x8] sm:$0xff] %vm6093_vm8, %v2931_v30  ;;  %vm6108_vm8 = vmmov %vm6092_vm0 }
 0x2bf   : > { %v2772_v43 = vpop.f32.mrb[4].mxu1 }
 0x2c0   : > { %v2875_v32 = vmul.f32 %v5650_v52, %v2772_v43  ;;  %v3186_v58 = vpop.f32.mrb[5].mxu1 }
 0x2c1   : > { %v2775_v63 = vpop.f32.mrb[6].mxu1 }
 0x2c2   : > { %v2907_v8 = vadd.f32 %v5655_v60, %v2875_v32  ;;  %v2876_v57 = vmul.f32 %v5650_v52, %v2775_v63  ;;  %v3187_v22 = vpop.f32.mrb[7].mxu1 }
 0x2c4   : > { %v2932_v1 = vadd.f32 %v3409_v33, %v2907_v8  ;;  %v2908_v39 = vadd.f32 %v5655_v60, %v2876_v57  ;;  %v3419_v57 = vld [vmem:[%s3527_s22 + $0x60] sm:$0xff] }
 0x2c6   : > { %2957 = vst.msk [vmem:[%s5665_s11 + $0x10] sm:$0xff] %vm6094_vm13, %v2932_v1  ;;  %v2933_v55 = vadd.f32 %v3410_v53, %v2908_v39  ;;  %v3420_v1 = vld [vmem:[%s3527_s22 + $0x68] sm:$0xff]  ;;  %vm6109_vm13 = vmmov %vm6092_vm0 }
 0x2c8   : > { %2958 = vst.msk [vmem:[%s5665_s11 + $0x18] sm:$0xff] %vm6095_vm3, %v2933_v55  ;;  %vm6110_vm3 = vmmov %vm6092_vm0 }
 0x2cb   : > { %v2780_v23 = vpop.f32.mrb[8].mxu1 }
 0x2cc   : > { %v2877_v19 = vmul.f32 %v5650_v52, %v2780_v23  ;;  %v3190_v35 = vpop.f32.mrb[9].mxu1 }
 0x2cd   : > { %v2783_v15 = vpop.f32.mrb[10].mxu1 }
 0x2ce   : > { %v2909_v50 = vadd.f32 %v5655_v60, %v2877_v19  ;;  %v2878_v44 = vmul.f32 %v5650_v52, %v2783_v15  ;;  %v3191_v42 = vpop.f32.mrb[11].mxu1 }
 0x2d0   : > { %v2934_v47 = vadd.f32 %v3411_v24, %v2909_v50  ;;  %v2910_v21 = vadd.f32 %v5655_v60, %v2878_v44  ;;  %v3421_v44 = vld [vmem:[%s3527_s22 + $0x70] sm:$0xff] }
 0x2d2   : > { %2959 = vst.msk [vmem:[%s5665_s11 + $0x20] sm:$0xff] %vm6096_vm10, %v2934_v47  ;;  %v2935_v2 = vadd.f32 %v3412_v56, %v2910_v21  ;;  %v3422_v47 = vld [vmem:[%s3527_s22 + $0x78] sm:$0xff]  ;;  %vm6111_vm10 = vmmov %vm6092_vm0 }
 0x2d3   : > { %v2788_v62 = vpop.f32.mrb[12].mxu1 }
 0x2d4   : > { %2960 = vst.msk [vmem:[%s5665_s11 + $0x28] sm:$0xff] %vm6097_vm4, %v2935_v2  ;;  %v2879_v6 = vmul.f32 %v5650_v52, %v2788_v62  ;;  %v3194_v12 = vpop.f32.mrb[13].mxu1  ;;  %vm6112_vm4 = vmmov %vm6092_vm0 }
 0x2d5   : > { %v2791_v54 = vpop.f32.mrb[14].mxu1 }
 0x2d6   : > { %v2911_v14 = vadd.f32 %v5655_v60, %v2879_v6  ;;  %v2880_v0 = vmul.f32 %v5650_v52, %v2791_v54  ;;  %v3195_v3 = vpop.f32.mrb[15].mxu1 }
 0x2d8   : > { %v2936_v46 = vadd.f32 %v3413_v37, %v2911_v14  ;;  %v2912_v25 = vadd.f32 %v5655_v60, %v2880_v0  ;;  %v3423_v0 = vld [vmem:[%s3527_s22 + $0x80] sm:$0xff] }
 0x2da   : > { %2961 = vst.msk [vmem:[%s5665_s11 + $0x30] sm:$0xff] %vm6098_vm6, %v2936_v46  ;;  %v2937_v34 = vadd.f32 %v3414_v51, %v2912_v25  ;;  %v3424_v46 = vld [vmem:[%s3527_s22 + $0x88] sm:$0xff]  ;;  %vm6113_vm6 = vmmov %vm6092_vm0 }
 0x2db   : > { %v2796_v59 = vpop.f32.mrb[16].mxu1 }
 0x2dc   : > { %2962 = vst.msk [vmem:[%s5665_s11 + $0x38] sm:$0xff] %vm6099_vm7, %v2937_v34  ;;  %v2881_v5 = vmul.f32 %v5650_v52, %v2796_v59  ;;  %v3198_v7 = vpop.f32.mrb[17].mxu1  ;;  %vm6114_vm7 = vmmov %vm6092_vm0 }
 0x2dd   : > { %v2799_v45 = vpop.f32.mrb[18].mxu1 }
 0x2de   : > { %v2913_v10 = vadd.f32 %v5655_v60, %v2881_v5  ;;  %v2882_v20 = vmul.f32 %v5650_v52, %v2799_v45  ;;  %v3199_v9 = vpop.f32.mrb[19].mxu1 }
 0x2e0   : > { %v2938_v31 = vadd.f32 %v3415_v48, %v2913_v10  ;;  %v2914_v61 = vadd.f32 %v5655_v60, %v2882_v20  ;;  %v3425_v20 = vld [vmem:[%s3527_s22 + $0x90] sm:$0xff] }
 0x2e2   : > { %2963 = vst.msk [vmem:[%s5665_s11 + $0x40] sm:$0xff] %vm6100_vm15, %v2938_v31  ;;  %v2939_v4 = vadd.f32 %v3416_v16, %v2914_v61  ;;  %v3426_v31 = vld [vmem:[%s3527_s22 + $0x98] sm:$0xff]  ;;  %vm2979_vm15 = vcmask 257024  }
 0x2e4   : > { %2964 = vst.msk [vmem:[%s5665_s11 + $0x48] sm:$0xff] %vm6101_vm9, %v2939_v4 }
 0x2e8   : > { %v2804_v36 = vpop.f32.mrb[20].mxu1 }
 0x2e9   : > { %v2883_v38 = vmul.f32 %v5650_v52, %v2804_v36  ;;  %v3202_v28 = vpop.f32.mrb[21].mxu1 }
 0x2ea   : > { %v2807_v29 = vpop.f32.mrb[22].mxu1 }
 0x2eb   : > { %v2915_v27 = vadd.f32 %v5655_v60, %v2883_v38  ;;  %v2884_v13 = vmul.f32 %v5650_v52, %v2807_v29  ;;  %v3203_v26 = vpop.f32.mrb[23].mxu1 }
 0x2ed   : > { %v2940_v11 = vadd.f32 %v3417_v41, %v2915_v27  ;;  %v2916_v17 = vadd.f32 %v5655_v60, %v2884_v13  ;;  %v3427_v13 = vld [vmem:[%s3527_s22 + $0xa0] sm:$0xff] }
 0x2ef   : > { %2965 = vst.msk [vmem:[%s5665_s11 + $0x50] sm:$0xff] %vm6102_vm11, %v2940_v11  ;;  %v2941_v40 = vadd.f32 %v3418_v49, %v2916_v17  ;;  %v3428_v11 = vld [vmem:[%s3527_s22 + $0xa8] sm:$0xff] }
 0x2f0   : > { %v2812_v18 = vpop.f32.mrb[24].mxu1 }
 0x2f1   : > { %2966 = vst.msk [vmem:[%s5665_s11 + $0x58] sm:$0xff] %vm6103_vm14, %v2941_v40  ;;  %v2885_v30 = vmul.f32 %v5650_v52, %v2812_v18  ;;  %v3206_v43 = vpop.f32.mrb[25].mxu1 }
 0x2f2   : > { %v2815_v32 = vpop.f32.mrb[26].mxu1 }
 0x2f3   : > { %v2917_v58 = vadd.f32 %v5655_v60, %v2885_v30  ;;  %v2886_v63 = vmul.f32 %v5650_v52, %v2815_v32  ;;  %v3207_v8 = vpop.f32.mrb[27].mxu1 }
 0x2f5   : > { %v2942_v22 = vadd.f32 %v3419_v57, %v2917_v58  ;;  %v2918_v33 = vadd.f32 %v5655_v60, %v2886_v63  ;;  %v3429_v63 = vld [vmem:[%s3527_s22 + $0xb0] sm:$0xff] }
 0x2f7   : > { %2967 = vst.msk [vmem:[%s5665_s11 + $0x60] sm:$0xff] %vm6104_vm12, %v2942_v22  ;;  %v2943_v39 = vadd.f32 %v3420_v1, %v2918_v33  ;;  %v3430_v22 = vld [vmem:[%s3527_s22 + $0xb8] sm:$0xff] }
 0x2f8   : > { %v2820_v53 = vpop.f32.mrb[28].mxu1 }
 0x2f9   : > { %2968 = vst.msk [vmem:[%s5665_s11 + $0x68] sm:$0xff] %vm6105_vm5, %v2943_v39  ;;  %v2887_v55 = vmul.f32 %v5650_v52, %v2820_v53  ;;  %v3210_v23 = vpop.f32.mrb[29].mxu1 }
 0x2fa   : > { %v2823_v19 = vpop.f32.mrb[30].mxu1 }
 0x2fb   : > { %v2919_v35 = vadd.f32 %v5655_v60, %v2887_v55  ;;  %v2888_v15 = vmul.f32 %v5650_v52, %v2823_v19  ;;  %v3211_v50 = vpop.f32.mrb[31].mxu1 }
 0x2fd   : > { %v2944_v42 = vadd.f32 %v3421_v44, %v2919_v35  ;;  %v2920_v24 = vadd.f32 %v5655_v60, %v2888_v15  ;;  %v3431_v35 = vld [vmem:[%s3527_s22 + $0xc0] sm:$0xf] }
 0x2ff   : > { %2969 = vst.msk [vmem:[%s5665_s11 + $0x70] sm:$0xff] %vm6106_vm2, %v2944_v42  ;;  %v2945_v21 = vadd.f32 %v3422_v47, %v2920_v24 }
 0x301   : > { %2970 = vst.msk [vmem:[%s5665_s11 + $0x78] sm:$0xff] %vm6107_vm1, %v2945_v21 }
 0x303   : > { %v2828_v56 = vpop.f32.mrb[32].mxu1 }
 0x304   : > { %v2889_v2 = vmul.f32 %v5650_v52, %v2828_v56  ;;  %v3214_v62 = vpop.f32.mrb[33].mxu1 }
 0x305   : > { %v2831_v6 = vpop.f32.mrb[34].mxu1 }
 0x306   : > { %v2921_v12 = vadd.f32 %v5655_v60, %v2889_v2  ;;  %v2890_v54 = vmul.f32 %v5650_v52, %v2831_v6  ;;  %v3215_v14 = vpop.f32.mrb[35].mxu1 }
 0x308   : > { %v2946_v3 = vadd.f32 %v3423_v0, %v2921_v12  ;;  %v2922_v37 = vadd.f32 %v5655_v60, %v2890_v54 }
 0x30a   : > { %2971 = vst.msk [vmem:[%s5665_s11 + $0x80] sm:$0xff] %vm6092_vm0, %v2946_v3  ;;  %v2947_v25 = vadd.f32 %v3424_v46, %v2922_v37 }
 0x30b   : > { %v2836_v51 = vpop.f32.mrb[36].mxu1 }
 0x30c   : > { %2972 = vst.msk [vmem:[%s5665_s11 + $0x88] sm:$0xff] %vm6108_vm8, %v2947_v25  ;;  %v2891_v34 = vmul.f32 %v5650_v52, %v2836_v51  ;;  %v3218_v59 = vpop.f32.mrb[37].mxu1 }
 0x30d   : > { %v2839_v5 = vpop.f32.mrb[38].mxu1 }
 0x30e   : > { %v2923_v7 = vadd.f32 %v5655_v60, %v2891_v34  ;;  %v2892_v45 = vmul.f32 %v5650_v52, %v2839_v5  ;;  %v3219_v10 = vpop.f32.mrb[39].mxu1 }
 0x310   : > { %v2948_v9 = vadd.f32 %v3425_v20, %v2923_v7  ;;  %v2924_v48 = vadd.f32 %v5655_v60, %v2892_v45 }
 0x312   : > { %2973 = vst.msk [vmem:[%s5665_s11 + $0x90] sm:$0xff] %vm6109_vm13, %v2948_v9  ;;  %v2949_v61 = vadd.f32 %v3426_v31, %v2924_v48 }
 0x314   : > { %2974 = vst.msk [vmem:[%s5665_s11 + $0x98] sm:$0xff] %vm6110_vm3, %v2949_v61  ;;  %v2844_v16 = vpop.f32.mrb[40].mxu1 }
 0x315   : > { %v2893_v4 = vmul.f32 %v5650_v52, %v2844_v16  ;;  %v3222_v36 = vpop.f32.mrb[41].mxu1 }
 0x316   : > { %v2847_v38 = vpop.f32.mrb[42].mxu1 }
 0x317   : > { %v2925_v28 = vadd.f32 %v5655_v60, %v2893_v4  ;;  %v2894_v29 = vmul.f32 %v5650_v52, %v2847_v38  ;;  %v3223_v27 = vpop.f32.mrb[43].mxu1 }
 0x319   : > { %v2950_v26 = vadd.f32 %v3427_v13, %v2925_v28  ;;  %v2926_v41 = vadd.f32 %v5655_v60, %v2894_v29 }
 0x31b   : > { %2975 = vst.msk [vmem:[%s5665_s11 + $0xa0] sm:$0xff] %vm6111_vm10, %v2950_v26  ;;  %v2951_v17 = vadd.f32 %v3428_v11, %v2926_v41 }
 0x31d   : > { %2976 = vst.msk [vmem:[%s5665_s11 + $0xa8] sm:$0xff] %vm6112_vm4, %v2951_v17 }
 0x320   : > { %v2852_v49 = vpop.f32.mrb[44].mxu1 }
 0x321   : > { %v2895_v40 = vmul.f32 %v5650_v52, %v2852_v49  ;;  %v3226_v18 = vpop.f32.mrb[45].mxu1 }
 0x322   : > { %v2855_v30 = vpop.f32.mrb[46].mxu1 }
 0x323   : > { %v2927_v43 = vadd.f32 %v5655_v60, %v2895_v40  ;;  %v2896_v32 = vmul.f32 %v5650_v52, %v2855_v30  ;;  %v3227_v58 = vpop.f32.mrb[47].mxu1 }
 0x325   : > { %v2952_v8 = vadd.f32 %v3429_v63, %v2927_v43  ;;  %v2928_v57 = vadd.f32 %v5655_v60, %v2896_v32 }
 0x327   : > { %2977 = vst.msk [vmem:[%s5665_s11 + $0xb0] sm:$0xff] %vm6113_vm6, %v2952_v8  ;;  %v2953_v33 = vadd.f32 %v3430_v22, %v2928_v57 }
 0x328   : > { %v2860_v1 = vpop.f32.mrb[48].mxu1 }
 0x329   : > { %2978 = vst.msk [vmem:[%s5665_s11 + $0xb8] sm:$0xff] %vm6114_vm7, %v2953_v33  ;;  %v2897_v39 = vmul.f32 %v5650_v52, %v2860_v1  ;;  %v3230_v53 = vpop.f32.mrb[49].mxu1 }
 0x32a   : > { %v2863_v55 = vpop.f32.mrb[50].mxu1 }
 0x32b   : > { %v2929_v23 = vadd.f32 %v5655_v60, %v2897_v39  ;;  %v3231_v19 = vpop.f32.mrb[51].mxu1 }
 0x32d   : > { %v2954_v15 = vadd.f32 %v3431_v35, %v2929_v23 }
 0x32f   : > { %2980 = vst.msk [vmem:[%s5665_s11 + $0xc0] sm:$0xf] %vm2979_vm15, %v2954_v15 }
 0x330 PF: > { %s20_s13 = sadd.s32 1, %s3438_s13  }
 0x331   : > { %p17_p4 = scmp.ge.s32.totalorder %s20_s13, 4  }
 0x333   :  { %19 = sbr.rel (!%p17_p4) target bundleno = 1 (0x1), region = 90 }

// kernel: sbcformer_block.11
= control target key start
LH: loop header
LB: loop body
LE: loop exit
PB: predicated region body
PF: predicated region fallthrough
CT: control target
= control target key end

     0   :  { %s4259_s24 = smov 0   ;;  %s5449_s0 = inlined_call_operand.vmem [shape: f32[2,49,32], index: 0, kind: input, shape index: {}]   ;;  %s5450_s1 = inlined_call_operand.vmem [shape: f32[1,32], index: 1, kind: input, shape index: {}]   ;;  %s5451_s2 = inlined_call_operand.vmem [shape: f32[1,32], index: 2, kind: input, shape index: {}]   ;;  %s5452_s3 = inlined_call_operand.vmem [shape: bf16[32,128], index: 3, kind: input, shape index: {}]   ;;  %s5453_s4 = inlined_call_operand.vmem [shape: f32[1,128], index: 4, kind: input, shape index: {}]   ;;  %s5454_s5 = inlined_call_operand.vmem [shape: f32[9,64], index: 5, kind: input, shape index: {}]   ;;  %s5455_s6 = inlined_call_operand.vmem [shape: f32[1,64], index: 6, kind: input, shape index: {}]   ;;  %s5456_s7 = inlined_call_operand.vmem [shape: f32[1,64], index: 7, kind: input, shape index: {}]   ;;  %s5457_s8 = inlined_call_operand.vmem [shape: bf16[64,32], index: 8, kind: input, shape index: {}]   ;;  %s5458_s9 = inlined_call_operand.vmem [shape: f32[1,32], index: 9, kind: input, shape index: {}]   ;;  %s5459_s10 = inlined_call_operand.vmem [shape: f32[4,49,49], index: 10, kind: input, shape index: {}]   ;;  %s5460_s11 = inlined_call_operand.vmem [shape: f32[1,32], index: 11, kind: input, shape index: {}]   ;;  %s5461_s12 = inlined_call_operand.vmem [shape: f32[1,32], index: 12, kind: input, shape index: {}]   ;;  %s5462_s13 = inlined_call_operand.vmem [shape: bf16[32,64], index: 13, kind: input, shape index: {}]   ;;  %s5463_s14 = inlined_call_operand.vmem [shape: f32[1,64], index: 14, kind: input, shape index: {}]   ;;  %s5464_s15 = inlined_call_operand.vmem [shape: bf16[64,32], index: 15, kind: input, shape index: {}]   ;;  %s5465_s16 = inlined_call_operand.vmem [shape: f32[1,32], index: 16, kind: input, shape index: {}]   ;;  %s5466_s17 = inlined_call_operand.vmem [shape: f32[2,49,32], index: 17, kind: output, shape index: {}]  }
   0x1   :  { %5485 = sst [smem:[#allocation9_spill]] %s5449_s0 }
   0x2   :  { %5486 = sst [smem:[#allocation10_spill]] %s5450_s1 }
   0x3 LB: > { %s3472_s25 = sadd.s32 4294967295, %s4154_s24   ;;  %p3476_p0 = scmp.ge.s32.totalorder %s4154_s24, 1  ;;  %s4154_s24 = sphi %s4259_s24, %s27_s24  }
   0x4   : > { %p487_p1 = scmp.lt.s32.totalorder %s4154_s24, 3 }
   0x6   : > { %p488_p2 = pnand %p3476_p0, %p487_p1 }
   0x8   : > { %491 = sbr.rel (%p488_p2) target bundleno = 3692 (0xe6c), region = 88 }
   0xf   : > { %p539_p3 = scmp.lt.s32.totalorder %s3472_s25, 1  ;;  %vm5469_vm0 = vcmask 261120   ;;  %s5487_s29 = sld [smem:[#allocation9_spill]]  ;;  %vm5468_vm1 = vcmask 253952   ;;  %v3961_v49 = vld [vmem:[%s5452_s3] sm:$0xff]   ;;  %v3962_v50 = vld [vmem:[%s5452_s3 + $0x8] sm:$0xff]  }
  0x10   : > { %3689 = vmatprep.subr.bf16.mxu0 %v3961_v49  ;;  %s5488_s22 = sld [smem:[#allocation10_spill]]  ;;  %vm5470_vm2 = vcmask 64512   ;;  %s4156_s19 = smov 96   ;;  %vm5467_vm3 = vcmask 523264   ;;  %vm819_vm6 = vcmask 516096  }
  0x11   : > { %s5570_s25 = smov (!%p539_p3, %s3472_s25), 1  ;;  %3690 = vmatpush3.bf16.msra.mxu0 %v3961_v49  ;;  %s4158_s1 = smov 64  }
  0x12   : > { %s3925_s26 = smul.u32 56, %s5570_s25  ;;  %3691 = vmatprep.subr.bf16.mxu0 %v3962_v50  ;;  %s4161_s20 = smov 120  }
  0x13   : > { %s4162_s21 = smov 80   ;;  %s4165_s30 = smov 72  }
  0x14   : > { %s4166_s18 = smov 104   ;;  %s4167_s28 = smov 32  }
  0x15   : > { %s4275_s0 = scalar_lea.vmem %s5487_s29, %s3925_s26  ;;  %3692 = vmatpush3.bf16.msra.mxu0 %v3962_v50  ;;  %s4164_s29 = smov 48  }
  0x16   : > { %v550_v0 = vld [vmem:[%s4275_s0] sm:$0xff]  ;;  %v552_v1 = vld [vmem:[%s4275_s0 + $0x10] sm:$0xff]  ;;  %v551_v2 = vld [vmem:[%s4275_s0 + $0x8] sm:$0xff]  ;;  %s548_s23 = scalar_lea.vmem %s5466_s17, %s3925_s26 }
  0x17   : > { %v560_v3 = vsel %vm5469_vm0, %v550_v0, 0.0  ;;  %v566_v4 = vsel %vm5469_vm0, %v552_v1, 0.0  ;;  %v553_v5 = vld [vmem:[%s4275_s0 + $0x18] sm:$0xff]  ;;  %v563_v6 = vsel %vm5469_vm0, %v551_v2, 0.0  ;;  %v554_v7 = vld [vmem:[%s4275_s0 + $0x20] sm:$0xff]  ;;  %v555_v9 = vld [vmem:[%s4275_s0 + $0x28] sm:$0xff] }
  0x18   : > { %561 = vadd.xlane.f32.xlu0 %v560_v3  ;;  %567 = vadd.xlane.f32.xlu1 %v566_v4  ;;  %v569_v8 = vsel %vm5469_vm0, %v553_v5, 0.0  ;;  %v572_v10 = vsel %vm5469_vm0, %v554_v7, 0.0  ;;  %v575_v11 = vsel %vm5469_vm0, %v555_v9, 0.0  ;;  %v556_v12 = vld [vmem:[%s4275_s0 + $0x30] sm:$0x1] }
  0x19   : > { %v579_v13 = vsel %vm5468_vm1, %v556_v12, 0.0 }
  0x1c   : > { %564 = vadd.xlane.f32.xlu0 %v563_v6  ;;  %570 = vadd.xlane.f32.xlu1 %v569_v8 }
  0x20   : > { %573 = vadd.xlane.f32.xlu0 %v572_v10  ;;  %576 = vadd.xlane.f32.xlu1 %v575_v11  ;;  %v3479_v10 = vld [vmem:[%s5488_s22] ss:$0 sm:$0xff]  ;;  %s4163_s22 = smov 112  }
  0x24   : > { %580 = vadd.xlane.f32.xlu0 %v579_v13 }
  0xa5   : > { %v562_v14 = vpop.xlane.xlu0 %561  ;;  %v568_v15 = vpop.xlane.xlu1 %567 }
  0xa6   : > { %v583_v16 = vmul.f32 0.03125, %v562_v14  ;;  %v585_v17 = vmul.f32 0.03125, %v568_v15  ;;  %v3480_v14 = vld [vmem:[%s5451_s2] ss:$0 sm:$0xff] }
  0xa8   : > { %v4291_v18 = vsub.f32 %v550_v0, %v583_v16  ;;  %v4293_v19 = vsub.f32 %v552_v1, %v585_v17 }
  0xa9   : > { %v565_v20 = vpop.xlane.xlu0 %564  ;;  %v571_v21 = vpop.xlane.xlu1 %570 }
  0xaa   : > { %v584_v22 = vmul.f32 0.03125, %v565_v20  ;;  %v586_v23 = vmul.f32 0.03125, %v571_v21  ;;  %v597_v24 = vmul.f32 %v4291_v18, %v4291_v18  ;;  %v599_v25 = vmul.f32 %v4293_v19, %v4293_v19 }
  0xac   : > { %v4299_v26 = vsub.f32 %v551_v2, %v584_v22  ;;  %v4301_v27 = vsub.f32 %v553_v5, %v586_v23  ;;  %v604_v28 = vsel %vm5469_vm0, %v597_v24, 0.0  ;;  %v610_v31 = vsel %vm5469_vm0, %v599_v25, 0.0 }
  0xad   : > { %605 = vadd.xlane.f32.xlu1 %v604_v28  ;;  %v574_v29 = vpop.xlane.xlu0 %573  ;;  %v577_v30 = vpop.xlane.xlu1 %576 }
  0xae   : > { %v587_v32 = vmul.f32 0.03125, %v574_v29  ;;  %v588_v33 = vmul.f32 0.03125, %v577_v30  ;;  %v598_v34 = vmul.f32 %v4299_v26, %v4299_v26  ;;  %v600_v35 = vmul.f32 %v4301_v27, %v4301_v27 }
  0xb0   : > { %v4309_v36 = vsub.f32 %v554_v7, %v587_v32  ;;  %v4311_v37 = vsub.f32 %v555_v9, %v588_v33  ;;  %v607_v38 = vsel %vm5469_vm0, %v598_v34, 0.0  ;;  %v613_v41 = vsel %vm5469_vm0, %v600_v35, 0.0 }
  0xb1   : > { %611 = vadd.xlane.f32.xlu1 %v610_v31  ;;  %608 = vadd.xlane.f32.xlu0 %v607_v38  ;;  %v581_v39 = vpop.xlane.xlu0 %580 }
  0xb2   : > { %v589_v40 = vmul.f32 0.03125, %v581_v39  ;;  %v601_v42 = vmul.f32 %v4309_v36, %v4309_v36  ;;  %v602_v43 = vmul.f32 %v4311_v37, %v4311_v37 }
  0xb4   : > { %v4319_v44 = vsub.f32 %v556_v12, %v589_v40  ;;  %v616_v45 = vsel %vm5469_vm0, %v601_v42, 0.0  ;;  %v619_v46 = vsel %vm5469_vm0, %v602_v43, 0.0  ;;  %v821_v43 = vlaneseq }
  0xb5   : > { %614 = vadd.xlane.f32.xlu0 %v613_v41  ;;  %617 = vadd.xlane.f32.xlu1 %v616_v45 }
  0xb6   : > { %v603_v47 = vmul.f32 %v4319_v44, %v4319_v44  ;;  %v4352_v45 = vshrl.u32 %v821_v43, 7 }
  0xb8   : > { %v622_v48 = vsel %vm5468_vm1, %v603_v47, 0.0 }
  0xb9   : > { %620 = vadd.xlane.f32.xlu0 %v619_v46  ;;  %623 = vadd.xlane.f32.xlu1 %v622_v48 }
 0x13a   : > { %v606_v51 = vpop.xlane.xlu1 %605 }
 0x13b   : > { %v625_v52 = vmul.f32 0.03125, %v606_v51 }
 0x13d   : > { %v632_v53 = vadd.f32 1e-06, %v625_v52 }
 0x13e   : > { %v612_v54 = vpop.xlane.xlu1 %611  ;;  %v609_v55 = vpop.xlane.xlu0 %608 }
 0x13f   : > { %3973 = vrsqrt.f32 %v632_v53  ;;  %v627_v56 = vmul.f32 0.03125, %v612_v54  ;;  %v626_v57 = vmul.f32 0.03125, %v609_v55  ;;  %v1129_v53 = vsub.s32 4, %v4352_v45  ;;  %v4370_v55 = vld [vmem:[%s5454_s5] sm:$0xff] }
 0x141   : > { %v634_v58 = vadd.f32 1e-06, %v627_v56  ;;  %v633_v59 = vadd.f32 1e-06, %v626_v57 }
 0x142   : > { %v618_v60 = vpop.xlane.xlu1 %617  ;;  %v615_v61 = vpop.xlane.xlu0 %614 }
 0x143   : > { %3975 = vrsqrt.f32 %v634_v58  ;;  %v629_v62 = vmul.f32 0.03125, %v618_v60  ;;  %v628_v63 = vmul.f32 0.03125, %v615_v61  ;;  %v1130_v58 = vrot.slane %v4370_v55, %v1129_v53 }
 0x144   : > { %3977 = vrsqrt.f32 %v633_v59  ;;  %v1111_v53 = vsub.s32 3, %v4352_v45 }
 0x145   : > { %v636_v0 = vadd.f32 1e-06, %v629_v62  ;;  %v635_v1 = vadd.f32 1e-06, %v628_v63  ;;  %v4157_v62 = vmov 0.0  }
 0x146   : > { %v624_v2 = vpop.xlane.xlu1 %623  ;;  %v621_v3 = vpop.xlane.xlu0 %620  ;;  %783 = vst.msk [vmem:[#allocation2] sm:$0xff] %vm5467_vm3, %v4157_v62  ;;  %784 = vst.msk [vmem:[#allocation2 + $0x39] sm:$0xff] %vm5467_vm3, %v4157_v62 }
 0x147   : > { %3979 = vrsqrt.f32 %v636_v0  ;;  %v631_v4 = vmul.f32 0.03125, %v624_v2  ;;  %v630_v5 = vmul.f32 0.03125, %v621_v3 }
 0x148   : > { %3981 = vrsqrt.f32 %v635_v1 }
 0x149   : > { %v3974_v6 = vpop.eup %3973  ;;  %v638_v7 = vadd.f32 1e-06, %v631_v4  ;;  %v637_v8 = vadd.f32 1e-06, %v630_v5  ;;  %v827_v4 = vadd.s32 40, %v4352_v45 }
 0x14a   : > { %v646_v9 = vmul.f32 %v3974_v6, %v4291_v18 }
 0x14b   : > { %3983 = vrsqrt.f32 %v638_v7 }
 0x14c   : > { %3985 = vrsqrt.f32 %v637_v8  ;;  %v659_v13 = vmul.f32 %v3479_v10, %v646_v9  ;;  %v4417_v7 = vmul.u32.u64.low 2454267026, %v827_v4  ;;  %v4418_v8 = vmul.u32.u64.high 2454267026, %v827_v4, %v4417_v7 }
 0x14d   : > { %v3976_v11 = vpop.eup %3975 }
 0x14e   : > { %v3978_v12 = vpop.eup %3977  ;;  %v648_v16 = vmul.f32 %v3976_v11, %v4293_v19  ;;  %v672_v21 = vadd.f32 %v3480_v14, %v659_v13  ;;  %v828_v11 = vadd.s32 48, %v4352_v45  ;;  %vm905_vm4 = vc.u32 %v4417_v7, 2454267026 }
 0x14f   : > { %v647_v15 = vmul.f32 %v3978_v12, %v4299_v26  ;;  %v4482_v7 = vrot.slane %v4370_v55, %v1111_v53 }
 0x150   : > { %v661_v24 = vmul.f32 %v3479_v10, %v648_v16  ;;  %v5474_v16 = vmov 0  }
 0x151   : > { %v3980_v17 = vpop.eup %3979  ;;  %v660_v20 = vmul.f32 %v3479_v10, %v647_v15 }
 0x152   : > { %v3982_v18 = vpop.eup %3981  ;;  %v650_v25 = vmul.f32 %v3980_v17, %v4309_v36  ;;  %v674_v26 = vadd.f32 %v3480_v14, %v661_v24  ;;  %v906_v17 = vsel %vm905_vm4, 1, %v5474_v16 }
 0x153   : > { %v673_v22 = vadd.f32 %v3480_v14, %v660_v20  ;;  %v649_v23 = vmul.f32 %v3982_v18, %v4301_v27  ;;  %v4427_v20 = vmul.u32.u64.low 2454267026, %v828_v11  ;;  %v4428_v18 = vmul.u32.u64.high 2454267026, %v828_v11, %v4427_v20 }
 0x154   : > { %v663_v34 = vmul.f32 %v3479_v10, %v650_v25  ;;  %v907_v24 = vadd.s32 %v4418_v8, %v906_v17 }
 0x155   : > { %v3984_v28 = vpop.eup %3983  ;;  %v679_v29 = vpack.c.bf16 %v673_v22, %v672_v21  ;;  %v662_v30 = vmul.f32 %v3479_v10, %v649_v23  ;;  %vm919_vm5 = vc.u32 %v4427_v20, 2454267026 }
 0x156   : > { %v3986_v31 = vpop.eup %3985  ;;  %v652_v32 = vmul.f32 %v3984_v28, %v4319_v44  ;;  %v676_v27 = vadd.f32 %v3480_v14, %v663_v34 }
 0x157   : > { %3693 = vmatprep.mubr.msk.bf16.mxu0 %vm5469_vm0, %v679_v29  ;;  %v675_v19 = vadd.f32 %v3480_v14, %v662_v30  ;;  %v651_v33 = vmul.f32 %v3986_v31, %v4311_v37  ;;  %v3481_v37 = vld [vmem:[%s5453_s4] ss:$0 sm:$0xff]  ;;  %v908_v31 = vshrl.u32 %v907_v24, 2 }
 0x158   : > { %v665_v39 = vmul.f32 %v3479_v10, %v652_v32  ;;  %v920_v32 = vsel %vm919_vm5, 1, %v5474_v16 }
 0x159   : > { %v680_v35 = vpack.c.bf16 %v675_v19, %v674_v26  ;;  %v664_v38 = vmul.f32 %v3479_v10, %v651_v33 }
 0x15a   : > { %v678_v41 = vadd.f32 %v3480_v14, %v665_v39 }
 0x15b   : > { %3694 = vmatmul.mubr.msk.bf16.vlgmr.msra.gmra.mrb[0].mxu0 %vm5469_vm0, %v680_v35  ;;  %v677_v36 = vadd.f32 %v3480_v14, %v664_v38  ;;  %v921_v35 = vadd.s32 %v4428_v18, %v920_v32  ;;  %v909_v38 = vmul.u32 7, %v908_v31 }
 0x15c   : > { %v682_v42 = vpack.c.bf16 %v678_v41, %v678_v41 }
 0x15d   : > { %v681_v40 = vpack.c.bf16 %v677_v36, %v676_v27  ;;  %v922_v27 = vshrl.u32 %v921_v35, 2  ;;  %v910_v36 = vsub.s32 %v827_v4, %v909_v38  ;;  %v823_v35 = vadd.s32 8, %v4352_v45 }
 0x15e   : > { %v824_v38 = vadd.s32 16, %v4352_v45 }
 0x15f   : > { %3697 = vmatprep.mubr.msk.bf16.mxu0 %vm5469_vm0, %v681_v40  ;;  %vm932_vm7 = vcmp.ne.s32.totalorder %v910_v36, 0  ;;  %vm939_vm8 = vcmp.lt.s32.totalorder %v910_v36, 0 }
 0x160   : > { %vm946_vm9 = vmand %vm939_vm8, %vm932_vm7 }
 0x163   : > { %3698 = vmatmul.mubr.msk.bf16.gmra.mrb[4].mxu0 %vm5469_vm0, %v682_v42  ;;  %v923_v42 = vmul.u32 7, %v922_v27 }
 0x22e   : > { %v3695_v44 = vpop.f32.mrb[0].mxu0 }
 0x22f   : > { %v752_v46 = vpop.f32.mrb[1].mxu0  ;;  %v4354_v48 = vadd.f32 %v3695_v44, %v3481_v37  ;;  %v953_v44 = vadd.s32 7, %v910_v36 }
 0x230   : > { %v3696_v47 = vpop.f32.mrb[2].mxu0  ;;  %v4358_v51 = vadd.f32 %v3481_v37, %v752_v46 }
 0x231   : > { %v4356_v49 = vadd.f32 %v3696_v47, %v3481_v37  ;;  %v755_v50 = vpop.f32.mrb[3].mxu0  ;;  %v4456_v46 = vsel %vm946_vm9, %v953_v44, %v910_v36  ;;  %v1008_v47 = vsub.s32 0, %v4352_v45  ;;  %v826_v36 = vadd.s32 32, %v4352_v45 }
 0x232   : > { %v4360_v52 = vadd.f32 %v3481_v37, %v755_v50  ;;  %v1033_v50 = vsub.s32 1, %v4352_v45  ;;  %vm5471_vm12 = vcmp.gt.s32.totalorder %v4456_v46, 0  ;;  %vm5472_vm14 = vcmp.lt.s32.totalorder %v4456_v46, 6 }
 0x233   : > { %v4365_v54 = vpack.c.bf16 %v4356_v49, %v4354_v48 }
 0x234   : > { %v4374_v56 = vpack.c.bf16 %v4360_v52, %v4358_v51 }
 0x235   : > { %5489 = vst [vmem:[#allocation3_spill] sm:$0xff] %v4365_v54  ;;  %1428 = vrot.lane.b32.xlu1 %v4365_v54, %s4156_s19 }
 0x236   : > { %5490 = vst [vmem:[#allocation4_spill] sm:$0xff] %v4374_v56  ;;  %1426 = vrot.lane.b32.xlu0 %v4374_v56, %s4156_s19  ;;  %v3699_v57 = vpop.f32.mrb[4].mxu0  ;;  %3709 = vmatprep.mubr.msk.bf16.mxu1 %vm5470_vm2, %v4374_v56 }
 0x237   : > { %v768_v59 = vpop.f32.mrb[5].mxu0  ;;  %v4388_v1 = vadd.f32 %v3699_v57, %v3481_v37 }
 0x238   : > { %v3700_v60 = vpop.f32.mrb[6].mxu0  ;;  %v4383_v63 = vadd.f32 %v3481_v37, %v768_v59  ;;  %v1079_v59 = vsub.s32 2, %v4352_v45 }
 0x239   : > { %v771_v61 = vpop.f32.mrb[7].mxu0  ;;  %5492 = vst [vmem:[#allocation6_spill] sm:$0xff] %v4388_v1  ;;  %v4399_v3 = vpack.c.bf16 %v4388_v1, %v4388_v1  ;;  %v4468_v60 = vrot.slane %v4370_v55, %v1008_v47 }
 0x23a   : > { %v4385_v0 = vadd.f32 %v3481_v37, %v771_v61  ;;  %1132 = vrot.lane.b32.xlu0 %v1130_v58, %s4158_s1  ;;  %v924_v37 = vsub.s32 %v828_v11, %v923_v42  ;;  %v825_v42 = vadd.s32 24, %v4352_v45 }
 0x23b   : > { %5494 = vst [vmem:[#allocation8_spill] sm:$0xff] %v4399_v3 }
 0x23c   : > { %5491 = vst [vmem:[#allocation5_spill] sm:$0xff] %v4385_v0  ;;  %v4392_v2 = vpack.c.bf16 %v4385_v0, %v4383_v63  ;;  %vm933_vm10 = vcmp.ne.s32.totalorder %v924_v37, 0  ;;  %vm940_vm11 = vcmp.lt.s32.totalorder %v924_v37, 0  ;;  %v954_v58 = vadd.s32 7, %v924_v37 }
 0x23d   : > { %vm947_vm13 = vmand %vm940_vm11, %vm933_vm10 }
 0x23e   : > { %5493 = vst [vmem:[#allocation7_spill] sm:$0xff] %v4392_v2  ;;  %794 = vrot.lane.b32.xlu0 %v4360_v52, %s4158_s1  ;;  %1430 = vrot.lane.b32.xlu1 %v4392_v2, %s4156_s19 }
 0x242   : > { %798 = vrot.lane.b32.xlu0 %v4356_v49, %s4158_s1  ;;  %1432 = vrot.lane.b32.xlu1 %v4399_v3, %s4156_s19 }
 0x246   : > { %802 = vrot.lane.b32.xlu0 %v4385_v0, %s4158_s1  ;;  %792 = vrot.lane.b32.xlu1 %v4358_v51, %s4158_s1 }
 0x24a   : > { %796 = vrot.lane.b32.xlu1 %v4354_v48, %s4158_s1 }
 0x24e   : > { %800 = vrot.lane.b32.xlu1 %v4383_v63, %s4158_s1 }
 0x252   : > { %804 = vrot.lane.b32.xlu1 %v4388_v1, %s4158_s1 }
 0x2a7   : > { %v1429_v9 = vpop.permute.xlu1 %1428 }
 0x2a8   : > { %v1427_v5 = vpop.permute.xlu0 %1426  ;;  %v1451_v21 = vsel %vm5470_vm2, %v1429_v9, 0 }
 0x2a9   : > { %3909 = vmatprep.subr.msk.bf16.mxu1 %vm5470_vm2, %v1427_v5  ;;  %v1448_v6 = vsel %vm5470_vm2, %v1427_v5, 0  ;;  %v4476_v5 = vrot.slane %v4370_v55, %v1033_v50  ;;  %v4534_v50 = vmul.u32.u64.low 2454267026, %v825_v42  ;;  %v4535_v53 = vmul.u32.u64.high 2454267026, %v825_v42, %v4534_v50 }
 0x2aa   : > { %3702 = vmatpush3.bf16.xpose.msra.mxu1 %v1448_v6 }
 0x2ab   : > { %3910 = vmatprep.subr.msk.bf16.mxu1 %vm5470_vm2, %v1429_v9  ;;  %v4485_v9 = vsel %vm947_vm13, %v954_v58, %v924_v37  ;;  %v4531_v37 = vmul.u32.u64.low 2454267026, %v826_v36  ;;  %v4532_v47 = vmul.u32.u64.high 2454267026, %v826_v36, %v4531_v37  ;;  %vm877_vm9 = vc.u32 %v4534_v50, 2454267026  ;;  %v1178_v50 = vld [vmem:[#allocation2 + $0x39] sm:$0x1] }
 0x2ac   : > { %v1133_v10 = vpop.permute.xlu0 %1132  ;;  %vm5473_vm15 = vcmp.gt.s32.totalorder %v4485_v9, 0  ;;  %vm975_vm4 = vcmp.lt.s32.totalorder %v4485_v9, 6 }
 0x2ad   : > { %v1136_v12 = vmul.f32 %v1133_v10, %v4360_v52  ;;  %v1135_v13 = vmul.f32 %v1133_v10, %v4358_v51  ;;  %v1138_v22 = vmul.f32 %v1133_v10, %v4356_v49  ;;  %v1137_v23 = vmul.f32 %v1133_v10, %v4354_v48 }
 0x2ae   : > { %v1140_v29 = vmul.f32 %v1133_v10, %v4385_v0  ;;  %v1139_v30 = vmul.f32 %v1133_v10, %v4383_v63  ;;  %v1141_v34 = vmul.f32 %v1133_v10, %v4388_v1  ;;  %v4490_v10 = vrot.slane %v4370_v55, %v1079_v59 }
 0x2af   : > { %1151 = vrot.lane.b32.xlu1 %v1136_v12, %s4158_s1  ;;  %1149 = vrot.lane.b32.xlu0 %v1135_v13, %s4158_s1  ;;  %vm891_vm8 = vc.u32 %v4531_v37, 2454267026 }
 0x2b0   : > { %v1431_v14 = vpop.permute.xlu1 %1430  ;;  %v795_v15 = vpop.permute.xlu0 %794 }
 0x2b1   : > { %814 = vst.msk [vmem:[#allocation2 + $0x10] sm:$0xff] %vm5467_vm3, %v795_v15  ;;  %v1454_v33 = vsel %vm5470_vm2, %v1431_v14, 0 }
 0x2b2   : > { %3704 = vmatpush3.bf16.xpose.msra.mxu1 %v1451_v21 }
 0x2b3   : > { %3911 = vmatprep.subr.msk.bf16.mxu1 %vm5470_vm2, %v1431_v14  ;;  %1155 = vrot.lane.b32.xlu1 %v1138_v22, %s4158_s1 }
 0x2b4   : > { %1153 = vrot.lane.b32.xlu0 %v1137_v23, %s4158_s1  ;;  %v1433_v25 = vpop.permute.xlu1 %1432  ;;  %v799_v28 = vpop.permute.xlu0 %798 }
 0x2b5   : > { %816 = vst.msk [vmem:[#allocation2 + $0x20] sm:$0xff] %vm5467_vm3, %v799_v28  ;;  %v1457_v41 = vsel %vm5470_vm2, %v1433_v25, 0 }
 0x2b7   : > { %1159 = vrot.lane.b32.xlu1 %v1140_v29, %s4158_s1 }
 0x2b8   : > { %1157 = vrot.lane.b32.xlu0 %v1139_v30, %s4158_s1  ;;  %v793_v26 = vpop.permute.xlu1 %792  ;;  %v803_v19 = vpop.permute.xlu0 %802 }
 0x2b9   : > { %813 = vst.msk [vmem:[#allocation2 + $0x8] sm:$0xff] %vm5467_vm3, %v793_v26  ;;  %818 = vst.msk [vmem:[#allocation2 + $0x30] sm:$0xff] %vm5467_vm3, %v803_v19 }
 0x2ba   : > { %3706 = vmatpush3.bf16.xpose.msra.mxu1 %v1454_v33 }
 0x2bb   : > { %3912 = vmatprep.subr.msk.bf16.mxu1 %vm5470_vm2, %v1433_v25 }
 0x2bc   : > { %1161 = vrot.lane.b32.xlu0 %v1141_v34, %s4158_s1  ;;  %v797_v39 = vpop.permute.xlu1 %796 }
 0x2bd   : > { %815 = vst.msk [vmem:[#allocation2 + $0x18] sm:$0xff] %vm5467_vm3, %v797_v39  ;;  %v4520_v39 = vmul.u32.u64.low 2454267026, %v4352_v45  ;;  %v4521_v27 = vmul.u32.u64.high 2454267026, %v4352_v45, %v4520_v39 }
 0x2bf   : > { %vm835_vm5 = vc.u32 %v4520_v39, 2454267026 }
 0x2c0   : > { %v801_v40 = vpop.permute.xlu1 %800  ;;  %v984_v20 = vld [vmem:[#allocation2 + $0x30] sm:$0x1]  ;;  %v1030_v21 = vld [vmem:[#allocation2 + $0x31] sm:$0x1]  ;;  %v1055_v22 = vld [vmem:[#allocation2 + $0x32] sm:$0x1] }
 0x2c1   : > { %817 = vst.msk [vmem:[#allocation2 + $0x28] sm:$0xff] %vm5467_vm3, %v801_v40  ;;  %v1005_v23 = vsel %vm5473_vm15, %v984_v20, 0.0  ;;  %v1101_v24 = vld [vmem:[#allocation2 + $0x37] sm:$0x1]  ;;  %v1041_v29 = vmul.f32 %v4476_v5, %v1030_v21  ;;  %v1076_v30 = vsel %vm975_vm4, %v1055_v22, 0.0  ;;  %v836_v58 = vsel %vm835_vm5, 1, %v5474_v16 }
 0x2c2   : > { %3708 = vmatpush3.bf16.xpose.msra.mxu1 %v1457_v41  ;;  %v1016_v28 = vmul.f32 %v4468_v60, %v1005_v23  ;;  %v1108_v31 = vsel %vm5473_vm15, %v1101_v24, 0.0  ;;  %v1087_v26 = vmul.f32 %v4490_v10, %v1076_v30  ;;  %v1204_v56 = vld [vmem:[#allocation2 + $0xe] sm:$0xff] }
 0x2c3   : > { %v1119_v33 = vmul.f32 %v4482_v7, %v1108_v31  ;;  %v4524_v40 = vmul.u32.u64.low 2454267026, %v823_v35  ;;  %v4525_v41 = vmul.u32.u64.high 2454267026, %v823_v35, %v4524_v40 }
 0x2c4   : > { %v805_v43 = vpop.permute.xlu1 %804  ;;  %v1048_v32 = vadd.f32 %v1041_v29, %v1016_v28 }
 0x2c5   : > { %820 = vst.msk [vmem:[#allocation2 + $0x38] sm:$0x1] %vm819_vm6, %v805_v43  ;;  %v4528_v43 = vmul.u32.u64.low 2454267026, %v824_v38  ;;  %v4529_v44 = vmul.u32.u64.high 2454267026, %v824_v38, %v4528_v43  ;;  %vm849_vm6 = vc.u32 %v4524_v40, 2454267026 }
 0x2c6   : > { %v1094_v19 = vadd.f32 %v1087_v26, %v1048_v32  ;;  %v850_v59 = vsel %vm849_vm6, 1, %v5474_v16 }
 0x2c7   : > { %vm863_vm7 = vc.u32 %v4528_v43, 2454267026 }
 0x2c8   : > { %v4463_v57 = vld [vmem:[#allocation2 + $0x28] sm:$0xff]  ;;  %v4515_v34 = vadd.f32 %v1119_v33, %v1094_v19 }
 0x2c9   : > { %3710 = vmatmul.mubr.msk.bf16.vlgmr.msra.gmra.mrb[0].mxu1 %vm5470_vm2, %v4365_v54  ;;  %v4471_v61 = vld [vmem:[#allocation2 + $0x29] sm:$0xff]  ;;  %v1004_v6 = vsel %vm5471_vm12, %v4463_v57, 0.0 }
 0x2ca   : > { %3713 = vmatprep.mubr.msk.bf16.mxu1 %vm5470_vm2, %v4392_v2  ;;  %v1054_v62 = vld [vmem:[#allocation2 + $0x2a] sm:$0xff]  ;;  %v1015_v8 = vmul.f32 %v4468_v60, %v1004_v6  ;;  %v1040_v11 = vmul.f32 %v4476_v5, %v4471_v61  ;;  %v837_v6 = vadd.s32 %v4521_v27, %v836_v58  ;;  %v1053_v2 = vld [vmem:[#allocation2 + $0x22] sm:$0xff] }
 0x2cb   : > { %v4473_v4 = vld [vmem:[#allocation2 + $0x2f] sm:$0xff]  ;;  %v1075_v12 = vsel %vm5472_vm14, %v1054_v62, 0.0  ;;  %v864_v62 = vsel %vm863_vm7, 1, %v5474_v16 }
 0x2cc   : > { %v1107_v13 = vsel %vm5471_vm12, %v4473_v4, 0.0  ;;  %v1047_v15 = vadd.f32 %v1040_v11, %v1015_v8  ;;  %v1086_v17 = vmul.f32 %v4490_v10, %v1075_v12  ;;  %v851_v8 = vadd.s32 %v4525_v41, %v850_v59  ;;  %v979_v58 = vld [vmem:[#allocation2 + $0x8] sm:$0xff] }
 0x2cd   : > { %v1118_v14 = vmul.f32 %v4482_v7, %v1107_v13  ;;  %v892_v11 = vsel %vm891_vm8, 1, %v5474_v16  ;;  %v878_v12 = vsel %vm877_vm9, 1, %v5474_v16  ;;  %v865_v13 = vadd.s32 %v4529_v44, %v864_v62 }
 0x2ce   : > { %v1093_v18 = vadd.f32 %v1086_v17, %v1047_v15  ;;  %v893_v15 = vadd.s32 %v4532_v47, %v892_v11  ;;  %v852_v17 = vshrl.u32 %v851_v8, 2  ;;  %v879_v20 = vadd.s32 %v4535_v53, %v878_v12  ;;  %v1210_v53 = vld [vmem:[#allocation2 + $0x3e] sm:$0x1]  ;;  %v980_v8 = vld [vmem:[#allocation2 + $0x10] sm:$0xff]  ;;  %v982_v12 = vld [vmem:[#allocation2 + $0x20] sm:$0xff] }
 0x2cf   : > { %v1220_v44 = vsub.s32 6, %v4352_v45  ;;  %v1240_v47 = vsub.s32 7, %v4352_v45 }
 0x2d0   : > { %v4505_v25 = vadd.f32 %v1118_v14, %v1093_v18  ;;  %v838_v14 = vshrl.u32 %v837_v6, 2  ;;  %v866_v18 = vshrl.u32 %v865_v13, 2  ;;  %v894_v22 = vshrl.u32 %v893_v15, 2  ;;  %v1237_v15 = vld [vmem:[#allocation2 + $0x3f] sm:$0x1] }
 0x2d1   : > { %3714 = vmatmul.mubr.msk.bf16.gmra.mrb[4].mxu1 %vm5470_vm2, %v4399_v3  ;;  %v853_v23 = vmul.u32 7, %v852_v17  ;;  %v880_v24 = vshrl.u32 %v879_v20, 2  ;;  %v1185_v13 = vsel %vm975_vm4, %v1178_v50, 0.0  ;;  %v4582_v17 = vld [vmem:[%s5454_s5 + $0x8] ss:$0 sm:$0xff]  ;;  %v4620_v50 = vld [vmem:[#allocation2 + $0x19] sm:$0xff] }
 0x2d2   : > { %v839_v21 = vmul.u32 7, %v838_v14  ;;  %v867_v28 = vmul.u32 7, %v866_v18  ;;  %v4587_v18 = vrot.slane %v4370_v55, %v1240_v47 }
 0x2d3   : > { %v895_v30 = vmul.u32 7, %v894_v22  ;;  %v854_v31 = vsub.s32 %v823_v35, %v853_v23  ;;  %v881_v32 = vmul.u32 7, %v880_v24  ;;  %v1050_v22 = vld [vmem:[#allocation2 + $0xa] sm:$0xff]  ;;  %v981_v24 = vld [vmem:[#allocation2 + $0x18] sm:$0xff] }
 0x2d4   : > { %v840_v29 = vsub.s32 %v4352_v45, %v839_v21  ;;  %v868_v26 = vsub.s32 %v824_v38, %v867_v28  ;;  %v1025_v21 = vld [vmem:[#allocation2 + $0x9] sm:$0xff]  ;;  %v1024_v28 = vld [vmem:[#allocation2 + $0x1] sm:$0xff] }
 0x2d5   : > { %v896_v19 = vsub.s32 %v826_v36, %v895_v30  ;;  %vm928_vm13 = vcmp.ne.s32.totalorder %v854_v31, 0  ;;  %vm935_vm5 = vcmp.lt.s32.totalorder %v854_v31, 0  ;;  %v882_v33 = vsub.s32 %v825_v42, %v881_v32  ;;  %v978_v42 = vld [vmem:[#allocation2] sm:$0xff] }
 0x2d6   : > { %vm927_vm10 = vcmp.ne.s32.totalorder %v840_v29, 0  ;;  %vm934_vm11 = vcmp.lt.s32.totalorder %v840_v29, 0  ;;  %v948_v39 = vadd.s32 7, %v840_v29  ;;  %vm929_vm6 = vcmp.ne.s32.totalorder %v868_v26, 0  ;;  %vm942_vm9 = vmand %vm935_vm5, %vm928_vm13 }
 0x2d7   : > { %vm936_vm7 = vcmp.lt.s32.totalorder %v868_v26, 0  ;;  %v949_v27 = vadd.s32 7, %v854_v31  ;;  %vm941_vm8 = vmand %vm934_vm11, %vm927_vm10  ;;  %v950_v40 = vadd.s32 7, %v868_v26  ;;  %vm931_vm3 = vcmp.ne.s32.totalorder %v896_v19, 0 }
 0x2d8   : > { %vm938_vm1 = vcmp.lt.s32.totalorder %v896_v19, 0  ;;  %vm930_vm0 = vcmp.ne.s32.totalorder %v882_v33, 0  ;;  %vm937_vm2 = vcmp.lt.s32.totalorder %v882_v33, 0  ;;  %vm943_vm12 = vmand %vm936_vm7, %vm929_vm6  ;;  %v4548_v35 = vsel %vm941_vm8, %v948_v39, %v840_v29  ;;  %v1258_v39 = vld [vmem:[#allocation2 + $0x40] sm:$0x1] }
 0x2d9   : > { %v952_v38 = vadd.s32 7, %v896_v19  ;;  %v4550_v41 = vsel %vm942_vm9, %v949_v27, %v854_v31  ;;  %v1188_v36 = vsub.s32 5, %v4352_v45  ;;  %vm962_vm14 = vcmp.gt.s32.totalorder %v4548_v35, 0  ;;  %vm945_vm15 = vmand %vm938_vm1, %vm931_vm3  ;;  %v1049_v31 = vld [vmem:[#allocation2 + $0x2] sm:$0xff] }
 0x2da   : > { %v951_v43 = vadd.s32 7, %v882_v33  ;;  %vm944_vm10 = vmand %vm937_vm2, %vm930_vm0  ;;  %v4555_v37 = vsel %vm943_vm12, %v950_v40, %v868_v26  ;;  %vm963_vm11 = vcmp.gt.s32.totalorder %v4550_v41, 0  ;;  %vm969_vm13 = vcmp.lt.s32.totalorder %v4548_v35, 6 }
 0x2db   : > { %v999_v59 = vsel %vm962_vm14, %v978_v42, 0.0  ;;  %v4562_v62 = vsel %vm945_vm15, %v952_v38, %v896_v19  ;;  %vm970_vm1 = vcmp.lt.s32.totalorder %v4550_v41, 6  ;;  %v4566_v6 = vrot.slane %v4370_v55, %v1188_v36  ;;  %v1095_v36 = vld [vmem:[#allocation2 + $0x7] sm:$0xff] }
 0x2dc   : > { %v4568_v11 = vsel %vm944_vm10, %v951_v43, %v882_v33  ;;  %vm964_vm0 = vcmp.gt.s32.totalorder %v4555_v37, 0  ;;  %v4572_v45 = vrot.slane %v4370_v55, %v1220_v44  ;;  %vm971_vm2 = vcmp.lt.s32.totalorder %v4555_v37, 6  ;;  %v1096_v55 = vld [vmem:[#allocation2 + $0xf] sm:$0xff] }
 0x2dd   : > { %vm5495_vm3 = vcmp.gt.s32.totalorder %v4485_v9, 0  ;;  %v1000_v20 = vsel %vm963_vm11, %v979_v58, 0.0  ;;  %v1010_v23 = vmul.f32 %v4468_v60, %v999_v59  ;;  %vm966_vm12 = vcmp.gt.s32.totalorder %v4562_v62, 0 }
 0x2de   : > { %v1217_v14 = vsel %vm5495_vm3, %v1210_v53, 0.0  ;;  %v1259_v29 = vsel %vm969_vm13, %v980_v8, 0.0  ;;  %vm965_vm15 = vcmp.gt.s32.totalorder %v4568_v11, 0  ;;  %vm972_vm5 = vcmp.lt.s32.totalorder %v4568_v11, 6 }
 0x2df   : > { %v1001_v30 = vsel %vm964_vm0, %v980_v8, 0.0  ;;  %v1261_v32 = vsel %vm971_vm2, %v982_v12, 0.0  ;;  %v4600_v26 = vmul.f32 %v4566_v6, %v1185_v13  ;;  %v4603_v19 = vmul.f32 %v4572_v45, %v1217_v14  ;;  %v1026_v13 = vld [vmem:[#allocation2 + $0x11] sm:$0xff] }
 0x2e0   : > { %v4606_v33 = vmul.f32 %v4587_v18, %v1237_v15  ;;  %v1011_v27 = vmul.f32 %v4468_v60, %v1000_v20  ;;  %v1036_v40 = vmul.f32 %v4476_v5, %v1025_v21  ;;  %v1071_v38 = vsel %vm970_vm1, %v1050_v22, 0.0  ;;  %v1052_v22 = vld [vmem:[#allocation2 + $0x1a] sm:$0xff] }
 0x2e1   : > { %v1003_v42 = vsel %vm966_vm12, %v982_v12, 0.0  ;;  %v1035_v43 = vmul.f32 %v4476_v5, %v1024_v28  ;;  %v4616_v44 = vmul.f32 %v4582_v17, %v1259_v29  ;;  %v1002_v47 = vsel %vm965_vm15, %v981_v24, 0.0 }
 0x2e2   : > { %v1012_v53 = vmul.f32 %v4468_v60, %v1001_v30  ;;  %v1103_v58 = vsel %vm963_vm11, %v1096_v55, 0.0  ;;  %v1070_v59 = vsel %vm969_vm13, %v1049_v31, 0.0  ;;  %v4628_v8 = vmul.f32 %v4582_v17, %v1261_v32  ;;  %v1097_v31 = vld [vmem:[#allocation2 + $0x17] sm:$0xff] }
 0x2e3   : > { %vm973_vm6 = vcmp.lt.s32.totalorder %v4562_v62, 6  ;;  %v4633_v12 = vsel %vm975_vm4, %v1258_v39, 0.0  ;;  %v1082_v14 = vmul.f32 %v4490_v10, %v1071_v38  ;;  %v1102_v15 = vsel %vm962_vm14, %v1095_v36, 0.0  ;;  %v1051_v39 = vld [vmem:[#allocation2 + $0x12] sm:$0xff] }
 0x2e4   : > { %v1179_v20 = vsel %vm969_vm13, %v1025_v21, 0.0  ;;  %v1014_v28 = vmul.f32 %v4468_v60, %v1003_v42  ;;  %v1260_v29 = vsel %vm970_vm1, %v981_v24, 0.0  ;;  %v1043_v30 = vadd.f32 %v1036_v40, %v1011_v27  ;;  %v1205_v36 = vld [vmem:[#allocation2 + $0x16] sm:$0xff]  ;;  %v1028_v40 = vld [vmem:[#allocation2 + $0x21] sm:$0xff] }
 0x2e5   : > { %v1013_v9 = vmul.f32 %v4468_v60, %v1002_v47  ;;  %v1038_v32 = vmul.f32 %v4476_v5, %v4620_v50  ;;  %v1114_v38 = vmul.f32 %v4482_v7, %v1103_v58  ;;  %v4648_v16 = vmul.f32 %v4587_v18, %v1096_v55 }
 0x2e6   : > { %v1042_v21 = vadd.f32 %v1035_v43, %v1010_v23  ;;  %v1081_v42 = vmul.f32 %v4490_v10, %v1070_v59  ;;  %v1037_v24 = vmul.f32 %v4476_v5, %v1026_v13  ;;  %v1113_v27 = vmul.f32 %v4482_v7, %v1102_v15  ;;  %v1098_v43 = vld [vmem:[#allocation2 + $0x1f] sm:$0xff] }
 0x2e7   : > { %v1190_v60 = vmul.f32 %v4566_v6, %v1179_v20  ;;  %v1073_v47 = vsel %vm972_vm5, %v1052_v22, 0.0  ;;  %v4657_v58 = vmul.f32 %v4582_v17, %v1260_v29  ;;  %v1180_v55 = vsel %vm970_vm1, %v1026_v13, 0.0  ;;  %v1207_v29 = vld [vmem:[#allocation2 + $0x26] sm:$0xff] }
 0x2e8   : > { %v4662_v23 = vmul.f32 %v4587_v18, %v1097_v31  ;;  %v1072_v59 = vsel %vm971_vm2, %v1051_v39, 0.0  ;;  %v1089_v15 = vadd.f32 %v1082_v14, %v1043_v30  ;;  %v1212_v20 = vsel %vm963_vm11, %v1205_v36, 0.0 }
 0x2e9   : > { %v1211_v22 = vsel %vm962_vm14, %v1204_v56, 0.0  ;;  %v1045_v3 = vadd.f32 %v1038_v32, %v1013_v9  ;;  %v1088_v54 = vadd.f32 %v1081_v42, %v1042_v21  ;;  %v1262_v13 = vsel %vm972_vm5, %v4463_v57, 0.0  ;;  %v1099_v42 = vld [vmem:[#allocation2 + $0x27] sm:$0xff] }
 0x2ea   : > { %v1039_v1 = vmul.f32 %v4476_v5, %v1028_v40  ;;  %v1084_v0 = vmul.f32 %v4490_v10, %v1073_v47  ;;  %v1105_v14 = vsel %vm965_vm15, %v1098_v43, 0.0  ;;  %v1182_v41 = vsel %vm972_vm5, %v1028_v40, 0.0  ;;  %v1206_v47 = vld [vmem:[#allocation2 + $0x1e] sm:$0xff] }
 0x2eb   : > { %v1044_v35 = vadd.f32 %v1037_v24, %v1012_v53  ;;  %v1083_v56 = vmul.f32 %v4490_v10, %v1072_v59  ;;  %v1191_v30 = vmul.f32 %v4566_v6, %v1180_v55  ;;  %v1223_v9 = vmul.f32 %v4572_v45, %v1212_v20 }
 0x2ec   : > { %v1214_v57 = vsel %vm965_vm15, %v1207_v29, 0.0  ;;  %v1074_v5 = vsel %vm973_vm6, %v1053_v2, 0.0  ;;  %v1121_v32 = vadd.f32 %v1114_v38, %v1089_v15  ;;  %v1222_v39 = vmul.f32 %v4572_v45, %v1211_v22  ;;  %v1177_v15 = vld [vmem:[#allocation2 + $0x31] sm:$0xff] }
 0x2ed   : > { %v4688_v36 = vmul.f32 %v4582_v17, %v1262_v13  ;;  %v1091_v21 = vadd.f32 %v1084_v0, %v1045_v3  ;;  %v1120_v53 = vadd.f32 %v1113_v27, %v1088_v54  ;;  %v1116_v24 = vmul.f32 %v4482_v7, %v1105_v14  ;;  %v1257_v29 = vld [vmem:[#allocation2 + $0x38] sm:$0xff] }
 0x2ee   : > { %v1193_v40 = vmul.f32 %v4566_v6, %v1182_v41  ;;  %v1104_v11 = vsel %vm964_vm0, %v1097_v31, 0.0  ;;  %v1225_v2 = vmul.f32 %v4572_v45, %v1214_v57  ;;  %v1090_v38 = vadd.f32 %v1083_v56, %v1044_v35  ;;  %v1209_v35 = vld [vmem:[#allocation2 + $0x36] sm:$0xff] }
 0x2ef   : > { %v1046_v20 = vadd.f32 %v1039_v1, %v1014_v28  ;;  %v1085_v22 = vmul.f32 %v4490_v10, %v1074_v5  ;;  %v1244_v3 = vmul.f32 %v4587_v18, %v1098_v43  ;;  %v1181_v27 = vsel %vm971_vm2, %v4620_v50, 0.0 }
 0x2f0   : > { %v1123_v31 = vadd.f32 %v1116_v24, %v1091_v21  ;;  %v1245_v13 = vmul.f32 %v4587_v18, %v1099_v42  ;;  %v1115_v14 = vmul.f32 %v4482_v7, %v1104_v11  ;;  %v1213_v41 = vsel %vm964_vm0, %v1206_v47, 0.0  ;;  %v1236_v24 = vld [vmem:[#allocation2 + $0x37] sm:$0xff]  ;;  %v1208_v11 = vld [vmem:[#allocation2 + $0x2e] sm:$0xff] }
 0x2f1   : > { %vm5496_vm14 = vcmp.lt.s32.totalorder %v4456_v46, 6  ;;  %v1106_v43 = vsel %vm966_vm12, %v1099_v42, 0.0  ;;  %v1192_v57 = vmul.f32 %v4566_v6, %v1181_v27  ;;  %vm5498_vm7 = vcmp.gt.s32.totalorder %v4456_v46, 0  ;;  %v1256_v27 = vld [vmem:[#allocation2 + $0x30] sm:$0xff] }
 0x2f2   : > { %v1184_v10 = vsel %vm5496_vm14, %v1177_v15, 0.0  ;;  %v1122_v50 = vadd.f32 %v1115_v14, %v1090_v38  ;;  %vm5497_vm4 = vmmov %vm5496_vm14  ;;  %v1216_v42 = vsel %vm5498_vm7, %v1209_v35, 0.0  ;;  %v1247_v46 = vmul.f32 %v4587_v18, %v1236_v24 }
 0x2f3   : > { %v1264_v5 = vsel %vm5497_vm4, %v1257_v29, 0.0  ;;  %vm1544_vm8 = vcmask 400384   ;;  %vm1563_vm9 = vcmask 393216   ;;  %vm1658_vm10 = vcmask 1040384  }
 0x2f4   : > { %v1275_v62 = vmul.f32 %v4582_v17, %v1264_v5  ;;  %vm5506_vm11 = vcmask 64512  }
 0x2f5   : > { %vm5507_vm13 = vmmov %vm5506_vm11 }
 0x2f6   : > { %vm5508_vm1 = vmmov %vm5506_vm11 }
 0x2f7   : > { %vm5509_vm0 = vmmov %vm5508_vm1 }
 0x2f8   : > { %vm5510_vm2 = vmmov %vm5509_vm0 }
 0x2f9   : > { %vm5511_vm3 = vmmov %vm5509_vm0 }
 0x2fa   : > { %vm5513_vm15 = vmmov %vm5509_vm0 }
 0x2fb   : > { %vm5514_vm5 = vmmov %vm5509_vm0 }
 0x2fc   : > { %vm5516_vm14 = vmmov %vm5509_vm0 }
 0x2fd   : > { %vm5517_vm4 = vmmov %vm5509_vm0 }
 0x2fe   : > { %vm5518_vm7 = vmmov %vm5509_vm0 }
 0x321   : > { %v1152_v55 = vpop.permute.xlu1 %1151  ;;  %v1150_v59 = vpop.permute.xlu0 %1149 }
 0x322   : > { %v1171_v0 = vadd.f32 %v1152_v55, %v1121_v32  ;;  %v1170_v54 = vadd.f32 %v1150_v59, %v1120_v53  ;;  %v1092_v32 = vadd.f32 %v1085_v22, %v1046_v20  ;;  %v1195_v55 = vmul.f32 %v4566_v6, %v1184_v10  ;;  %v4724_v20 = vld [vmem:[%s5455_s6] ss:$0 sm:$0xff] }
 0x323   : > { %v1117_v59 = vmul.f32 %v4482_v7, %v1106_v43  ;;  %v1215_v7 = vsel %vm966_vm12, %v1208_v11, 0.0  ;;  %v1263_v43 = vsel %vm973_vm6, %v1256_v27, 0.0  ;;  %vm5512_vm12 = vmmov %vm5509_vm0 }
 0x324   : > { %v1198_v1 = vadd.f32 %v1191_v30, %v1171_v0  ;;  %v1197_v28 = vadd.f32 %v1190_v60, %v1170_v54  ;;  %v1224_v60 = vmul.f32 %v4572_v45, %v1213_v41  ;;  %v1227_v41 = vmul.f32 %v4572_v45, %v1216_v42 }
 0x325   : > { %v1156_v56 = vpop.permute.xlu1 %1155  ;;  %v1124_v54 = vadd.f32 %v1117_v59, %v1092_v32  ;;  %v1276_v59 = vmul.f32 %v4582_v17, %v4633_v12 }
 0x326   : > { %v1230_v21 = vadd.f32 %v1223_v9, %v1198_v1  ;;  %v1229_v37 = vadd.f32 %v1222_v39, %v1197_v28  ;;  %v1173_v53 = vadd.f32 %v1156_v56, %v1123_v31  ;;  %v1154_v30 = vpop.permute.xlu0 %1153  ;;  %v1183_v39 = vsel %vm973_vm6, %v4471_v61, 0.0  ;;  %v3490_v31 = vld [vmem:[%s5456_s7] ss:$0 sm:$0xff]  ;;  %vm5515_vm6 = vmmov %vm5509_vm0 }
 0x327   : > { %v1172_v47 = vadd.f32 %v1154_v30, %v1122_v50  ;;  %v1194_v1 = vmul.f32 %v4566_v6, %v1183_v39 }
 0x328   : > { %v1250_v38 = vadd.f32 %v4662_v23, %v1230_v21  ;;  %v1249_v15 = vadd.f32 %v4648_v16, %v1229_v37  ;;  %v1200_v9 = vadd.f32 %v1193_v40, %v1173_v53 }
 0x329   : > { %v1199_v22 = vadd.f32 %v1192_v57, %v1172_v47  ;;  %v1160_v0 = vpop.permute.xlu1 %1159 }
 0x32a   : > { %v1278_v16 = vadd.f32 %v4657_v58, %v1250_v38  ;;  %v1277_v23 = vadd.f32 %v4616_v44, %v1249_v15  ;;  %v1232_v40 = vadd.f32 %v1225_v2, %v1200_v9  ;;  %v1175_v61 = vadd.f32 %v1160_v0, %v4505_v25  ;;  %v1158_v29 = vpop.permute.xlu0 %1157 }
 0x32b   : > { %v1231_v14 = vadd.f32 %v1224_v60, %v1199_v22  ;;  %v1174_v28 = vadd.f32 %v1158_v29, %v1124_v54  ;;  %v1226_v25 = vmul.f32 %v4572_v45, %v1215_v7 }
 0x32c   : > { %v1292_v10 = vmul.f32 %v4724_v20, %v1278_v16  ;;  %v1291_v58 = vmul.f32 %v4724_v20, %v1277_v23  ;;  %v1252_v44 = vadd.f32 %v1245_v13, %v1232_v40  ;;  %v1202_v2 = vadd.f32 %v1195_v55, %v1175_v61 }
 0x32d   : > { %v1251_v35 = vadd.f32 %v1244_v3, %v1231_v14  ;;  %v1201_v56 = vadd.f32 %v1194_v1, %v1174_v28  ;;  %v1246_v13 = vmul.f32 %v4587_v18, %v4473_v4 }
 0x32e   : > { %v4742_v50 = vadd.f32 %v3490_v31, %v1292_v10  ;;  %v1305_v57 = vadd.f32 %v3490_v31, %v1291_v58  ;;  %v1280_v32 = vadd.f32 %v4688_v36, %v1252_v44  ;;  %v1234_v6 = vadd.f32 %v1227_v41, %v1202_v2  ;;  %v1162_v21 = vpop.permute.xlu0 %1161 }
 0x32f   : > { %v1279_v37 = vadd.f32 %v4628_v8, %v1251_v35  ;;  %v1233_v53 = vadd.f32 %v1226_v25, %v1201_v56  ;;  %v1176_v3 = vadd.f32 %v1162_v21, %v4515_v34  ;;  %v1274_v36 = vmul.f32 %v4582_v17, %v1263_v43 }
 0x330   : > { %v1294_v45 = vmul.f32 %v4724_v20, %v1280_v32  ;;  %v1254_v60 = vadd.f32 %v1247_v46, %v1234_v6  ;;  %v1319_v30 = vmul.f32 0.044715, %v1305_v57  ;;  %v1320_v4 = vmul.f32 0.044715, %v4742_v50 }
 0x331   : > { %v1293_v24 = vmul.f32 %v4724_v20, %v1279_v37  ;;  %v1253_v11 = vadd.f32 %v1246_v13, %v1233_v53  ;;  %v1203_v47 = vadd.f32 %v4600_v26, %v1176_v3  ;;  %v1312_v43 = vmul.f32 0.5, %v1305_v57 }
 0x332   : > { %v1308_v8 = vadd.f32 %v3490_v31, %v1294_v45  ;;  %v1282_v55 = vadd.f32 %v1275_v62, %v1254_v60  ;;  %v1326_v42 = vmul.f32 %v1319_v30, %v1305_v57  ;;  %v1327_v22 = vmul.f32 %v1320_v4, %v4742_v50 }
 0x333   : > { %v1307_v18 = vadd.f32 %v3490_v31, %v1293_v24  ;;  %v1281_v34 = vadd.f32 %v1274_v36, %v1253_v11  ;;  %v1235_v5 = vadd.f32 %v4603_v19, %v1203_v47  ;;  %v1313_v62 = vmul.f32 0.5, %v4742_v50 }
 0x334   : > { %v1296_v38 = vmul.f32 %v4724_v20, %v1282_v55  ;;  %v1333_v15 = vmul.f32 %v1326_v42, %v1305_v57  ;;  %v1322_v9 = vmul.f32 0.044715, %v1308_v8  ;;  %v1334_v17 = vmul.f32 %v1327_v22, %v4742_v50 }
 0x335   : > { %v1295_v39 = vmul.f32 %v4724_v20, %v1281_v34  ;;  %v1255_v26 = vadd.f32 %v4606_v33, %v1235_v5  ;;  %v1321_v7 = vmul.f32 0.044715, %v1307_v18  ;;  %v1314_v11 = vmul.f32 0.5, %v1307_v18 }
 0x336   : > { %v4762_v0 = vadd.f32 %v3490_v31, %v1296_v38  ;;  %v1340_v46 = vadd.f32 %v1333_v15, %v1305_v57  ;;  %v1329_v54 = vmul.f32 %v1322_v9, %v1308_v8  ;;  %v1341_v27 = vadd.f32 %v1334_v17, %v4742_v50  ;;  %v1532_v50 = vld [vmem:[%s5459_s10 + $0x10] sm:$0xff]  ;;  %v1533_v9 = vld [vmem:[%s5459_s10 + $0x18] sm:$0xff] }
 0x337   : > { %v1309_v16 = vadd.f32 %v3490_v31, %v1295_v39  ;;  %v1283_v23 = vadd.f32 %v1276_v59, %v1255_v26  ;;  %v1328_v40 = vmul.f32 %v1321_v7, %v1307_v18 }
 0x338   : > { %v1347_v19 = vmul.f32 0.7978846, %v1340_v46  ;;  %v1336_v12 = vmul.f32 %v1329_v54, %v1308_v8  ;;  %v1348_v1 = vmul.f32 0.7978846, %v1341_v27 }
 0x339   : > { %v1297_v61 = vmul.f32 %v4724_v20, %v1283_v23  ;;  %v1323_v29 = vmul.f32 0.044715, %v1309_v16  ;;  %v1335_v14 = vmul.f32 %v1328_v40, %v1307_v18  ;;  %v1316_v60 = vmul.f32 0.5, %v1309_v16 }
 0x33a   : > { %3987 = vtanh.f32 %v1347_v19  ;;  %v1343_v33 = vadd.f32 %v1336_v12, %v1308_v8  ;;  %v1531_v12 = vld [vmem:[%s5459_s10 + $0x8] sm:$0xff] }
 0x33b   : > { %v4767_v41 = vadd.f32 %v3490_v31, %v1297_v61  ;;  %v1330_v28 = vmul.f32 %v1323_v29, %v1309_v16  ;;  %v1342_v58 = vadd.f32 %v1335_v14, %v1307_v18  ;;  %3989 = vtanh.f32 %v1348_v1  ;;  %v1530_v18 = vld [vmem:[%s5459_s10] sm:$0xff]  ;;  %v1536_v61 = vld [vmem:[%s5459_s10 + $0x30] sm:$0x1] }
 0x33c   : > { %v1350_v10 = vmul.f32 0.7978846, %v1343_v33  ;;  %v1315_v31 = vmul.f32 0.5, %v1308_v8  ;;  %v1324_v8 = vmul.f32 0.044715, %v4762_v0 }
 0x33d   : > { %v1337_v44 = vmul.f32 %v1330_v28, %v1309_v16  ;;  %v1349_v2 = vmul.f32 0.7978846, %v1342_v58  ;;  %v1325_v55 = vmul.f32 0.044715, %v4767_v41 }
 0x33e   : > { %3991 = vtanh.f32 %v1350_v10  ;;  %v1331_v4 = vmul.f32 %v1324_v8, %v4762_v0 }
 0x33f   : > { %v1344_v35 = vadd.f32 %v1337_v44, %v1309_v16  ;;  %3993 = vtanh.f32 %v1349_v2  ;;  %v1332_v5 = vmul.f32 %v1325_v55, %v4767_v41  ;;  %v1534_v44 = vld [vmem:[%s5459_s10 + $0x20] sm:$0xff] }
 0x340   : > { %v1338_v54 = vmul.f32 %v1331_v4, %v4762_v0 }
 0x341   : > { %v1351_v25 = vmul.f32 0.7978846, %v1344_v35  ;;  %v1339_v17 = vmul.f32 %v1332_v5, %v4767_v41 }
 0x342   : > { %v1345_v27 = vadd.f32 %v1338_v54, %v4762_v0 }
 0x343   : > { %3995 = vtanh.f32 %v1351_v25  ;;  %v1346_v28 = vadd.f32 %v1339_v17, %v4767_v41 }
 0x344   : > { %v3988_v20 = vpop.eup %3987  ;;  %v1352_v25 = vmul.f32 0.7978846, %v1345_v27  ;;  %v5500_v27 = vld [vmem:[#allocation6_spill] sm:$0xff] }
 0x345   : > { %v1361_v56 = vadd.f32 1.0, %v3988_v20  ;;  %v3990_v32 = vpop.eup %3989 }
 0x346   : > { %v1362_v53 = vadd.f32 1.0, %v3990_v32  ;;  %v1353_v32 = vmul.f32 0.7978846, %v1346_v28  ;;  %3997 = vtanh.f32 %v1352_v25 }
 0x347   : > { %v1368_v6 = vmul.f32 %v1361_v56, %v1312_v43 }
 0x348   : > { %v3992_v21 = vpop.eup %3991  ;;  %v1369_v24 = vmul.f32 %v1362_v53, %v1313_v62  ;;  %3999 = vtanh.f32 %v1353_v32  ;;  %v1317_v53 = vmul.f32 0.5, %v4762_v0 }
 0x349   : > { %1382 = vrot.lane.b32.xlu0 %v1368_v6, %s4158_s1  ;;  %v1364_v37 = vadd.f32 1.0, %v3992_v21  ;;  %v3994_v3 = vpop.eup %3993 }
 0x34a   : > { %v1363_v57 = vadd.f32 1.0, %v3994_v3  ;;  %v1318_v3 = vmul.f32 0.5, %v4767_v41  ;;  %v1535_v41 = vld [vmem:[%s5459_s10 + $0x28] sm:$0xff] }
 0x34b   : > { %v1371_v13 = vmul.f32 %v1364_v37, %v1315_v31 }
 0x34c   : > { %v1370_v47 = vmul.f32 %v1363_v57, %v1314_v11 }
 0x34d   : > { %v3996_v45 = vpop.eup %3995  ;;  %1388 = vrot.lane.b32.xlu1 %v1371_v13, %s4158_s1 }
 0x34e   : > { %v1365_v30 = vadd.f32 1.0, %v3996_v45 }
 0x350   : > { %v1372_v36 = vmul.f32 %v1365_v30, %v1316_v60  ;;  %v3998_v21 = vpop.eup %3997 }
 0x351   : > { %1384 = vrot.lane.b32.xlu1 %v1369_v24, %s4158_s1  ;;  %v1366_v37 = vadd.f32 1.0, %v3998_v21 }
 0x352   : > { %1390 = vrot.lane.b32.xlu0 %v1372_v36, %s4158_s1  ;;  %v4000_v31 = vpop.eup %3999 }
 0x353   : > { %v1367_v13 = vadd.f32 1.0, %v4000_v31  ;;  %v1373_v45 = vmul.f32 %v1366_v37, %v1317_v53 }
 0x355   : > { %1386 = vrot.lane.b32.xlu1 %v1370_v47, %s4158_s1  ;;  %v1374_v62 = vmul.f32 %v1367_v13, %v1318_v3  ;;  %v5501_v3 = vld [vmem:[#allocation3_spill] sm:$0xff] }
 0x39c   : > { %v3711_v42 = vpop.f32.mrb[0].mxu1 }
 0x39d   : > { %v1525_v34 = vmul.f32 0.35355338, %v3711_v42  ;;  %v1493_v59 = vpop.f32.mrb[1].mxu1 }
 0x39e   : > { %v1523_v38 = vmul.f32 0.35355338, %v1493_v59  ;;  %v3712_v15 = vpop.f32.mrb[2].mxu1 }
 0x39f   : > { %v1526_v39 = vmul.f32 0.35355338, %v3712_v15  ;;  %v1496_v26 = vpop.f32.mrb[3].mxu1  ;;  %v4788_v22 = vadd.f32 %v1532_v50, %v1525_v34 }
 0x3a0   : > { %v4790_v46 = vadd.f32 %v1530_v18, %v1523_v38  ;;  %v1524_v7 = vmul.f32 0.35355338, %v1496_v26 }
 0x3a1   : > { %v1551_v16 = vsel %vm1544_vm8, %v4788_v22, -inf  ;;  %v4795_v23 = vadd.f32 %v1533_v9, %v1526_v39 }
 0x3a2   : > { %1552 = vmax.xlane.f32.xlu0 %v1551_v16  ;;  %v1545_v19 = vsel %vm1544_vm8, %v4790_v46, -inf  ;;  %v1538_v1 = vadd.f32 %v1531_v12, %v1524_v7  ;;  %v5499_v12 = vld [vmem:[#allocation5_spill] sm:$0xff] }
 0x3a3   : > { %1546 = vmax.xlane.f32.xlu1 %v1545_v19  ;;  %v1554_v14 = vsel %vm1544_vm8, %v4795_v23, -inf }
 0x3a4   : > { %v3715_v40 = vpop.f32.mrb[4].mxu1  ;;  %v1548_v43 = vsel %vm1544_vm8, %v1538_v1, -inf }
 0x3a5   : > { %v1529_v29 = vmul.f32 0.35355338, %v3715_v40  ;;  %v1509_v33 = vpop.f32.mrb[5].mxu1 }
 0x3a6   : > { %v1527_v10 = vmul.f32 0.35355338, %v1509_v33  ;;  %v3716_v58 = vpop.f32.mrb[6].mxu1  ;;  %1555 = vmax.xlane.f32.xlu0 %v1554_v14 }
 0x3a7   : > { %v1512_v2 = vpop.f32.mrb[7].mxu1  ;;  %v1543_v35 = vadd.f32 %v1536_v61, %v1529_v29 }
 0x3a8   : > { %v4815_v56 = vadd.f32 %v1534_v44, %v1527_v10  ;;  %v1528_v0 = vmul.f32 0.35355338, %v1512_v2 }
 0x3a9   : > { %v1564_v20 = vsel %vm1563_vm9, %v1543_v35, -inf }
 0x3aa   : > { %1565 = vmax.xlane.f32.xlu1 %v1564_v20  ;;  %1549 = vmax.xlane.f32.xlu0 %v1548_v43  ;;  %v1557_v6 = vsel %vm1544_vm8, %v4815_v56, -inf  ;;  %v4832_v47 = vadd.f32 %v1535_v41, %v1528_v0 }
 0x3ac   : > { %v1560_v8 = vsel %vm1544_vm8, %v4832_v47, -inf }
 0x3ae   : > { %1558 = vmax.xlane.f32.xlu1 %v1557_v6 }
 0x3bb   : > { %v1383_v30 = vpop.permute.xlu0 %1382 }
 0x3bc   : > { %v1403_v57 = vadd.f32 %v1383_v30, %v4358_v51 }
 0x3bf   : > { %v1389_v60 = vpop.permute.xlu1 %1388  ;;  %1392 = vrot.lane.b32.xlu1 %v1373_v45, %s4158_s1  ;;  %v5502_v45 = vld [vmem:[#allocation7_spill] sm:$0xff] }
 0x3c0   : > { %1394 = vrot.lane.b32.xlu0 %v1374_v62, %s4158_s1  ;;  %v5503_v62 = vld [vmem:[#allocation8_spill] sm:$0xff] }
 0x3c3   : > { %v1385_v24 = vpop.permute.xlu1 %1384 }
 0x3c4   : > { %v1404_v36 = vadd.f32 %v1385_v24, %v4360_v52  ;;  %v1406_v52 = vadd.f32 %v1389_v60, %v4356_v49  ;;  %v1391_v50 = vpop.permute.xlu0 %1390  ;;  %v5504_v60 = vld [vmem:[#allocation4_spill] sm:$0xff]  ;;  %v5505_v24 = vmov 0  }
 0x3c6   : > { %v4825_v11 = vpack.c.bf16 %v1404_v36, %v1403_v57  ;;  %v4900_v57 = vsel %vm1658_vm10, 65535, %v5505_v24  ;;  %vm5519_vm10 = vmmov %vm5509_vm0 }
 0x3c7   : > { %v1387_v55 = vpop.permute.xlu1 %1386 }
 0x3c8   : > { %1635 = vrot.lane.b32.xlu1 %v4825_v11, %s4158_s1  ;;  %v1405_v51 = vadd.f32 %v1387_v55, %v4354_v48 }
 0x3ca   : > { %v4838_v42 = vpack.c.bf16 %v1406_v52, %v1405_v51 }
 0x3df   : > { %1561 = vmax.xlane.f32.xlu0 %v1560_v8 }
 0x3f5   : > { %1637 = vrot.lane.b32.xlu0 %v4838_v42, %s4158_s1 }
 0x42f   : > { %v1553_v4 = vpop.xlane.xlu0 %1552 }
 0x430   : > { %v1569_v34 = vsub.f32 %v4788_v22, %v1553_v4  ;;  %v1547_v18 = vpop.xlane.xlu1 %1546 }
 0x431   : > { %v1567_v2 = vsub.f32 %v4790_v46, %v1547_v18 }
 0x432   : > { %v1578_v59 = vmul.f32 1.442695, %v1569_v34 }
 0x433   : > { %v1556_v5 = vpop.xlane.xlu0 %1555 }
 0x434   : > { %4001 = vpow2.f32 %v1578_v59  ;;  %v1570_v38 = vsub.f32 %v4795_v23, %v1556_v5  ;;  %v1407_v23 = vadd.f32 %v1391_v50, %v4383_v63 }
 0x436   : > { %v1580_v15 = vmul.f32 1.442695, %v1570_v38 }
 0x437   : > { %v1566_v9 = vpop.xlane.xlu1 %1565  ;;  %v1550_v48 = vpop.xlane.xlu0 %1549 }
 0x438   : > { %4003 = vpow2.f32 %v1580_v15  ;;  %v1573_v49 = vsub.f32 %v1543_v35, %v1566_v9  ;;  %v1568_v39 = vsub.f32 %v1538_v1, %v1550_v48  ;;  %v1574_v35 = vmul.f32 1.442695, %v1567_v2 }
 0x43a   : > { %v1576_v26 = vmul.f32 1.442695, %v1568_v39  ;;  %v1586_v54 = vmul.f32 1.442695, %v1573_v49 }
 0x43b   : > { %v1559_v7 = vpop.xlane.xlu1 %1558  ;;  %v1395_v22 = vpop.permute.xlu0 %1394 }
 0x43c   : > { %4005 = vpow2.f32 %v1576_v26  ;;  %v1409_v29 = vadd.f32 %v1395_v22, %v5500_v27  ;;  %v1571_v25 = vsub.f32 %v4815_v56, %v1559_v7 }
 0x43d   : > { %4007 = vpow2.f32 %v1586_v54 }
 0x43e   : > { %v4844_v16 = vpop.eup %4001  ;;  %v4859_v63 = vpack.c.bf16 %v1409_v29, %v1409_v29  ;;  %4009 = vpow2.f32 %v1574_v35  ;;  %v1582_v20 = vmul.f32 1.442695, %v1571_v25 }
 0x43f   : > { %v1393_v17 = vpop.permute.xlu1 %1392  ;;  %v1594_v19 = vsel %vm1544_vm8, %v4844_v16, 0.0 }
 0x440   : > { %v1408_v40 = vadd.f32 %v1393_v17, %v5499_v12  ;;  %1595 = vadd.xlane.f32.xlu0 %v1594_v19  ;;  %4011 = vpow2.f32 %v1582_v20 }
 0x442   : > { %v4850_v61 = vpop.eup %4003  ;;  %v4853_v33 = vpack.c.bf16 %v1408_v40, %v1407_v23 }
 0x443   : > { %v1636_v14 = vpop.permute.xlu1 %1635  ;;  %v1597_v1 = vsel %vm1544_vm8, %v4850_v61, 0.0 }
 0x444   : > { %3717 = vmatprep.subr.bf16.mxu0 %v1636_v14  ;;  %1639 = vrot.lane.b32.xlu1 %v4853_v33, %s4158_s1 }
 0x445   : > { %1598 = vadd.xlane.f32.xlu0 %v1597_v1  ;;  %3718 = vmatpush3.bf16.msra.mxu0 %v1636_v14 }
 0x446   : > { %v4861_v28 = vpop.eup %4005 }
 0x447   : > { %v1591_v10 = vsel %vm1544_vm8, %v4861_v28, 0.0  ;;  %v4867_v58 = vpop.eup %4007 }
 0x448   : > { %1641 = vrot.lane.b32.xlu1 %v4859_v63, %s4158_s1  ;;  %v1606_v44 = vsel %vm1563_vm9, %v4867_v58, 0.0  ;;  %v4010_v43 = vpop.eup %4009  ;;  %s4160_s1 = smov 88  }
 0x449   : > { %1592 = vadd.xlane.f32.xlu0 %v1591_v10  ;;  %v1588_v32 = vsel %vm1544_vm8, %v4010_v43, 0.0 }
 0x44a   : > { %v4874_v6 = vpop.eup %4011 }
 0x44b   : > { %v1600_v13 = vsel %vm1544_vm8, %v4874_v6, 0.0 }
 0x44d   : > { %1607 = vadd.xlane.f32.xlu0 %v1606_v44 }
 0x46c   : > { %1589 = vadd.xlane.f32.xlu1 %v1588_v32  ;;  %v1562_v21 = vpop.xlane.xlu0 %1561 }
 0x46d   : > { %v1572_v31 = vsub.f32 %v4832_v47, %v1562_v21 }
 0x46f   : > { %v1584_v37 = vmul.f32 1.442695, %v1572_v31 }
 0x470   : > { %1601 = vadd.xlane.f32.xlu1 %v1600_v13  ;;  %v1638_v46 = vpop.permute.xlu0 %1637 }
 0x471   : > { %4013 = vpow2.f32 %v1584_v37  ;;  %3719 = vmatprep.subr.bf16.mxu0 %v1638_v46 }
 0x472   : > { %3720 = vmatpush3.bf16.msra.mxu0 %v1638_v46 }
 0x47b   : > { %v4879_v56 = vpop.eup %4013 }
 0x47c   : > { %v1603_v53 = vsel %vm1544_vm8, %v4879_v56, 0.0 }
 0x47d   : > { %1604 = vadd.xlane.f32.xlu0 %v1603_v53 }
 0x481   : > { %1742 = vrot.lane.b32.xlu1 %v5501_v3, %s4160_s1 }
 0x485   : > { %1744 = vrot.lane.b32.xlu1 %v5502_v45, %s4160_s1 }
 0x489   : > { %1746 = vrot.lane.b32.xlu1 %v5503_v62, %s4160_s1 }
 0x48d   : > { %1734 = vrot.lane.b32.xlu1 %v5501_v3, %s4161_s20 }
 0x491   : > { %1738 = vrot.lane.b32.xlu1 %v5503_v62, %s4161_s20 }
 0x493   : > { %1740 = vrot.lane.b32.xlu0 %v5504_v60, %s4160_s1 }
 0x495   : > { %2208 = vrot.lane.b32.xlu1 %v5501_v3, %s4162_s21 }
 0x497   : > { %1732 = vrot.lane.b32.xlu0 %v5504_v60, %s4161_s20 }
 0x499   : > { %2212 = vrot.lane.b32.xlu1 %v5503_v62, %s4162_s21 }
 0x49b   : > { %1736 = vrot.lane.b32.xlu0 %v5502_v45, %s4161_s20  ;;  %s4168_s20 = smov 16  }
 0x49d   : > { %2200 = vrot.lane.b32.xlu1 %v5501_v3, %s4163_s22 }
 0x49f   : > { %2206 = vrot.lane.b32.xlu0 %v5504_v60, %s4162_s21 }
 0x4a1   : > { %2204 = vrot.lane.b32.xlu1 %v5503_v62, %s4163_s22 }
 0x4a3   : > { %2210 = vrot.lane.b32.xlu0 %v5502_v45, %s4162_s21 }
 0x4a7   : > { %2198 = vrot.lane.b32.xlu0 %v5504_v60, %s4163_s22 }
 0x4ab   : > { %2202 = vrot.lane.b32.xlu0 %v5502_v45, %s4163_s22 }
 0x4b6   : > { %v1640_v30 = vpop.permute.xlu1 %1639 }
 0x4b7   : > { %3721 = vmatprep.subr.bf16.mxu0 %v1640_v30 }
 0x4b8   : > { %3722 = vmatpush3.bf16.msra.mxu0 %v1640_v30 }
 0x4ba   : > { %v1642_v36 = vpop.permute.xlu1 %1641 }
 0x4bb   : > { %v1662_v0 = vand.u32 %v4900_v57, %v1642_v36 }
 0x4bd   : > { %3723 = vmatprep.subr.bf16.mxu0 %v1662_v0 }
 0x4be   : > { %3724 = vmatpush3.bf16.msra.mxu0 %v1662_v0 }
 0x4cd   : > { %v1596_v41 = vpop.xlane.xlu0 %1595 }
 0x4d2   : > { %v1599_v47 = vpop.xlane.xlu0 %1598 }
 0x4d3   : > { %4015 = vrcp.f32 %v1599_v47 }
 0x4d6   : > { %v1593_v8 = vpop.xlane.xlu0 %1592 }
 0x4d7   : > { %4017 = vrcp.f32 %v1593_v8 }
 0x4d8   : > { %4019 = vrcp.f32 %v1596_v41 }
 0x4da   : > { %v1608_v59 = vpop.xlane.xlu0 %1607 }
 0x4dd   : > { %v4016_v51 = vpop.eup %4015 }
 0x4de   : > { %v1619_v34 = vmul.f32 %v4016_v51, %v4850_v61 }
 0x4e1   : > { %v4018_v52 = vpop.eup %4017 }
 0x4e2   : > { %v4020_v50 = vpop.eup %4019  ;;  %v1617_v5 = vmul.f32 %v4018_v52, %v4861_v28 }
 0x4e3   : > { %v1618_v38 = vmul.f32 %v4020_v50, %v4844_v16 }
 0x4e5   : > { %v1624_v48 = vpack.c.bf16 %v1619_v34, %v1618_v38  ;;  %v3504_v38 = vld [vmem:[%s5459_s10 + $0x40] sm:$0xff] }
 0x4f9   : > { %v1590_v55 = vpop.xlane.xlu1 %1589 }
 0x4fa   : > { %4021 = vrcp.f32 %v1590_v55 }
 0x4fb   : > { %4023 = vrcp.f32 %v1608_v59 }
 0x4fd   : > { %v1602_v15 = vpop.xlane.xlu1 %1601 }
 0x4fe   : > { %4025 = vrcp.f32 %v1602_v15  ;;  %v3505_v15 = vld [vmem:[%s5459_s10 + $0x48] sm:$0xff] }
 0x501   : > { %v1743_v54 = vpop.permute.xlu1 %1742 }
 0x502   : > { %v1764_v12 = vsel %vm5509_vm0, %v1743_v54, 0 }
 0x504   : > { %v4022_v4 = vpop.eup %4021 }
 0x505   : > { %v1616_v18 = vmul.f32 %v4022_v4, %v4010_v43  ;;  %v4024_v7 = vpop.eup %4023  ;;  %v1745_v40 = vpop.permute.xlu1 %1744  ;;  %v3503_v4 = vld [vmem:[%s5459_s10 + $0x38] sm:$0xff] }
 0x506   : > { %v1622_v17 = vmul.f32 %v4024_v7, %v4867_v58  ;;  %v1767_v1 = vsel %vm5512_vm12, %v1745_v40, 0  ;;  %vm5525_vm12 = vmmov %vm5509_vm0  ;;  %v3506_v7 = vld [vmem:[%s5459_s10 + $0x50] sm:$0xff] }
 0x507   : > { %v1623_v9 = vpack.c.bf16 %v1617_v5, %v1616_v18 }
 0x508   : > { %v4026_v16 = vpop.eup %4025  ;;  %v1626_v27 = vpack.c.bf16 %v1622_v17, %v1622_v17 }
 0x509   : > { %3725 = vmatprep.mubr.msk.bf16.mxu0 %vm1544_vm8, %v1623_v9  ;;  %v1620_v19 = vmul.f32 %v4026_v16, %v4874_v6  ;;  %v1747_v14 = vpop.permute.xlu1 %1746 }
 0x50a   : > { %3726 = vmatmul.mubr.msk.bf16.vlgmr.msra.gmra.mrb[8].mxu0 %vm1544_vm8, %v1624_v48  ;;  %v1605_v49 = vpop.xlane.xlu0 %1604  ;;  %v1770_v58 = vsel %vm5514_vm5, %v1747_v14, 0  ;;  %vm5527_vm5 = vmmov %vm5509_vm0 }
 0x50b   : > { %4027 = vrcp.f32 %v1605_v49 }
 0x50d   : > { %v1735_v10 = vpop.permute.xlu1 %1734 }
 0x50e   : > { %v1741_v39 = vpop.permute.xlu0 %1740 }
 0x50f   : > { %v1761_v26 = vsel %vm5506_vm11, %v1741_v39, 0  ;;  %3913 = vmatprep.subr.msk.bf16.mxu0 %vm5507_vm13, %v1741_v39  ;;  %vm5520_vm11 = vmmov %vm5509_vm0 }
 0x510   : > { %3734 = vmatpush3.bf16.xpose.msra.mxu0 %v1761_v26  ;;  %vm5521_vm13 = vmmov %vm5509_vm0 }
 0x511   : > { %3914 = vmatprep.subr.msk.bf16.mxu0 %vm5508_vm1, %v1743_v54  ;;  %v1739_v2 = vpop.permute.xlu1 %1738  ;;  %vm5522_vm1 = vmmov %vm5509_vm0 }
 0x512   : > { %v1733_v29 = vpop.permute.xlu0 %1732 }
 0x515   : > { %v4028_v22 = vpop.eup %4027  ;;  %v2209_v25 = vpop.permute.xlu1 %2208 }
 0x516   : > { %v1621_v23 = vmul.f32 %v4028_v22, %v4879_v56  ;;  %v1737_v28 = vpop.permute.xlu0 %1736  ;;  %v2230_v43 = vsel %vm5520_vm11, %v2209_v25, 0  ;;  %vm5533_vm11 = vmmov %vm5509_vm0 }
 0x518   : > { %3736 = vmatpush3.bf16.xpose.msra.mxu0 %v1764_v12  ;;  %v1625_v61 = vpack.c.bf16 %v1621_v23, %v1620_v19 }
 0x519   : > { %3915 = vmatprep.subr.msk.bf16.mxu0 %vm5510_vm2, %v1745_v40  ;;  %vm5523_vm2 = vmmov %vm5509_vm0  ;;  %v2213_v21 = vpop.permute.xlu1 %2212 }
 0x51a   : > { %3729 = vmatprep.mubr.msk.bf16.mxu0 %vm1544_vm8, %v1625_v61  ;;  %v2207_v44 = vpop.permute.xlu0 %2206  ;;  %v2236_v31 = vsel %vm5525_vm12, %v2213_v21, 0  ;;  %vm5538_vm12 = vmmov %vm5509_vm0 }
 0x51b   : > { %3730 = vmatmul.mubr.msk.bf16.gmra.mrb[12].mxu0 %vm1544_vm8, %v1626_v27  ;;  %v2227_v35 = vsel %vm5516_vm14, %v2207_v44, 0  ;;  %v3508_v27 = vld [vmem:[%s5459_s10 + $0x60] sm:$0xff]  ;;  %vm5529_vm14 = vmmov %vm5509_vm0 }
 0x51c   : > { %3741 = vmatprep.mubr.msk.bf16.mxu0 %vm5511_vm3, %v1733_v29  ;;  %vm5524_vm3 = vmmov %vm5509_vm0  ;;  %v3507_v29 = vld [vmem:[%s5459_s10 + $0x58] sm:$0xff] }
 0x51d   : > { %v2201_v37 = vpop.permute.xlu1 %2200 }
 0x51e   : > { %v2211_v20 = vpop.permute.xlu0 %2210 }
 0x51f   : > { %v2233_v6 = vsel %vm5523_vm2, %v2211_v20, 0  ;;  %vm5536_vm2 = vmmov %vm5509_vm0 }
 0x520   : > { %3738 = vmatpush3.bf16.xpose.msra.mxu0 %v1767_v1 }
 0x521   : > { %3916 = vmatprep.subr.msk.bf16.mxu0 %vm5513_vm15, %v1747_v14  ;;  %vm5526_vm15 = vmmov %vm5509_vm0  ;;  %v2205_v46 = vpop.permute.xlu1 %2204 }
 0x522   : > { %v2199_v32 = vpop.permute.xlu0 %2198 }
 0x526   : > { %v2203_v13 = vpop.permute.xlu0 %2202 }
 0x528   : > { %3740 = vmatpush3.bf16.xpose.msra.mxu0 %v1770_v58 }
 0x529   : > { %3917 = vmatprep.subr.msk.bf16.mxu0 %vm5515_vm6, %v2207_v44  ;;  %vm5528_vm6 = vmmov %vm5509_vm0  ;;  %v3509_v44 = vld [vmem:[%s5459_s10 + $0x68] sm:$0x1] }
 0x52f   : > { %3742 = vmatmul.mubr.msk.bf16.vlgmr.msra.gmra.mrb[16].mxu0 %vm5517_vm4, %v1735_v10  ;;  %vm5530_vm4 = vmmov %vm5509_vm0 }
 0x530   : > { %3745 = vmatprep.mubr.msk.bf16.mxu0 %vm5518_vm7, %v1737_v28  ;;  %3786 = vmatpush3.bf16.xpose.msra.mxu0 %v2227_v35  ;;  %vm5531_vm7 = vmmov %vm5509_vm0 }
 0x531   : > { %3918 = vmatprep.subr.msk.bf16.mxu0 %vm5519_vm10, %v2209_v25  ;;  %vm5532_vm10 = vmmov %vm5509_vm0 }
 0x537   : > { %3746 = vmatmul.mubr.msk.bf16.gmra.mrb[20].mxu0 %vm5521_vm13, %v1739_v2  ;;  %vm5534_vm13 = vmmov %vm5509_vm0 }
 0x538   : > { %3788 = vmatpush3.bf16.xpose.msra.mxu0 %v2230_v43  ;;  %3793 = vmatprep.mubr.msk.bf16.mxu0 %vm5522_vm1, %v2199_v32  ;;  %vm5535_vm1 = vmmov %vm5509_vm0 }
 0x539   : > { %3919 = vmatprep.subr.msk.bf16.mxu0 %vm5509_vm0, %v2211_v20 }
 0x540   : > { %3790 = vmatpush3.bf16.xpose.msra.mxu0 %v2233_v6 }
 0x541   : > { %3920 = vmatprep.subr.msk.bf16.mxu0 %vm5524_vm3, %v2213_v21  ;;  %vm5537_vm3 = vmmov %vm5509_vm0 }
 0x548   : > { %3792 = vmatpush3.bf16.xpose.msra.mxu0 %v2236_v31 }
 0x54f   : > { %3794 = vmatmul.mubr.msk.bf16.vlgmr.msra.gmra.mrb[24].mxu0 %vm5526_vm15, %v2201_v37  ;;  %vm5539_vm15 = vmmov %vm5509_vm0 }
 0x550   : > { %3797 = vmatprep.mubr.msk.bf16.mxu0 %vm5527_vm5, %v2203_v13  ;;  %vm2039_vm5 = vcmask 130048  }
 0x557   : > { %3798 = vmatmul.mubr.msk.bf16.gmra.mrb[28].mxu0 %vm5528_vm6, %v2205_v46 }
 0x5dd   : > { %v4937_v56 = vpop.f32.mrb[8].mxu0 }
 0x5de   : > { %v4939_v53 = vpop.f32.mrb[9].mxu0 }
 0x5df   : > { %v4941_v30 = vpop.f32.mrb[10].mxu0 }
 0x5e0   : > { %v1729_v24 = vpack.c.bf16 %v4941_v30, %v4937_v56  ;;  %v4945_v36 = vpop.f32.mrb[11].mxu0  ;;  %v3550_v56 = vld [vmem:[%s5459_s10 + $0xb8] sm:$0xff] }
 0x5e1   : > { %v1728_v0 = vpack.c.bf16 %v4945_v36, %v4939_v53 }
 0x5ee   : > { %v4949_v41 = vpop.f32.mrb[12].mxu0 }
 0x5ef   : > { %v4951_v47 = vpop.f32.mrb[13].mxu0 }
 0x5f0   : > { %v3732_v8 = vpop.f32.mrb[14].mxu0 }
 0x5f1   : > { %v4953_v55 = vpop.f32.mrb[15].mxu0 }
 0x5f2   : > { %v1730_v51 = vpack.c.bf16 %v4953_v55, %v4951_v47 }
 0x602   : > { %v3743_v52 = vpop.f32.mrb[16].mxu0 }
 0x603   : > { %v1806_v50 = vpop.f32.mrb[17].mxu0  ;;  %v1838_v34 = vmul.f32 0.35355338, %v3743_v52 }
 0x604   : > { %v1836_v59 = vmul.f32 0.35355338, %v1806_v50  ;;  %v3744_v18 = vpop.f32.mrb[18].mxu0 }
 0x605   : > { %v1809_v5 = vpop.f32.mrb[19].mxu0  ;;  %v1839_v49 = vmul.f32 0.35355338, %v3744_v18  ;;  %v1853_v54 = vadd.f32 %v3505_v15, %v1838_v34 }
 0x606   : > { %v1837_v9 = vmul.f32 0.35355338, %v1809_v5  ;;  %v1851_v48 = vadd.f32 %v3503_v4, %v1836_v59 }
 0x607   : > { %v1864_v12 = vsel %vm1544_vm8, %v1853_v54, -inf  ;;  %v1854_v40 = vadd.f32 %v3506_v7, %v1839_v49 }
 0x608   : > { %v1858_v39 = vsel %vm1544_vm8, %v1851_v48, -inf  ;;  %v1852_v26 = vadd.f32 %v3504_v38, %v1837_v9 }
 0x609   : > { %1859 = vmax.xlane.f32.xlu0 %v1858_v39  ;;  %v1867_v28 = vsel %vm1544_vm8, %v1854_v40, -inf }
 0x60a   : > { %v3747_v16 = vpop.f32.mrb[20].mxu0  ;;  %v1861_v22 = vsel %vm1544_vm8, %v1852_v26, -inf }
 0x60b   : > { %1862 = vmax.xlane.f32.xlu1 %v1861_v22  ;;  %v1822_v17 = vpop.f32.mrb[21].mxu0  ;;  %v1842_v1 = vmul.f32 0.35355338, %v3747_v16 }
 0x60c   : > { %v1840_v19 = vmul.f32 0.35355338, %v1822_v17  ;;  %v3748_v23 = vpop.f32.mrb[22].mxu0 }
 0x60d   : > { %1865 = vmax.xlane.f32.xlu0 %v1864_v12  ;;  %v1825_v61 = vpop.f32.mrb[23].mxu0  ;;  %v1857_v25 = vadd.f32 %v3509_v44, %v1842_v1 }
 0x60e   : > { %v1841_v14 = vmul.f32 0.35355338, %v1825_v61  ;;  %v1855_v58 = vadd.f32 %v3507_v29, %v1840_v19 }
 0x60f   : > { %v1876_v20 = vsel %vm1563_vm9, %v1857_v25, -inf }
 0x610   : > { %v1856_v10 = vadd.f32 %v3508_v27, %v1841_v14  ;;  %v1870_v35 = vsel %vm1544_vm8, %v1855_v58, -inf }
 0x611   : > { %1868 = vmax.xlane.f32.xlu0 %v1867_v28 }
 0x612   : > { %v1873_v2 = vsel %vm1544_vm8, %v1856_v10, -inf }
 0x613   : > { %1874 = vmax.xlane.f32.xlu1 %v1873_v2 }
 0x615   : > { %1871 = vmax.xlane.f32.xlu0 %v1870_v35 }
 0x619   : > { %1877 = vmax.xlane.f32.xlu0 %v1876_v20  ;;  %v3528_v20 = vld [vmem:[%s5459_s10 + $0x70] sm:$0xff] }
 0x622   : > { %v4985_v43 = vpop.f32.mrb[24].mxu0 }
 0x623   : > { %v4987_v32 = vpop.f32.mrb[25].mxu0 }
 0x624   : > { %v4989_v6 = vpop.f32.mrb[26].mxu0 }
 0x625   : > { %v4991_v21 = vpop.f32.mrb[27].mxu0 }
 0x62a   : > { %v4993_v31 = vpop.f32.mrb[28].mxu0 }
 0x62b   : > { %v4995_v37 = vpop.f32.mrb[29].mxu0 }
 0x62c   : > { %v3800_v13 = vpop.f32.mrb[30].mxu0 }
 0x62d   : > { %v4997_v46 = vpop.f32.mrb[31].mxu0  ;;  %v2304_v13 = vmul.f32 0.35355338, %v4985_v43  ;;  %v2303_v43 = vmul.f32 0.35355338, %v4991_v21 }
 0x62e   : > { %v2308_v21 = vmul.f32 0.35355338, %v4993_v31 }
 0x696   : > { %v1860_v8 = vpop.xlane.xlu0 %1859 }
 0x697   : > { %v1879_v52 = vsub.f32 %v1851_v48, %v1860_v8 }
 0x698   : > { %v1863_v50 = vpop.xlane.xlu1 %1862 }
 0x699   : > { %v1886_v59 = vmul.f32 1.442695, %v1879_v52  ;;  %v1880_v18 = vsub.f32 %v1852_v26, %v1863_v50  ;;  %v3529_v50 = vld [vmem:[%s5459_s10 + $0x78] sm:$0xff] }
 0x69a   : > { %v1866_v4 = vpop.xlane.xlu0 %1865 }
 0x69b   : > { %v1881_v34 = vsub.f32 %v1853_v54, %v1866_v4  ;;  %v1888_v49 = vmul.f32 1.442695, %v1880_v18  ;;  %v2306_v4 = vmul.f32 0.35355338, %v4995_v37  ;;  %v3534_v37 = vld [vmem:[%s5459_s10 + $0xa0] sm:$0x1] }
 0x69d   : > { %v1890_v5 = vmul.f32 1.442695, %v1881_v34  ;;  %v3532_v34 = vld [vmem:[%s5459_s10 + $0x90] sm:$0xff] }
 0x69e   : > { %v1869_v38 = vpop.xlane.xlu0 %1868  ;;  %v5072_v18 = vadd.f32 %v3532_v34, %v2306_v4 }
 0x69f   : > { %4029 = vpow2.f32 %v1890_v5  ;;  %v1882_v15 = vsub.f32 %v1854_v40, %v1869_v38  ;;  %v2307_v5 = vmul.f32 0.35355338, %v4997_v46 }
 0x6a0   : > { %v1875_v9 = vpop.xlane.xlu1 %1874  ;;  %4031 = vpow2.f32 %v1886_v59  ;;  %v5069_v59 = vadd.f32 %v3529_v50, %v2303_v43  ;;  %v2336_v31 = vsel %vm1544_vm8, %v5072_v18, -inf }
 0x6a1   : > { %v1892_v39 = vmul.f32 1.442695, %v1882_v15  ;;  %v1884_v7 = vsub.f32 %v1856_v10, %v1875_v9  ;;  %v3533_v15 = vld [vmem:[%s5459_s10 + $0x98] sm:$0xff]  ;;  %v5083_v9 = vadd.f32 %v3534_v37, %v2308_v21 }
 0x6a2   : > { %v1872_v16 = vpop.xlane.xlu0 %1871  ;;  %v2327_v46 = vsel %vm1544_vm8, %v5069_v59, -inf }
 0x6a3   : > { %4033 = vpow2.f32 %v1892_v39  ;;  %v1896_v22 = vmul.f32 1.442695, %v1884_v7  ;;  %v1883_v17 = vsub.f32 %v1855_v58, %v1872_v16  ;;  %v2342_v39 = vsel %vm1563_vm9, %v5083_v9, -inf }
 0x6a4   : > { %4035 = vpow2.f32 %v1888_v49  ;;  %v5085_v49 = vadd.f32 %v3533_v15, %v2307_v5 }
 0x6a5   : > { %4037 = vpow2.f32 %v1896_v22  ;;  %v1894_v26 = vmul.f32 1.442695, %v1883_v17 }
 0x6a6   : > { %v1878_v48 = vpop.xlane.xlu0 %1877  ;;  %v2339_v7 = vsel %vm1544_vm8, %v5085_v49, -inf }
 0x6a7   : > { %v1885_v19 = vsub.f32 %v1857_v25, %v1878_v48  ;;  %v2302_v25 = vmul.f32 0.35355338, %v4987_v32 }
 0x6a9   : > { %v4999_v23 = vpop.eup %4029  ;;  %v1898_v54 = vmul.f32 1.442695, %v1885_v19  ;;  %v5044_v8 = vadd.f32 %v3528_v20, %v2302_v25 }
 0x6aa   : > { %v1906_v12 = vsel %vm1544_vm8, %v4999_v23, 0.0  ;;  %v5003_v40 = vpop.eup %4031 }
 0x6ab   : > { %4039 = vpow2.f32 %v1898_v54  ;;  %1907 = vadd.xlane.f32.xlu1 %v1906_v12  ;;  %v1900_v27 = vsel %vm1544_vm8, %v5003_v40, 0.0 }
 0x6ac   : > { %4041 = vpow2.f32 %v1894_v26 }
 0x6ad   : > { %v5005_v61 = vpop.eup %4033 }
 0x6ae   : > { %v1909_v29 = vsel %vm1544_vm8, %v5005_v61, 0.0  ;;  %v5011_v14 = vpop.eup %4035 }
 0x6af   : > { %1901 = vadd.xlane.f32.xlu1 %v1900_v27  ;;  %1910 = vadd.xlane.f32.xlu0 %v1909_v29  ;;  %v1903_v1 = vsel %vm1544_vm8, %v5011_v14, 0.0  ;;  %v5015_v28 = vpop.eup %4037 }
 0x6b0   : > { %v1915_v58 = vsel %vm1544_vm8, %v5015_v28, 0.0 }
 0x6b3   : > { %1904 = vadd.xlane.f32.xlu0 %v1903_v1 }
 0x6b5   : > { %v5017_v10 = vpop.eup %4039 }
 0x6b6   : > { %v1918_v44 = vsel %vm1563_vm9, %v5017_v10, 0.0  ;;  %v5023_v2 = vpop.eup %4041 }
 0x6b7   : > { %1916 = vadd.xlane.f32.xlu0 %v1915_v58  ;;  %1919 = vadd.xlane.f32.xlu1 %v1918_v44  ;;  %v1912_v35 = vsel %vm1544_vm8, %v5023_v2, 0.0 }
 0x6bb   : > { %1913 = vadd.xlane.f32.xlu1 %v1912_v35 }
 0x6cc   : > { %1941 = vrot.lane.b32.xlu1 %v4838_v42, %s4164_s29 }
 0x6cd   : > { %1939 = vrot.lane.b32.xlu0 %v4825_v11, %s4164_s29 }
 0x6d0   : > { %1943 = vrot.lane.b32.xlu1 %v4853_v33, %s4164_s29 }
 0x6d1   : > { %2596 = vrot.lane.b32.xlu0 %v5504_v60, %s4165_s30 }
 0x6d4   : > { %1945 = vrot.lane.b32.xlu1 %v4859_v63, %s4164_s29 }
 0x6d5   : > { %2600 = vrot.lane.b32.xlu0 %v5502_v45, %s4165_s30 }
 0x6d8   : > { %2598 = vrot.lane.b32.xlu1 %v5501_v3, %s4165_s30 }
 0x6d9   : > { %2588 = vrot.lane.b32.xlu0 %v5504_v60, %s4166_s18  ;;  %v3530_v60 = vld [vmem:[%s5459_s10 + $0x80] sm:$0xff] }
 0x6da   : > { %v5049_v52 = vadd.f32 %v3530_v60, %v2304_v13 }
 0x6dc   : > { %2602 = vrot.lane.b32.xlu1 %v5503_v62, %s4165_s30 }
 0x6dd   : > { %2592 = vrot.lane.b32.xlu0 %v5502_v45, %s4166_s18  ;;  %v2324_v45 = vsel %vm1544_vm8, %v5044_v8, -inf }
 0x6e0   : > { %2590 = vrot.lane.b32.xlu1 %v5501_v3, %s4166_s18  ;;  %v2305_v3 = vmul.f32 0.35355338, %v4989_v6  ;;  %v2330_v6 = vsel %vm1544_vm8, %v5049_v52, -inf }
 0x6e4   : > { %2594 = vrot.lane.b32.xlu1 %v5503_v62, %s4166_s18  ;;  %v3531_v62 = vld [vmem:[%s5459_s10 + $0x88] sm:$0xff] }
 0x6e5   : > { %v5058_v32 = vadd.f32 %v3531_v62, %v2305_v3 }
 0x6e7   : > { %v2333_v38 = vsel %vm1544_vm8, %v5058_v32, -inf }
 0x6fc   : > { %2325 = vmax.xlane.f32.xlu0 %v2324_v45 }
 0x700   : > { %2331 = vmax.xlane.f32.xlu0 %v2330_v6 }
 0x704   : > { %2334 = vmax.xlane.f32.xlu0 %v2333_v38 }
 0x708   : > { %2337 = vmax.xlane.f32.xlu0 %v2336_v31  ;;  %2328 = vmax.xlane.f32.xlu1 %v2327_v46 }
 0x70c   : > { %2343 = vmax.xlane.f32.xlu0 %v2342_v39  ;;  %2340 = vmax.xlane.f32.xlu1 %v2339_v7 }
 0x738   : > { %v1908_v16 = vpop.xlane.xlu1 %1907 }
 0x73c   : > { %v1902_v22 = vpop.xlane.xlu1 %1901  ;;  %v1911_v17 = vpop.xlane.xlu0 %1910 }
 0x73d   : > { %4043 = vrcp.f32 %v1902_v22 }
 0x740   : > { %v1905_v48 = vpop.xlane.xlu0 %1904 }
 0x741   : > { %4045 = vrcp.f32 %v1905_v48 }
 0x742   : > { %4047 = vrcp.f32 %v1911_v17 }
 0x744   : > { %v1920_v19 = vpop.xlane.xlu1 %1919  ;;  %v1917_v26 = vpop.xlane.xlu0 %1916 }
 0x747   : > { %v4044_v27 = vpop.eup %4043 }
 0x748   : > { %v1914_v54 = vpop.xlane.xlu1 %1913  ;;  %v1940_v12 = vpop.permute.xlu0 %1939  ;;  %v1928_v44 = vmul.f32 %v4044_v27, %v5003_v40 }
 0x749   : > { %4049 = vrcp.f32 %v1914_v54  ;;  %3749 = vmatprep.subr.bf16.mxu1 %v1940_v12 }
 0x74a   : > { %4051 = vrcp.f32 %v1908_v16  ;;  %3750 = vmatpush3.bf16.msra.mxu1 %v1940_v12 }
 0x74b   : > { %v4046_v29 = vpop.eup %4045  ;;  %4053 = vrcp.f32 %v1917_v26 }
 0x74c   : > { %v1942_v1 = vpop.permute.xlu1 %1941  ;;  %v2597_v58 = vpop.permute.xlu0 %2596  ;;  %v1929_v35 = vmul.f32 %v4046_v29, %v5011_v14  ;;  %4055 = vrcp.f32 %v1920_v19 }
 0x74d   : > { %v2617_v25 = vsel %vm5529_vm14, %v2597_v58, 0  ;;  %3751 = vmatprep.subr.bf16.mxu1 %v1942_v1  ;;  %3921 = vmatprep.subr.msk.bf16.mxu0 %vm5530_vm4, %v2597_v58  ;;  %v4048_v3 = vpop.eup %4047 }
 0x74e   : > { %3752 = vmatpush3.bf16.msra.mxu1 %v1942_v1  ;;  %3828 = vmatpush3.bf16.xpose.msra.mxu0 %v2617_v25  ;;  %v1935_v20 = vpack.c.bf16 %v1929_v35, %v1928_v44  ;;  %v1931_v50 = vmul.f32 %v4048_v3, %v5005_v61 }
 0x750   : > { %v1944_v13 = vpop.permute.xlu1 %1943  ;;  %3757 = vmatprep.mubr.msk.bf16.mxu1 %vm1544_vm8, %v1935_v20  ;;  %v2601_v60 = vpop.permute.xlu0 %2600 }
 0x751   : > { %3753 = vmatprep.subr.bf16.mxu1 %v1944_v13 }
 0x752   : > { %3754 = vmatpush3.bf16.msra.mxu1 %v1944_v13 }
 0x753   : > { %v4050_v45 = vpop.eup %4049 }
 0x754   : > { %v4052_v40 = vpop.eup %4051  ;;  %v1946_v62 = vpop.permute.xlu1 %1945  ;;  %v1932_v6 = vmul.f32 %v4050_v45, %v5023_v2  ;;  %v2623_v2 = vsel %vm5535_vm1, %v2601_v60, 0 }
 0x755   : > { %v2589_v14 = vpop.permute.xlu0 %2588  ;;  %v4054_v43 = vpop.eup %4053  ;;  %v1963_v4 = vand.u32 %v1946_v62, %v4900_v57  ;;  %v1930_v34 = vmul.f32 %v4052_v40, %v4999_v23 }
 0x756   : > { %3835 = vmatprep.mubr.msk.bf16.mxu0 %vm5531_vm7, %v2589_v14  ;;  %v1933_v5 = vmul.f32 %v4054_v43, %v5015_v28  ;;  %v4056_v15 = vpop.eup %4055 }
 0x757   : > { %3755 = vmatprep.subr.bf16.mxu1 %v1963_v4  ;;  %v1936_v38 = vpack.c.bf16 %v1931_v50, %v1930_v34  ;;  %v1934_v23 = vmul.f32 %v4056_v15, %v5017_v10 }
 0x758   : > { %v2599_v21 = vpop.permute.xlu1 %2598  ;;  %3756 = vmatpush3.bf16.msra.mxu1 %v1963_v4  ;;  %v1937_v61 = vpack.c.bf16 %v1933_v5, %v1932_v6  ;;  %v3964_v5 = vld [vmem:[%s5457_s8] sm:$0xff]  }
 0x759   : > { %v2620_v37 = vsel %vm5532_vm10, %v2599_v21, 0  ;;  %3922 = vmatprep.subr.msk.bf16.mxu0 %vm5533_vm11, %v2599_v21  ;;  %v1938_v31 = vpack.c.bf16 %v1934_v23, %v1934_v23  ;;  %v2593_v7 = vpop.permute.xlu0 %2592  ;;  %v3963_v21 = vld [vmem:[%s5457_s8 + $0x8] sm:$0xff]   ;;  %vm5546_vm10 = vcmask 253952  }
 0x75a   : > { %3830 = vmatpush3.bf16.xpose.msra.mxu0 %v2620_v37  ;;  %3765 = vmatprep.subr.bf16.mxu1 %v3963_v21 }
 0x75b   : > { %3758 = vmatmul.mubr.msk.bf16.vlgmr.msra.gmra.mrb[8].mxu1 %vm1544_vm8, %v1936_v38  ;;  %3923 = vmatprep.subr.msk.bf16.mxu0 %vm5534_vm13, %v2601_v60 }
 0x75c   : > { %3761 = vmatprep.mubr.msk.bf16.mxu1 %vm1544_vm8, %v1937_v61  ;;  %v2603_v28 = vpop.permute.xlu1 %2602  ;;  %3766 = vmatpush3.bf16.msra.mxu1 %v3963_v21 }
 0x75d   : > { %v2626_v46 = vsel %vm5536_vm2, %v2603_v28, 0  ;;  %3775 = vmatprep.subr.bf16.mxu1 %v3964_v5 }
 0x760   : > { %v2591_v39 = vpop.permute.xlu1 %2590 }
 0x762   : > { %3832 = vmatpush3.bf16.xpose.msra.mxu0 %v2623_v2 }
 0x763   : > { %3762 = vmatmul.mubr.msk.bf16.gmra.mrb[12].mxu1 %vm1544_vm8, %v1938_v31  ;;  %3924 = vmatprep.subr.msk.bf16.mxu0 %vm5509_vm0, %v2603_v28 }
 0x764   : > { %v2595_v16 = vpop.permute.xlu1 %2594 }
 0x76a   : > { %3834 = vmatpush3.bf16.xpose.msra.mxu0 %v2626_v46 }
 0x771   : > { %3836 = vmatmul.mubr.msk.bf16.vlgmr.msra.gmra.mrb[32].mxu0 %vm5537_vm3, %v2591_v39 }
 0x772   : > { %3839 = vmatprep.mubr.msk.bf16.mxu0 %vm5538_vm12, %v2593_v7  ;;  %vm5553_vm12 = vmmov %vm5546_vm10 }
 0x779   : > { %3840 = vmatmul.mubr.msk.bf16.gmra.mrb[36].mxu0 %vm5539_vm15, %v2595_v16 }
 0x789   : > { %v2326_v10 = vpop.xlane.xlu0 %2325 }
 0x78a   : > { %v2345_v22 = vsub.f32 %v5044_v8, %v2326_v10 }
 0x78c   : > { %v2352_v19 = vmul.f32 1.442695, %v2345_v22 }
 0x78d   : > { %v2332_v17 = vpop.xlane.xlu0 %2331 }
 0x78e   : > { %v2347_v48 = vsub.f32 %v5049_v52, %v2332_v17 }
 0x790   : > { %v2356_v26 = vmul.f32 1.442695, %v2347_v48 }
 0x791   : > { %v2335_v54 = vpop.xlane.xlu0 %2334 }
 0x792   : > { %4057 = vpow2.f32 %v2356_v26  ;;  %v2348_v12 = vsub.f32 %v5058_v32, %v2335_v54 }
 0x793   : > { %4059 = vpow2.f32 %v2352_v19 }
 0x794   : > { %v2358_v27 = vmul.f32 1.442695, %v2348_v12 }
 0x795   : > { %v2329_v29 = vpop.xlane.xlu1 %2328  ;;  %v2338_v1 = vpop.xlane.xlu0 %2337 }
 0x796   : > { %4061 = vpow2.f32 %v2358_v27  ;;  %v2346_v58 = vsub.f32 %v5069_v59, %v2329_v29  ;;  %v2349_v35 = vsub.f32 %v5072_v18, %v2338_v1 }
 0x798   : > { %v2354_v44 = vmul.f32 1.442695, %v2346_v58  ;;  %v2360_v3 = vmul.f32 1.442695, %v2349_v35 }
 0x799   : > { %v2341_v8 = vpop.xlane.xlu1 %2340  ;;  %v2344_v25 = vpop.xlane.xlu0 %2343 }
 0x79a   : > { %4063 = vpow2.f32 %v2354_v44  ;;  %v2350_v52 = vsub.f32 %v5085_v49, %v2341_v8  ;;  %v2351_v20 = vsub.f32 %v5083_v9, %v2344_v25  ;;  %v3548_v44 = vld [vmem:[%s5459_s10 + $0xa8] sm:$0xff]  ;;  %v3549_v25 = vld [vmem:[%s5459_s10 + $0xb0] sm:$0xff] }
 0x79c   : > { %v5126_v13 = vpop.eup %4057  ;;  %v2362_v32 = vmul.f32 1.442695, %v2350_v52  ;;  %v2364_v60 = vmul.f32 1.442695, %v2351_v20 }
 0x79d   : > { %v2372_v45 = vsel %vm1544_vm8, %v5126_v13, 0.0  ;;  %v5130_v40 = vpop.eup %4059 }
 0x79e   : > { %4065 = vpow2.f32 %v2362_v32  ;;  %2373 = vadd.xlane.f32.xlu1 %v2372_v45  ;;  %v2366_v18 = vsel %vm1544_vm8, %v5130_v40, 0.0  ;;  %v1731_v45 = vpack.c.bf16 %v4949_v41, %v4949_v41 }
 0x79f   : > { %4067 = vpow2.f32 %v2364_v60 }
 0x7a0   : > { %v5132_v59 = vpop.eup %4061  ;;  %4069 = vpow2.f32 %v2360_v3 }
 0x7a1   : > { %v2375_v9 = vsel %vm1544_vm8, %v5132_v59, 0.0 }
 0x7a2   : > { %2367 = vadd.xlane.f32.xlu1 %v2366_v18  ;;  %2376 = vadd.xlane.f32.xlu0 %v2375_v9  ;;  %v3551_v18 = vld [vmem:[%s5459_s10 + $0xc0] sm:$0xff] }
 0x7a4   : > { %v5138_v49 = vpop.eup %4063 }
 0x7a5   : > { %v2369_v62 = vsel %vm1544_vm8, %v5138_v49, 0.0 }
 0x7a6   : > { %2370 = vadd.xlane.f32.xlu0 %v2369_v62 }
 0x7a8   : > { %v5142_v14 = vpop.eup %4065 }
 0x7a9   : > { %v5144_v43 = vpop.eup %4067  ;;  %v2381_v50 = vsel %vm1544_vm8, %v5142_v14, 0.0 }
 0x7aa   : > { %2382 = vadd.xlane.f32.xlu0 %v2381_v50  ;;  %v2384_v4 = vsel %vm1563_vm9, %v5144_v43, 0.0  ;;  %v5150_v6 = vpop.eup %4069 }
 0x7ab   : > { %2385 = vadd.xlane.f32.xlu1 %v2384_v4  ;;  %v2378_v34 = vsel %vm1544_vm8, %v5150_v6, 0.0 }
 0x7af   : > { %2379 = vadd.xlane.f32.xlu1 %v2378_v34 }
 0x7c0   : > { %2407 = vrot.lane.b32.xlu1 %v4838_v42, %s4167_s28  ;;  %2405 = vrot.lane.b32.xlu0 %v4825_v11, %s4167_s28 }
 0x7c4   : > { %2409 = vrot.lane.b32.xlu1 %v4853_v33, %s4167_s28 }
 0x7c8   : > { %2411 = vrot.lane.b32.xlu1 %v4859_v63, %s4167_s28 }
 0x82b   : > { %v2374_v38 = vpop.xlane.xlu1 %2373 }
 0x82e   : > { %v3759_v37 = vpop.f32.mrb[8].mxu1 }
 0x82f   : > { %v1999_v15 = vpop.f32.mrb[9].mxu1  ;;  %v2377_v61 = vpop.xlane.xlu0 %2376 }
 0x830   : > { %v3760_v23 = vpop.f32.mrb[10].mxu1  ;;  %v2368_v46 = vpop.xlane.xlu1 %2367 }
 0x831   : > { %v2030_v2 = vpack.c.bf16 %v3760_v23, %v3759_v37  ;;  %v2002_v31 = vpop.f32.mrb[11].mxu1 }
 0x832   : > { %v2029_v28 = vpack.c.bf16 %v2002_v31, %v1999_v15  ;;  %v3553_v15 = vld [vmem:[%s5459_s10 + $0xd0] sm:$0xff]  ;;  %v3552_v31 = vld [vmem:[%s5459_s10 + $0xc8] sm:$0xff] }
 0x833   : > { %v2371_v39 = vpop.xlane.xlu0 %2370 }
 0x834   : > { %3767 = vmatprep.mubr.msk.bf16.mxu1 %vm2039_vm5, %v2029_v28  ;;  %4071 = vrcp.f32 %v2371_v39 }
 0x835   : > { %3768 = vmatmul.mubr.msk.bf16.vlgmr.msra.gmra.mrb[16].mxu1 %vm2039_vm5, %v2030_v2  ;;  %4073 = vrcp.f32 %v2368_v46 }
 0x836   : > { %v3763_v7 = vpop.f32.mrb[12].mxu1  ;;  %3776 = vmatpush3.bf16.msra.mxu1 %v3964_v5  ;;  %4075 = vrcp.f32 %v2377_v61 }
 0x837   : > { %v2015_v16 = vpop.f32.mrb[13].mxu1  ;;  %v2383_v22 = vpop.xlane.xlu0 %2382  ;;  %v2032_v26 = vpack.c.bf16 %v3763_v7, %v3763_v7 }
 0x838   : > { %v2386_v10 = vpop.xlane.xlu1 %2385  ;;  %v3764_v17 = vpop.f32.mrb[14].mxu1 }
 0x839   : > { %v2018_v48 = vpop.f32.mrb[15].mxu1 }
 0x83a   : > { %v2031_v19 = vpack.c.bf16 %v2018_v48, %v2015_v16  ;;  %v3554_v48 = vld [vmem:[%s5459_s10 + $0xd8] sm:$0x1] }
 0x83b   : > { %v2406_v12 = vpop.permute.xlu0 %2405 }
 0x83c   : > { %v2380_v54 = vpop.xlane.xlu1 %2379  ;;  %3771 = vmatprep.mubr.msk.bf16.mxu1 %vm2039_vm5, %v2031_v19  ;;  %3801 = vmatprep.subr.bf16.mxu1 %v2406_v12 }
 0x83d   : > { %3772 = vmatmul.mubr.msk.bf16.gmra.mrb[20].mxu1 %vm2039_vm5, %v2032_v26  ;;  %4077 = vrcp.f32 %v2380_v54 }
 0x83e   : > { %3777 = vmatprep.mubr.msk.bf16.mxu1 %vm2039_vm5, %v1728_v0  ;;  %4079 = vrcp.f32 %v2374_v38  ;;  %v4072_v35 = vpop.eup %4071 }
 0x83f   : > { %4081 = vrcp.f32 %v2383_v22  ;;  %v4074_v52 = vpop.eup %4073  ;;  %v2395_v20 = vmul.f32 %v4072_v35, %v5138_v49 }
 0x840   : > { %v2408_v27 = vpop.permute.xlu1 %2407  ;;  %4083 = vrcp.f32 %v2386_v10  ;;  %v2394_v3 = vmul.f32 %v4074_v52, %v5130_v40  ;;  %v4076_v62 = vpop.eup %4075 }
 0x841   : > { %v2397_v2 = vmul.f32 %v4076_v62, %v5132_v59 }
 0x842   : > { %v2401_v4 = vpack.c.bf16 %v2395_v20, %v2394_v3 }
 0x844   : > { %v3837_v29 = vpop.f32.mrb[32].mxu0  ;;  %v2410_v1 = vpop.permute.xlu1 %2409 }
 0x845   : > { %v2662_v58 = vpop.f32.mrb[33].mxu0  ;;  %3778 = vmatmul.mubr.msk.bf16.vlgmr.msra.gmra.mrb[16].mxu1 %vm2039_vm5, %v1729_v24  ;;  %v2694_v0 = vmul.f32 0.35355338, %v3837_v29  ;;  %v3965_v29 = vld [vmem:[%s5457_s8 + $0x10] sm:$0xff]  }
 0x846   : > { %v2692_v53 = vmul.f32 0.35355338, %v2662_v58  ;;  %v3838_v36 = vpop.f32.mrb[34].mxu0  ;;  %3802 = vmatpush3.bf16.msra.mxu1 %v2406_v12  ;;  %3781 = vmatprep.mubr.msk.bf16.mxu1 %vm2039_vm5, %v1730_v51 }
 0x847   : > { %v2665_v8 = vpop.f32.mrb[35].mxu0  ;;  %3803 = vmatprep.subr.bf16.mxu1 %v2408_v27  ;;  %v5196_v55 = vadd.f32 %v3550_v56, %v2694_v0  ;;  %v2695_v51 = vmul.f32 0.35355338, %v3838_v36  ;;  %v4078_v34 = vpop.eup %4077 }
 0x848   : > { %v5189_v30 = vadd.f32 %v3548_v44, %v2692_v53  ;;  %v2693_v24 = vmul.f32 0.35355338, %v2665_v8  ;;  %v2412_v60 = vpop.permute.xlu1 %2411  ;;  %v4080_v41 = vpop.eup %4079  ;;  %v2398_v46 = vmul.f32 %v4078_v34, %v5150_v6 }
 0x849   : > { %v2429_v21 = vand.u32 %v2412_v60, %v4900_v57  ;;  %v2710_v5 = vadd.f32 %v3551_v18, %v2695_v51  ;;  %v2720_v61 = vsel %vm1544_vm8, %v5196_v55, -inf  ;;  %v4082_v23 = vpop.eup %4081  ;;  %v2396_v39 = vmul.f32 %v4080_v41, %v5126_v13 }
 0x84a   : > { %v5192_v32 = vadd.f32 %v3549_v25, %v2693_v24  ;;  %v2714_v47 = vsel %vm1544_vm8, %v5189_v30, -inf  ;;  %3804 = vmatpush3.bf16.msra.mxu1 %v2408_v27  ;;  %v2399_v17 = vmul.f32 %v4082_v23, %v5142_v14  ;;  %v4084_v26 = vpop.eup %4083 }
 0x84b   : > { %2715 = vmax.xlane.f32.xlu0 %v2714_v47  ;;  %3805 = vmatprep.subr.bf16.mxu1 %v2410_v1  ;;  %v2723_v22 = vsel %vm1544_vm8, %v2710_v5, -inf  ;;  %v2402_v59 = vpack.c.bf16 %v2397_v2, %v2396_v39  ;;  %v2400_v14 = vmul.f32 %v4084_v26, %v5144_v43 }
 0x84c   : > { %v3841_v9 = vpop.f32.mrb[36].mxu0  ;;  %v2717_v49 = vsel %vm1544_vm8, %v5192_v32, -inf  ;;  %v2403_v6 = vpack.c.bf16 %v2399_v17, %v2398_v46 }
 0x84d   : > { %v2678_v50 = vpop.f32.mrb[37].mxu0  ;;  %2718 = vmax.xlane.f32.xlu1 %v2717_v49  ;;  %3782 = vmatmul.mubr.msk.bf16.gmra.mrb[24].mxu1 %vm2039_vm5, %v1731_v45  ;;  %v2698_v16 = vmul.f32 0.35355338, %v3841_v9  ;;  %v2404_v27 = vpack.c.bf16 %v2400_v14, %v2400_v14 }
 0x84e   : > { %v3842_v40 = vpop.f32.mrb[38].mxu0  ;;  %v2696_v38 = vmul.f32 0.35355338, %v2678_v50  ;;  %3806 = vmatpush3.bf16.msra.mxu1 %v2410_v1  ;;  %3809 = vmatprep.mubr.msk.bf16.mxu1 %vm1544_vm8, %v2401_v4 }
 0x84f   : > { %v2681_v37 = vpop.f32.mrb[39].mxu0  ;;  %3807 = vmatprep.subr.bf16.mxu1 %v2429_v21  ;;  %2721 = vmax.xlane.f32.xlu0 %v2720_v61  ;;  %v2713_v13 = vadd.f32 %v3554_v48, %v2698_v16 }
 0x850   : > { %v2697_v28 = vmul.f32 0.35355338, %v2681_v37  ;;  %v2711_v10 = vadd.f32 %v3552_v31, %v2696_v38 }
 0x851   : > { %v2732_v12 = vsel %vm1563_vm9, %v2713_v13, -inf }
 0x852   : > { %v2712_v7 = vadd.f32 %v3553_v15, %v2697_v28  ;;  %3808 = vmatpush3.bf16.msra.mxu1 %v2429_v21  ;;  %v2726_v54 = vsel %vm1544_vm8, %v2711_v10, -inf }
 0x853   : > { %2724 = vmax.xlane.f32.xlu0 %v2723_v22  ;;  %3817 = vmatprep.subr.bf16.mxu1 %v3965_v29 }
 0x854   : > { %v2729_v19 = vsel %vm1544_vm8, %v2712_v7, -inf }
 0x855   : > { %2730 = vmax.xlane.f32.xlu1 %v2729_v19  ;;  %3810 = vmatmul.mubr.msk.bf16.vlgmr.msra.gmra.mrb[28].mxu1 %vm1544_vm8, %v2402_v59 }
 0x856   : > { %3813 = vmatprep.mubr.msk.bf16.mxu1 %vm1544_vm8, %v2403_v6  ;;  %3818 = vmatpush3.bf16.msra.mxu1 %v3965_v29 }
 0x857   : > { %2727 = vmax.xlane.f32.xlu0 %v2726_v54 }
 0x85b   : > { %2733 = vmax.xlane.f32.xlu0 %v2732_v12 }
 0x85d   : > { %3814 = vmatmul.mubr.msk.bf16.gmra.mrb[32].mxu1 %vm1544_vm8, %v2404_v27 }
 0x8d8   : > { %v2716_v1 = vpop.xlane.xlu0 %2715 }
 0x8d9   : > { %v2735_v58 = vsub.f32 %v5189_v30, %v2716_v1 }
 0x8da   : > { %v2719_v44 = vpop.xlane.xlu1 %2718 }
 0x8db   : > { %v2742_v43 = vmul.f32 1.442695, %v2735_v58  ;;  %v2736_v36 = vsub.f32 %v5192_v32, %v2719_v44 }
 0x8dc   : > { %v2722_v35 = vpop.xlane.xlu0 %2721 }
 0x8dd   : > { %v2737_v53 = vsub.f32 %v5196_v55, %v2722_v35  ;;  %v2744_v56 = vmul.f32 1.442695, %v2736_v36 }
 0x8df   : > { %v2746_v0 = vmul.f32 1.442695, %v2737_v53 }
 0x8e0   : > { %v2725_v8 = vpop.xlane.xlu0 %2724 }
 0x8e1   : > { %4085 = vpow2.f32 %v2746_v0  ;;  %v2738_v25 = vsub.f32 %v2710_v5, %v2725_v8 }
 0x8e2   : > { %v2731_v52 = vpop.xlane.xlu1 %2730  ;;  %4087 = vpow2.f32 %v2742_v43 }
 0x8e3   : > { %v2748_v24 = vmul.f32 1.442695, %v2738_v25  ;;  %v2740_v20 = vsub.f32 %v2712_v7, %v2731_v52 }
 0x8e4   : > { %v2728_v47 = vpop.xlane.xlu0 %2727 }
 0x8e5   : > { %4089 = vpow2.f32 %v2748_v24  ;;  %v2752_v30 = vmul.f32 1.442695, %v2740_v20  ;;  %v2739_v51 = vsub.f32 %v2711_v10, %v2728_v47 }
 0x8e6   : > { %4091 = vpow2.f32 %v2744_v56 }
 0x8e7   : > { %4093 = vpow2.f32 %v2752_v30  ;;  %v2750_v32 = vmul.f32 1.442695, %v2739_v51 }
 0x8e8   : > { %v2734_v60 = vpop.xlane.xlu0 %2733 }
 0x8e9   : > { %v2741_v3 = vsub.f32 %v2713_v13, %v2734_v60  ;;  %v3966_v60 = vld [vmem:[%s5457_s8 + $0x18] sm:$0xff]  }
 0x8eb   : > { %v5238_v55 = vpop.eup %4085  ;;  %v2754_v45 = vmul.f32 1.442695, %v2741_v3 }
 0x8ec   : > { %v2762_v18 = vsel %vm1544_vm8, %v5238_v55, 0.0  ;;  %v5242_v9 = vpop.eup %4087 }
 0x8ed   : > { %4095 = vpow2.f32 %v2754_v45  ;;  %2763 = vadd.xlane.f32.xlu1 %v2762_v18  ;;  %v2756_v62 = vsel %vm1544_vm8, %v5242_v9, 0.0 }
 0x8ee   : > { %4097 = vpow2.f32 %v2750_v32 }
 0x8ef   : > { %v5244_v49 = vpop.eup %4089 }
 0x8f0   : > { %v2765_v50 = vsel %vm1544_vm8, %v5244_v49, 0.0  ;;  %v5250_v4 = vpop.eup %4091 }
 0x8f1   : > { %2757 = vadd.xlane.f32.xlu1 %v2756_v62  ;;  %2766 = vadd.xlane.f32.xlu0 %v2765_v50  ;;  %v2759_v34 = vsel %vm1544_vm8, %v5250_v4, 0.0  ;;  %v5254_v21 = vpop.eup %4093 }
 0x8f2   : > { %v2771_v41 = vsel %vm1544_vm8, %v5254_v21, 0.0 }
 0x8f5   : > { %2760 = vadd.xlane.f32.xlu0 %v2759_v34 }
 0x8f7   : > { %v5256_v40 = vpop.eup %4095 }
 0x8f8   : > { %v2774_v5 = vsel %vm1563_vm9, %v5256_v40, 0.0  ;;  %v5262_v38 = vpop.eup %4097 }
 0x8f9   : > { %2772 = vadd.xlane.f32.xlu0 %v2771_v41  ;;  %2775 = vadd.xlane.f32.xlu1 %v2774_v5  ;;  %v2768_v37 = vsel %vm1544_vm8, %v5262_v38, 0.0 }
 0x8fd   : > { %2769 = vadd.xlane.f32.xlu1 %v2768_v37 }
 0x90e   : > { %2797 = vrot.lane.b32.xlu1 %v4838_v42, %s4168_s20 }
 0x90f   : > { %2795 = vrot.lane.b32.xlu0 %v4825_v11, %s4168_s20 }
 0x910   : > { %v3773_v15 = vpop.f32.mrb[20].mxu1 }
 0x911   : > { %v2102_v61 = vpop.f32.mrb[21].mxu1 }
 0x912   : > { %v3774_v23 = vpop.f32.mrb[22].mxu1  ;;  %2799 = vrot.lane.b32.xlu1 %v4853_v33, %s4168_s20 }
 0x913   : > { %v2105_v2 = vpop.f32.mrb[23].mxu1 }
 0x916   : > { %2801 = vrot.lane.b32.xlu1 %v4859_v63, %s4168_s20 }
 0x920   : > { %v3783_v31 = vpop.f32.mrb[24].mxu1 }
 0x921   : > { %v5270_v28 = vadd.f32 %v3783_v31, %v3773_v15  ;;  %v2184_v46 = vpop.f32.mrb[25].mxu1 }
 0x922   : > { %v5272_v39 = vadd.f32 %v2184_v46, %v2102_v61  ;;  %v3784_v7 = vpop.f32.mrb[26].mxu1 }
 0x923   : > { %v2187_v16 = vpop.f32.mrb[27].mxu1 }
 0x924   : > { %v5274_v10 = vadd.f32 %v2187_v16, %v2105_v2 }
 0x928   : > { %v3811_v42 = vpop.f32.mrb[28].mxu1 }
 0x929   : > { %v2465_v11 = vpop.f32.mrb[29].mxu1 }
 0x92a   : > { %v3812_v22 = vpop.f32.mrb[30].mxu1 }
 0x92b   : > { %v2496_v17 = vpack.c.bf16 %v3812_v22, %v3811_v42  ;;  %v2468_v59 = vpop.f32.mrb[31].mxu1 }
 0x92c   : > { %v2495_v48 = vpack.c.bf16 %v2468_v59, %v2465_v11  ;;  %v4141_v11 = vld [vmem:[%s4275_s0 + $0x10] sm:$0xff] }
 0x92e   : > { %3819 = vmatprep.mubr.msk.bf16.mxu1 %vm2039_vm5, %v2495_v48 }
 0x92f   : > { %3820 = vmatmul.mubr.msk.bf16.vlgmr.msra.gmra.mrb[16].mxu1 %vm2039_vm5, %v2496_v17  ;;  %v4142_v17 = vld [vmem:[%s4275_s0] sm:$0xff] }
 0x930   : > { %v3815_v33 = vpop.f32.mrb[32].mxu1 }
 0x931   : > { %v2481_v63 = vpop.f32.mrb[33].mxu1  ;;  %v2498_v13 = vpack.c.bf16 %v3815_v33, %v3815_v33 }
 0x932   : > { %v3816_v19 = vpop.f32.mrb[34].mxu1 }
 0x933   : > { %v2484_v26 = vpop.f32.mrb[35].mxu1  ;;  %v4143_v19 = vld [vmem:[%s4275_s0 + $0x8] sm:$0xff] }
 0x934   : > { %v2497_v6 = vpack.c.bf16 %v2484_v26, %v2481_v63 }
 0x936   : > { %3823 = vmatprep.mubr.msk.bf16.mxu1 %vm2039_vm5, %v2497_v6 }
 0x937   : > { %3824 = vmatmul.mubr.msk.bf16.gmra.mrb[36].mxu1 %vm2039_vm5, %v2498_v13  ;;  %v4144_v13 = vld [vmem:[%s4275_s0 + $0x18] sm:$0xff] }
 0x97a   : > { %v2764_v54 = vpop.xlane.xlu1 %2763 }
 0x97e   : > { %v2758_v14 = vpop.xlane.xlu1 %2757  ;;  %v2767_v12 = vpop.xlane.xlu0 %2766 }
 0x97f   : > { %4099 = vrcp.f32 %v2758_v14 }
 0x982   : > { %v2761_v27 = vpop.xlane.xlu0 %2760 }
 0x983   : > { %4101 = vrcp.f32 %v2761_v27 }
 0x984   : > { %4103 = vrcp.f32 %v2767_v12 }
 0x986   : > { %v2776_v29 = vpop.xlane.xlu1 %2775  ;;  %v2773_v1 = vpop.xlane.xlu0 %2772 }
 0x989   : > { %v4100_v35 = vpop.eup %4099 }
 0x98a   : > { %v2770_v58 = vpop.xlane.xlu1 %2769  ;;  %v2796_v44 = vpop.permute.xlu0 %2795  ;;  %v2784_v36 = vmul.f32 %v4100_v35, %v5242_v9 }
 0x98b   : > { %4105 = vrcp.f32 %v2770_v58  ;;  %3843 = vmatprep.subr.bf16.mxu1 %v2796_v44 }
 0x98c   : > { %4107 = vrcp.f32 %v2764_v54  ;;  %3844 = vmatpush3.bf16.msra.mxu1 %v2796_v44 }
 0x98d   : > { %v4102_v53 = vpop.eup %4101  ;;  %4109 = vrcp.f32 %v2773_v1 }
 0x98e   : > { %v2798_v43 = vpop.permute.xlu1 %2797  ;;  %v2785_v0 = vmul.f32 %v4102_v53, %v5250_v4  ;;  %4111 = vrcp.f32 %v2776_v29  ;;  %v4104_v52 = vpop.eup %4103 }
 0x98f   : > { %3845 = vmatprep.subr.bf16.mxu1 %v2798_v43  ;;  %v2787_v30 = vmul.f32 %v4104_v52, %v5244_v49  ;;  %v4146_v52 = vld [vmem:[%s4275_s0 + $0x30] sm:$0x1] }
 0x990   : > { %3846 = vmatpush3.bf16.msra.mxu1 %v2798_v43  ;;  %v2791_v8 = vpack.c.bf16 %v2785_v0, %v2784_v36  ;;  %v4145_v0 = vld [vmem:[%s4275_s0 + $0x20] sm:$0xff] }
 0x992   : > { %v2800_v25 = vpop.permute.xlu1 %2799  ;;  %3851 = vmatprep.mubr.msk.bf16.mxu1 %vm1544_vm8, %v2791_v8 }
 0x993   : > { %3847 = vmatprep.subr.bf16.mxu1 %v2800_v25 }
 0x994   : > { %3848 = vmatpush3.bf16.msra.mxu1 %v2800_v25 }
 0x995   : > { %v4106_v56 = vpop.eup %4105 }
 0x996   : > { %v4108_v24 = vpop.eup %4107  ;;  %v2802_v20 = vpop.permute.xlu1 %2801  ;;  %v2788_v3 = vmul.f32 %v4106_v56, %v5262_v38 }
 0x997   : > { %v4110_v47 = vpop.eup %4109  ;;  %v2819_v51 = vand.u32 %v2802_v20, %v4900_v57  ;;  %v2786_v32 = vmul.f32 %v4108_v24, %v5238_v55  ;;  %v4147_v20 = vld [vmem:[%s4275_s0 + $0x28] sm:$0xff] }
 0x998   : > { %v2789_v45 = vmul.f32 %v4110_v47, %v5254_v21  ;;  %v4112_v9 = vpop.eup %4111 }
 0x999   : > { %3849 = vmatprep.subr.bf16.mxu1 %v2819_v51  ;;  %v2792_v18 = vpack.c.bf16 %v2787_v30, %v2786_v32  ;;  %v2790_v57 = vmul.f32 %v4112_v9, %v5256_v40 }
 0x99a   : > { %3850 = vmatpush3.bf16.msra.mxu1 %v2819_v51  ;;  %v2793_v62 = vpack.c.bf16 %v2789_v45, %v2788_v3 }
 0x99b   : > { %3859 = vmatprep.subr.bf16.mxu1 %v3966_v60  ;;  %v2794_v49 = vpack.c.bf16 %v2790_v57, %v2790_v57 }
 0x99d   : > { %3852 = vmatmul.mubr.msk.bf16.vlgmr.msra.gmra.mrb[40].mxu1 %vm1544_vm8, %v2792_v18 }
 0x99e   : > { %3855 = vmatprep.mubr.msk.bf16.mxu1 %vm1544_vm8, %v2793_v62  ;;  %3860 = vmatpush3.bf16.msra.mxu1 %v3966_v60 }
 0x9a5   : > { %3856 = vmatmul.mubr.msk.bf16.gmra.mrb[44].mxu1 %vm1544_vm8, %v2794_v49  ;;  %vm5540_vm8 = vcmask 261120  }
 0x9a6   : > { %vm5541_vm9 = vmmov %vm5540_vm8 }
 0x9a7   : > { %vm5542_vm6 = vmmov %vm5540_vm8 }
 0x9a8   : > { %vm5543_vm14 = vmmov %vm5542_vm6 }
 0x9a9   : > { %vm5544_vm4 = vmmov %vm5542_vm6 }
 0x9aa   : > { %vm5545_vm7 = vmmov %vm5544_vm4 }
 0x9ab   : > { %vm5547_vm11 = vmmov %vm5544_vm4 }
 0x9ac   : > { %vm5548_vm13 = vmmov %vm5544_vm4 }
 0x9ad   : > { %vm5549_vm1 = vmmov %vm5544_vm4 }
 0x9ae   : > { %vm5550_vm0 = vmmov %vm5549_vm1 }
 0x9af   : > { %vm5551_vm2 = vmmov %vm5550_vm0 }
 0x9b0   : > { %vm5552_vm3 = vmmov %vm5550_vm0 }
 0x9b1   : > { %vm5554_vm15 = vmmov %vm5550_vm0 }
 0xa0a   : > { %v3825_v50 = vpop.f32.mrb[36].mxu1 }
 0xa0b   : > { %v2587_v55 = vadd.f32 %v3825_v50, %v5270_v28  ;;  %v2567_v4 = vpop.f32.mrb[37].mxu1 }
 0xa0c   : > { %v2585_v34 = vadd.f32 %v2567_v4, %v5272_v39  ;;  %v3826_v21 = vpop.f32.mrb[38].mxu1 }
 0xa0d   : > { %v2570_v41 = vpop.f32.mrb[39].mxu1 }
 0xa0e   : > { %v2586_v5 = vadd.f32 %v2570_v41, %v5274_v10  ;;  %v3564_v10 = vld [vmem:[%s5458_s9] ss:$0 sm:$0xff] }
 0xa70   : > { %v3853_v38 = vpop.f32.mrb[40].mxu1 }
 0xa71   : > { %v2855_v37 = vpop.f32.mrb[41].mxu1 }
 0xa72   : > { %v3854_v15 = vpop.f32.mrb[42].mxu1 }
 0xa73   : > { %v2886_v61 = vpack.c.bf16 %v3854_v15, %v3853_v38  ;;  %v2858_v23 = vpop.f32.mrb[43].mxu1 }
 0xa74   : > { %v2885_v40 = vpack.c.bf16 %v2858_v23, %v2855_v37 }
 0xa76   : > { %3861 = vmatprep.mubr.msk.bf16.mxu1 %vm2039_vm5, %v2885_v40 }
 0xa77   : > { %3862 = vmatmul.mubr.msk.bf16.vlgmr.msra.gmra.mrb[16].mxu1 %vm2039_vm5, %v2886_v61 }
 0xa78   : > { %v3857_v2 = vpop.f32.mrb[44].mxu1 }
 0xa79   : > { %v2871_v31 = vpop.f32.mrb[45].mxu1  ;;  %v2888_v7 = vpack.c.bf16 %v3857_v2, %v3857_v2 }
 0xa7a   : > { %v3858_v28 = vpop.f32.mrb[46].mxu1 }
 0xa7b   : > { %v2874_v46 = vpop.f32.mrb[47].mxu1 }
 0xa7c   : > { %v2887_v39 = vpack.c.bf16 %v2874_v46, %v2871_v31 }
 0xa7e   : > { %3865 = vmatprep.mubr.msk.bf16.mxu1 %vm2039_vm5, %v2887_v39 }
 0xa7f   : > { %3866 = vmatmul.mubr.msk.bf16.gmra.mrb[48].mxu1 %vm2039_vm5, %v2888_v7  ;;  %vm5555_vm5 = vmmov %vm5550_vm0 }
 0xb4a   : > { %v3863_v16 = vpop.f32.mrb[16].mxu1 }
 0xb4b   : > { %v2941_v42 = vpop.f32.mrb[17].mxu1  ;;  %v2980_v22 = vadd.f32 %v4141_v11, %v3863_v16 }
 0xb4c   : > { %v2978_v59 = vadd.f32 %v4142_v17, %v2941_v42  ;;  %v3864_v48 = vpop.f32.mrb[18].mxu1 }
 0xb4d   : > { %v2944_v33 = vpop.f32.mrb[19].mxu1  ;;  %v5310_v6 = vadd.f32 %v3564_v10, %v2980_v22  ;;  %v2981_v54 = vadd.f32 %v4144_v13, %v3864_v48  ;;  %v3967_v13 = vld [vmem:[%s5462_s13] sm:$0xff]  }
 0xb4e   : > { %v5307_v63 = vadd.f32 %v3564_v10, %v2978_v59  ;;  %v2979_v26 = vadd.f32 %v4143_v19, %v2944_v33  ;;  %3869 = vmatprep.subr.bf16.mxu0 %v3967_v13 }
 0xb4f   : > { %v5319_v44 = vadd.f32 %v3564_v10, %v2981_v54  ;;  %v3007_v43 = vsel %vm5542_vm6, %v5310_v6, 0.0  ;;  %3870 = vmatpush3.bf16.msra.mxu0 %v3967_v13  ;;  %v3968_v54 = vld [vmem:[%s5462_s13 + $0x8] sm:$0xff]   ;;  %vm5558_vm6 = vcmask 523264  }
 0xb50   : > { %v5313_v14 = vadd.f32 %v3564_v10, %v2979_v26  ;;  %v3001_v12 = vsel %vm5540_vm8, %v5307_v63, 0.0  ;;  %3871 = vmatprep.subr.bf16.mxu0 %v3968_v54  ;;  %vm5556_vm8 = vmmov %vm5550_vm0 }
 0xb51   : > { %3002 = vadd.xlane.f32.xlu0 %v3001_v12  ;;  %v3010_v30 = vsel %vm5543_vm14, %v5319_v44, 0.0  ;;  %vm5559_vm14 = vmmov %vm5558_vm6 }
 0xb52   : > { %v3867_v27 = vpop.f32.mrb[48].mxu1  ;;  %v3004_v29 = vsel %vm5541_vm9, %v5313_v14, 0.0  ;;  %vm5557_vm9 = vmmov %vm5550_vm0 }
 0xb53   : > { %v2977_v1 = vadd.f32 %v3867_v27, %v2587_v55  ;;  %3005 = vadd.xlane.f32.xlu1 %v3004_v29  ;;  %v2957_v58 = vpop.f32.mrb[49].mxu1  ;;  %3872 = vmatpush3.bf16.msra.mxu0 %v3968_v54 }
 0xb54   : > { %v2975_v35 = vadd.f32 %v2957_v58, %v2585_v34  ;;  %v3868_v53 = vpop.f32.mrb[50].mxu1 }
 0xb55   : > { %3008 = vadd.xlane.f32.xlu0 %v3007_v43  ;;  %v2960_v36 = vpop.f32.mrb[51].mxu1  ;;  %v2984_v56 = vadd.f32 %v4146_v52, %v2977_v1 }
 0xb56   : > { %v2982_v8 = vadd.f32 %v4145_v0, %v2975_v35  ;;  %v2976_v25 = vadd.f32 %v2960_v36, %v2586_v5 }
 0xb57   : > { %v5332_v60 = vadd.f32 %v3564_v10, %v2984_v56 }
 0xb58   : > { %v5325_v24 = vadd.f32 %v3564_v10, %v2982_v8  ;;  %v2983_v47 = vadd.f32 %v4147_v20, %v2976_v25 }
 0xb59   : > { %3011 = vadd.xlane.f32.xlu0 %v3010_v30  ;;  %v3019_v45 = vsel %vm5546_vm10, %v5332_v60, 0.0  ;;  %vm5562_vm10 = vmmov %vm5550_vm0 }
 0xb5a   : > { %v5330_v51 = vadd.f32 %v3564_v10, %v2983_v47  ;;  %v3013_v3 = vsel %vm5544_vm4, %v5325_v24, 0.0  ;;  %vm5560_vm4 = vmmov %vm5558_vm6 }
 0xb5c   : > { %v3016_v32 = vsel %vm5545_vm7, %v5330_v51, 0.0  ;;  %vm5561_vm7 = vmmov %vm5560_vm4 }
 0xb5d   : > { %3014 = vadd.xlane.f32.xlu0 %v3013_v3  ;;  %3017 = vadd.xlane.f32.xlu1 %v3016_v32  ;;  %v3565_v3 = vld [vmem:[%s5460_s11] ss:$0 sm:$0xff] }
 0xb61   : > { %3020 = vadd.xlane.f32.xlu0 %v3019_v45 }
 0xbde   : > { %v3003_v18 = vpop.xlane.xlu0 %3002 }
 0xbdf   : > { %v3022_v9 = vmul.f32 0.03125, %v3003_v18 }
 0xbe0   : > { %v3006_v62 = vpop.xlane.xlu1 %3005 }
 0xbe1   : > { %v5341_v57 = vsub.f32 %v5307_v63, %v3022_v9  ;;  %v3023_v49 = vmul.f32 0.03125, %v3006_v62 }
 0xbe2   : > { %v3009_v50 = vpop.xlane.xlu0 %3008 }
 0xbe3   : > { %v5344_v55 = vsub.f32 %v5313_v14, %v3023_v49  ;;  %v3024_v4 = vmul.f32 0.03125, %v3009_v50  ;;  %v3036_v34 = vmul.f32 %v5341_v57, %v5341_v57 }
 0xbe5   : > { %v5349_v21 = vsub.f32 %v5310_v6, %v3024_v4  ;;  %v3043_v41 = vsel %vm5547_vm11, %v3036_v34, 0.0  ;;  %v3037_v5 = vmul.f32 %v5344_v55, %v5344_v55  ;;  %vm5563_vm11 = vmmov %vm5550_vm0 }
 0xbe6   : > { %v3012_v38 = vpop.xlane.xlu0 %3011  ;;  %3044 = vadd.xlane.f32.xlu1 %v3043_v41  ;;  %v3566_v41 = vld [vmem:[%s5461_s12] ss:$0 sm:$0xff] }
 0xbe7   : > { %v3025_v37 = vmul.f32 0.03125, %v3012_v38  ;;  %v3046_v15 = vsel %vm5548_vm13, %v3037_v5, 0.0  ;;  %v3038_v61 = vmul.f32 %v5349_v21, %v5349_v21  ;;  %vm5564_vm13 = vmmov %vm5550_vm0 }
 0xbe8   : > { %3047 = vadd.xlane.f32.xlu0 %v3046_v15 }
 0xbe9   : > { %v5358_v23 = vsub.f32 %v5319_v44, %v3025_v37  ;;  %v3049_v40 = vsel %vm5549_vm1, %v3038_v61, 0.0  ;;  %vm5565_vm1 = vmmov %vm5550_vm0 }
 0xbea   : > { %v3015_v2 = vpop.xlane.xlu0 %3014  ;;  %3050 = vadd.xlane.f32.xlu1 %v3049_v40  ;;  %v3018_v31 = vpop.xlane.xlu1 %3017 }
 0xbeb   : > { %v3026_v28 = vmul.f32 0.03125, %v3015_v2  ;;  %v3027_v46 = vmul.f32 0.03125, %v3018_v31  ;;  %v3039_v39 = vmul.f32 %v5358_v23, %v5358_v23 }
 0xbed   : > { %v5364_v7 = vsub.f32 %v5325_v24, %v3026_v28  ;;  %v5367_v16 = vsub.f32 %v5330_v51, %v3027_v46  ;;  %v3052_v10 = vsel %vm5550_vm0, %v3039_v39, 0.0  ;;  %vm5566_vm0 = vmmov %vm5553_vm12 }
 0xbee   : > { %3053 = vadd.xlane.f32.xlu0 %v3052_v10  ;;  %v3021_v42 = vpop.xlane.xlu0 %3020 }
 0xbef   : > { %v3028_v11 = vmul.f32 0.03125, %v3021_v42  ;;  %v3040_v22 = vmul.f32 %v5364_v7, %v5364_v7  ;;  %v3041_v17 = vmul.f32 %v5367_v16, %v5367_v16 }
 0xbf1   : > { %v5375_v59 = vsub.f32 %v5332_v60, %v3028_v11  ;;  %v3055_v48 = vsel %vm5551_vm2, %v3040_v22, 0.0  ;;  %v3058_v33 = vsel %vm5552_vm3, %v3041_v17, 0.0  ;;  %vm5567_vm2 = vmmov %vm5565_vm1 }
 0xbf2   : > { %3056 = vadd.xlane.f32.xlu1 %v3055_v48  ;;  %3059 = vadd.xlane.f32.xlu0 %v3058_v33  ;;  %vm5568_vm3 = vmmov %vm5565_vm1 }
 0xbf3   : > { %v3042_v19 = vmul.f32 %v5375_v59, %v5375_v59 }
 0xbf5   : > { %v3061_v26 = vsel %vm5553_vm12, %v3042_v19, 0.0 }
 0xbf6   : > { %3062 = vadd.xlane.f32.xlu1 %v3061_v26 }
 0xc73   : > { %v3045_v12 = vpop.xlane.xlu1 %3044 }
 0xc74   : > { %v3064_v27 = vmul.f32 0.03125, %v3045_v12 }
 0xc75   : > { %v3048_v29 = vpop.xlane.xlu0 %3047 }
 0xc76   : > { %v3071_v1 = vadd.f32 1e-06, %v3064_v27  ;;  %v3065_v58 = vmul.f32 0.03125, %v3048_v29  ;;  %v3972_v27 = vld [vmem:[%s5464_s15 + $0x18] sm:$0xff]   ;;  %v3567_v29 = vld [vmem:[%s5463_s14] ss:$0 sm:$0xff] }
 0xc77   : > { %v3051_v35 = vpop.xlane.xlu1 %3050 }
 0xc78   : > { %4113 = vrsqrt.f32 %v3071_v1  ;;  %v3072_v53 = vadd.f32 1e-06, %v3065_v58  ;;  %v3066_v43 = vmul.f32 0.03125, %v3051_v35 }
 0xc7a   : > { %4115 = vrsqrt.f32 %v3072_v53  ;;  %v3073_v36 = vadd.f32 1e-06, %v3066_v43 }
 0xc7b   : > { %v3054_v0 = vpop.xlane.xlu0 %3053 }
 0xc7c   : > { %4117 = vrsqrt.f32 %v3073_v36  ;;  %v3067_v8 = vmul.f32 0.03125, %v3054_v0 }
 0xc7e   : > { %v3074_v25 = vadd.f32 1e-06, %v3067_v8 }
 0xc7f   : > { %v3060_v52 = vpop.xlane.xlu0 %3059  ;;  %v3057_v56 = vpop.xlane.xlu1 %3056 }
 0xc80   : > { %4119 = vrsqrt.f32 %v3074_v25  ;;  %v3069_v20 = vmul.f32 0.03125, %v3060_v52  ;;  %v3068_v47 = vmul.f32 0.03125, %v3057_v56 }
 0xc82   : > { %v4114_v30 = vpop.eup %4113  ;;  %v3076_v32 = vadd.f32 1e-06, %v3069_v20  ;;  %v3075_v45 = vadd.f32 1e-06, %v3068_v47 }
 0xc83   : > { %v3085_v18 = vmul.f32 %v4114_v30, %v5341_v57  ;;  %v3063_v9 = vpop.xlane.xlu1 %3062 }
 0xc84   : > { %v4116_v62 = vpop.eup %4115  ;;  %4121 = vrsqrt.f32 %v3076_v32  ;;  %v3070_v49 = vmul.f32 0.03125, %v3063_v9 }
 0xc85   : > { %v3086_v50 = vmul.f32 %v4116_v62, %v5344_v55  ;;  %4123 = vrsqrt.f32 %v3075_v45  ;;  %v3098_v4 = vmul.f32 %v3565_v3, %v3085_v18 }
 0xc86   : > { %v4118_v34 = vpop.eup %4117  ;;  %v3077_v5 = vadd.f32 1e-06, %v3070_v49 }
 0xc87   : > { %v3087_v38 = vmul.f32 %v4118_v34, %v5349_v21  ;;  %v3099_v37 = vmul.f32 %v3565_v3, %v3086_v50  ;;  %v3111_v15 = vadd.f32 %v3566_v41, %v3098_v4 }
 0xc88   : > { %4125 = vrsqrt.f32 %v3077_v5 }
 0xc89   : > { %v3112_v57 = vadd.f32 %v3566_v41, %v3099_v37  ;;  %v3100_v40 = vmul.f32 %v3565_v3, %v3087_v38 }
 0xc8a   : > { %v4120_v61 = vpop.eup %4119 }
 0xc8b   : > { %v3088_v2 = vmul.f32 %v4120_v61, %v5358_v23  ;;  %v3118_v31 = vpack.c.bf16 %v3112_v57, %v3111_v15  ;;  %v3113_v39 = vadd.f32 %v3566_v41, %v3100_v40 }
 0xc8d   : > { %v3101_v55 = vmul.f32 %v3565_v3, %v3088_v2  ;;  %3873 = vmatprep.mubr.msk.bf16.mxu0 %vm5554_vm15, %v3118_v31 }
 0xc8e   : > { %v4122_v28 = vpop.eup %4121 }
 0xc8f   : > { %v4124_v46 = vpop.eup %4123  ;;  %v3114_v10 = vadd.f32 %v3566_v41, %v3101_v55  ;;  %v3090_v42 = vmul.f32 %v4122_v28, %v5367_v16  ;;  %v3970_v16 = vld [vmem:[%s5464_s15 + $0x8] sm:$0xff]  }
 0xc90   : > { %v3089_v21 = vmul.f32 %v4124_v46, %v5364_v7  ;;  %v3969_v7 = vld [vmem:[%s5464_s15] sm:$0xff]  }
 0xc91   : > { %v3119_v11 = vpack.c.bf16 %v3114_v10, %v3113_v39  ;;  %v3103_v22 = vmul.f32 %v3565_v3, %v3090_v42  ;;  %3881 = vmatprep.subr.bf16.mxu0 %v3969_v7 }
 0xc92   : > { %v4126_v17 = vpop.eup %4125  ;;  %v3102_v48 = vmul.f32 %v3565_v3, %v3089_v21 }
 0xc93   : > { %v3091_v33 = vmul.f32 %v4126_v17, %v5375_v59  ;;  %3874 = vmatmul.mubr.msk.bf16.vlgmr.msra.gmra.mrb[40].mxu0 %vm5555_vm5, %v3119_v11  ;;  %v3116_v23 = vadd.f32 %v3566_v41, %v3103_v22  ;;  %v3971_v59 = vld [vmem:[%s5464_s15 + $0x10] sm:$0xff]  }
 0xc94   : > { %v3115_v19 = vadd.f32 %v3566_v41, %v3102_v48  ;;  %3882 = vmatpush3.bf16.msra.mxu0 %v3969_v7 }
 0xc95   : > { %v3104_v26 = vmul.f32 %v3565_v3, %v3091_v33  ;;  %3883 = vmatprep.subr.bf16.mxu0 %v3970_v16 }
 0xc96   : > { %v3120_v13 = vpack.c.bf16 %v3116_v23, %v3115_v19 }
 0xc97   : > { %v3117_v54 = vadd.f32 %v3566_v41, %v3104_v26 }
 0xc98   : > { %3877 = vmatprep.mubr.msk.bf16.mxu0 %vm5556_vm8, %v3120_v13  ;;  %3884 = vmatpush3.bf16.msra.mxu0 %v3970_v16 }
 0xc99   : > { %v3121_v12 = vpack.c.bf16 %v3117_v54, %v3117_v54  ;;  %3885 = vmatprep.subr.bf16.mxu0 %v3971_v59 }
 0xc9b   : > { %3878 = vmatmul.mubr.msk.bf16.gmra.mrb[44].mxu0 %vm5557_vm9, %v3121_v12 }
 0xc9c   : > { %3886 = vmatpush3.bf16.msra.mxu0 %v3971_v59 }
 0xc9d   : > { %3887 = vmatprep.subr.bf16.mxu0 %v3972_v27 }
 0xca0   : > { %3888 = vmatpush3.bf16.msra.mxu0 %v3972_v27 }
 0xd66   : > { %v3875_v1 = vpop.f32.mrb[40].mxu0 }
 0xd67   : > { %v3200_v58 = vadd.f32 %v3875_v1, %v3567_v29  ;;  %v3191_v35 = vpop.f32.mrb[41].mxu0 }
 0xd68   : > { %v3192_v53 = vadd.f32 %v3567_v29, %v3191_v35  ;;  %v3876_v43 = vpop.f32.mrb[42].mxu0 }
 0xd69   : > { %v3230_v36 = vmul.f32 0.044715, %v3200_v58  ;;  %v3203_v0 = vadd.f32 %v3876_v43, %v3567_v29  ;;  %v3194_v8 = vpop.f32.mrb[43].mxu0 }
 0xd6a   : > { %v3228_v25 = vmul.f32 0.044715, %v3192_v53  ;;  %v3195_v52 = vadd.f32 %v3567_v29, %v3194_v8  ;;  %v3221_v43 = vmul.f32 0.5, %v3192_v53 }
 0xd6b   : > { %v3237_v56 = vmul.f32 %v3230_v36, %v3200_v58  ;;  %v3231_v20 = vmul.f32 0.044715, %v3203_v0  ;;  %v3224_v1 = vmul.f32 0.5, %v3203_v0 }
 0xd6c   : > { %v3235_v47 = vmul.f32 %v3228_v25, %v3192_v53  ;;  %v3229_v30 = vmul.f32 0.044715, %v3195_v52  ;;  %v3222_v36 = vmul.f32 0.5, %v3195_v52 }
 0xd6d   : > { %v3244_v3 = vmul.f32 %v3237_v56, %v3200_v58  ;;  %v3238_v32 = vmul.f32 %v3231_v20, %v3203_v0 }
 0xd6e   : > { %v3242_v45 = vmul.f32 %v3235_v47, %v3192_v53  ;;  %v3236_v18 = vmul.f32 %v3229_v30, %v3195_v52  ;;  %v3879_v9 = vpop.f32.mrb[44].mxu0 }
 0xd6f   : > { %v3251_v62 = vadd.f32 %v3244_v3, %v3200_v58  ;;  %v3245_v49 = vmul.f32 %v3238_v32, %v3203_v0  ;;  %v3216_v50 = vadd.f32 %v3879_v9, %v3567_v29  ;;  %v3207_v4 = vpop.f32.mrb[45].mxu0 }
 0xd70   : > { %v3249_v34 = vadd.f32 %v3242_v45, %v3192_v53  ;;  %v3243_v41 = vmul.f32 %v3236_v18, %v3195_v52  ;;  %v3208_v5 = vadd.f32 %v3567_v29, %v3207_v4  ;;  %v3880_v38 = vpop.f32.mrb[46].mxu0 }
 0xd71   : > { %v3258_v37 = vmul.f32 0.7978846, %v3251_v62  ;;  %v3252_v15 = vadd.f32 %v3245_v49, %v3203_v0  ;;  %v3234_v57 = vmul.f32 0.044715, %v3216_v50  ;;  %v3210_v61 = vpop.f32.mrb[47].mxu0 }
 0xd72   : > { %v3256_v40 = vmul.f32 0.7978846, %v3249_v34  ;;  %v3250_v2 = vadd.f32 %v3243_v41, %v3195_v52  ;;  %v3232_v31 = vmul.f32 0.044715, %v3208_v5  ;;  %v3211_v55 = vadd.f32 %v3567_v29, %v3210_v61 }
 0xd73   : > { %4127 = vtanh.f32 %v3258_v37  ;;  %v3259_v28 = vmul.f32 0.7978846, %v3252_v15  ;;  %v3241_v46 = vmul.f32 %v3234_v57, %v3216_v50  ;;  %v3223_v29 = vmul.f32 0.5, %v3200_v58  ;;  %v3574_v37 = vld [vmem:[%s5465_s16] ss:$0 sm:$0xff] }
 0xd74   : > { %4129 = vtanh.f32 %v3256_v40  ;;  %v3257_v39 = vmul.f32 0.7978846, %v3250_v2  ;;  %v3239_v10 = vmul.f32 %v3232_v31, %v3208_v5  ;;  %v3233_v42 = vmul.f32 0.044715, %v3211_v55 }
 0xd75   : > { %4131 = vtanh.f32 %v3259_v28  ;;  %v3248_v21 = vmul.f32 %v3241_v46, %v3216_v50  ;;  %v3227_v58 = vmul.f32 0.5, %v3216_v50  ;;  %v3225_v53 = vmul.f32 0.5, %v3208_v5 }
 0xd76   : > { %4133 = vtanh.f32 %v3257_v39  ;;  %v3246_v11 = vmul.f32 %v3239_v10, %v3208_v5  ;;  %v3240_v22 = vmul.f32 %v3233_v42, %v3211_v55  ;;  %v3226_v0 = vmul.f32 0.5, %v3211_v55 }
 0xd77   : > { %v3255_v17 = vadd.f32 %v3248_v21, %v3216_v50 }
 0xd78   : > { %v3253_v48 = vadd.f32 %v3246_v11, %v3208_v5  ;;  %v3247_v33 = vmul.f32 %v3240_v22, %v3211_v55 }
 0xd79   : > { %v3262_v23 = vmul.f32 0.7978846, %v3255_v17 }
 0xd7a   : > { %v3260_v19 = vmul.f32 0.7978846, %v3253_v48  ;;  %v3254_v26 = vadd.f32 %v3247_v33, %v3211_v55 }
 0xd7b   : > { %4135 = vtanh.f32 %v3262_v23 }
 0xd7c   : > { %4137 = vtanh.f32 %v3260_v19  ;;  %v3261_v13 = vmul.f32 0.7978846, %v3254_v26 }
 0xd7d   : > { %v4128_v54 = vpop.eup %4127 }
 0xd7e   : > { %v4130_v12 = vpop.eup %4129  ;;  %v3272_v7 = vadd.f32 1.0, %v4128_v54  ;;  %4139 = vtanh.f32 %v3261_v13 }
 0xd7f   : > { %v4132_v16 = vpop.eup %4131  ;;  %v3270_v59 = vadd.f32 1.0, %v4130_v12 }
 0xd80   : > { %v4134_v27 = vpop.eup %4133  ;;  %v3273_v35 = vadd.f32 1.0, %v4132_v16  ;;  %v3279_v25 = vmul.f32 %v3272_v7, %v3223_v29 }
 0xd81   : > { %v3271_v8 = vadd.f32 1.0, %v4134_v27  ;;  %v3277_v20 = vmul.f32 %v3270_v59, %v3221_v43 }
 0xd82   : > { %v3280_v56 = vmul.f32 %v3273_v35, %v3224_v1 }
 0xd83   : > { %v3278_v47 = vmul.f32 %v3271_v8, %v3222_v36 }
 0xd84   : > { %v3285_v30 = vpack.c.bf16 %v3280_v56, %v3279_v25 }
 0xd85   : > { %v4136_v3 = vpop.eup %4135  ;;  %v3284_v32 = vpack.c.bf16 %v3278_v47, %v3277_v20 }
 0xd86   : > { %v4138_v45 = vpop.eup %4137  ;;  %v3276_v18 = vadd.f32 1.0, %v4136_v3 }
 0xd87   : > { %3889 = vmatprep.mubr.msk.bf16.mxu0 %vm5558_vm6, %v3284_v32  ;;  %v3274_v9 = vadd.f32 1.0, %v4138_v45 }
 0xd88   : > { %v4140_v62 = vpop.eup %4139  ;;  %3890 = vmatmul.mubr.msk.bf16.vlgmr.msra.gmra.mrb[48].mxu0 %vm5559_vm14, %v3285_v30  ;;  %v3283_v49 = vmul.f32 %v3276_v18, %v3227_v58 }
 0xd89   : > { %v3275_v52 = vadd.f32 1.0, %v4140_v62  ;;  %v3281_v4 = vmul.f32 %v3274_v9, %v3225_v53 }
 0xd8a   : > { %v3287_v38 = vpack.c.bf16 %v3283_v49, %v3283_v49 }
 0xd8b   : > { %v3282_v34 = vmul.f32 %v3275_v52, %v3226_v0 }
 0xd8d   : > { %v3286_v41 = vpack.c.bf16 %v3282_v34, %v3281_v4 }
 0xd8f   : > { %3893 = vmatprep.mubr.msk.bf16.mxu0 %vm5560_vm4, %v3286_v41 }
 0xd90   : > { %3894 = vmatmul.mubr.msk.bf16.gmra.mrb[52].mxu0 %vm5561_vm7, %v3287_v38 }
 0xe5b   : > { %v3891_v15 = vpop.f32.mrb[48].mxu0 }
 0xe5c   : > { %v3382_v57 = vadd.f32 %v3891_v15, %v3574_v37  ;;  %v3373_v61 = vpop.f32.mrb[49].mxu0 }
 0xe5d   : > { %v3374_v50 = vadd.f32 %v3574_v37, %v3373_v61  ;;  %v3892_v5 = vpop.f32.mrb[50].mxu0 }
 0xe5e   : > { %v3405_v40 = vadd.f32 %v3382_v57, %v5310_v6  ;;  %v3385_v2 = vadd.f32 %v3892_v5, %v3574_v37  ;;  %v3376_v31 = vpop.f32.mrb[51].mxu0 }
 0xe5f   : > { %v3403_v55 = vadd.f32 %v3374_v50, %v5307_v63  ;;  %v3377_v28 = vadd.f32 %v3574_v37, %v3376_v31 }
 0xe60   : > { %3412 = vst.msk [vmem:[%s548_s23 + $0x10] sm:$0xff] %vm5562_vm10, %v3405_v40  ;;  %v3406_v46 = vadd.f32 %v3385_v2, %v5319_v44 }
 0xe61   : > { %3410 = vst.msk [vmem:[%s548_s23] sm:$0xff] %vm5563_vm11, %v3403_v55  ;;  %v3404_v39 = vadd.f32 %v3377_v28, %v5313_v14 }
 0xe62   : > { %3413 = vst.msk [vmem:[%s548_s23 + $0x18] sm:$0xff] %vm5564_vm13, %v3406_v46 }
 0xe63   : > { %3411 = vst.msk [vmem:[%s548_s23 + $0x8] sm:$0xff] %vm5565_vm1, %v3404_v39  ;;  %v3895_v10 = vpop.f32.mrb[52].mxu0 }
 0xe64   : > { %v3398_v42 = vadd.f32 %v3895_v10, %v3574_v37  ;;  %v3389_v6 = vpop.f32.mrb[53].mxu0 }
 0xe65   : > { %v3390_v21 = vadd.f32 %v3574_v37, %v3389_v6  ;;  %v3896_v11 = vpop.f32.mrb[54].mxu0 }
 0xe66   : > { %v3409_v63 = vadd.f32 %v3398_v42, %v5332_v60  ;;  %v3392_v22 = vpop.f32.mrb[55].mxu0 }
 0xe67   : > { %v3407_v17 = vadd.f32 %v3390_v21, %v5325_v24  ;;  %v3393_v48 = vadd.f32 %v3574_v37, %v3392_v22 }
 0xe68   : > { %3416 = vst.msk [vmem:[%s548_s23 + $0x30] sm:$0x1] %vm5566_vm0, %v3409_v63 }
 0xe69   : > { %3414 = vst.msk [vmem:[%s548_s23 + $0x20] sm:$0xff] %vm5567_vm2, %v3407_v17  ;;  %v3408_v14 = vadd.f32 %v3393_v48, %v5330_v51 }
 0xe6b   : > { %3415 = vst.msk [vmem:[%s548_s23 + $0x28] sm:$0xff] %vm5568_vm3, %v3408_v14 }
 0xe6c PF: > { %s27_s24 = sadd.s32 1, %s4154_s24  }
 0xe6d   : > { %p24_p4 = scmp.ge.s32.totalorder %s27_s24, 4  }
 0xe6f   :  { %26 = sbr.rel (!%p24_p4) target bundleno = 3 (0x3), region = 121 }

// kernel: sbcformer_block.13
= control target key start
LH: loop header
LB: loop body
LE: loop exit
PB: predicated region body
PF: predicated region fallthrough
CT: control target
= control target key end

     0   :  { %s1834_s17 = smov 0   ;;  %s2345_s0 = inlined_call_operand.vmem [shape: f32[2,196,32], index: 0, kind: input, shape index: {}]   ;;  %s2346_s1 = inlined_call_operand.vmem [shape: f32[2,196,32], index: 1, kind: input, shape index: {}]   ;;  %s2347_s2 = inlined_call_operand.vmem [shape: f32[1,32], index: 2, kind: input, shape index: {}]   ;;  %s2348_s3 = inlined_call_operand.vmem [shape: f32[1,32], index: 3, kind: input, shape index: {}]   ;;  %s2349_s4 = inlined_call_operand.vmem [shape: bf16[32,32], index: 4, kind: input, shape index: {}]   ;;  %s2350_s5 = inlined_call_operand.vmem [shape: f32[1,32], index: 5, kind: input, shape index: {}]   ;;  %s2351_s6 = inlined_call_operand.vmem [shape: f32[1,32], index: 6, kind: input, shape index: {}]   ;;  %s2352_s7 = inlined_call_operand.vmem [shape: bf16[32,32], index: 7, kind: input, shape index: {}]   ;;  %s2353_s8 = inlined_call_operand.vmem [shape: bf16[32,32], index: 8, kind: input, shape index: {}]   ;;  %s2354_s9 = inlined_call_operand.vmem [shape: f32[1,32], index: 9, kind: input, shape index: {}]   ;;  %s2355_s10 = inlined_call_operand.vmem [shape: f32[1,32], index: 10, kind: input, shape index: {}]   ;;  %s2356_s11 = inlined_call_operand.vmem [shape: f32[2,196,32], index: 11, kind: output, shape index: {}]  }
   0x1 LB: > { %s1429_s18 = sadd.s32 4294967295, %s1770_s17   ;;  %p1433_p0 = scmp.ge.s32.totalorder %s1770_s17, 1  ;;  %s1770_s17 = sphi %s1834_s17, %s21_s17  }
   0x2   : > { %p347_p1 = scmp.lt.s32.totalorder %s1770_s17, 3 }
   0x4   : > { %p348_p2 = pnand %p1433_p0, %p347_p1 }
   0x5   : > { %v1758_v0 = vld [vmem:[%s2349_s4] sm:$0xff] (!%p348_p2)   ;;  %v1772_v1 = vmov (!%p348_p2), 0.0   ;;  %v1759_v2 = vld [vmem:[%s2349_s4 + $0x8] sm:$0xff] (!%p348_p2)   ;;  %vm1773_vm0 = vmmov (!%p348_p2), 0   ;;  %p392_p3 = scmp.lt.s32.totalorder (!%p348_p2), %s1429_s18, 1  ;;  %vm526_vm1 = vcmask (!%p348_p2), 261120  }
   0x6   : > { %351 = sbr.rel (%p348_p2) target bundleno = 671 (0x29f), region = 64  ;;  %1535 = vmatprep.subr.bf16.mxu0 (!%p348_p2), %v1772_v1  ;;  %1703 = vmatprep.subr.bf16.mxu1 (!%p348_p2), %v1772_v1  ;;  %v1860_v3 = vld [vmem:[%s2347_s2] ss:$0 sm:$0xff] (!%p348_p2)  ;;  %vm1360_vm2 = vcmask (!%p348_p2), 257024  }
   0x7   : > { %1536 = vmatpush3.bf16.msra.mxu0 (!%p348_p2), %v1758_v0  ;;  %1539 = vmatprep.mubr.msk.bf16.mxu0 (!%p348_p2), %vm1773_vm0, %v1772_v1  ;;  %v1872_v4 = vld [vmem:[%s2348_s3] ss:$0 sm:$0xff] (!%p348_p2) }
   0x8   : > { %1537 = vmatprep.subr.bf16.mxu0 (!%p348_p2), %v1772_v1  ;;  %1619 = vmatprep.mubr.msk.bf16.mxu1 (!%p348_p2), %vm1773_vm0, %v1772_v1 }
   0xb   : > { %1538 = vmatpush3.bf16.msra.mxu0 (!%p348_p2), %v1759_v2 }
   0xc   : > { %1591 = vmatprep.subr.bf16.mxu0 (!%p348_p2), %v1772_v1 }
   0xd   : > { %s2358_s18 = smov (!%p392_p3, %s1429_s18), 1 }
   0xe   : > { %s1855_s23 = smul.u32 200, %s2358_s18 }
  0x10   : > { %s1867_s28 = scalar_lea.vmem %s2345_s0, %s1855_s23  ;;  %s2054_s24 = scalar_lea.vmem %s2346_s1, %s1855_s23 }
  0x11   : > { %v408_v5 = vld [vmem:[%s1867_s28] sm:$0xff]  ;;  %v409_v6 = vld [vmem:[%s1867_s28 + $0x8] sm:$0xff]  ;;  %v410_v7 = vld [vmem:[%s1867_s28 + $0x10] sm:$0xff]  ;;  %s2240_s16 = scalar_lea.vmem %s2356_s11, %s1855_s23 }
  0x12   : > { %v440_v8 = vmul.f32 %v1860_v3, %v408_v5  ;;  %v441_v9 = vmul.f32 %v1860_v3, %v409_v6  ;;  %v411_v10 = vld [vmem:[%s1867_s28 + $0x18] sm:$0xff]  ;;  %v442_v13 = vmul.f32 %v1860_v3, %v410_v7  ;;  %v412_v16 = vld [vmem:[%s1867_s28 + $0x20] sm:$0xff]  ;;  %v425_v20 = vld [vmem:[%s1867_s28 + $0x88] sm:$0xff] }
  0x13   : > { %v443_v14 = vmul.f32 %v1860_v3, %v411_v10  ;;  %v424_v19 = vld [vmem:[%s1867_s28 + $0x80] sm:$0xff]  ;;  %v413_v21 = vld [vmem:[%s1867_s28 + $0x28] sm:$0xff]  ;;  %v426_v22 = vld [vmem:[%s1867_s28 + $0x90] sm:$0xff]  ;;  %v444_v24 = vmul.f32 %v1860_v3, %v412_v16  ;;  %v457_v27 = vmul.f32 %v1860_v3, %v425_v20 }
  0x14   : > { %v472_v11 = vadd.f32 %v1872_v4, %v440_v8  ;;  %v473_v12 = vadd.f32 %v1872_v4, %v441_v9  ;;  %v474_v17 = vadd.f32 %v1872_v4, %v442_v13  ;;  %v427_v23 = vld [vmem:[%s1867_s28 + $0x98] sm:$0xff]  ;;  %v428_v25 = vld [vmem:[%s1867_s28 + $0xa0] sm:$0xff]  ;;  %v456_v26 = vmul.f32 %v1860_v3, %v424_v19  ;;  %v429_v28 = vld [vmem:[%s1867_s28 + $0xa8] sm:$0xff] }
  0x15   : > { %v475_v18 = vadd.f32 %v1872_v4, %v443_v14  ;;  %v445_v30 = vmul.f32 %v1860_v3, %v413_v21  ;;  %v458_v31 = vmul.f32 %v1860_v3, %v426_v22  ;;  %v459_v32 = vmul.f32 %v1860_v3, %v427_v23  ;;  %v430_v33 = vld [vmem:[%s1867_s28 + $0xb0] sm:$0xff]  ;;  %v431_v34 = vld [vmem:[%s1867_s28 + $0xb8] sm:$0xff]  ;;  %v432_v38 = vld [vmem:[%s1867_s28 + $0xc0] sm:$0xf] }
  0x16   : > { %v1884_v15 = vpack.c.bf16 %v473_v12, %v472_v11  ;;  %v488_v35 = vadd.f32 %v1872_v4, %v456_v26  ;;  %v489_v36 = vadd.f32 %v1872_v4, %v457_v27  ;;  %v460_v37 = vmul.f32 %v1860_v3, %v428_v25  ;;  %v414_v51 = vld [vmem:[%s1867_s28 + $0x30] sm:$0xff]  ;;  %v415_v52 = vld [vmem:[%s1867_s28 + $0x38] sm:$0xff]  ;;  %v416_v63 = vld [vmem:[%s1867_s28 + $0x40] sm:$0xff] }
  0x17   : > { %v1903_v29 = vpack.c.bf16 %v475_v18, %v474_v17  ;;  %v476_v39 = vadd.f32 %v1872_v4, %v444_v24  ;;  %v490_v40 = vadd.f32 %v1872_v4, %v458_v31  ;;  %v491_v41 = vadd.f32 %v1872_v4, %v459_v32  ;;  %v417_v0 = vld [vmem:[%s1867_s28 + $0x48] sm:$0xff]  ;;  %v418_v9 = vld [vmem:[%s1867_s28 + $0x50] sm:$0xff]  ;;  %v419_v10 = vld [vmem:[%s1867_s28 + $0x58] sm:$0xff] }
  0x18   : > { %1540 = vmatmul.mubr.msk.bf16.vlgmr.msra.gmra.mrb[0].mxu0 %vm526_vm1, %v1884_v15  ;;  %v461_v42 = vmul.f32 %v1860_v3, %v429_v28  ;;  %v1918_v43 = vpack.c.bf16 %v489_v36, %v488_v35  ;;  %v492_v44 = vadd.f32 %v1872_v4, %v460_v37  ;;  %v462_v45 = vmul.f32 %v1860_v3, %v430_v33  ;;  %v420_v17 = vld [vmem:[%s1867_s28 + $0x60] sm:$0xff]  ;;  %v421_v18 = vld [vmem:[%s1867_s28 + $0x68] sm:$0xff]  ;;  %v422_v24 = vld [vmem:[%s1867_s28 + $0x70] sm:$0xff] }
  0x19   : > { %1543 = vmatprep.mubr.msk.bf16.mxu0 %vm1773_vm0, %v1772_v1  ;;  %v463_v46 = vmul.f32 %v1860_v3, %v431_v34  ;;  %v477_v47 = vadd.f32 %v1872_v4, %v445_v30  ;;  %v1926_v48 = vpack.c.bf16 %v491_v41, %v490_v40  ;;  %v464_v50 = vmul.f32 %v1860_v3, %v432_v38  ;;  %v423_v25 = vld [vmem:[%s1867_s28 + $0x78] sm:$0xff]  ;;  %v1761_v33 = vld [vmem:[%s2353_s8 + $0x8] sm:$0xff]   ;;  %v2039_v34 = vld [vmem:[%s2350_s5] ss:$0 sm:$0xff] }
  0x1a   : > { %v493_v49 = vadd.f32 %v1872_v4, %v461_v42  ;;  %v494_v53 = vadd.f32 %v1872_v4, %v462_v45  ;;  %v446_v59 = vmul.f32 %v1860_v3, %v414_v51  ;;  %v447_v60 = vmul.f32 %v1860_v3, %v415_v52  ;;  %v2044_v36 = vld [vmem:[%s2351_s6] ss:$0 sm:$0xff] }
  0x1b   : > { %v495_v54 = vadd.f32 %v1872_v4, %v463_v46  ;;  %v496_v56 = vadd.f32 %v1872_v4, %v464_v50  ;;  %v1941_v58 = vpack.c.bf16 %v477_v47, %v476_v39  ;;  %v448_v5 = vmul.f32 %v1860_v3, %v416_v63  ;;  %v866_v63 = vld [vmem:[%s2054_s24] sm:$0xff] }
  0x1c   : > { %v1936_v55 = vpack.c.bf16 %v493_v49, %v492_v44  ;;  %v478_v61 = vadd.f32 %v1872_v4, %v446_v59  ;;  %v479_v62 = vadd.f32 %v1872_v4, %v447_v60  ;;  %v449_v6 = vmul.f32 %v1860_v3, %v417_v0  ;;  %v867_v0 = vld [vmem:[%s2054_s24 + $0x8] sm:$0xff] }
  0x1d   : > { %v1939_v57 = vpack.c.bf16 %v495_v54, %v494_v53  ;;  %v480_v7 = vadd.f32 %v1872_v4, %v448_v5  ;;  %v450_v12 = vmul.f32 %v1860_v3, %v418_v9  ;;  %v451_v13 = vmul.f32 %v1860_v3, %v419_v10 }
  0x1e   : > { %v1953_v2 = vpack.c.bf16 %v479_v62, %v478_v61  ;;  %v481_v8 = vadd.f32 %v1872_v4, %v449_v6  ;;  %v452_v20 = vmul.f32 %v1860_v3, %v420_v17  ;;  %v453_v21 = vmul.f32 %v1860_v3, %v421_v18 }
  0x1f   : > { %v482_v14 = vadd.f32 %v1872_v4, %v450_v12  ;;  %v483_v16 = vadd.f32 %v1872_v4, %v451_v13  ;;  %v454_v27 = vmul.f32 %v1860_v3, %v422_v24  ;;  %v455_v28 = vmul.f32 %v1860_v3, %v423_v25 }
  0x20   : > { %1544 = vmatmul.mubr.msk.bf16.gmra.mrb[4].mxu0 %vm526_vm1, %v1903_v29  ;;  %v1965_v11 = vpack.c.bf16 %v481_v8, %v480_v7  ;;  %v484_v22 = vadd.f32 %v1872_v4, %v452_v20  ;;  %v485_v23 = vadd.f32 %v1872_v4, %v453_v21  ;;  %v2021_v3 = vpack.c.bf16 %v496_v56, %v496_v56 }
  0x21   : > { %1547 = vmatprep.mubr.msk.bf16.mxu0 %vm1773_vm0, %v1772_v1  ;;  %v1977_v19 = vpack.c.bf16 %v483_v16, %v482_v14  ;;  %v486_v30 = vadd.f32 %v1872_v4, %v454_v27  ;;  %v487_v31 = vadd.f32 %v1872_v4, %v455_v28  ;;  %v1760_v4 = vld [vmem:[%s2353_s8] sm:$0xff]   ;;  %v868_v28 = vld [vmem:[%s2054_s24 + $0x10] sm:$0xff] }
  0x22   : > { %v1989_v26 = vpack.c.bf16 %v485_v23, %v484_v22  ;;  %1592 = vmatpush3.bf16.msra.mxu0 %v1760_v4  ;;  %1705 = vmatpush3.bf16.msra.mxu1 %v1760_v4 }
  0x23   : > { %v1999_v32 = vpack.c.bf16 %v487_v31, %v486_v30  ;;  %1593 = vmatprep.subr.bf16.mxu0 %v1772_v1  ;;  %1704 = vmatprep.subr.bf16.mxu1 %v1772_v1  ;;  %v869_v30 = vld [vmem:[%s2054_s24 + $0x18] sm:$0xff] }
  0x26   : > { %1594 = vmatpush3.bf16.msra.mxu0 %v1761_v33  ;;  %1706 = vmatpush3.bf16.msra.mxu1 %v1761_v33 }
  0x27   : > { %1647 = vmatprep.subr.bf16.mxu1 %v1772_v1 }
  0x28   : > { %1548 = vmatmul.mubr.msk.bf16.gmra.mrb[8].mxu0 %vm526_vm1, %v1941_v58 }
  0x29   : > { %1551 = vmatprep.mubr.msk.bf16.mxu0 %vm1773_vm0, %v1772_v1 }
  0x30   : > { %1552 = vmatmul.mubr.msk.bf16.gmra.mrb[12].mxu0 %vm526_vm1, %v1953_v2 }
  0x31   : > { %1555 = vmatprep.mubr.msk.bf16.mxu0 %vm1773_vm0, %v1772_v1 }
  0x38   : > { %1556 = vmatmul.mubr.msk.bf16.gmra.mrb[16].mxu0 %vm526_vm1, %v1965_v11 }
  0x39   : > { %1559 = vmatprep.mubr.msk.bf16.mxu0 %vm1773_vm0, %v1772_v1 }
  0x40   : > { %1560 = vmatmul.mubr.msk.bf16.gmra.mrb[20].mxu0 %vm526_vm1, %v1977_v19 }
  0x41   : > { %1563 = vmatprep.mubr.msk.bf16.mxu0 %vm1773_vm0, %v1772_v1 }
  0x48   : > { %1564 = vmatmul.mubr.msk.bf16.gmra.mrb[24].mxu0 %vm526_vm1, %v1989_v26 }
  0x49   : > { %1567 = vmatprep.mubr.msk.bf16.mxu0 %vm1773_vm0, %v1772_v1 }
  0x50   : > { %1568 = vmatmul.mubr.msk.bf16.gmra.mrb[28].mxu0 %vm526_vm1, %v1999_v32 }
  0x51   : > { %1571 = vmatprep.mubr.msk.bf16.mxu0 %vm1773_vm0, %v1772_v1 }
  0x58   : > { %1572 = vmatmul.mubr.msk.bf16.gmra.mrb[32].mxu0 %vm526_vm1, %v1918_v43 }
  0x59   : > { %1575 = vmatprep.mubr.msk.bf16.mxu0 %vm1773_vm0, %v1772_v1 }
  0x60   : > { %1576 = vmatmul.mubr.msk.bf16.gmra.mrb[36].mxu0 %vm526_vm1, %v1926_v48 }
  0x61   : > { %1579 = vmatprep.mubr.msk.bf16.mxu0 %vm1773_vm0, %v1772_v1 }
  0x68   : > { %1580 = vmatmul.mubr.msk.bf16.gmra.mrb[40].mxu0 %vm526_vm1, %v1936_v55 }
  0x69   : > { %1583 = vmatprep.mubr.msk.bf16.mxu0 %vm1773_vm0, %v1772_v1 }
  0x70   : > { %1584 = vmatmul.mubr.msk.bf16.gmra.mrb[44].mxu0 %vm526_vm1, %v1939_v57 }
  0x71   : > { %1587 = vmatprep.mubr.msk.bf16.mxu0 %vm1773_vm0, %v1772_v1 }
  0x78   : > { %1588 = vmatmul.mubr.msk.bf16.gmra.mrb[48].mxu0 %vm526_vm1, %v2021_v3 }
  0x79   : > { %1595 = vmatprep.mubr.msk.bf16.mxu0 %vm1773_vm0, %v1772_v1 }
  0xeb   : > { %v600_v35 = vpop.f32.mrb[0].mxu0 }
  0xec   : > { %v709_v37 = vmul.f32 %v2039_v34, %v600_v35  ;;  %v1541_v38 = vpop.f32.mrb[1].mxu0 }
  0xed   : > { %v603_v39 = vpop.f32.mrb[2].mxu0 }
  0xee   : > { %v741_v40 = vadd.f32 %v2044_v36, %v709_v37  ;;  %v710_v41 = vmul.f32 %v2039_v34, %v603_v39  ;;  %v1542_v42 = vpop.f32.mrb[3].mxu0 }
  0xf0   : > { %v766_v44 = vadd.f32 3.0, %v741_v40  ;;  %v742_v45 = vadd.f32 %v2044_v36, %v710_v41 }
  0xf2   : > { %v791_v46 = vmax.f32 %v766_v44, 0.0  ;;  %v767_v47 = vadd.f32 3.0, %v742_v45 }
  0xf3   : > { %v608_v49 = vpop.f32.mrb[4].mxu0 }
  0xf4   : > { %v816_v50 = vmin.f32 %v791_v46, 6.0  ;;  %v792_v51 = vmax.f32 %v767_v47, 0.0  ;;  %v711_v52 = vmul.f32 %v2039_v34, %v608_v49  ;;  %v1545_v53 = vpop.f32.mrb[5].mxu0 }
  0xf5   : > { %v611_v54 = vpop.f32.mrb[6].mxu0 }
  0xf6   : > { %v841_v56 = vmul.f32 0.16666667, %v816_v50  ;;  %v817_v59 = vmin.f32 %v792_v51, 6.0  ;;  %v743_v60 = vadd.f32 %v2044_v36, %v711_v52  ;;  %v712_v61 = vmul.f32 %v2039_v34, %v611_v54  ;;  %v1546_v62 = vpop.f32.mrb[7].mxu0  ;;  %v870_v54 = vld [vmem:[%s2054_s24 + $0x20] sm:$0xff] }
  0xf8   : > { %v842_v5 = vmul.f32 0.16666667, %v817_v59  ;;  %v768_v6 = vadd.f32 3.0, %v743_v60  ;;  %v744_v7 = vadd.f32 %v2044_v36, %v712_v61  ;;  %v891_v8 = vmul.f32 %v866_v63, %v841_v56  ;;  %v871_v56 = vld [vmem:[%s2054_s24 + $0x28] sm:$0xff] }
  0xfa   : > { %v892_v9 = vmul.f32 %v867_v0, %v842_v5  ;;  %v793_v10 = vmax.f32 %v768_v6, 0.0  ;;  %v769_v12 = vadd.f32 3.0, %v744_v7 }
  0xfb   : > { %v616_v13 = vpop.f32.mrb[8].mxu0 }
  0xfc   : > { %v920_v14 = vpack.c.bf16 %v892_v9, %v891_v8  ;;  %v818_v16 = vmin.f32 %v793_v10, 6.0  ;;  %v794_v17 = vmax.f32 %v769_v12, 0.0  ;;  %v713_v18 = vmul.f32 %v2039_v34, %v616_v13  ;;  %v1549_v20 = vpop.f32.mrb[9].mxu0 }
  0xfd   : > { %v619_v21 = vpop.f32.mrb[10].mxu0 }
  0xfe   : > { %v843_v22 = vmul.f32 0.16666667, %v818_v16  ;;  %v819_v23 = vmin.f32 %v794_v17, 6.0  ;;  %v745_v24 = vadd.f32 %v2044_v36, %v713_v18  ;;  %v714_v25 = vmul.f32 %v2039_v34, %v619_v21  ;;  %v1550_v27 = vpop.f32.mrb[11].mxu0  ;;  %1596 = vmatmul.mubr.msk.bf16.vlgmr.msra.gmra.mrb[52].mxu0 %vm526_vm1, %v920_v14  ;;  %v872_v21 = vld [vmem:[%s2054_s24 + $0x30] sm:$0xff] }
  0xff   : > { %1599 = vmatprep.mubr.msk.bf16.mxu0 %vm1773_vm0, %v1772_v1 }
 0x100   : > { %v844_v31 = vmul.f32 0.16666667, %v819_v23  ;;  %v770_v4 = vadd.f32 3.0, %v745_v24  ;;  %v746_v33 = vadd.f32 %v2044_v36, %v714_v25  ;;  %v893_v35 = vmul.f32 %v868_v28, %v843_v22  ;;  %v873_v22 = vld [vmem:[%s2054_s24 + $0x38] sm:$0xff] }
 0x102   : > { %v894_v37 = vmul.f32 %v869_v30, %v844_v31  ;;  %v795_v38 = vmax.f32 %v770_v4, 0.0  ;;  %v771_v39 = vadd.f32 3.0, %v746_v33 }
 0x103   : > { %v624_v40 = vpop.f32.mrb[12].mxu0 }
 0x104   : > { %v820_v41 = vmin.f32 %v795_v38, 6.0  ;;  %v796_v42 = vmax.f32 %v771_v39, 0.0  ;;  %v715_v44 = vmul.f32 %v2039_v34, %v624_v40  ;;  %v1553_v45 = vpop.f32.mrb[13].mxu0  ;;  %v921_v46 = vpack.c.bf16 %v894_v37, %v893_v35 }
 0x105   : > { %v627_v47 = vpop.f32.mrb[14].mxu0 }
 0x106   : > { %v845_v49 = vmul.f32 0.16666667, %v820_v41  ;;  %v821_v50 = vmin.f32 %v796_v42, 6.0  ;;  %v747_v51 = vadd.f32 %v2044_v36, %v715_v44  ;;  %v716_v52 = vmul.f32 %v2039_v34, %v627_v47  ;;  %v1554_v53 = vpop.f32.mrb[15].mxu0  ;;  %1600 = vmatmul.mubr.msk.bf16.gmra.mrb[56].mxu0 %vm526_vm1, %v921_v46  ;;  %v874_v47 = vld [vmem:[%s2054_s24 + $0x40] sm:$0xff] }
 0x107   : > { %1603 = vmatprep.mubr.msk.bf16.mxu0 %vm1773_vm0, %v1772_v1 }
 0x108   : > { %v846_v59 = vmul.f32 0.16666667, %v821_v50  ;;  %v772_v60 = vadd.f32 3.0, %v747_v51  ;;  %v748_v61 = vadd.f32 %v2044_v36, %v716_v52  ;;  %v895_v62 = vmul.f32 %v870_v54, %v845_v49  ;;  %v875_v49 = vld [vmem:[%s2054_s24 + $0x48] sm:$0xff] }
 0x10a   : > { %v896_v63 = vmul.f32 %v871_v56, %v846_v59  ;;  %v797_v0 = vmax.f32 %v772_v60, 0.0  ;;  %v773_v5 = vadd.f32 3.0, %v748_v61 }
 0x10b   : > { %v632_v6 = vpop.f32.mrb[16].mxu0 }
 0x10c   : > { %v822_v7 = vmin.f32 %v797_v0, 6.0  ;;  %v798_v8 = vmax.f32 %v773_v5, 0.0  ;;  %v717_v9 = vmul.f32 %v2039_v34, %v632_v6  ;;  %v1557_v10 = vpop.f32.mrb[17].mxu0  ;;  %v922_v12 = vpack.c.bf16 %v896_v63, %v895_v62 }
 0x10d   : > { %v635_v13 = vpop.f32.mrb[18].mxu0 }
 0x10e   : > { %v847_v14 = vmul.f32 0.16666667, %v822_v7  ;;  %v823_v16 = vmin.f32 %v798_v8, 6.0  ;;  %v749_v17 = vadd.f32 %v2044_v36, %v717_v9  ;;  %v718_v18 = vmul.f32 %v2039_v34, %v635_v13  ;;  %v1558_v20 = vpop.f32.mrb[19].mxu0  ;;  %1604 = vmatmul.mubr.msk.bf16.gmra.mrb[60].mxu0 %vm526_vm1, %v922_v12  ;;  %v876_v13 = vld [vmem:[%s2054_s24 + $0x50] sm:$0xff] }
 0x10f   : > { %1607 = vmatprep.mubr.msk.bf16.mxu0 %vm1773_vm0, %v1772_v1 }
 0x110   : > { %v848_v23 = vmul.f32 0.16666667, %v823_v16  ;;  %v774_v24 = vadd.f32 3.0, %v749_v17  ;;  %v750_v25 = vadd.f32 %v2044_v36, %v718_v18  ;;  %v897_v27 = vmul.f32 %v872_v21, %v847_v14  ;;  %v877_v14 = vld [vmem:[%s2054_s24 + $0x58] sm:$0xff] }
 0x112   : > { %v898_v28 = vmul.f32 %v873_v22, %v848_v23  ;;  %v799_v30 = vmax.f32 %v774_v24, 0.0  ;;  %v775_v31 = vadd.f32 3.0, %v750_v25 }
 0x113   : > { %v640_v4 = vpop.f32.mrb[20].mxu0 }
 0x114   : > { %v824_v33 = vmin.f32 %v799_v30, 6.0  ;;  %v800_v35 = vmax.f32 %v775_v31, 0.0  ;;  %v719_v37 = vmul.f32 %v2039_v34, %v640_v4  ;;  %v1561_v38 = vpop.f32.mrb[21].mxu0  ;;  %v923_v39 = vpack.c.bf16 %v898_v28, %v897_v27 }
 0x115   : > { %v643_v40 = vpop.f32.mrb[22].mxu0 }
 0x116   : > { %v849_v41 = vmul.f32 0.16666667, %v824_v33  ;;  %v825_v42 = vmin.f32 %v800_v35, 6.0  ;;  %v751_v44 = vadd.f32 %v2044_v36, %v719_v37  ;;  %v720_v45 = vmul.f32 %v2039_v34, %v643_v40  ;;  %v1562_v46 = vpop.f32.mrb[23].mxu0  ;;  %1608 = vmatmul.mubr.msk.bf16.gmra.mrb[64].mxu0 %vm526_vm1, %v923_v39  ;;  %v878_v40 = vld [vmem:[%s2054_s24 + $0x60] sm:$0xff] }
 0x117   : > { %1611 = vmatprep.mubr.msk.bf16.mxu0 %vm1773_vm0, %v1772_v1 }
 0x118   : > { %v850_v50 = vmul.f32 0.16666667, %v825_v42  ;;  %v776_v51 = vadd.f32 3.0, %v751_v44  ;;  %v752_v52 = vadd.f32 %v2044_v36, %v720_v45  ;;  %v899_v53 = vmul.f32 %v874_v47, %v849_v41  ;;  %v879_v41 = vld [vmem:[%s2054_s24 + $0x68] sm:$0xff] }
 0x11a   : > { %v900_v54 = vmul.f32 %v875_v49, %v850_v50  ;;  %v801_v56 = vmax.f32 %v776_v51, 0.0  ;;  %v777_v59 = vadd.f32 3.0, %v752_v52  ;;  %v1762_v52 = vld [vmem:[%s2352_s7] sm:$0xff]  }
 0x11b   : > { %v648_v60 = vpop.f32.mrb[24].mxu0 }
 0x11c   : > { %v826_v61 = vmin.f32 %v801_v56, 6.0  ;;  %v802_v62 = vmax.f32 %v777_v59, 0.0  ;;  %v721_v63 = vmul.f32 %v2039_v34, %v648_v60  ;;  %v1565_v0 = vpop.f32.mrb[25].mxu0  ;;  %v924_v5 = vpack.c.bf16 %v900_v54, %v899_v53 }
 0x11d   : > { %v651_v6 = vpop.f32.mrb[26].mxu0 }
 0x11e   : > { %v851_v7 = vmul.f32 0.16666667, %v826_v61  ;;  %v827_v8 = vmin.f32 %v802_v62, 6.0  ;;  %v753_v9 = vadd.f32 %v2044_v36, %v721_v63  ;;  %v722_v10 = vmul.f32 %v2039_v34, %v651_v6  ;;  %v1566_v12 = vpop.f32.mrb[27].mxu0  ;;  %1612 = vmatmul.mubr.msk.bf16.gmra.mrb[68].mxu0 %vm526_vm1, %v924_v5 }
 0x11f   : > { %1615 = vmatprep.mubr.msk.bf16.mxu0 %vm1773_vm0, %v1772_v1 }
 0x120   : > { %v852_v16 = vmul.f32 0.16666667, %v827_v8  ;;  %v778_v17 = vadd.f32 3.0, %v753_v9  ;;  %v754_v18 = vadd.f32 %v2044_v36, %v722_v10  ;;  %v901_v20 = vmul.f32 %v876_v13, %v851_v7  ;;  %v880_v7 = vld [vmem:[%s2054_s24 + $0x70] sm:$0xff]  ;;  %v881_v8 = vld [vmem:[%s2054_s24 + $0x78] sm:$0xff]  ;;  %v1763_v9 = vld [vmem:[%s2352_s7 + $0x8] sm:$0xff]  }
 0x122   : > { %v902_v21 = vmul.f32 %v877_v14, %v852_v16  ;;  %v803_v22 = vmax.f32 %v778_v17, 0.0  ;;  %v779_v23 = vadd.f32 3.0, %v754_v18 }
 0x123   : > { %v656_v24 = vpop.f32.mrb[28].mxu0 }
 0x124   : > { %v828_v25 = vmin.f32 %v803_v22, 6.0  ;;  %v804_v27 = vmax.f32 %v779_v23, 0.0  ;;  %v723_v28 = vmul.f32 %v2039_v34, %v656_v24  ;;  %v1569_v30 = vpop.f32.mrb[29].mxu0  ;;  %v925_v31 = vpack.c.bf16 %v902_v21, %v901_v20 }
 0x125   : > { %v659_v4 = vpop.f32.mrb[30].mxu0 }
 0x126   : > { %v853_v33 = vmul.f32 0.16666667, %v828_v25  ;;  %v829_v35 = vmin.f32 %v804_v27, 6.0  ;;  %v755_v37 = vadd.f32 %v2044_v36, %v723_v28  ;;  %v724_v38 = vmul.f32 %v2039_v34, %v659_v4  ;;  %v1570_v39 = vpop.f32.mrb[31].mxu0  ;;  %1616 = vmatmul.mubr.msk.bf16.gmra.mrb[72].mxu0 %vm526_vm1, %v925_v31 }
 0x128   : > { %v854_v42 = vmul.f32 0.16666667, %v829_v35  ;;  %v780_v44 = vadd.f32 3.0, %v755_v37  ;;  %v756_v45 = vadd.f32 %v2044_v36, %v724_v38  ;;  %v903_v46 = vmul.f32 %v878_v40, %v853_v33  ;;  %v882_v35 = vld [vmem:[%s2054_s24 + $0x80] sm:$0xff]  ;;  %v883_v37 = vld [vmem:[%s2054_s24 + $0x88] sm:$0xff] }
 0x12a   : > { %v904_v47 = vmul.f32 %v879_v41, %v854_v42  ;;  %v805_v49 = vmax.f32 %v780_v44, 0.0  ;;  %v781_v50 = vadd.f32 3.0, %v756_v45 }
 0x12b   : > { %v664_v51 = vpop.f32.mrb[32].mxu0 }
 0x12c   : > { %v830_v53 = vmin.f32 %v805_v49, 6.0  ;;  %v806_v54 = vmax.f32 %v781_v50, 0.0  ;;  %v725_v56 = vmul.f32 %v2039_v34, %v664_v51  ;;  %v1573_v59 = vpop.f32.mrb[33].mxu0  ;;  %v926_v60 = vpack.c.bf16 %v904_v47, %v903_v46 }
 0x12d   : > { %v667_v61 = vpop.f32.mrb[34].mxu0 }
 0x12e   : > { %v855_v62 = vmul.f32 0.16666667, %v830_v53  ;;  %v831_v63 = vmin.f32 %v806_v54, 6.0  ;;  %v757_v0 = vadd.f32 %v2044_v36, %v725_v56  ;;  %v726_v5 = vmul.f32 %v2039_v34, %v667_v61  ;;  %v1574_v6 = vpop.f32.mrb[35].mxu0  ;;  %1620 = vmatmul.mubr.msk.bf16.vlgmr.msra.gmra.mrb[0].mxu1 %vm526_vm1, %v926_v60 }
 0x12f   : > { %1648 = vmatpush3.bf16.msra.mxu1 %v1762_v52  ;;  %1623 = vmatprep.mubr.msk.bf16.mxu1 %vm1773_vm0, %v1772_v1 }
 0x130   : > { %v856_v10 = vmul.f32 0.16666667, %v831_v63  ;;  %v782_v12 = vadd.f32 3.0, %v757_v0  ;;  %v758_v13 = vadd.f32 %v2044_v36, %v726_v5  ;;  %1649 = vmatprep.subr.bf16.mxu1 %v1772_v1  ;;  %v905_v14 = vmul.f32 %v880_v7, %v855_v62  ;;  %v884_v62 = vld [vmem:[%s2054_s24 + $0x90] sm:$0xff]  ;;  %v885_v63 = vld [vmem:[%s2054_s24 + $0x98] sm:$0xff] }
 0x132   : > { %v906_v16 = vmul.f32 %v881_v8, %v856_v10  ;;  %v807_v17 = vmax.f32 %v782_v12, 0.0  ;;  %v783_v18 = vadd.f32 3.0, %v758_v13 }
 0x133   : > { %v672_v20 = vpop.f32.mrb[36].mxu0  ;;  %1650 = vmatpush3.bf16.msra.mxu1 %v1763_v9 }
 0x134   : > { %v832_v21 = vmin.f32 %v807_v17, 6.0  ;;  %v808_v22 = vmax.f32 %v783_v18, 0.0  ;;  %v727_v23 = vmul.f32 %v2039_v34, %v672_v20  ;;  %v1577_v24 = vpop.f32.mrb[37].mxu0  ;;  %v927_v25 = vpack.c.bf16 %v906_v16, %v905_v14 }
 0x135   : > { %v675_v27 = vpop.f32.mrb[38].mxu0 }
 0x136   : > { %v857_v28 = vmul.f32 0.16666667, %v832_v21  ;;  %v833_v30 = vmin.f32 %v808_v22, 6.0  ;;  %v759_v31 = vadd.f32 %v2044_v36, %v727_v23  ;;  %v728_v4 = vmul.f32 %v2039_v34, %v675_v27  ;;  %v1578_v33 = vpop.f32.mrb[39].mxu0  ;;  %1624 = vmatmul.mubr.msk.bf16.gmra.mrb[4].mxu1 %vm526_vm1, %v927_v25  ;;  %v886_v27 = vld [vmem:[%s2054_s24 + $0xa0] sm:$0xff] }
 0x137   : > { %1627 = vmatprep.mubr.msk.bf16.mxu1 %vm1773_vm0, %v1772_v1 }
 0x138   : > { %v858_v38 = vmul.f32 0.16666667, %v833_v30  ;;  %v784_v39 = vadd.f32 3.0, %v759_v31  ;;  %v760_v40 = vadd.f32 %v2044_v36, %v728_v4  ;;  %v907_v41 = vmul.f32 %v882_v35, %v857_v28  ;;  %v887_v28 = vld [vmem:[%s2054_s24 + $0xa8] sm:$0xff] }
 0x13a   : > { %v908_v42 = vmul.f32 %v883_v37, %v858_v38  ;;  %v809_v44 = vmax.f32 %v784_v39, 0.0  ;;  %v785_v45 = vadd.f32 3.0, %v760_v40 }
 0x13b   : > { %v680_v46 = vpop.f32.mrb[40].mxu0 }
 0x13c   : > { %v834_v47 = vmin.f32 %v809_v44, 6.0  ;;  %v810_v49 = vmax.f32 %v785_v45, 0.0  ;;  %v729_v50 = vmul.f32 %v2039_v34, %v680_v46  ;;  %v1581_v51 = vpop.f32.mrb[41].mxu0  ;;  %v928_v52 = vpack.c.bf16 %v908_v42, %v907_v41 }
 0x13d   : > { %v683_v53 = vpop.f32.mrb[42].mxu0 }
 0x13e   : > { %v859_v54 = vmul.f32 0.16666667, %v834_v47  ;;  %v835_v56 = vmin.f32 %v810_v49, 6.0  ;;  %v761_v59 = vadd.f32 %v2044_v36, %v729_v50  ;;  %v730_v60 = vmul.f32 %v2039_v34, %v683_v53  ;;  %v1582_v61 = vpop.f32.mrb[43].mxu0  ;;  %1628 = vmatmul.mubr.msk.bf16.gmra.mrb[8].mxu1 %vm526_vm1, %v928_v52  ;;  %v888_v52 = vld [vmem:[%s2054_s24 + $0xb0] sm:$0xff]  ;;  %v889_v53 = vld [vmem:[%s2054_s24 + $0xb8] sm:$0xff] }
 0x13f   : > { %1631 = vmatprep.mubr.msk.bf16.mxu1 %vm1773_vm0, %v1772_v1 }
 0x140   : > { %v860_v0 = vmul.f32 0.16666667, %v835_v56  ;;  %v786_v5 = vadd.f32 3.0, %v761_v59  ;;  %v762_v6 = vadd.f32 %v2044_v36, %v730_v60  ;;  %v909_v7 = vmul.f32 %v884_v62, %v859_v54 }
 0x142   : > { %v910_v8 = vmul.f32 %v885_v63, %v860_v0  ;;  %v811_v9 = vmax.f32 %v786_v5, 0.0  ;;  %v787_v10 = vadd.f32 3.0, %v762_v6  ;;  %v890_v63 = vld [vmem:[%s2054_s24 + $0xc0] sm:$0xf] }
 0x143   : > { %v688_v12 = vpop.f32.mrb[44].mxu0 }
 0x144   : > { %v836_v13 = vmin.f32 %v811_v9, 6.0  ;;  %v812_v14 = vmax.f32 %v787_v10, 0.0  ;;  %v731_v16 = vmul.f32 %v2039_v34, %v688_v12  ;;  %v1585_v17 = vpop.f32.mrb[45].mxu0  ;;  %v929_v18 = vpack.c.bf16 %v910_v8, %v909_v7 }
 0x145   : > { %v691_v20 = vpop.f32.mrb[46].mxu0 }
 0x146   : > { %v861_v21 = vmul.f32 0.16666667, %v836_v13  ;;  %v837_v22 = vmin.f32 %v812_v14, 6.0  ;;  %v763_v23 = vadd.f32 %v2044_v36, %v731_v16  ;;  %v732_v24 = vmul.f32 %v2039_v34, %v691_v20  ;;  %v1586_v25 = vpop.f32.mrb[47].mxu0  ;;  %1632 = vmatmul.mubr.msk.bf16.gmra.mrb[12].mxu1 %vm526_vm1, %v929_v18  ;;  %v2228_v20 = vld [vmem:[%s2354_s9] ss:$0 sm:$0xff] }
 0x147   : > { %1635 = vmatprep.mubr.msk.bf16.mxu1 %vm1773_vm0, %v1772_v1 }
 0x148   : > { %v862_v30 = vmul.f32 0.16666667, %v837_v22  ;;  %v788_v31 = vadd.f32 3.0, %v763_v23  ;;  %v764_v4 = vadd.f32 %v2044_v36, %v732_v24  ;;  %v911_v33 = vmul.f32 %v886_v27, %v861_v21  ;;  %v2233_v23 = vld [vmem:[%s2355_s10] ss:$0 sm:$0xff] }
 0x14a   : > { %v912_v35 = vmul.f32 %v887_v28, %v862_v30  ;;  %v813_v37 = vmax.f32 %v788_v31, 0.0  ;;  %v789_v38 = vadd.f32 3.0, %v764_v4 }
 0x14b   : > { %v696_v39 = vpop.f32.mrb[48].mxu0 }
 0x14c   : > { %v838_v40 = vmin.f32 %v813_v37, 6.0  ;;  %v814_v41 = vmax.f32 %v789_v38, 0.0  ;;  %v733_v42 = vmul.f32 %v2039_v34, %v696_v39  ;;  %v1589_v44 = vpop.f32.mrb[49].mxu0  ;;  %v930_v45 = vpack.c.bf16 %v912_v35, %v911_v33 }
 0x14d   : > { %v699_v46 = vpop.f32.mrb[50].mxu0 }
 0x14e   : > { %v863_v47 = vmul.f32 0.16666667, %v838_v40  ;;  %v839_v49 = vmin.f32 %v814_v41, 6.0  ;;  %v765_v50 = vadd.f32 %v2044_v36, %v733_v42  ;;  %v1590_v51 = vpop.f32.mrb[51].mxu0  ;;  %1636 = vmatmul.mubr.msk.bf16.gmra.mrb[16].mxu1 %vm526_vm1, %v930_v45 }
 0x14f   : > { %1639 = vmatprep.mubr.msk.bf16.mxu1 %vm1773_vm0, %v1772_v1 }
 0x150   : > { %v864_v54 = vmul.f32 0.16666667, %v839_v49  ;;  %v790_v56 = vadd.f32 3.0, %v765_v50  ;;  %v913_v59 = vmul.f32 %v888_v52, %v863_v47 }
 0x152   : > { %v914_v34 = vmul.f32 %v889_v53, %v864_v54  ;;  %v815_v60 = vmax.f32 %v790_v56, 0.0 }
 0x154   : > { %v840_v61 = vmin.f32 %v815_v60, 6.0  ;;  %v931_v62 = vpack.c.bf16 %v914_v34, %v913_v59 }
 0x156   : > { %v865_v0 = vmul.f32 0.16666667, %v840_v61  ;;  %1640 = vmatmul.mubr.msk.bf16.gmra.mrb[20].mxu1 %vm526_vm1, %v931_v62 }
 0x157   : > { %1643 = vmatprep.mubr.msk.bf16.mxu1 %vm1773_vm0, %v1772_v1 }
 0x158   : > { %v915_v36 = vmul.f32 %v890_v63, %v865_v0 }
 0x15a   : > { %v932_v5 = vpack.c.bf16 %v915_v36, %v915_v36 }
 0x15e   : > { %1644 = vmatmul.mubr.msk.bf16.gmra.mrb[24].mxu1 %vm526_vm1, %v932_v5 }
 0x15f   : > { %1651 = vmatprep.mubr.msk.bf16.mxu1 %vm1773_vm0, %v1772_v1 }
 0x166   : > { %1652 = vmatmul.mubr.msk.bf16.vlgmr.msra.gmra.mrb[28].mxu1 %vm526_vm1, %v1884_v15 }
 0x167   : > { %1655 = vmatprep.mubr.msk.bf16.mxu1 %vm1773_vm0, %v1772_v1 }
 0x16e   : > { %1656 = vmatmul.mubr.msk.bf16.gmra.mrb[32].mxu1 %vm526_vm1, %v1903_v29 }
 0x16f   : > { %1659 = vmatprep.mubr.msk.bf16.mxu1 %vm1773_vm0, %v1772_v1 }
 0x176   : > { %1660 = vmatmul.mubr.msk.bf16.gmra.mrb[36].mxu1 %vm526_vm1, %v1941_v58 }
 0x177   : > { %1663 = vmatprep.mubr.msk.bf16.mxu1 %vm1773_vm0, %v1772_v1 }
 0x17e   : > { %1664 = vmatmul.mubr.msk.bf16.gmra.mrb[40].mxu1 %vm526_vm1, %v1953_v2 }
 0x17f   : > { %1667 = vmatprep.mubr.msk.bf16.mxu1 %vm1773_vm0, %v1772_v1 }
 0x186   : > { %1668 = vmatmul.mubr.msk.bf16.gmra.mrb[44].mxu1 %vm526_vm1, %v1965_v11 }
 0x187   : > { %1671 = vmatprep.mubr.msk.bf16.mxu1 %vm1773_vm0, %v1772_v1 }
 0x18e   : > { %1672 = vmatmul.mubr.msk.bf16.gmra.mrb[48].mxu1 %vm526_vm1, %v1977_v19 }
 0x18f   : > { %1675 = vmatprep.mubr.msk.bf16.mxu1 %vm1773_vm0, %v1772_v1 }
 0x196   : > { %1676 = vmatmul.mubr.msk.bf16.gmra.mrb[0].mxu1 %vm526_vm1, %v1989_v26 }
 0x197   : > { %1679 = vmatprep.mubr.msk.bf16.mxu1 %vm1773_vm0, %v1772_v1 }
 0x19e   : > { %1680 = vmatmul.mubr.msk.bf16.gmra.mrb[4].mxu1 %vm526_vm1, %v1999_v32 }
 0x19f   : > { %1683 = vmatprep.mubr.msk.bf16.mxu1 %vm1773_vm0, %v1772_v1 }
 0x1a6   : > { %1684 = vmatmul.mubr.msk.bf16.gmra.mrb[8].mxu1 %vm526_vm1, %v1918_v43 }
 0x1a7   : > { %1687 = vmatprep.mubr.msk.bf16.mxu1 %vm1773_vm0, %v1772_v1 }
 0x1ae   : > { %1688 = vmatmul.mubr.msk.bf16.gmra.mrb[12].mxu1 %vm526_vm1, %v1926_v48 }
 0x1af   : > { %1691 = vmatprep.mubr.msk.bf16.mxu1 %vm1773_vm0, %v1772_v1 }
 0x1b6   : > { %1692 = vmatmul.mubr.msk.bf16.gmra.mrb[16].mxu1 %vm526_vm1, %v1936_v55 }
 0x1b7   : > { %1695 = vmatprep.mubr.msk.bf16.mxu1 %vm1773_vm0, %v1772_v1 }
 0x1be   : > { %1696 = vmatmul.mubr.msk.bf16.gmra.mrb[20].mxu1 %vm526_vm1, %v1939_v57 }
 0x1bf   : > { %1699 = vmatprep.mubr.msk.bf16.mxu1 %vm1773_vm0, %v1772_v1 }
 0x1c6   : > { %1700 = vmatmul.mubr.msk.bf16.gmra.mrb[24].mxu1 %vm526_vm1, %v2021_v3 }
 0x1d1   : > { %v1022_v15 = vpop.f32.mrb[52].mxu0 }
 0x1d2   : > { %v1597_v29 = vpop.f32.mrb[53].mxu0 }
 0x1d3   : > { %v1025_v43 = vpop.f32.mrb[54].mxu0 }
 0x1d4   : > { %v1598_v48 = vpop.f32.mrb[55].mxu0 }
 0x1d9   : > { %v1030_v58 = vpop.f32.mrb[56].mxu0 }
 0x1da   : > { %v1601_v2 = vpop.f32.mrb[57].mxu0 }
 0x1db   : > { %v1033_v11 = vpop.f32.mrb[58].mxu0 }
 0x1dc   : > { %v1602_v55 = vpop.f32.mrb[59].mxu0 }
 0x1e1   : > { %v1038_v19 = vpop.f32.mrb[60].mxu0 }
 0x1e2   : > { %v1605_v26 = vpop.f32.mrb[61].mxu0 }
 0x1e3   : > { %v1041_v32 = vpop.f32.mrb[62].mxu0 }
 0x1e4   : > { %v1606_v6 = vpop.f32.mrb[63].mxu0 }
 0x1e9   : > { %v1046_v7 = vpop.f32.mrb[64].mxu0 }
 0x1ea   : > { %v1609_v57 = vpop.f32.mrb[65].mxu0 }
 0x1eb   : > { %v1049_v8 = vpop.f32.mrb[66].mxu0 }
 0x1ec   : > { %v1610_v9 = vpop.f32.mrb[67].mxu0 }
 0x1f1   : > { %v1054_v1 = vpop.f32.mrb[68].mxu0 }
 0x1f2   : > { %v1613_v10 = vpop.f32.mrb[69].mxu0 }
 0x1f3   : > { %v1057_v3 = vpop.f32.mrb[70].mxu0 }
 0x1f4   : > { %v1614_v12 = vpop.f32.mrb[71].mxu0 }
 0x1f9   : > { %v2221_v13 = vpop.f32.mrb[72].mxu0 }
 0x1fa   : > { %v1617_v14 = vpop.f32.mrb[73].mxu0 }
 0x1fb   : > { %v2223_v16 = vpop.f32.mrb[74].mxu0 }
 0x1fc   : > { %v1618_v17 = vpop.f32.mrb[75].mxu0 }
 0x239   : > { %v1170_v18 = vpop.f32.mrb[28].mxu1 }
 0x23a   : > { %v1171_v21 = vadd.f32 %v1170_v18, %v1022_v15  ;;  %v1653_v22 = vpop.f32.mrb[29].mxu1 }
 0x23b   : > { %v1173_v24 = vpop.f32.mrb[30].mxu1 }
 0x23c   : > { %v1279_v25 = vmul.f32 %v2228_v20, %v1171_v21  ;;  %v1174_v27 = vadd.f32 %v1173_v24, %v1025_v43  ;;  %v1654_v28 = vpop.f32.mrb[31].mxu1 }
 0x23e   : > { %v1311_v30 = vadd.f32 %v2233_v23, %v1279_v25  ;;  %v1280_v31 = vmul.f32 %v2228_v20, %v1174_v27 }
 0x240   : > { %1336 = vst.msk [vmem:[%s2240_s16] sm:$0xff] %vm526_vm1, %v1311_v30  ;;  %v1312_v4 = vadd.f32 %v2233_v23, %v1280_v31 }
 0x241   : > { %v1178_v33 = vpop.f32.mrb[32].mxu1 }
 0x242   : > { %1337 = vst.msk [vmem:[%s2240_s16 + $0x8] sm:$0xff] %vm526_vm1, %v1312_v4  ;;  %v1179_v35 = vadd.f32 %v1178_v33, %v1030_v58  ;;  %v1657_v37 = vpop.f32.mrb[33].mxu1 }
 0x243   : > { %v1181_v38 = vpop.f32.mrb[34].mxu1 }
 0x244   : > { %v1281_v39 = vmul.f32 %v2228_v20, %v1179_v35  ;;  %v1182_v40 = vadd.f32 %v1181_v38, %v1033_v11  ;;  %v1658_v41 = vpop.f32.mrb[35].mxu1 }
 0x246   : > { %v1313_v42 = vadd.f32 %v2233_v23, %v1281_v39  ;;  %v1282_v44 = vmul.f32 %v2228_v20, %v1182_v40 }
 0x248   : > { %1338 = vst.msk [vmem:[%s2240_s16 + $0x10] sm:$0xff] %vm526_vm1, %v1313_v42  ;;  %v1314_v45 = vadd.f32 %v2233_v23, %v1282_v44 }
 0x249   : > { %v1186_v46 = vpop.f32.mrb[36].mxu1 }
 0x24a   : > { %1339 = vst.msk [vmem:[%s2240_s16 + $0x18] sm:$0xff] %vm526_vm1, %v1314_v45  ;;  %v1187_v47 = vadd.f32 %v1186_v46, %v1038_v19  ;;  %v1661_v49 = vpop.f32.mrb[37].mxu1 }
 0x24b   : > { %v1189_v50 = vpop.f32.mrb[38].mxu1 }
 0x24c   : > { %v1283_v51 = vmul.f32 %v2228_v20, %v1187_v47  ;;  %v1190_v52 = vadd.f32 %v1189_v50, %v1041_v32  ;;  %v1662_v53 = vpop.f32.mrb[39].mxu1 }
 0x24e   : > { %v1315_v54 = vadd.f32 %v2233_v23, %v1283_v51  ;;  %v1284_v56 = vmul.f32 %v2228_v20, %v1190_v52 }
 0x250   : > { %1340 = vst.msk [vmem:[%s2240_s16 + $0x20] sm:$0xff] %vm526_vm1, %v1315_v54  ;;  %v1316_v59 = vadd.f32 %v2233_v23, %v1284_v56 }
 0x251   : > { %v1194_v34 = vpop.f32.mrb[40].mxu1 }
 0x252   : > { %1341 = vst.msk [vmem:[%s2240_s16 + $0x28] sm:$0xff] %vm526_vm1, %v1316_v59  ;;  %v1195_v60 = vadd.f32 %v1194_v34, %v1046_v7  ;;  %v1665_v61 = vpop.f32.mrb[41].mxu1 }
 0x253   : > { %v1197_v62 = vpop.f32.mrb[42].mxu1 }
 0x254   : > { %v1285_v63 = vmul.f32 %v2228_v20, %v1195_v60  ;;  %v1198_v0 = vadd.f32 %v1197_v62, %v1049_v8  ;;  %v1666_v36 = vpop.f32.mrb[43].mxu1 }
 0x256   : > { %v1317_v5 = vadd.f32 %v2233_v23, %v1285_v63  ;;  %v1286_v15 = vmul.f32 %v2228_v20, %v1198_v0 }
 0x258   : > { %1342 = vst.msk [vmem:[%s2240_s16 + $0x30] sm:$0xff] %vm526_vm1, %v1317_v5  ;;  %v1318_v29 = vadd.f32 %v2233_v23, %v1286_v15 }
 0x259   : > { %v1202_v43 = vpop.f32.mrb[44].mxu1 }
 0x25a   : > { %1343 = vst.msk [vmem:[%s2240_s16 + $0x38] sm:$0xff] %vm526_vm1, %v1318_v29  ;;  %v1203_v48 = vadd.f32 %v1202_v43, %v1054_v1  ;;  %v1669_v58 = vpop.f32.mrb[45].mxu1 }
 0x25b   : > { %v1205_v2 = vpop.f32.mrb[46].mxu1 }
 0x25c   : > { %v1287_v11 = vmul.f32 %v2228_v20, %v1203_v48  ;;  %v1206_v55 = vadd.f32 %v1205_v2, %v1057_v3  ;;  %v1670_v19 = vpop.f32.mrb[47].mxu1 }
 0x25e   : > { %v1319_v26 = vadd.f32 %v2233_v23, %v1287_v11  ;;  %v1288_v32 = vmul.f32 %v2228_v20, %v1206_v55 }
 0x260   : > { %1344 = vst.msk [vmem:[%s2240_s16 + $0x40] sm:$0xff] %vm526_vm1, %v1319_v26  ;;  %v1320_v6 = vadd.f32 %v2233_v23, %v1288_v32 }
 0x261   : > { %v1210_v7 = vpop.f32.mrb[48].mxu1 }
 0x262   : > { %1345 = vst.msk [vmem:[%s2240_s16 + $0x48] sm:$0xff] %vm526_vm1, %v1320_v6  ;;  %v1211_v57 = vadd.f32 %v1210_v7, %v2221_v13  ;;  %v1673_v8 = vpop.f32.mrb[49].mxu1 }
 0x263   : > { %v1213_v9 = vpop.f32.mrb[50].mxu1 }
 0x264   : > { %v1289_v1 = vmul.f32 %v2228_v20, %v1211_v57  ;;  %v1214_v10 = vadd.f32 %v1213_v9, %v2223_v16  ;;  %v1674_v3 = vpop.f32.mrb[51].mxu1 }
 0x266   : > { %v1321_v12 = vadd.f32 %v2233_v23, %v1289_v1  ;;  %v1290_v14 = vmul.f32 %v2228_v20, %v1214_v10 }
 0x268   : > { %1346 = vst.msk [vmem:[%s2240_s16 + $0x50] sm:$0xff] %vm526_vm1, %v1321_v12  ;;  %v1322_v17 = vadd.f32 %v2233_v23, %v1290_v14 }
 0x269   : > { %v1218_v18 = vpop.f32.mrb[0].mxu1 }
 0x26a   : > { %1347 = vst.msk [vmem:[%s2240_s16 + $0x58] sm:$0xff] %vm526_vm1, %v1322_v17  ;;  %v1291_v13 = vmul.f32 %v2228_v20, %v1218_v18  ;;  %v1677_v21 = vpop.f32.mrb[1].mxu1 }
 0x26b   : > { %v1221_v22 = vpop.f32.mrb[2].mxu1 }
 0x26c   : > { %v1323_v16 = vadd.f32 %v2233_v23, %v1291_v13  ;;  %v1292_v24 = vmul.f32 %v2228_v20, %v1221_v22  ;;  %v1678_v25 = vpop.f32.mrb[3].mxu1 }
 0x26e   : > { %1348 = vst.msk [vmem:[%s2240_s16 + $0x60] sm:$0xff] %vm526_vm1, %v1323_v16  ;;  %v1324_v27 = vadd.f32 %v2233_v23, %v1292_v24 }
 0x270   : > { %1349 = vst.msk [vmem:[%s2240_s16 + $0x68] sm:$0xff] %vm526_vm1, %v1324_v27 }
 0x271   : > { %v1226_v28 = vpop.f32.mrb[4].mxu1 }
 0x272   : > { %v1293_v30 = vmul.f32 %v2228_v20, %v1226_v28  ;;  %v1681_v31 = vpop.f32.mrb[5].mxu1 }
 0x273   : > { %v1229_v4 = vpop.f32.mrb[6].mxu1 }
 0x274   : > { %v1325_v33 = vadd.f32 %v2233_v23, %v1293_v30  ;;  %v1294_v35 = vmul.f32 %v2228_v20, %v1229_v4  ;;  %v1682_v37 = vpop.f32.mrb[7].mxu1 }
 0x276   : > { %1350 = vst.msk [vmem:[%s2240_s16 + $0x70] sm:$0xff] %vm526_vm1, %v1325_v33  ;;  %v1326_v38 = vadd.f32 %v2233_v23, %v1294_v35 }
 0x278   : > { %1351 = vst.msk [vmem:[%s2240_s16 + $0x78] sm:$0xff] %vm526_vm1, %v1326_v38 }
 0x279   : > { %v1234_v39 = vpop.f32.mrb[8].mxu1 }
 0x27a   : > { %v1295_v40 = vmul.f32 %v2228_v20, %v1234_v39  ;;  %v1685_v41 = vpop.f32.mrb[9].mxu1 }
 0x27b   : > { %v1237_v42 = vpop.f32.mrb[10].mxu1 }
 0x27c   : > { %v1327_v44 = vadd.f32 %v2233_v23, %v1295_v40  ;;  %v1296_v45 = vmul.f32 %v2228_v20, %v1237_v42  ;;  %v1686_v46 = vpop.f32.mrb[11].mxu1 }
 0x27e   : > { %1352 = vst.msk [vmem:[%s2240_s16 + $0x80] sm:$0xff] %vm526_vm1, %v1327_v44  ;;  %v1328_v47 = vadd.f32 %v2233_v23, %v1296_v45 }
 0x280   : > { %1353 = vst.msk [vmem:[%s2240_s16 + $0x88] sm:$0xff] %vm526_vm1, %v1328_v47 }
 0x281   : > { %v1242_v49 = vpop.f32.mrb[12].mxu1 }
 0x282   : > { %v1297_v50 = vmul.f32 %v2228_v20, %v1242_v49  ;;  %v1689_v51 = vpop.f32.mrb[13].mxu1 }
 0x283   : > { %v1245_v52 = vpop.f32.mrb[14].mxu1 }
 0x284   : > { %v1329_v53 = vadd.f32 %v2233_v23, %v1297_v50  ;;  %v1298_v54 = vmul.f32 %v2228_v20, %v1245_v52  ;;  %v1690_v56 = vpop.f32.mrb[15].mxu1 }
 0x286   : > { %1354 = vst.msk [vmem:[%s2240_s16 + $0x90] sm:$0xff] %vm526_vm1, %v1329_v53  ;;  %v1330_v59 = vadd.f32 %v2233_v23, %v1298_v54 }
 0x288   : > { %1355 = vst.msk [vmem:[%s2240_s16 + $0x98] sm:$0xff] %vm526_vm1, %v1330_v59 }
 0x289   : > { %v1250_v34 = vpop.f32.mrb[16].mxu1 }
 0x28a   : > { %v1299_v60 = vmul.f32 %v2228_v20, %v1250_v34  ;;  %v1693_v61 = vpop.f32.mrb[17].mxu1 }
 0x28b   : > { %v1253_v62 = vpop.f32.mrb[18].mxu1 }
 0x28c   : > { %v1331_v63 = vadd.f32 %v2233_v23, %v1299_v60  ;;  %v1300_v0 = vmul.f32 %v2228_v20, %v1253_v62  ;;  %v1694_v36 = vpop.f32.mrb[19].mxu1 }
 0x28e   : > { %1356 = vst.msk [vmem:[%s2240_s16 + $0xa0] sm:$0xff] %vm526_vm1, %v1331_v63  ;;  %v1332_v5 = vadd.f32 %v2233_v23, %v1300_v0 }
 0x290   : > { %1357 = vst.msk [vmem:[%s2240_s16 + $0xa8] sm:$0xff] %vm526_vm1, %v1332_v5 }
 0x291   : > { %v1258_v15 = vpop.f32.mrb[20].mxu1 }
 0x292   : > { %v1301_v29 = vmul.f32 %v2228_v20, %v1258_v15  ;;  %v1697_v43 = vpop.f32.mrb[21].mxu1 }
 0x293   : > { %v1261_v48 = vpop.f32.mrb[22].mxu1 }
 0x294   : > { %v1333_v58 = vadd.f32 %v2233_v23, %v1301_v29  ;;  %v1302_v2 = vmul.f32 %v2228_v20, %v1261_v48  ;;  %v1698_v11 = vpop.f32.mrb[23].mxu1 }
 0x296   : > { %1358 = vst.msk [vmem:[%s2240_s16 + $0xb0] sm:$0xff] %vm526_vm1, %v1333_v58  ;;  %v1334_v55 = vadd.f32 %v2233_v23, %v1302_v2 }
 0x298   : > { %1359 = vst.msk [vmem:[%s2240_s16 + $0xb8] sm:$0xff] %vm526_vm1, %v1334_v55 }
 0x299   : > { %v1266_v19 = vpop.f32.mrb[24].mxu1 }
 0x29a   : > { %v1303_v26 = vmul.f32 %v2228_v20, %v1266_v19  ;;  %v1701_v32 = vpop.f32.mrb[25].mxu1 }
 0x29b   : > { %v1269_v6 = vpop.f32.mrb[26].mxu1 }
 0x29c   : > { %v1335_v7 = vadd.f32 %v2233_v23, %v1303_v26  ;;  %v1702_v57 = vpop.f32.mrb[27].mxu1 }
 0x29e   : > { %1361 = vst.msk [vmem:[%s2240_s16 + $0xc0] sm:$0xf] %vm1360_vm2, %v1335_v7 }
 0x29f PF: > { %s21_s17 = sadd.s32 1, %s1770_s17  }
 0x2a0   : > { %p18_p4 = scmp.ge.s32.totalorder %s21_s17, 4  }
 0x2a2   :  { %20 = sbr.rel (!%p18_p4) target bundleno = 1 (0x1), region = 97 }

</bundles_post_ra>
